<compile_context>
chip_gen: v7x
topology: tpu7x:2x2x1
jax: 0.10.0
libtpu: 0.0.40
codegen_flags: <defaults>
</compile_context>

<pallas_src>
import math
from functools import partial

import numpy as np
import jax
import jax.numpy as jnp
from jax.experimental import pallas as pl
from jax.experimental.pallas import tpu as pltpu

# ----------------------------------------------------------------------------
# Small deterministic configuration
# ----------------------------------------------------------------------------
LMAX = 2
MUL = 2
LAYERS = 3
MAX_RADIUS = 1.0
NUMBER_OF_BASIS = 3
NB_PAD = 8               # Gaussian-basis dim zero-padded to 8 lanes
RADIAL_LAYERS = 3
RADIAL_H = 100           # e3nn hidden width
RADIAL_H_PAD = 128       # zero-padded to a full lane tile (identical function)
RES_BETA = 8             # S2 grid: 8 Gauss-Legendre x 16 alpha = 128 points (lane aligned)
RES_ALPHA = 16

Z = 2                    # batch
N = 8                    # points
SH_DIM = (LMAX + 1) ** 2  # 9
SH_PAD = 16              # padded spherical-harmonic axis (zeros in cols 9..15)
F_PAD = 8                # padded width of the scalar input / output irreps
DIM_OUT = 1              # dim(Rs_out)


# ----------------------------------------------------------------------------
# Real spherical harmonics ('component' normalization), hard coded up to l = 2.
# ----------------------------------------------------------------------------
def real_sh_components(x, y, z, xp):
    out = [xp.ones_like(x)]                                    # l = 0
    if LMAX >= 1:
        s3 = math.sqrt(3.0)
        out += [s3 * y, s3 * z, s3 * x]                        # l = 1
    if LMAX >= 2:
        s15, s5 = math.sqrt(15.0), math.sqrt(5.0)
        out += [s15 * x * y,
                s15 * y * z,
                0.5 * s5 * (3.0 * z * z - 1.0),
                s15 * x * z,
                0.5 * s15 * (x * x - y * y)]                   # l = 2
    return xp.stack(out, axis=-1)


def _sphere_quadrature(n_beta, n_alpha):
    """Gauss-Legendre x uniform-alpha sphere quadrature (exact for band-limited fns)."""
    ct, wt = np.polynomial.legendre.leggauss(n_beta)
    alpha = np.arange(n_alpha) * (2.0 * np.pi / n_alpha)
    ct_g, a_g = np.meshgrid(ct, alpha, indexing="ij")
    st_g = np.sqrt(np.maximum(0.0, 1.0 - ct_g ** 2))
    x = st_g * np.cos(a_g)
    y = st_g * np.sin(a_g)
    z = ct_g
    w = np.broadcast_to(wt[:, None], ct_g.shape) * (2.0 * np.pi / n_alpha)
    return x.ravel(), y.ravel(), z.ravel(), w.ravel()


def selection_rule_in_out_sh(l_in, p_in, l_out, p_out, lmax):
    return [lf for lf in range(abs(l_in - l_out), min(l_in + l_out, lmax) + 1)
            if p_out == p_in * (-1) ** lf]


def build_real_cg(lmax):
    """Real Clebsch-Gordan / Wigner-3j coefficients (Frobenius-normalized Gaunt tensors)."""
    x, y, z, w = _sphere_quadrature(2 * lmax + 4, 4 * lmax + 4)
    Y = real_sh_components(x, y, z, np) / math.sqrt(4.0 * math.pi)   # orthonormal SH
    offs = [l * l for l in range(lmax + 2)]
    cg = {}
    for lo in range(lmax + 1):
        for li in range(lmax + 1):
            for lf in range(abs(lo - li), min(lo + li, lmax) + 1):
                if (lo + li + lf) % 2 != 0:
                    continue
                Yo = Y[:, offs[lo]:offs[lo + 1]]
                Yi = Y[:, offs[li]:offs[li + 1]]
                Yf = Y[:, offs[lf]:offs[lf + 1]]
                G = np.einsum("g,ga,gb,gc->abc", w, Yo, Yi, Yf)
                cg[(lo, li, lf)] = (G / np.linalg.norm(G)).astype(np.float32)
    return cg


def expand_irreps(Rs):
    out = []
    for (mul, l, p) in Rs:
        out += [(l, p)] * mul
    return out


def irreps_dim(irreps):
    return sum(2 * l + 1 for l, _ in irreps)


def build_s2grid(lmax, res_beta, res_alpha):
    # TODO(synk): e3nn's s2grid is a 60x60 equi-angular grid with FFT quadrature weights;
    # here a lane-aligned 8x16 Gauss-Legendre grid is used (exact round-trip for lmax=2).
    x, y, z, w = _sphere_quadrature(res_beta, res_alpha)
    Ysh = real_sh_components(x, y, z, np)                      # [G, sh], component norm
    sh = (lmax + 1) ** 2
    to_grid = (Ysh.T / math.sqrt(sh)).astype(np.float32)       # [sh, G]
    from_grid = (w[:, None] * Ysh * (math.sqrt(sh) / (4.0 * math.pi))).astype(np.float32)
    return to_grid, from_grid


def build_layer_tables(irreps_in, irreps_out, lmax, cg, din_pad, do_pad):
    """Per-layer constants for the fused formulation (all lane-friendly, 0-padded)."""
    din = irreps_dim(irreps_in)
    dout = irreps_dim(irreps_out)
    assert din <= din_pad and dout <= do_pad
    offs_in = np.cumsum([0] + [2 * l + 1 for l, _ in irreps_in])
    offs_out = np.cumsum([0] + [2 * l + 1 for l, _ in irreps_out])
    sh_offs = [l * l for l in range(lmax + 2)]

    paths = []
    for io, (lo, po) in enumerate(irreps_out):
        num_summed = sum(len(selection_rule_in_out_sh(li, pi, lo, po, lmax))
                         for (li, pi) in irreps_in)
        # TODO(synk): e3nn's exact norm_coef / radii==0 self-interaction constants are
        # approximated here (constants are absorbed into the random radial weights).
        norm = math.sqrt(2 * lo + 1) / math.sqrt(max(num_summed, 1))
        for ii, (li, pi) in enumerate(irreps_in):
            for lf in selection_rule_in_out_sh(li, pi, lo, po, lmax):
                paths.append((io, ii, lf, norm))
    nw = len(paths)
    nw_pad = ((nw + 7) // 8) * 8              # SH_PAD * nw_pad is a multiple of 128
    sw = SH_PAD * nw_pad
    dd = do_pad * din_pad

    # B3[(s, w), (i, j)] : CG / norm tensor, fused rows (s major, w minor), fused cols (i, j)
    b3 = np.zeros((sw, dd), np.float32)
    for wi, (io, ii, lf, norm) in enumerate(paths):
        lo, _ = irreps_out[io]
        li, _ = irreps_in[ii]
        C = cg[(lo, li, lf)]                  # [2lo+1, 2li+1, 2lf+1]
        for mo in range(2 * lo + 1):
            for mi in range(2 * li + 1):
                for mf in range(2 * lf + 1):
                    row = (sh_offs[lf] + mf) * nw_pad + wi
                    col = (offs_out[io] + mo) * din_pad + (offs_in[ii] + mi)
                    b3[row, col] = norm * C[mo, mi, mf]

    # one-hot expansion maps (MXU-side broadcast; avoids any in-kernel reshape/repeat)
    es = np.zeros((SH_PAD, sw), np.float32)   # ysh[e,s] -> P column (s,w)
    ew = np.zeros((nw_pad, sw), np.float32)   # rad[e,w] -> P column (s,w)
    for s in range(SH_PAD):
        for w in range(nw_pad):
            es[s, s * nw_pad + w] = 1.0
            ew[w, s * nw_pad + w] = 1.0
    et = np.zeros((din_pad, dd), np.float32)  # featE[e,j] -> column (i,j)
    sm = np.zeros((dd, do_pad), np.float32)   # segment-sum over j -> output channel i
    for i in range(do_pad):
        for j in range(din_pad):
            et[j, i * din_pad + j] = 1.0
            sm[i * din_pad + j, i] = 1.0
    return nw, nw_pad, b3, es, ew, et, sm


# ----------------------------------------------------------------------------
# Pallas kernel: the whole forward pass, fused; one grid step per batch element.
# ----------------------------------------------------------------------------
def _network_kernel(emb_ref, ysh_ref, feat_ref, gm_ref, am_ref, tog_ref, fromg_ref,
                    *lrefs_and_out, n_layers):
    out_ref = lrefs_and_out[-1]
    lrefs = lrefs_and_out[:-1]                    # 9 refs per layer

    f32 = jnp.float32
    bf = lambda t: t.astype(jnp.bfloat16)

    def sigmoid(x):
        # EUP exp + approximate reciprocal; clamp guards exp overflow (inf -> NaN).
        return pl.reciprocal(1.0 + jnp.exp(jnp.minimum(-x, 80.0)), approx=True)

    emb = emb_ref[0]                              # [E, NB_PAD]  bf16  (E = N*N edges of this z)
    ysh = ysh_ref[0]                              # [E, SH_PAD]  bf16
    feat = feat_ref[0]                            # [N, F_PAD]   bf16
    gm = gm_ref[...]                              # [E, N]  0/1 gather: edge -> source node b
    am = am_ref[...]                              # [N, E]  scatter-add edge -> output node a (x 1/sqrt(N))

    for li in range(n_layers):
        w0, w1, w2, w3, es, ew, b3, et, sm = lrefs[9 * li: 9 * li + 9]

        # (1) radial MLP (GaussianRadialModel): 3 swish hidden layers + linear head
        x = emb
        for wr in (w0, w1, w2):
            h = jnp.dot(x, wr[...], preferred_element_type=f32)
            x = bf(h * sigmoid(h))                                       # swish
        rad = jnp.dot(x, w3[...], preferred_element_type=f32)            # [E, NW]

        # (2) per-edge path coefficients on the fused, 128-aligned (s, w) axis
        p = (jnp.dot(ysh, es[...], preferred_element_type=f32) *
             jnp.dot(bf(rad), ew[...], preferred_element_type=f32))      # [E, SW]

        # (3) per-edge kernel K(r)[i, j], flattened over (i, j)
        kmat = jnp.dot(bf(p), b3[...], preferred_element_type=f32)       # [E, do*di]

        # (4) gather source features onto edges, tile over output channels,
        #     contract j via the one-hot segment-sum matrix, aggregate neighbours via am
        fe = jnp.dot(gm, feat, preferred_element_type=f32)               # [E, di]
        frep = jnp.dot(bf(fe), et[...], preferred_element_type=f32)      # [E, do*di]
        m = jnp.dot(bf(kmat * frep), sm[...], preferred_element_type=f32)  # [E, do]
        o = jnp.dot(am, bf(m), preferred_element_type=f32)               # [N, do]

        # (5) S2Activation (all but the final convolution): block-diagonal (over mul copies)
        #     to-grid matmul -> sigmoid -> from-grid matmul.
        if li < n_layers - 1:
            g = jnp.dot(bf(o), tog_ref[...], preferred_element_type=f32)
            o = jnp.dot(bf(sigmoid(g)), fromg_ref[...], preferred_element_type=f32)
            feat = bf(o)
        else:
            out_ref[0] = o


def _make_spec(arr, per_z):
    nd = arr.ndim
    if per_z:
        blk = (1,) + tuple(arr.shape[1:])
        return pl.BlockSpec(blk, lambda zz, _n=nd: (zz,) + (0,) * (_n - 1))
    return pl.BlockSpec(tuple(arr.shape), lambda zz, _n=nd: (0,) * _n)


def s2_conv_network_forward(params, features, geometry):
    z, n, _ = geometry.shape
    assert n == params["A"].shape[0]
    e = n * n

    # --- geometry-derived, layer-independent edge data (tiny XLA glue, once per forward) ---
    # edge order (z, a, b):  rel[z, a, b] = r_b - r_a  (a = output point, b = neighbour)
    rel = (geometry[:, None, :, :] - geometry[:, :, None, :]).reshape(z, e, 3)
    radii = jnp.sqrt(jnp.sum(rel * rel, axis=-1))                         # [z, e]
    unit = rel / jnp.maximum(radii, 1e-12)[..., None]
    ysh = real_sh_components(unit[..., 0], unit[..., 1], unit[..., 2], jnp)   # [z, e, 9]
    zero = (radii < 1e-10)[..., None]
    ysh = jnp.where(zero & (jnp.arange(SH_DIM) > 0), 0.0, ysh)            # r = 0 -> only l = 0
    ysh = jnp.pad(ysh, ((0, 0), (0, 0), (0, SH_PAD - SH_DIM))).astype(jnp.bfloat16)

    centers = jnp.linspace(0.0, MAX_RADIUS, NUMBER_OF_BASIS)
    step = centers[1] - centers[0]
    emb = jnp.exp(-(((radii[..., None] - centers) / step) ** 2)) / 1.423085244900308
    emb = jnp.pad(emb, ((0, 0), (0, 0), (0, NB_PAD - NUMBER_OF_BASIS))).astype(jnp.bfloat16)

    feat0 = jnp.pad(features, ((0, 0), (0, 0), (0, F_PAD - features.shape[-1])))
    feat0 = feat0.astype(jnp.bfloat16)

    # --- one fused pallas_call for all layers; grid over batch (parallel across v7x TCs) ---
    args = [emb, ysh, feat0, params["G"], params["A"], params["tog"], params["fromg"]]
    per_z = [True, True, True, False, False, False, False]
    for layer in params["layers"]:
        for k in ("w0", "w1", "w2", "w3", "Es", "Ew", "B3", "Et", "S"):
            args.append(layer[k])
            per_z.append(False)
    in_specs = [_make_spec(a, p) for a, p in zip(args, per_z)]

    kernel = partial(_network_kernel, n_layers=len(params["layers"]))
    out = pl.pallas_call(
        kernel,
        out_shape=jax.ShapeDtypeStruct((z, n, F_PAD), jnp.float32),
        grid=(z,),
        in_specs=in_specs,
        out_specs=pl.BlockSpec((1, n, F_PAD), lambda zz: (zz, 0, 0)),
        compiler_params=pltpu.CompilerParams(dimension_semantics=("parallel",)),
    )(*args)
    return out[..., :DIM_OUT]


# ----------------------------------------------------------------------------
# Network construction
# ----------------------------------------------------------------------------
def _tob(x):
    return jnp.asarray(np.asarray(x), jnp.bfloat16)


def init_radial_params(key, nw, nw_pad):
    # TODO(synk): e3nn's FC uses a specific variance-preserving init/forward scaling;
    # here the 1/sqrt(fan_in) scaling is baked into the weights.  h = 100 is zero-padded
    # to 128 (padded units stay exactly zero through swish); nw is padded to nw_pad.
    dims = [NUMBER_OF_BASIS] + [RADIAL_H] * RADIAL_LAYERS + [nw]
    pads = [NB_PAD] + [RADIAL_H_PAD] * RADIAL_LAYERS + [nw_pad]
    ws = []
    for i in range(len(dims) - 1):
        din, dout = dims[i], dims[i + 1]
        key, sub = jax.random.split(key)
        w = jax.random.normal(sub, (din, dout), jnp.float32) / math.sqrt(din)
        w = jnp.pad(w, ((0, pads[i] - din), (0, pads[i + 1] - dout)))
        ws.append(w.astype(jnp.bfloat16))
    return key, ws


def build_network(key):
    cg = build_real_cg(LMAX)
    rs_in = [(1, 0, 1)]
    rs_out = [(1, 0, 1)]
    rs_hidden = [(1, l, (-1) ** l) for _ in range(MUL) for l in range(LMAX + 1)]
    reps = [rs_in] + [rs_hidden] * LAYERS + [rs_out]
    widths = [F_PAD] + [irreps_dim(expand_irreps(r)) for r in reps[1:-1]] + [F_PAD]

    layers = []
    for idx, (r_in, r_out) in enumerate(zip(reps[:-1], reps[1:])):
        ir_in, ir_out = expand_irreps(r_in), expand_irreps(r_out)
        din_pad, do_pad = widths[idx], widths[idx + 1]
        nw, nw_pad, b3, es, ew, et, sm = build_layer_tables(
            ir_in, ir_out, LMAX, cg, din_pad, do_pad)
        key, ws = init_radial_params(key, nw, nw_pad)
        layers.append({"w0": ws[0], "w1": ws[1], "w2": ws[2], "w3": ws[3],
                       "Es": _tob(es), "Ew": _tob(ew), "B3": _tob(b3),
                       "Et": _tob(et), "S": _tob(sm)})

    # S2 activation grids, block-diagonal over the mul copies
    to_grid, from_grid = build_s2grid(LMAX, RES_BETA, RES_ALPHA)
    sh, g = SH_DIM, RES_BETA * RES_ALPHA
    tog = np.zeros((MUL * sh, MUL * g), np.float32)
    fromg = np.zeros((MUL * g, MUL * sh), np.float32)
    for m in range(MUL):
        tog[m * sh:(m + 1) * sh, m * g:(m + 1) * g] = to_grid
        fromg[m * g:(m + 1) * g, m * sh:(m + 1) * sh] = from_grid

    # graph gather / aggregation maps (per batch element); n_norm = N folded into A
    inv_norm = 1.0 / math.sqrt(N)
    A = np.zeros((N, N * N), np.float32)
    G = np.zeros((N * N, N), np.float32)
    for a in range(N):
        for b in range(N):
            A[a, a * N + b] = inv_norm
            G[a * N + b, b] = 1.0

    return {"layers": layers, "tog": _tob(tog), "fromg": _tob(fromg),
            "A": _tob(A), "G": _tob(G)}


if __name__ == "__main__":
    key = jax.random.PRNGKey(0)
    key, kf, kg = jax.random.split(key, 3)
    features = jax.random.normal(kf, (Z, N, 1), jnp.float32)        # dim(Rs_in) = 1
    geometry = 0.3 * jax.random.normal(kg, (Z, N, 3), jnp.float32)  # point cloud

    params = build_network(key)
    fwd = jax.jit(lambda f, g: s2_conv_network_forward(params, f, g))
    out = jax.block_until_ready(fwd(features, geometry))

    assert out.shape == (Z, N, 1), out.shape
    assert bool(jnp.all(jnp.isfinite(out)))
    print("KERNEL_OK")
</pallas_src>

<mosaic_0001>
module attributes {stable_mosaic.version = 11 : i64} {
  func.func @_network_kernel(%arg0: i32, %arg1: memref<1x64x8xbf16, #tpu.memory_space<vmem>>, %arg2: memref<1x64x16xbf16, #tpu.memory_space<vmem>>, %arg3: memref<1x8x8xbf16, #tpu.memory_space<vmem>>, %arg4: memref<64x8xbf16, #tpu.memory_space<vmem>>, %arg5: memref<8x64xbf16, #tpu.memory_space<vmem>>, %arg6: memref<18x256xbf16, #tpu.memory_space<vmem>>, %arg7: memref<256x18xbf16, #tpu.memory_space<vmem>>, %arg8: memref<8x128xbf16, #tpu.memory_space<vmem>>, %arg9: memref<128x128xbf16, #tpu.memory_space<vmem>>, %arg10: memref<128x128xbf16, #tpu.memory_space<vmem>>, %arg11: memref<128x8xbf16, #tpu.memory_space<vmem>>, %arg12: memref<16x128xbf16, #tpu.memory_space<vmem>>, %arg13: memref<8x128xbf16, #tpu.memory_space<vmem>>, %arg14: memref<128x144xbf16, #tpu.memory_space<vmem>>, %arg15: memref<8x144xbf16, #tpu.memory_space<vmem>>, %arg16: memref<144x18xbf16, #tpu.memory_space<vmem>>, %arg17: memref<8x128xbf16, #tpu.memory_space<vmem>>, %arg18: memref<128x128xbf16, #tpu.memory_space<vmem>>, %arg19: memref<128x128xbf16, #tpu.memory_space<vmem>>, %arg20: memref<128x48xbf16, #tpu.memory_space<vmem>>, %arg21: memref<16x768xbf16, #tpu.memory_space<vmem>>, %arg22: memref<48x768xbf16, #tpu.memory_space<vmem>>, %arg23: memref<768x324xbf16, #tpu.memory_space<vmem>>, %arg24: memref<18x324xbf16, #tpu.memory_space<vmem>>, %arg25: memref<324x18xbf16, #tpu.memory_space<vmem>>, %arg26: memref<8x128xbf16, #tpu.memory_space<vmem>>, %arg27: memref<128x128xbf16, #tpu.memory_space<vmem>>, %arg28: memref<128x128xbf16, #tpu.memory_space<vmem>>, %arg29: memref<128x48xbf16, #tpu.memory_space<vmem>>, %arg30: memref<16x768xbf16, #tpu.memory_space<vmem>>, %arg31: memref<48x768xbf16, #tpu.memory_space<vmem>>, %arg32: memref<768x324xbf16, #tpu.memory_space<vmem>>, %arg33: memref<18x324xbf16, #tpu.memory_space<vmem>>, %arg34: memref<324x18xbf16, #tpu.memory_space<vmem>>, %arg35: memref<8x128xbf16, #tpu.memory_space<vmem>>, %arg36: memref<128x128xbf16, #tpu.memory_space<vmem>>, %arg37: memref<128x128xbf16, #tpu.memory_space<vmem>>, %arg38: memref<128x8xbf16, #tpu.memory_space<vmem>>, %arg39: memref<16x128xbf16, #tpu.memory_space<vmem>>, %arg40: memref<8x128xbf16, #tpu.memory_space<vmem>>, %arg41: memref<128x144xbf16, #tpu.memory_space<vmem>>, %arg42: memref<18x144xbf16, #tpu.memory_space<vmem>>, %arg43: memref<144x8xbf16, #tpu.memory_space<vmem>>, %arg44: memref<1x8x8xf32, #tpu.memory_space<vmem>>) attributes {dimension_semantics = [#tpu.dimension_semantics<parallel>], iteration_bounds = array<i64: 2>, scalar_prefetch = 0 : i64, scratch_operands = 0 : i64, tpu.core_type = #tpu.core_type<tc>, window_params = [{transform_indices = @transform_0, window_bounds = array<i64: 1, 64, 8>}, {transform_indices = @transform_1, window_bounds = array<i64: 1, 64, 16>}, {transform_indices = @transform_2, window_bounds = array<i64: 1, 8, 8>}, {pipeline_mode = #tpu.pipeline_mode<synchronous>, transform_indices = @transform_3, window_bounds = array<i64: 64, 8>}, {pipeline_mode = #tpu.pipeline_mode<synchronous>, transform_indices = @transform_4, window_bounds = array<i64: 8, 64>}, {pipeline_mode = #tpu.pipeline_mode<synchronous>, transform_indices = @transform_5, window_bounds = array<i64: 18, 256>}, {pipeline_mode = #tpu.pipeline_mode<synchronous>, transform_indices = @transform_6, window_bounds = array<i64: 256, 18>}, {pipeline_mode = #tpu.pipeline_mode<synchronous>, transform_indices = @transform_7, window_bounds = array<i64: 8, 128>}, {pipeline_mode = #tpu.pipeline_mode<synchronous>, transform_indices = @transform_8, window_bounds = array<i64: 128, 128>}, {pipeline_mode = #tpu.pipeline_mode<synchronous>, transform_indices = @transform_9, window_bounds = array<i64: 128, 128>}, {pipeline_mode = #tpu.pipeline_mode<synchronous>, transform_indices = @transform_10, window_bounds = array<i64: 128, 8>}, {pipeline_mode = #tpu.pipeline_mode<synchronous>, transform_indices = @transform_11, window_bounds = array<i64: 16, 128>}, {pipeline_mode = #tpu.pipeline_mode<synchronous>, transform_indices = @transform_12, window_bounds = array<i64: 8, 128>}, {pipeline_mode = #tpu.pipeline_mode<synchronous>, transform_indices = @transform_13, window_bounds = array<i64: 128, 144>}, {pipeline_mode = #tpu.pipeline_mode<synchronous>, transform_indices = @transform_14, window_bounds = array<i64: 8, 144>}, {pipeline_mode = #tpu.pipeline_mode<synchronous>, transform_indices = @transform_15, window_bounds = array<i64: 144, 18>}, {pipeline_mode = #tpu.pipeline_mode<synchronous>, transform_indices = @transform_16, window_bounds = array<i64: 8, 128>}, {pipeline_mode = #tpu.pipeline_mode<synchronous>, transform_indices = @transform_17, window_bounds = array<i64: 128, 128>}, {pipeline_mode = #tpu.pipeline_mode<synchronous>, transform_indices = @transform_18, window_bounds = array<i64: 128, 128>}, {pipeline_mode = #tpu.pipeline_mode<synchronous>, transform_indices = @transform_19, window_bounds = array<i64: 128, 48>}, {pipeline_mode = #tpu.pipeline_mode<synchronous>, transform_indices = @transform_20, window_bounds = array<i64: 16, 768>}, {pipeline_mode = #tpu.pipeline_mode<synchronous>, transform_indices = @transform_21, window_bounds = array<i64: 48, 768>}, {pipeline_mode = #tpu.pipeline_mode<synchronous>, transform_indices = @transform_22, window_bounds = array<i64: 768, 324>}, {pipeline_mode = #tpu.pipeline_mode<synchronous>, transform_indices = @transform_23, window_bounds = array<i64: 18, 324>}, {pipeline_mode = #tpu.pipeline_mode<synchronous>, transform_indices = @transform_24, window_bounds = array<i64: 324, 18>}, {pipeline_mode = #tpu.pipeline_mode<synchronous>, transform_indices = @transform_25, window_bounds = array<i64: 8, 128>}, {pipeline_mode = #tpu.pipeline_mode<synchronous>, transform_indices = @transform_26, window_bounds = array<i64: 128, 128>}, {pipeline_mode = #tpu.pipeline_mode<synchronous>, transform_indices = @transform_27, window_bounds = array<i64: 128, 128>}, {pipeline_mode = #tpu.pipeline_mode<synchronous>, transform_indices = @transform_28, window_bounds = array<i64: 128, 48>}, {pipeline_mode = #tpu.pipeline_mode<synchronous>, transform_indices = @transform_29, window_bounds = array<i64: 16, 768>}, {pipeline_mode = #tpu.pipeline_mode<synchronous>, transform_indices = @transform_30, window_bounds = array<i64: 48, 768>}, {pipeline_mode = #tpu.pipeline_mode<synchronous>, transform_indices = @transform_31, window_bounds = array<i64: 768, 324>}, {pipeline_mode = #tpu.pipeline_mode<synchronous>, transform_indices = @transform_32, window_bounds = array<i64: 18, 324>}, {pipeline_mode = #tpu.pipeline_mode<synchronous>, transform_indices = @transform_33, window_bounds = array<i64: 324, 18>}, {pipeline_mode = #tpu.pipeline_mode<synchronous>, transform_indices = @transform_34, window_bounds = array<i64: 8, 128>}, {pipeline_mode = #tpu.pipeline_mode<synchronous>, transform_indices = @transform_35, window_bounds = array<i64: 128, 128>}, {pipeline_mode = #tpu.pipeline_mode<synchronous>, transform_indices = @transform_36, window_bounds = array<i64: 128, 128>}, {pipeline_mode = #tpu.pipeline_mode<synchronous>, transform_indices = @transform_37, window_bounds = array<i64: 128, 8>}, {pipeline_mode = #tpu.pipeline_mode<synchronous>, transform_indices = @transform_38, window_bounds = array<i64: 16, 128>}, {pipeline_mode = #tpu.pipeline_mode<synchronous>, transform_indices = @transform_39, window_bounds = array<i64: 8, 128>}, {pipeline_mode = #tpu.pipeline_mode<synchronous>, transform_indices = @transform_40, window_bounds = array<i64: 128, 144>}, {pipeline_mode = #tpu.pipeline_mode<synchronous>, transform_indices = @transform_41, window_bounds = array<i64: 18, 144>}, {pipeline_mode = #tpu.pipeline_mode<synchronous>, transform_indices = @transform_42, window_bounds = array<i64: 144, 8>}, {transform_indices = @transform_43, window_bounds = array<i64: 1, 8, 8>}]} {
    %c0 = arith.constant 0 : index
    %c0_0 = arith.constant 0 : index
    %c0_1 = arith.constant 0 : index
    %0 = vector.load %arg1[%c0, %c0_0, %c0_1] : memref<1x64x8xbf16, #tpu.memory_space<vmem>>, vector<1x64x8xbf16>
    %1 = vector.shape_cast %0 : vector<1x64x8xbf16> to vector<64x8xbf16>
    %c0_2 = arith.constant 0 : index
    %c0_3 = arith.constant 0 : index
    %c0_4 = arith.constant 0 : index
    %2 = vector.load %arg2[%c0_2, %c0_3, %c0_4] : memref<1x64x16xbf16, #tpu.memory_space<vmem>>, vector<1x64x16xbf16>
    %3 = vector.shape_cast %2 : vector<1x64x16xbf16> to vector<64x16xbf16>
    %c0_5 = arith.constant 0 : index
    %c0_6 = arith.constant 0 : index
    %c0_7 = arith.constant 0 : index
    %4 = vector.load %arg3[%c0_5, %c0_6, %c0_7] : memref<1x8x8xbf16, #tpu.memory_space<vmem>>, vector<1x8x8xbf16>
    %5 = vector.shape_cast %4 : vector<1x8x8xbf16> to vector<8x8xbf16>
    %c0_8 = arith.constant 0 : index
    %c0_9 = arith.constant 0 : index
    %6 = vector.load %arg4[%c0_8, %c0_9] : memref<64x8xbf16, #tpu.memory_space<vmem>>, vector<64x8xbf16>
    %c0_10 = arith.constant 0 : index
    %c0_11 = arith.constant 0 : index
    %7 = vector.load %arg5[%c0_10, %c0_11] : memref<8x64xbf16, #tpu.memory_space<vmem>>, vector<8x64xbf16>
    %c0_12 = arith.constant 0 : index
    %c0_13 = arith.constant 0 : index
    %8 = vector.load %arg8[%c0_12, %c0_13] : memref<8x128xbf16, #tpu.memory_space<vmem>>, vector<8x128xbf16>
    %cst = arith.constant dense<0.000000e+00> : vector<64x128xf32>
    %9 = tpu.matmul %1, %8, %cst {dimension_numbers = #tpu.dot_dimension_numbers<[1], [0], [0], [1], [0, 0, 1, 1], [], []>} : vector<64x8xbf16>, vector<8x128xbf16>, vector<64x128xf32> -> vector<64x128xf32>
    %cst_14 = arith.constant 0.000000e+00 : f32
    %10 = vector.broadcast %cst_14 : f32 to vector<64x128xf32>
    %11 = arith.subf %10, %9 : vector<64x128xf32>
    %cst_15 = arith.constant 8.000000e+01 : f32
    %12 = vector.broadcast %cst_15 : f32 to vector<64x128xf32>
    %13 = arith.minimumf %11, %12 : vector<64x128xf32>
    %14 = math.exp %13 : vector<64x128xf32>
    %cst_16 = arith.constant 1.000000e+00 : f32
    %15 = vector.broadcast %cst_16 : f32 to vector<64x128xf32>
    %16 = arith.addf %15, %14 : vector<64x128xf32>
    %17 = tpu.reciprocal %16 {approx = true} : vector<64x128xf32> -> vector<64x128xf32>
    %18 = arith.mulf %9, %17 : vector<64x128xf32>
    %19 = arith.truncf %18 : vector<64x128xf32> to vector<64x128xbf16>
    %c0_17 = arith.constant 0 : index
    %c0_18 = arith.constant 0 : index
    %20 = vector.load %arg9[%c0_17, %c0_18] : memref<128x128xbf16, #tpu.memory_space<vmem>>, vector<128x128xbf16>
    %cst_19 = arith.constant dense<0.000000e+00> : vector<64x128xf32>
    %21 = tpu.matmul %19, %20, %cst_19 {dimension_numbers = #tpu.dot_dimension_numbers<[1], [0], [0], [1], [0, 0, 1, 1], [], []>} : vector<64x128xbf16>, vector<128x128xbf16>, vector<64x128xf32> -> vector<64x128xf32>
    %cst_20 = arith.constant 0.000000e+00 : f32
    %22 = vector.broadcast %cst_20 : f32 to vector<64x128xf32>
    %23 = arith.subf %22, %21 : vector<64x128xf32>
    %cst_21 = arith.constant 8.000000e+01 : f32
    %24 = vector.broadcast %cst_21 : f32 to vector<64x128xf32>
    %25 = arith.minimumf %23, %24 : vector<64x128xf32>
    %26 = math.exp %25 : vector<64x128xf32>
    %cst_22 = arith.constant 1.000000e+00 : f32
    %27 = vector.broadcast %cst_22 : f32 to vector<64x128xf32>
    %28 = arith.addf %27, %26 : vector<64x128xf32>
    %29 = tpu.reciprocal %28 {approx = true} : vector<64x128xf32> -> vector<64x128xf32>
    %30 = arith.mulf %21, %29 : vector<64x128xf32>
    %31 = arith.truncf %30 : vector<64x128xf32> to vector<64x128xbf16>
    %c0_23 = arith.constant 0 : index
    %c0_24 = arith.constant 0 : index
    %32 = vector.load %arg10[%c0_23, %c0_24] : memref<128x128xbf16, #tpu.memory_space<vmem>>, vector<128x128xbf16>
    %cst_25 = arith.constant dense<0.000000e+00> : vector<64x128xf32>
    %33 = tpu.matmul %31, %32, %cst_25 {dimension_numbers = #tpu.dot_dimension_numbers<[1], [0], [0], [1], [0, 0, 1, 1], [], []>} : vector<64x128xbf16>, vector<128x128xbf16>, vector<64x128xf32> -> vector<64x128xf32>
    %cst_26 = arith.constant 0.000000e+00 : f32
    %34 = vector.broadcast %cst_26 : f32 to vector<64x128xf32>
    %35 = arith.subf %34, %33 : vector<64x128xf32>
    %cst_27 = arith.constant 8.000000e+01 : f32
    %36 = vector.broadcast %cst_27 : f32 to vector<64x128xf32>
    %37 = arith.minimumf %35, %36 : vector<64x128xf32>
    %38 = math.exp %37 : vector<64x128xf32>
    %cst_28 = arith.constant 1.000000e+00 : f32
    %39 = vector.broadcast %cst_28 : f32 to vector<64x128xf32>
    %40 = arith.addf %39, %38 : vector<64x128xf32>
    %41 = tpu.reciprocal %40 {approx = true} : vector<64x128xf32> -> vector<64x128xf32>
    %42 = arith.mulf %33, %41 : vector<64x128xf32>
    %43 = arith.truncf %42 : vector<64x128xf32> to vector<64x128xbf16>
    %c0_29 = arith.constant 0 : index
    %c0_30 = arith.constant 0 : index
    %44 = vector.load %arg11[%c0_29, %c0_30] : memref<128x8xbf16, #tpu.memory_space<vmem>>, vector<128x8xbf16>
    %cst_31 = arith.constant dense<0.000000e+00> : vector<64x8xf32>
    %45 = tpu.matmul %43, %44, %cst_31 {dimension_numbers = #tpu.dot_dimension_numbers<[1], [0], [0], [1], [0, 0, 1, 1], [], []>} : vector<64x128xbf16>, vector<128x8xbf16>, vector<64x8xf32> -> vector<64x8xf32>
    %c0_32 = arith.constant 0 : index
    %c0_33 = arith.constant 0 : index
    %46 = vector.load %arg12[%c0_32, %c0_33] : memref<16x128xbf16, #tpu.memory_space<vmem>>, vector<16x128xbf16>
    %cst_34 = arith.constant dense<0.000000e+00> : vector<64x128xf32>
    %47 = tpu.matmul %3, %46, %cst_34 {dimension_numbers = #tpu.dot_dimension_numbers<[1], [0], [0], [1], [0, 0, 1, 1], [], []>} : vector<64x16xbf16>, vector<16x128xbf16>, vector<64x128xf32> -> vector<64x128xf32>
    %48 = arith.truncf %45 : vector<64x8xf32> to vector<64x8xbf16>
    %c0_35 = arith.constant 0 : index
    %c0_36 = arith.constant 0 : index
    %49 = vector.load %arg13[%c0_35, %c0_36] : memref<8x128xbf16, #tpu.memory_space<vmem>>, vector<8x128xbf16>
    %cst_37 = arith.constant dense<0.000000e+00> : vector<64x128xf32>
    %50 = tpu.matmul %48, %49, %cst_37 {dimension_numbers = #tpu.dot_dimension_numbers<[1], [0], [0], [1], [0, 0, 1, 1], [], []>} : vector<64x8xbf16>, vector<8x128xbf16>, vector<64x128xf32> -> vector<64x128xf32>
    %51 = arith.mulf %47, %50 : vector<64x128xf32>
    %52 = arith.truncf %51 : vector<64x128xf32> to vector<64x128xbf16>
    %c0_38 = arith.constant 0 : index
    %c0_39 = arith.constant 0 : index
    %53 = vector.load %arg14[%c0_38, %c0_39] : memref<128x144xbf16, #tpu.memory_space<vmem>>, vector<128x144xbf16>
    %cst_40 = arith.constant dense<0.000000e+00> : vector<64x144xf32>
    %54 = tpu.matmul %52, %53, %cst_40 {dimension_numbers = #tpu.dot_dimension_numbers<[1], [0], [0], [1], [0, 0, 1, 1], [], []>} : vector<64x128xbf16>, vector<128x144xbf16>, vector<64x144xf32> -> vector<64x144xf32>
    %cst_41 = arith.constant dense<0.000000e+00> : vector<64x8xf32>
    %55 = tpu.matmul %6, %5, %cst_41 {dimension_numbers = #tpu.dot_dimension_numbers<[1], [0], [0], [1], [0, 0, 1, 1], [], []>} : vector<64x8xbf16>, vector<8x8xbf16>, vector<64x8xf32> -> vector<64x8xf32>
    %56 = arith.truncf %55 : vector<64x8xf32> to vector<64x8xbf16>
    %c0_42 = arith.constant 0 : index
    %c0_43 = arith.constant 0 : index
    %57 = vector.load %arg15[%c0_42, %c0_43] : memref<8x144xbf16, #tpu.memory_space<vmem>>, vector<8x144xbf16>
    %cst_44 = arith.constant dense<0.000000e+00> : vector<64x144xf32>
    %58 = tpu.matmul %56, %57, %cst_44 {dimension_numbers = #tpu.dot_dimension_numbers<[1], [0], [0], [1], [0, 0, 1, 1], [], []>} : vector<64x8xbf16>, vector<8x144xbf16>, vector<64x144xf32> -> vector<64x144xf32>
    %59 = arith.mulf %54, %58 : vector<64x144xf32>
    %60 = arith.truncf %59 : vector<64x144xf32> to vector<64x144xbf16>
    %c0_45 = arith.constant 0 : index
    %c0_46 = arith.constant 0 : index
    %61 = vector.load %arg16[%c0_45, %c0_46] : memref<144x18xbf16, #tpu.memory_space<vmem>>, vector<144x18xbf16>
    %cst_47 = arith.constant dense<0.000000e+00> : vector<64x18xf32>
    %62 = tpu.matmul %60, %61, %cst_47 {dimension_numbers = #tpu.dot_dimension_numbers<[1], [0], [0], [1], [0, 0, 1, 1], [], []>} : vector<64x144xbf16>, vector<144x18xbf16>, vector<64x18xf32> -> vector<64x18xf32>
    %63 = arith.truncf %62 : vector<64x18xf32> to vector<64x18xbf16>
    %cst_48 = arith.constant dense<0.000000e+00> : vector<8x18xf32>
    %64 = tpu.matmul %7, %63, %cst_48 {dimension_numbers = #tpu.dot_dimension_numbers<[1], [0], [0], [1], [0, 0, 1, 1], [], []>} : vector<8x64xbf16>, vector<64x18xbf16>, vector<8x18xf32> -> vector<8x18xf32>
    %65 = arith.truncf %64 : vector<8x18xf32> to vector<8x18xbf16>
    %c0_49 = arith.constant 0 : index
    %c0_50 = arith.constant 0 : index
    %66 = vector.load %arg6[%c0_49, %c0_50] : memref<18x256xbf16, #tpu.memory_space<vmem>>, vector<18x256xbf16>
    %cst_51 = arith.constant dense<0.000000e+00> : vector<8x256xf32>
    %67 = tpu.matmul %65, %66, %cst_51 {dimension_numbers = #tpu.dot_dimension_numbers<[1], [0], [0], [1], [0, 0, 1, 1], [], []>} : vector<8x18xbf16>, vector<18x256xbf16>, vector<8x256xf32> -> vector<8x256xf32>
    %cst_52 = arith.constant 0.000000e+00 : f32
    %68 = vector.broadcast %cst_52 : f32 to vector<8x256xf32>
    %69 = arith.subf %68, %67 : vector<8x256xf32>
    %cst_53 = arith.constant 8.000000e+01 : f32
    %70 = vector.broadcast %cst_53 : f32 to vector<8x256xf32>
    %71 = arith.minimumf %69, %70 : vector<8x256xf32>
    %72 = math.exp %71 : vector<8x256xf32>
    %cst_54 = arith.constant 1.000000e+00 : f32
    %73 = vector.broadcast %cst_54 : f32 to vector<8x256xf32>
    %74 = arith.addf %73, %72 : vector<8x256xf32>
    %75 = tpu.reciprocal %74 {approx = true} : vector<8x256xf32> -> vector<8x256xf32>
    %76 = arith.truncf %75 : vector<8x256xf32> to vector<8x256xbf16>
    %c0_55 = arith.constant 0 : index
    %c0_56 = arith.constant 0 : index
    %77 = vector.load %arg7[%c0_55, %c0_56] : memref<256x18xbf16, #tpu.memory_space<vmem>>, vector<256x18xbf16>
    %cst_57 = arith.constant dense<0.000000e+00> : vector<8x18xf32>
    %78 = tpu.matmul %76, %77, %cst_57 {dimension_numbers = #tpu.dot_dimension_numbers<[1], [0], [0], [1], [0, 0, 1, 1], [], []>} : vector<8x256xbf16>, vector<256x18xbf16>, vector<8x18xf32> -> vector<8x18xf32>
    %79 = arith.truncf %78 : vector<8x18xf32> to vector<8x18xbf16>
    %c0_58 = arith.constant 0 : index
    %c0_59 = arith.constant 0 : index
    %80 = vector.load %arg17[%c0_58, %c0_59] : memref<8x128xbf16, #tpu.memory_space<vmem>>, vector<8x128xbf16>
    %cst_60 = arith.constant dense<0.000000e+00> : vector<64x128xf32>
    %81 = tpu.matmul %1, %80, %cst_60 {dimension_numbers = #tpu.dot_dimension_numbers<[1], [0], [0], [1], [0, 0, 1, 1], [], []>} : vector<64x8xbf16>, vector<8x128xbf16>, vector<64x128xf32> -> vector<64x128xf32>
    %cst_61 = arith.constant 0.000000e+00 : f32
    %82 = vector.broadcast %cst_61 : f32 to vector<64x128xf32>
    %83 = arith.subf %82, %81 : vector<64x128xf32>
    %cst_62 = arith.constant 8.000000e+01 : f32
    %84 = vector.broadcast %cst_62 : f32 to vector<64x128xf32>
    %85 = arith.minimumf %83, %84 : vector<64x128xf32>
    %86 = math.exp %85 : vector<64x128xf32>
    %cst_63 = arith.constant 1.000000e+00 : f32
    %87 = vector.broadcast %cst_63 : f32 to vector<64x128xf32>
    %88 = arith.addf %87, %86 : vector<64x128xf32>
    %89 = tpu.reciprocal %88 {approx = true} : vector<64x128xf32> -> vector<64x128xf32>
    %90 = arith.mulf %81, %89 : vector<64x128xf32>
    %91 = arith.truncf %90 : vector<64x128xf32> to vector<64x128xbf16>
    %c0_64 = arith.constant 0 : index
    %c0_65 = arith.constant 0 : index
    %92 = vector.load %arg18[%c0_64, %c0_65] : memref<128x128xbf16, #tpu.memory_space<vmem>>, vector<128x128xbf16>
    %cst_66 = arith.constant dense<0.000000e+00> : vector<64x128xf32>
    %93 = tpu.matmul %91, %92, %cst_66 {dimension_numbers = #tpu.dot_dimension_numbers<[1], [0], [0], [1], [0, 0, 1, 1], [], []>} : vector<64x128xbf16>, vector<128x128xbf16>, vector<64x128xf32> -> vector<64x128xf32>
    %cst_67 = arith.constant 0.000000e+00 : f32
    %94 = vector.broadcast %cst_67 : f32 to vector<64x128xf32>
    %95 = arith.subf %94, %93 : vector<64x128xf32>
    %cst_68 = arith.constant 8.000000e+01 : f32
    %96 = vector.broadcast %cst_68 : f32 to vector<64x128xf32>
    %97 = arith.minimumf %95, %96 : vector<64x128xf32>
    %98 = math.exp %97 : vector<64x128xf32>
    %cst_69 = arith.constant 1.000000e+00 : f32
    %99 = vector.broadcast %cst_69 : f32 to vector<64x128xf32>
    %100 = arith.addf %99, %98 : vector<64x128xf32>
    %101 = tpu.reciprocal %100 {approx = true} : vector<64x128xf32> -> vector<64x128xf32>
    %102 = arith.mulf %93, %101 : vector<64x128xf32>
    %103 = arith.truncf %102 : vector<64x128xf32> to vector<64x128xbf16>
    %c0_70 = arith.constant 0 : index
    %c0_71 = arith.constant 0 : index
    %104 = vector.load %arg19[%c0_70, %c0_71] : memref<128x128xbf16, #tpu.memory_space<vmem>>, vector<128x128xbf16>
    %cst_72 = arith.constant dense<0.000000e+00> : vector<64x128xf32>
    %105 = tpu.matmul %103, %104, %cst_72 {dimension_numbers = #tpu.dot_dimension_numbers<[1], [0], [0], [1], [0, 0, 1, 1], [], []>} : vector<64x128xbf16>, vector<128x128xbf16>, vector<64x128xf32> -> vector<64x128xf32>
    %cst_73 = arith.constant 0.000000e+00 : f32
    %106 = vector.broadcast %cst_73 : f32 to vector<64x128xf32>
    %107 = arith.subf %106, %105 : vector<64x128xf32>
    %cst_74 = arith.constant 8.000000e+01 : f32
    %108 = vector.broadcast %cst_74 : f32 to vector<64x128xf32>
    %109 = arith.minimumf %107, %108 : vector<64x128xf32>
    %110 = math.exp %109 : vector<64x128xf32>
    %cst_75 = arith.constant 1.000000e+00 : f32
    %111 = vector.broadcast %cst_75 : f32 to vector<64x128xf32>
    %112 = arith.addf %111, %110 : vector<64x128xf32>
    %113 = tpu.reciprocal %112 {approx = true} : vector<64x128xf32> -> vector<64x128xf32>
    %114 = arith.mulf %105, %113 : vector<64x128xf32>
    %115 = arith.truncf %114 : vector<64x128xf32> to vector<64x128xbf16>
    %c0_76 = arith.constant 0 : index
    %c0_77 = arith.constant 0 : index
    %116 = vector.load %arg20[%c0_76, %c0_77] : memref<128x48xbf16, #tpu.memory_space<vmem>>, vector<128x48xbf16>
    %cst_78 = arith.constant dense<0.000000e+00> : vector<64x48xf32>
    %117 = tpu.matmul %115, %116, %cst_78 {dimension_numbers = #tpu.dot_dimension_numbers<[1], [0], [0], [1], [0, 0, 1, 1], [], []>} : vector<64x128xbf16>, vector<128x48xbf16>, vector<64x48xf32> -> vector<64x48xf32>
    %c0_79 = arith.constant 0 : index
    %c0_80 = arith.constant 0 : index
    %118 = vector.load %arg21[%c0_79, %c0_80] : memref<16x768xbf16, #tpu.memory_space<vmem>>, vector<16x768xbf16>
    %cst_81 = arith.constant dense<0.000000e+00> : vector<64x768xf32>
    %119 = tpu.matmul %3, %118, %cst_81 {dimension_numbers = #tpu.dot_dimension_numbers<[1], [0], [0], [1], [0, 0, 1, 1], [], []>} : vector<64x16xbf16>, vector<16x768xbf16>, vector<64x768xf32> -> vector<64x768xf32>
    %120 = arith.truncf %117 : vector<64x48xf32> to vector<64x48xbf16>
    %c0_82 = arith.constant 0 : index
    %c0_83 = arith.constant 0 : index
    %121 = vector.load %arg22[%c0_82, %c0_83] : memref<48x768xbf16, #tpu.memory_space<vmem>>, vector<48x768xbf16>
    %cst_84 = arith.constant dense<0.000000e+00> : vector<64x768xf32>
    %122 = tpu.matmul %120, %121, %cst_84 {dimension_numbers = #tpu.dot_dimension_numbers<[1], [0], [0], [1], [0, 0, 1, 1], [], []>} : vector<64x48xbf16>, vector<48x768xbf16>, vector<64x768xf32> -> vector<64x768xf32>
    %123 = arith.mulf %119, %122 : vector<64x768xf32>
    %124 = arith.truncf %123 : vector<64x768xf32> to vector<64x768xbf16>
    %c0_85 = arith.constant 0 : index
    %c0_86 = arith.constant 0 : index
    %125 = vector.load %arg23[%c0_85, %c0_86] : memref<768x324xbf16, #tpu.memory_space<vmem>>, vector<768x324xbf16>
    %cst_87 = arith.constant dense<0.000000e+00> : vector<64x324xf32>
    %126 = tpu.matmul %124, %125, %cst_87 {dimension_numbers = #tpu.dot_dimension_numbers<[1], [0], [0], [1], [0, 0, 1, 1], [], []>} : vector<64x768xbf16>, vector<768x324xbf16>, vector<64x324xf32> -> vector<64x324xf32>
    %cst_88 = arith.constant dense<0.000000e+00> : vector<64x18xf32>
    %127 = tpu.matmul %6, %79, %cst_88 {dimension_numbers = #tpu.dot_dimension_numbers<[1], [0], [0], [1], [0, 0, 1, 1], [], []>} : vector<64x8xbf16>, vector<8x18xbf16>, vector<64x18xf32> -> vector<64x18xf32>
    %128 = arith.truncf %127 : vector<64x18xf32> to vector<64x18xbf16>
    %c0_89 = arith.constant 0 : index
    %c0_90 = arith.constant 0 : index
    %129 = vector.load %arg24[%c0_89, %c0_90] : memref<18x324xbf16, #tpu.memory_space<vmem>>, vector<18x324xbf16>
    %cst_91 = arith.constant dense<0.000000e+00> : vector<64x324xf32>
    %130 = tpu.matmul %128, %129, %cst_91 {dimension_numbers = #tpu.dot_dimension_numbers<[1], [0], [0], [1], [0, 0, 1, 1], [], []>} : vector<64x18xbf16>, vector<18x324xbf16>, vector<64x324xf32> -> vector<64x324xf32>
    %131 = arith.mulf %126, %130 : vector<64x324xf32>
    %132 = arith.truncf %131 : vector<64x324xf32> to vector<64x324xbf16>
    %c0_92 = arith.constant 0 : index
    %c0_93 = arith.constant 0 : index
    %133 = vector.load %arg25[%c0_92, %c0_93] : memref<324x18xbf16, #tpu.memory_space<vmem>>, vector<324x18xbf16>
    %cst_94 = arith.constant dense<0.000000e+00> : vector<64x18xf32>
    %134 = tpu.matmul %132, %133, %cst_94 {dimension_numbers = #tpu.dot_dimension_numbers<[1], [0], [0], [1], [0, 0, 1, 1], [], []>} : vector<64x324xbf16>, vector<324x18xbf16>, vector<64x18xf32> -> vector<64x18xf32>
    %135 = arith.truncf %134 : vector<64x18xf32> to vector<64x18xbf16>
    %cst_95 = arith.constant dense<0.000000e+00> : vector<8x18xf32>
    %136 = tpu.matmul %7, %135, %cst_95 {dimension_numbers = #tpu.dot_dimension_numbers<[1], [0], [0], [1], [0, 0, 1, 1], [], []>} : vector<8x64xbf16>, vector<64x18xbf16>, vector<8x18xf32> -> vector<8x18xf32>
    %137 = arith.truncf %136 : vector<8x18xf32> to vector<8x18xbf16>
    %c0_96 = arith.constant 0 : index
    %c0_97 = arith.constant 0 : index
    %138 = vector.load %arg6[%c0_96, %c0_97] : memref<18x256xbf16, #tpu.memory_space<vmem>>, vector<18x256xbf16>
    %cst_98 = arith.constant dense<0.000000e+00> : vector<8x256xf32>
    %139 = tpu.matmul %137, %138, %cst_98 {dimension_numbers = #tpu.dot_dimension_numbers<[1], [0], [0], [1], [0, 0, 1, 1], [], []>} : vector<8x18xbf16>, vector<18x256xbf16>, vector<8x256xf32> -> vector<8x256xf32>
    %cst_99 = arith.constant 0.000000e+00 : f32
    %140 = vector.broadcast %cst_99 : f32 to vector<8x256xf32>
    %141 = arith.subf %140, %139 : vector<8x256xf32>
    %cst_100 = arith.constant 8.000000e+01 : f32
    %142 = vector.broadcast %cst_100 : f32 to vector<8x256xf32>
    %143 = arith.minimumf %141, %142 : vector<8x256xf32>
    %144 = math.exp %143 : vector<8x256xf32>
    %cst_101 = arith.constant 1.000000e+00 : f32
    %145 = vector.broadcast %cst_101 : f32 to vector<8x256xf32>
    %146 = arith.addf %145, %144 : vector<8x256xf32>
    %147 = tpu.reciprocal %146 {approx = true} : vector<8x256xf32> -> vector<8x256xf32>
    %148 = arith.truncf %147 : vector<8x256xf32> to vector<8x256xbf16>
    %c0_102 = arith.constant 0 : index
    %c0_103 = arith.constant 0 : index
    %149 = vector.load %arg7[%c0_102, %c0_103] : memref<256x18xbf16, #tpu.memory_space<vmem>>, vector<256x18xbf16>
    %cst_104 = arith.constant dense<0.000000e+00> : vector<8x18xf32>
    %150 = tpu.matmul %148, %149, %cst_104 {dimension_numbers = #tpu.dot_dimension_numbers<[1], [0], [0], [1], [0, 0, 1, 1], [], []>} : vector<8x256xbf16>, vector<256x18xbf16>, vector<8x18xf32> -> vector<8x18xf32>
    %151 = arith.truncf %150 : vector<8x18xf32> to vector<8x18xbf16>
    %c0_105 = arith.constant 0 : index
    %c0_106 = arith.constant 0 : index
    %152 = vector.load %arg26[%c0_105, %c0_106] : memref<8x128xbf16, #tpu.memory_space<vmem>>, vector<8x128xbf16>
    %cst_107 = arith.constant dense<0.000000e+00> : vector<64x128xf32>
    %153 = tpu.matmul %1, %152, %cst_107 {dimension_numbers = #tpu.dot_dimension_numbers<[1], [0], [0], [1], [0, 0, 1, 1], [], []>} : vector<64x8xbf16>, vector<8x128xbf16>, vector<64x128xf32> -> vector<64x128xf32>
    %cst_108 = arith.constant 0.000000e+00 : f32
    %154 = vector.broadcast %cst_108 : f32 to vector<64x128xf32>
    %155 = arith.subf %154, %153 : vector<64x128xf32>
    %cst_109 = arith.constant 8.000000e+01 : f32
    %156 = vector.broadcast %cst_109 : f32 to vector<64x128xf32>
    %157 = arith.minimumf %155, %156 : vector<64x128xf32>
    %158 = math.exp %157 : vector<64x128xf32>
    %cst_110 = arith.constant 1.000000e+00 : f32
    %159 = vector.broadcast %cst_110 : f32 to vector<64x128xf32>
    %160 = arith.addf %159, %158 : vector<64x128xf32>
    %161 = tpu.reciprocal %160 {approx = true} : vector<64x128xf32> -> vector<64x128xf32>
    %162 = arith.mulf %153, %161 : vector<64x128xf32>
    %163 = arith.truncf %162 : vector<64x128xf32> to vector<64x128xbf16>
    %c0_111 = arith.constant 0 : index
    %c0_112 = arith.constant 0 : index
    %164 = vector.load %arg27[%c0_111, %c0_112] : memref<128x128xbf16, #tpu.memory_space<vmem>>, vector<128x128xbf16>
    %cst_113 = arith.constant dense<0.000000e+00> : vector<64x128xf32>
    %165 = tpu.matmul %163, %164, %cst_113 {dimension_numbers = #tpu.dot_dimension_numbers<[1], [0], [0], [1], [0, 0, 1, 1], [], []>} : vector<64x128xbf16>, vector<128x128xbf16>, vector<64x128xf32> -> vector<64x128xf32>
    %cst_114 = arith.constant 0.000000e+00 : f32
    %166 = vector.broadcast %cst_114 : f32 to vector<64x128xf32>
    %167 = arith.subf %166, %165 : vector<64x128xf32>
    %cst_115 = arith.constant 8.000000e+01 : f32
    %168 = vector.broadcast %cst_115 : f32 to vector<64x128xf32>
    %169 = arith.minimumf %167, %168 : vector<64x128xf32>
    %170 = math.exp %169 : vector<64x128xf32>
    %cst_116 = arith.constant 1.000000e+00 : f32
    %171 = vector.broadcast %cst_116 : f32 to vector<64x128xf32>
    %172 = arith.addf %171, %170 : vector<64x128xf32>
    %173 = tpu.reciprocal %172 {approx = true} : vector<64x128xf32> -> vector<64x128xf32>
    %174 = arith.mulf %165, %173 : vector<64x128xf32>
    %175 = arith.truncf %174 : vector<64x128xf32> to vector<64x128xbf16>
    %c0_117 = arith.constant 0 : index
    %c0_118 = arith.constant 0 : index
    %176 = vector.load %arg28[%c0_117, %c0_118] : memref<128x128xbf16, #tpu.memory_space<vmem>>, vector<128x128xbf16>
    %cst_119 = arith.constant dense<0.000000e+00> : vector<64x128xf32>
    %177 = tpu.matmul %175, %176, %cst_119 {dimension_numbers = #tpu.dot_dimension_numbers<[1], [0], [0], [1], [0, 0, 1, 1], [], []>} : vector<64x128xbf16>, vector<128x128xbf16>, vector<64x128xf32> -> vector<64x128xf32>
    %cst_120 = arith.constant 0.000000e+00 : f32
    %178 = vector.broadcast %cst_120 : f32 to vector<64x128xf32>
    %179 = arith.subf %178, %177 : vector<64x128xf32>
    %cst_121 = arith.constant 8.000000e+01 : f32
    %180 = vector.broadcast %cst_121 : f32 to vector<64x128xf32>
    %181 = arith.minimumf %179, %180 : vector<64x128xf32>
    %182 = math.exp %181 : vector<64x128xf32>
    %cst_122 = arith.constant 1.000000e+00 : f32
    %183 = vector.broadcast %cst_122 : f32 to vector<64x128xf32>
    %184 = arith.addf %183, %182 : vector<64x128xf32>
    %185 = tpu.reciprocal %184 {approx = true} : vector<64x128xf32> -> vector<64x128xf32>
    %186 = arith.mulf %177, %185 : vector<64x128xf32>
    %187 = arith.truncf %186 : vector<64x128xf32> to vector<64x128xbf16>
    %c0_123 = arith.constant 0 : index
    %c0_124 = arith.constant 0 : index
    %188 = vector.load %arg29[%c0_123, %c0_124] : memref<128x48xbf16, #tpu.memory_space<vmem>>, vector<128x48xbf16>
    %cst_125 = arith.constant dense<0.000000e+00> : vector<64x48xf32>
    %189 = tpu.matmul %187, %188, %cst_125 {dimension_numbers = #tpu.dot_dimension_numbers<[1], [0], [0], [1], [0, 0, 1, 1], [], []>} : vector<64x128xbf16>, vector<128x48xbf16>, vector<64x48xf32> -> vector<64x48xf32>
    %c0_126 = arith.constant 0 : index
    %c0_127 = arith.constant 0 : index
    %190 = vector.load %arg30[%c0_126, %c0_127] : memref<16x768xbf16, #tpu.memory_space<vmem>>, vector<16x768xbf16>
    %cst_128 = arith.constant dense<0.000000e+00> : vector<64x768xf32>
    %191 = tpu.matmul %3, %190, %cst_128 {dimension_numbers = #tpu.dot_dimension_numbers<[1], [0], [0], [1], [0, 0, 1, 1], [], []>} : vector<64x16xbf16>, vector<16x768xbf16>, vector<64x768xf32> -> vector<64x768xf32>
    %192 = arith.truncf %189 : vector<64x48xf32> to vector<64x48xbf16>
    %c0_129 = arith.constant 0 : index
    %c0_130 = arith.constant 0 : index
    %193 = vector.load %arg31[%c0_129, %c0_130] : memref<48x768xbf16, #tpu.memory_space<vmem>>, vector<48x768xbf16>
    %cst_131 = arith.constant dense<0.000000e+00> : vector<64x768xf32>
    %194 = tpu.matmul %192, %193, %cst_131 {dimension_numbers = #tpu.dot_dimension_numbers<[1], [0], [0], [1], [0, 0, 1, 1], [], []>} : vector<64x48xbf16>, vector<48x768xbf16>, vector<64x768xf32> -> vector<64x768xf32>
    %195 = arith.mulf %191, %194 : vector<64x768xf32>
    %196 = arith.truncf %195 : vector<64x768xf32> to vector<64x768xbf16>
    %c0_132 = arith.constant 0 : index
    %c0_133 = arith.constant 0 : index
    %197 = vector.load %arg32[%c0_132, %c0_133] : memref<768x324xbf16, #tpu.memory_space<vmem>>, vector<768x324xbf16>
    %cst_134 = arith.constant dense<0.000000e+00> : vector<64x324xf32>
    %198 = tpu.matmul %196, %197, %cst_134 {dimension_numbers = #tpu.dot_dimension_numbers<[1], [0], [0], [1], [0, 0, 1, 1], [], []>} : vector<64x768xbf16>, vector<768x324xbf16>, vector<64x324xf32> -> vector<64x324xf32>
    %cst_135 = arith.constant dense<0.000000e+00> : vector<64x18xf32>
    %199 = tpu.matmul %6, %151, %cst_135 {dimension_numbers = #tpu.dot_dimension_numbers<[1], [0], [0], [1], [0, 0, 1, 1], [], []>} : vector<64x8xbf16>, vector<8x18xbf16>, vector<64x18xf32> -> vector<64x18xf32>
    %200 = arith.truncf %199 : vector<64x18xf32> to vector<64x18xbf16>
    %c0_136 = arith.constant 0 : index
    %c0_137 = arith.constant 0 : index
    %201 = vector.load %arg33[%c0_136, %c0_137] : memref<18x324xbf16, #tpu.memory_space<vmem>>, vector<18x324xbf16>
    %cst_138 = arith.constant dense<0.000000e+00> : vector<64x324xf32>
    %202 = tpu.matmul %200, %201, %cst_138 {dimension_numbers = #tpu.dot_dimension_numbers<[1], [0], [0], [1], [0, 0, 1, 1], [], []>} : vector<64x18xbf16>, vector<18x324xbf16>, vector<64x324xf32> -> vector<64x324xf32>
    %203 = arith.mulf %198, %202 : vector<64x324xf32>
    %204 = arith.truncf %203 : vector<64x324xf32> to vector<64x324xbf16>
    %c0_139 = arith.constant 0 : index
    %c0_140 = arith.constant 0 : index
    %205 = vector.load %arg34[%c0_139, %c0_140] : memref<324x18xbf16, #tpu.memory_space<vmem>>, vector<324x18xbf16>
    %cst_141 = arith.constant dense<0.000000e+00> : vector<64x18xf32>
    %206 = tpu.matmul %204, %205, %cst_141 {dimension_numbers = #tpu.dot_dimension_numbers<[1], [0], [0], [1], [0, 0, 1, 1], [], []>} : vector<64x324xbf16>, vector<324x18xbf16>, vector<64x18xf32> -> vector<64x18xf32>
    %207 = arith.truncf %206 : vector<64x18xf32> to vector<64x18xbf16>
    %cst_142 = arith.constant dense<0.000000e+00> : vector<8x18xf32>
    %208 = tpu.matmul %7, %207, %cst_142 {dimension_numbers = #tpu.dot_dimension_numbers<[1], [0], [0], [1], [0, 0, 1, 1], [], []>} : vector<8x64xbf16>, vector<64x18xbf16>, vector<8x18xf32> -> vector<8x18xf32>
    %209 = arith.truncf %208 : vector<8x18xf32> to vector<8x18xbf16>
    %c0_143 = arith.constant 0 : index
    %c0_144 = arith.constant 0 : index
    %210 = vector.load %arg6[%c0_143, %c0_144] : memref<18x256xbf16, #tpu.memory_space<vmem>>, vector<18x256xbf16>
    %cst_145 = arith.constant dense<0.000000e+00> : vector<8x256xf32>
    %211 = tpu.matmul %209, %210, %cst_145 {dimension_numbers = #tpu.dot_dimension_numbers<[1], [0], [0], [1], [0, 0, 1, 1], [], []>} : vector<8x18xbf16>, vector<18x256xbf16>, vector<8x256xf32> -> vector<8x256xf32>
    %cst_146 = arith.constant 0.000000e+00 : f32
    %212 = vector.broadcast %cst_146 : f32 to vector<8x256xf32>
    %213 = arith.subf %212, %211 : vector<8x256xf32>
    %cst_147 = arith.constant 8.000000e+01 : f32
    %214 = vector.broadcast %cst_147 : f32 to vector<8x256xf32>
    %215 = arith.minimumf %213, %214 : vector<8x256xf32>
    %216 = math.exp %215 : vector<8x256xf32>
    %cst_148 = arith.constant 1.000000e+00 : f32
    %217 = vector.broadcast %cst_148 : f32 to vector<8x256xf32>
    %218 = arith.addf %217, %216 : vector<8x256xf32>
    %219 = tpu.reciprocal %218 {approx = true} : vector<8x256xf32> -> vector<8x256xf32>
    %220 = arith.truncf %219 : vector<8x256xf32> to vector<8x256xbf16>
    %c0_149 = arith.constant 0 : index
    %c0_150 = arith.constant 0 : index
    %221 = vector.load %arg7[%c0_149, %c0_150] : memref<256x18xbf16, #tpu.memory_space<vmem>>, vector<256x18xbf16>
    %cst_151 = arith.constant dense<0.000000e+00> : vector<8x18xf32>
    %222 = tpu.matmul %220, %221, %cst_151 {dimension_numbers = #tpu.dot_dimension_numbers<[1], [0], [0], [1], [0, 0, 1, 1], [], []>} : vector<8x256xbf16>, vector<256x18xbf16>, vector<8x18xf32> -> vector<8x18xf32>
    %223 = arith.truncf %222 : vector<8x18xf32> to vector<8x18xbf16>
    %c0_152 = arith.constant 0 : index
    %c0_153 = arith.constant 0 : index
    %224 = vector.load %arg35[%c0_152, %c0_153] : memref<8x128xbf16, #tpu.memory_space<vmem>>, vector<8x128xbf16>
    %cst_154 = arith.constant dense<0.000000e+00> : vector<64x128xf32>
    %225 = tpu.matmul %1, %224, %cst_154 {dimension_numbers = #tpu.dot_dimension_numbers<[1], [0], [0], [1], [0, 0, 1, 1], [], []>} : vector<64x8xbf16>, vector<8x128xbf16>, vector<64x128xf32> -> vector<64x128xf32>
    %cst_155 = arith.constant 0.000000e+00 : f32
    %226 = vector.broadcast %cst_155 : f32 to vector<64x128xf32>
    %227 = arith.subf %226, %225 : vector<64x128xf32>
    %cst_156 = arith.constant 8.000000e+01 : f32
    %228 = vector.broadcast %cst_156 : f32 to vector<64x128xf32>
    %229 = arith.minimumf %227, %228 : vector<64x128xf32>
    %230 = math.exp %229 : vector<64x128xf32>
    %cst_157 = arith.constant 1.000000e+00 : f32
    %231 = vector.broadcast %cst_157 : f32 to vector<64x128xf32>
    %232 = arith.addf %231, %230 : vector<64x128xf32>
    %233 = tpu.reciprocal %232 {approx = true} : vector<64x128xf32> -> vector<64x128xf32>
    %234 = arith.mulf %225, %233 : vector<64x128xf32>
    %235 = arith.truncf %234 : vector<64x128xf32> to vector<64x128xbf16>
    %c0_158 = arith.constant 0 : index
    %c0_159 = arith.constant 0 : index
    %236 = vector.load %arg36[%c0_158, %c0_159] : memref<128x128xbf16, #tpu.memory_space<vmem>>, vector<128x128xbf16>
    %cst_160 = arith.constant dense<0.000000e+00> : vector<64x128xf32>
    %237 = tpu.matmul %235, %236, %cst_160 {dimension_numbers = #tpu.dot_dimension_numbers<[1], [0], [0], [1], [0, 0, 1, 1], [], []>} : vector<64x128xbf16>, vector<128x128xbf16>, vector<64x128xf32> -> vector<64x128xf32>
    %cst_161 = arith.constant 0.000000e+00 : f32
    %238 = vector.broadcast %cst_161 : f32 to vector<64x128xf32>
    %239 = arith.subf %238, %237 : vector<64x128xf32>
    %cst_162 = arith.constant 8.000000e+01 : f32
    %240 = vector.broadcast %cst_162 : f32 to vector<64x128xf32>
    %241 = arith.minimumf %239, %240 : vector<64x128xf32>
    %242 = math.exp %241 : vector<64x128xf32>
    %cst_163 = arith.constant 1.000000e+00 : f32
    %243 = vector.broadcast %cst_163 : f32 to vector<64x128xf32>
    %244 = arith.addf %243, %242 : vector<64x128xf32>
    %245 = tpu.reciprocal %244 {approx = true} : vector<64x128xf32> -> vector<64x128xf32>
    %246 = arith.mulf %237, %245 : vector<64x128xf32>
    %247 = arith.truncf %246 : vector<64x128xf32> to vector<64x128xbf16>
    %c0_164 = arith.constant 0 : index
    %c0_165 = arith.constant 0 : index
    %248 = vector.load %arg37[%c0_164, %c0_165] : memref<128x128xbf16, #tpu.memory_space<vmem>>, vector<128x128xbf16>
    %cst_166 = arith.constant dense<0.000000e+00> : vector<64x128xf32>
    %249 = tpu.matmul %247, %248, %cst_166 {dimension_numbers = #tpu.dot_dimension_numbers<[1], [0], [0], [1], [0, 0, 1, 1], [], []>} : vector<64x128xbf16>, vector<128x128xbf16>, vector<64x128xf32> -> vector<64x128xf32>
    %cst_167 = arith.constant 0.000000e+00 : f32
    %250 = vector.broadcast %cst_167 : f32 to vector<64x128xf32>
    %251 = arith.subf %250, %249 : vector<64x128xf32>
    %cst_168 = arith.constant 8.000000e+01 : f32
    %252 = vector.broadcast %cst_168 : f32 to vector<64x128xf32>
    %253 = arith.minimumf %251, %252 : vector<64x128xf32>
    %254 = math.exp %253 : vector<64x128xf32>
    %cst_169 = arith.constant 1.000000e+00 : f32
    %255 = vector.broadcast %cst_169 : f32 to vector<64x128xf32>
    %256 = arith.addf %255, %254 : vector<64x128xf32>
    %257 = tpu.reciprocal %256 {approx = true} : vector<64x128xf32> -> vector<64x128xf32>
    %258 = arith.mulf %249, %257 : vector<64x128xf32>
    %259 = arith.truncf %258 : vector<64x128xf32> to vector<64x128xbf16>
    %c0_170 = arith.constant 0 : index
    %c0_171 = arith.constant 0 : index
    %260 = vector.load %arg38[%c0_170, %c0_171] : memref<128x8xbf16, #tpu.memory_space<vmem>>, vector<128x8xbf16>
    %cst_172 = arith.constant dense<0.000000e+00> : vector<64x8xf32>
    %261 = tpu.matmul %259, %260, %cst_172 {dimension_numbers = #tpu.dot_dimension_numbers<[1], [0], [0], [1], [0, 0, 1, 1], [], []>} : vector<64x128xbf16>, vector<128x8xbf16>, vector<64x8xf32> -> vector<64x8xf32>
    %c0_173 = arith.constant 0 : index
    %c0_174 = arith.constant 0 : index
    %262 = vector.load %arg39[%c0_173, %c0_174] : memref<16x128xbf16, #tpu.memory_space<vmem>>, vector<16x128xbf16>
    %cst_175 = arith.constant dense<0.000000e+00> : vector<64x128xf32>
    %263 = tpu.matmul %3, %262, %cst_175 {dimension_numbers = #tpu.dot_dimension_numbers<[1], [0], [0], [1], [0, 0, 1, 1], [], []>} : vector<64x16xbf16>, vector<16x128xbf16>, vector<64x128xf32> -> vector<64x128xf32>
    %264 = arith.truncf %261 : vector<64x8xf32> to vector<64x8xbf16>
    %c0_176 = arith.constant 0 : index
    %c0_177 = arith.constant 0 : index
    %265 = vector.load %arg40[%c0_176, %c0_177] : memref<8x128xbf16, #tpu.memory_space<vmem>>, vector<8x128xbf16>
    %cst_178 = arith.constant dense<0.000000e+00> : vector<64x128xf32>
    %266 = tpu.matmul %264, %265, %cst_178 {dimension_numbers = #tpu.dot_dimension_numbers<[1], [0], [0], [1], [0, 0, 1, 1], [], []>} : vector<64x8xbf16>, vector<8x128xbf16>, vector<64x128xf32> -> vector<64x128xf32>
    %267 = arith.mulf %263, %266 : vector<64x128xf32>
    %268 = arith.truncf %267 : vector<64x128xf32> to vector<64x128xbf16>
    %c0_179 = arith.constant 0 : index
    %c0_180 = arith.constant 0 : index
    %269 = vector.load %arg41[%c0_179, %c0_180] : memref<128x144xbf16, #tpu.memory_space<vmem>>, vector<128x144xbf16>
    %cst_181 = arith.constant dense<0.000000e+00> : vector<64x144xf32>
    %270 = tpu.matmul %268, %269, %cst_181 {dimension_numbers = #tpu.dot_dimension_numbers<[1], [0], [0], [1], [0, 0, 1, 1], [], []>} : vector<64x128xbf16>, vector<128x144xbf16>, vector<64x144xf32> -> vector<64x144xf32>
    %cst_182 = arith.constant dense<0.000000e+00> : vector<64x18xf32>
    %271 = tpu.matmul %6, %223, %cst_182 {dimension_numbers = #tpu.dot_dimension_numbers<[1], [0], [0], [1], [0, 0, 1, 1], [], []>} : vector<64x8xbf16>, vector<8x18xbf16>, vector<64x18xf32> -> vector<64x18xf32>
    %272 = arith.truncf %271 : vector<64x18xf32> to vector<64x18xbf16>
    %c0_183 = arith.constant 0 : index
    %c0_184 = arith.constant 0 : index
    %273 = vector.load %arg42[%c0_183, %c0_184] : memref<18x144xbf16, #tpu.memory_space<vmem>>, vector<18x144xbf16>
    %cst_185 = arith.constant dense<0.000000e+00> : vector<64x144xf32>
    %274 = tpu.matmul %272, %273, %cst_185 {dimension_numbers = #tpu.dot_dimension_numbers<[1], [0], [0], [1], [0, 0, 1, 1], [], []>} : vector<64x18xbf16>, vector<18x144xbf16>, vector<64x144xf32> -> vector<64x144xf32>
    %275 = arith.mulf %270, %274 : vector<64x144xf32>
    %276 = arith.truncf %275 : vector<64x144xf32> to vector<64x144xbf16>
    %c0_186 = arith.constant 0 : index
    %c0_187 = arith.constant 0 : index
    %277 = vector.load %arg43[%c0_186, %c0_187] : memref<144x8xbf16, #tpu.memory_space<vmem>>, vector<144x8xbf16>
    %cst_188 = arith.constant dense<0.000000e+00> : vector<64x8xf32>
    %278 = tpu.matmul %276, %277, %cst_188 {dimension_numbers = #tpu.dot_dimension_numbers<[1], [0], [0], [1], [0, 0, 1, 1], [], []>} : vector<64x144xbf16>, vector<144x8xbf16>, vector<64x8xf32> -> vector<64x8xf32>
    %279 = arith.truncf %278 : vector<64x8xf32> to vector<64x8xbf16>
    %cst_189 = arith.constant dense<0.000000e+00> : vector<8x8xf32>
    %280 = tpu.matmul %7, %279, %cst_189 {dimension_numbers = #tpu.dot_dimension_numbers<[1], [0], [0], [1], [0, 0, 1, 1], [], []>} : vector<8x64xbf16>, vector<64x8xbf16>, vector<8x8xf32> -> vector<8x8xf32>
    %c0_190 = arith.constant 0 : index
    %c0_191 = arith.constant 0 : index
    %c0_192 = arith.constant 0 : index
    %281 = vector.load %arg44[%c0_190, %c0_191, %c0_192] : memref<1x8x8xf32, #tpu.memory_space<vmem>>, vector<1x8x8xf32>
    %282 = vector.shape_cast %281 : vector<1x8x8xf32> to vector<8x8xf32>
    %283 = vector.shape_cast %280 : vector<8x8xf32> to vector<1x8x8xf32>
    tpu.vector_store %arg44[%c0_190, %c0_191, %c0_192], %283 {strides = array<i32>} : memref<1x8x8xf32, #tpu.memory_space<vmem>>, vector<1x8x8xf32>,
    return
  }
  func.func @transform_0(%arg0: i32) -> (i32, i32, i32) {
    %c0_i32 = arith.constant 0 : i32
    %c0_i32_0 = arith.constant 0 : i32
    %c0_i32_1 = arith.constant 0 : i32
    return %arg0, %c0_i32, %c0_i32_0 : i32, i32, i32
  }
  func.func @transform_1(%arg0: i32) -> (i32, i32, i32) {
    %c0_i32 = arith.constant 0 : i32
    %c0_i32_0 = arith.constant 0 : i32
    %c0_i32_1 = arith.constant 0 : i32
    return %arg0, %c0_i32, %c0_i32_0 : i32, i32, i32
  }
  func.func @transform_2(%arg0: i32) -> (i32, i32, i32) {
    %c0_i32 = arith.constant 0 : i32
    %c0_i32_0 = arith.constant 0 : i32
    %c0_i32_1 = arith.constant 0 : i32
    return %arg0, %c0_i32, %c0_i32_0 : i32, i32, i32
  }
  func.func @transform_3(%arg0: i32) -> (i32, i32) {
    %c0_i32 = arith.constant 0 : i32
    %c0_i32_0 = arith.constant 0 : i32
    %c0_i32_1 = arith.constant 0 : i32
    return %c0_i32, %c0_i32_0 : i32, i32
  }
  func.func @transform_4(%arg0: i32) -> (i32, i32) {
    %c0_i32 = arith.constant 0 : i32
    %c0_i32_0 = arith.constant 0 : i32
    %c0_i32_1 = arith.constant 0 : i32
    return %c0_i32, %c0_i32_0 : i32, i32
  }
  func.func @transform_5(%arg0: i32) -> (i32, i32) {
    %c0_i32 = arith.constant 0 : i32
    %c0_i32_0 = arith.constant 0 : i32
    %c0_i32_1 = arith.constant 0 : i32
    return %c0_i32, %c0_i32_0 : i32, i32
  }
  func.func @transform_6(%arg0: i32) -> (i32, i32) {
    %c0_i32 = arith.constant 0 : i32
    %c0_i32_0 = arith.constant 0 : i32
    %c0_i32_1 = arith.constant 0 : i32
    return %c0_i32, %c0_i32_0 : i32, i32
  }
  func.func @transform_7(%arg0: i32) -> (i32, i32) {
    %c0_i32 = arith.constant 0 : i32
    %c0_i32_0 = arith.constant 0 : i32
    %c0_i32_1 = arith.constant 0 : i32
    return %c0_i32, %c0_i32_0 : i32, i32
  }
  func.func @transform_8(%arg0: i32) -> (i32, i32) {
    %c0_i32 = arith.constant 0 : i32
    %c0_i32_0 = arith.constant 0 : i32
    %c0_i32_1 = arith.constant 0 : i32
    return %c0_i32, %c0_i32_0 : i32, i32
  }
  func.func @transform_9(%arg0: i32) -> (i32, i32) {
    %c0_i32 = arith.constant 0 : i32
    %c0_i32_0 = arith.constant 0 : i32
    %c0_i32_1 = arith.constant 0 : i32
    return %c0_i32, %c0_i32_0 : i32, i32
  }
  func.func @transform_10(%arg0: i32) -> (i32, i32) {
    %c0_i32 = arith.constant 0 : i32
    %c0_i32_0 = arith.constant 0 : i32
    %c0_i32_1 = arith.constant 0 : i32
    return %c0_i32, %c0_i32_0 : i32, i32
  }
  func.func @transform_11(%arg0: i32) -> (i32, i32) {
    %c0_i32 = arith.constant 0 : i32
    %c0_i32_0 = arith.constant 0 : i32
    %c0_i32_1 = arith.constant 0 : i32
    return %c0_i32, %c0_i32_0 : i32, i32
  }
  func.func @transform_12(%arg0: i32) -> (i32, i32) {
    %c0_i32 = arith.constant 0 : i32
    %c0_i32_0 = arith.constant 0 : i32
    %c0_i32_1 = arith.constant 0 : i32
    return %c0_i32, %c0_i32_0 : i32, i32
  }
  func.func @transform_13(%arg0: i32) -> (i32, i32) {
    %c0_i32 = arith.constant 0 : i32
    %c0_i32_0 = arith.constant 0 : i32
    %c0_i32_1 = arith.constant 0 : i32
    return %c0_i32, %c0_i32_0 : i32, i32
  }
  func.func @transform_14(%arg0: i32) -> (i32, i32) {
    %c0_i32 = arith.constant 0 : i32
    %c0_i32_0 = arith.constant 0 : i32
    %c0_i32_1 = arith.constant 0 : i32
    return %c0_i32, %c0_i32_0 : i32, i32
  }
  func.func @transform_15(%arg0: i32) -> (i32, i32) {
    %c0_i32 = arith.constant 0 : i32
    %c0_i32_0 = arith.constant 0 : i32
    %c0_i32_1 = arith.constant 0 : i32
    return %c0_i32, %c0_i32_0 : i32, i32
  }
  func.func @transform_16(%arg0: i32) -> (i32, i32) {
    %c0_i32 = arith.constant 0 : i32
    %c0_i32_0 = arith.constant 0 : i32
    %c0_i32_1 = arith.constant 0 : i32
    return %c0_i32, %c0_i32_0 : i32, i32
  }
  func.func @transform_17(%arg0: i32) -> (i32, i32) {
    %c0_i32 = arith.constant 0 : i32
    %c0_i32_0 = arith.constant 0 : i32
    %c0_i32_1 = arith.constant 0 : i32
    return %c0_i32, %c0_i32_0 : i32, i32
  }
  func.func @transform_18(%arg0: i32) -> (i32, i32) {
    %c0_i32 = arith.constant 0 : i32
    %c0_i32_0 = arith.constant 0 : i32
    %c0_i32_1 = arith.constant 0 : i32
    return %c0_i32, %c0_i32_0 : i32, i32
  }
  func.func @transform_19(%arg0: i32) -> (i32, i32) {
    %c0_i32 = arith.constant 0 : i32
    %c0_i32_0 = arith.constant 0 : i32
    %c0_i32_1 = arith.constant 0 : i32
    return %c0_i32, %c0_i32_0 : i32, i32
  }
  func.func @transform_20(%arg0: i32) -> (i32, i32) {
    %c0_i32 = arith.constant 0 : i32
    %c0_i32_0 = arith.constant 0 : i32
    %c0_i32_1 = arith.constant 0 : i32
    return %c0_i32, %c0_i32_0 : i32, i32
  }
  func.func @transform_21(%arg0: i32) -> (i32, i32) {
    %c0_i32 = arith.constant 0 : i32
    %c0_i32_0 = arith.constant 0 : i32
    %c0_i32_1 = arith.constant 0 : i32
    return %c0_i32, %c0_i32_0 : i32, i32
  }
  func.func @transform_22(%arg0: i32) -> (i32, i32) {
    %c0_i32 = arith.constant 0 : i32
    %c0_i32_0 = arith.constant 0 : i32
    %c0_i32_1 = arith.constant 0 : i32
    return %c0_i32, %c0_i32_0 : i32, i32
  }
  func.func @transform_23(%arg0: i32) -> (i32, i32) {
    %c0_i32 = arith.constant 0 : i32
    %c0_i32_0 = arith.constant 0 : i32
    %c0_i32_1 = arith.constant 0 : i32
    return %c0_i32, %c0_i32_0 : i32, i32
  }
  func.func @transform_24(%arg0: i32) -> (i32, i32) {
    %c0_i32 = arith.constant 0 : i32
    %c0_i32_0 = arith.constant 0 : i32
    %c0_i32_1 = arith.constant 0 : i32
    return %c0_i32, %c0_i32_0 : i32, i32
  }
  func.func @transform_25(%arg0: i32) -> (i32, i32) {
    %c0_i32 = arith.constant 0 : i32
    %c0_i32_0 = arith.constant 0 : i32
    %c0_i32_1 = arith.constant 0 : i32
    return %c0_i32, %c0_i32_0 : i32, i32
  }
  func.func @transform_26(%arg0: i32) -> (i32, i32) {
    %c0_i32 = arith.constant 0 : i32
    %c0_i32_0 = arith.constant 0 : i32
    %c0_i32_1 = arith.constant 0 : i32
    return %c0_i32, %c0_i32_0 : i32, i32
  }
  func.func @transform_27(%arg0: i32) -> (i32, i32) {
    %c0_i32 = arith.constant 0 : i32
    %c0_i32_0 = arith.constant 0 : i32
    %c0_i32_1 = arith.constant 0 : i32
    return %c0_i32, %c0_i32_0 : i32, i32
  }
  func.func @transform_28(%arg0: i32) -> (i32, i32) {
    %c0_i32 = arith.constant 0 : i32
    %c0_i32_0 = arith.constant 0 : i32
    %c0_i32_1 = arith.constant 0 : i32
    return %c0_i32, %c0_i32_0 : i32, i32
  }
  func.func @transform_29(%arg0: i32) -> (i32, i32) {
    %c0_i32 = arith.constant 0 : i32
    %c0_i32_0 = arith.constant 0 : i32
    %c0_i32_1 = arith.constant 0 : i32
    return %c0_i32, %c0_i32_0 : i32, i32
  }
  func.func @transform_30(%arg0: i32) -> (i32, i32) {
    %c0_i32 = arith.constant 0 : i32
    %c0_i32_0 = arith.constant 0 : i32
    %c0_i32_1 = arith.constant 0 : i32
    return %c0_i32, %c0_i32_0 : i32, i32
  }
  func.func @transform_31(%arg0: i32) -> (i32, i32) {
    %c0_i32 = arith.constant 0 : i32
    %c0_i32_0 = arith.constant 0 : i32
    %c0_i32_1 = arith.constant 0 : i32
    return %c0_i32, %c0_i32_0 : i32, i32
  }
  func.func @transform_32(%arg0: i32) -> (i32, i32) {
    %c0_i32 = arith.constant 0 : i32
    %c0_i32_0 = arith.constant 0 : i32
    %c0_i32_1 = arith.constant 0 : i32
    return %c0_i32, %c0_i32_0 : i32, i32
  }
  func.func @transform_33(%arg0: i32) -> (i32, i32) {
    %c0_i32 = arith.constant 0 : i32
    %c0_i32_0 = arith.constant 0 : i32
    %c0_i32_1 = arith.constant 0 : i32
    return %c0_i32, %c0_i32_0 : i32, i32
  }
  func.func @transform_34(%arg0: i32) -> (i32, i32) {
    %c0_i32 = arith.constant 0 : i32
    %c0_i32_0 = arith.constant 0 : i32
    %c0_i32_1 = arith.constant 0 : i32
    return %c0_i32, %c0_i32_0 : i32, i32
  }
  func.func @transform_35(%arg0: i32) -> (i32, i32) {
    %c0_i32 = arith.constant 0 : i32
    %c0_i32_0 = arith.constant 0 : i32
    %c0_i32_1 = arith.constant 0 : i32
    return %c0_i32, %c0_i32_0 : i32, i32
  }
  func.func @transform_36(%arg0: i32) -> (i32, i32) {
    %c0_i32 = arith.constant 0 : i32
    %c0_i32_0 = arith.constant 0 : i32
    %c0_i32_1 = arith.constant 0 : i32
    return %c0_i32, %c0_i32_0 : i32, i32
  }
  func.func @transform_37(%arg0: i32) -> (i32, i32) {
    %c0_i32 = arith.constant 0 : i32
    %c0_i32_0 = arith.constant 0 : i32
    %c0_i32_1 = arith.constant 0 : i32
    return %c0_i32, %c0_i32_0 : i32, i32
  }
  func.func @transform_38(%arg0: i32) -> (i32, i32) {
    %c0_i32 = arith.constant 0 : i32
    %c0_i32_0 = arith.constant 0 : i32
    %c0_i32_1 = arith.constant 0 : i32
    return %c0_i32, %c0_i32_0 : i32, i32
  }
  func.func @transform_39(%arg0: i32) -> (i32, i32) {
    %c0_i32 = arith.constant 0 : i32
    %c0_i32_0 = arith.constant 0 : i32
    %c0_i32_1 = arith.constant 0 : i32
    return %c0_i32, %c0_i32_0 : i32, i32
  }
  func.func @transform_40(%arg0: i32) -> (i32, i32) {
    %c0_i32 = arith.constant 0 : i32
    %c0_i32_0 = arith.constant 0 : i32
    %c0_i32_1 = arith.constant 0 : i32
    return %c0_i32, %c0_i32_0 : i32, i32
  }
  func.func @transform_41(%arg0: i32) -> (i32, i32) {
    %c0_i32 = arith.constant 0 : i32
    %c0_i32_0 = arith.constant 0 : i32
    %c0_i32_1 = arith.constant 0 : i32
    return %c0_i32, %c0_i32_0 : i32, i32
  }
  func.func @transform_42(%arg0: i32) -> (i32, i32) {
    %c0_i32 = arith.constant 0 : i32
    %c0_i32_0 = arith.constant 0 : i32
    %c0_i32_1 = arith.constant 0 : i32
    return %c0_i32, %c0_i32_0 : i32, i32
  }
  func.func @transform_43(%arg0: i32) -> (i32, i32, i32) {
    %c0_i32 = arith.constant 0 : i32
    %c0_i32_0 = arith.constant 0 : i32
    %c0_i32_1 = arith.constant 0 : i32
    return %arg0, %c0_i32, %c0_i32_0 : i32, i32, i32
  }
}

</mosaic_0001>

<bundles_post_ra>
// kernel: _lambda_.1
= control target key start
LH: loop header
LB: loop body
LE: loop exit
PB: predicated region body
PF: predicated region fallthrough
CT: control target
= control target key end

     0   :  { %s14670_s6 = smov 1   ;;  %s14671_s10 = smov 2   ;;  %s16897_s0 = inlined_call_operand.smem [shape: u32[44], index: -1, kind: input, shape index: {}] }
   0x1   :  { %s14724_s5 = sld [smem:[%s16897_s0]]   ;;  %s14672_s14 = smov 3  }
   0x2   :  { %s14729_s9 = sld [smem:[%s16897_s0 + %s14670_s6]]   ;;  %s14673_s18 = smov 4  }
   0x3   :  { %s14734_s13 = sld [smem:[%s16897_s0 + %s14671_s10]]   ;;  %s14674_s22 = smov 5  }
   0x4   :  { %s14739_s17 = sld [smem:[%s16897_s0 + %s14672_s14]]   ;;  %s14675_s26 = smov 6  }
   0x5   :  { %s14744_s21 = sld [smem:[%s16897_s0 + %s14673_s18]]   ;;  %s14676_s30 = smov 7  }
   0x6   :  { %s14749_s25 = sld [smem:[%s16897_s0 + %s14674_s22]]   ;;  %s14677_s4 = smov 8  }
   0x7   :  { %s14754_s29 = sld [smem:[%s16897_s0 + %s14675_s26]]   ;;  %s14678_s10 = smov 9  }
   0x8   :  { %s14759_s3 = sld [smem:[%s16897_s0 + %s14676_s30]]   ;;  %s14679_s15 = smov 10  }
   0x9   :  { %s14764_s8 = sld [smem:[%s16897_s0 + %s14677_s4]]   ;;  %s14680_s20 = smov 11  }
   0xa   :  { %s14769_s14 = sld [smem:[%s16897_s0 + %s14678_s10]]   ;;  %s14681_s26 = smov 12  }
   0xb   :  { %16941 = sst [smem:[#allocation2_spill]] %s14744_s21  ;;  %s14682_s1 = smov 13  }
   0xc   :  { %s14774_s19 = sld [smem:[%s16897_s0 + %s14679_s15]]   ;;  %s14683_s7 = smov 14  }
   0xd   :  { %16942 = sst [smem:[#allocation3_spill]] %s14754_s29  ;;  %s14684_s15 = smov 15  }
   0xe   :  { %s14779_s24 = sld [smem:[%s16897_s0 + %s14680_s20]]   ;;  %s14685_s22 = smov 16  }
   0xf   :  { %s14784_s30 = sld [smem:[%s16897_s0 + %s14681_s26]]   ;;  %s14686_s28 = smov 17  }
  0x10   :  { %s14789_s6 = sld [smem:[%s16897_s0 + %s14682_s1]]  }
  0x11   :  { %s14794_s12 = sld [smem:[%s16897_s0 + %s14683_s7]]   ;;  %s14687_s7 = smov 18  }
  0x12   :  { %s14799_s20 = sld [smem:[%s16897_s0 + %s14684_s15]]   ;;  %s14688_s15 = smov 19  }
  0x13   :  { %s14804_s27 = sld [smem:[%s16897_s0 + %s14685_s22]]   ;;  %s14689_s22 = smov 20  }
  0x14   :  { %s14809_s4 = sld [smem:[%s16897_s0 + %s14686_s28]]   ;;  %s14690_s28 = smov 21  }
  0x15   :  { %s14814_s29 = sld [smem:[%s16897_s0 + %s14687_s7]]   ;;  %s14691_s7 = smov 22  }
  0x16   :  { %s14819_s21 = sld [smem:[%s16897_s0 + %s14688_s15]]   ;;  %s14692_s15 = smov 23  }
  0x19   :  { %16943 = sst [smem:[#allocation4_spill]] %s14804_s27 }
  0x1a   :  { %16944 = sst [smem:[#allocation5_spill]] %s14809_s4 }
  0x1b   :  { %16945 = sst [smem:[#allocation6_spill]] %s14814_s29 }
  0x1c   :  { %16946 = sst [smem:[#allocation7_spill]] %s14819_s21 }
  0x1d   :  { %s14824_s27 = sld [smem:[%s16897_s0 + %s14689_s22]]   ;;  %s14693_s22 = smov 24  }
  0x1e   :  { %s14829_s4 = sld [smem:[%s16897_s0 + %s14690_s28]]   ;;  %s14694_s28 = smov 25  }
  0x1f   :  { %s14834_s29 = sld [smem:[%s16897_s0 + %s14691_s7]]   ;;  %s14695_s7 = smov 26  }
  0x20   :  { %s14839_s21 = sld [smem:[%s16897_s0 + %s14692_s15]]   ;;  %s14696_s15 = smov 27  }
  0x23   :  { %16947 = sst [smem:[#allocation8_spill]] %s14824_s27 }
  0x24   :  { %16948 = sst [smem:[#allocation9_spill]] %s14829_s4 }
  0x25   :  { %16949 = sst [smem:[#allocation10_spill]] %s14834_s29 }
  0x26   :  { %16950 = sst [smem:[#allocation11_spill]] %s14839_s21 }
  0x27   :  { %s14844_s27 = sld [smem:[%s16897_s0 + %s14693_s22]]   ;;  %s14697_s22 = smov 28  }
  0x28   :  { %s14849_s4 = sld [smem:[%s16897_s0 + %s14694_s28]]   ;;  %s14698_s28 = smov 29  }
  0x29   :  { %s14854_s29 = sld [smem:[%s16897_s0 + %s14695_s7]]   ;;  %s14699_s7 = smov 30  }
  0x2a   :  { %s14859_s21 = sld [smem:[%s16897_s0 + %s14696_s15]]   ;;  %s14700_s15 = smov 31  }
  0x2d   :  { %16951 = sst [smem:[#allocation12_spill]] %s14844_s27 }
  0x2e   :  { %16952 = sst [smem:[#allocation13_spill]] %s14849_s4 }
  0x2f   :  { %16953 = sst [smem:[#allocation14_spill]] %s14854_s29 }
  0x30   :  { %16954 = sst [smem:[#allocation15_spill]] %s14859_s21 }
  0x31   :  { %s14864_s27 = sld [smem:[%s16897_s0 + %s14697_s22]]   ;;  %s14701_s22 = smov 32  }
  0x32   :  { %s14869_s4 = sld [smem:[%s16897_s0 + %s14698_s28]]   ;;  %s14702_s28 = smov 33  }
  0x33   :  { %s14874_s29 = sld [smem:[%s16897_s0 + %s14699_s7]]   ;;  %s14703_s7 = smov 34  }
  0x34   :  { %s14879_s21 = sld [smem:[%s16897_s0 + %s14700_s15]]   ;;  %s14704_s15 = smov 35  }
  0x37   :  { %16955 = sst [smem:[#allocation16_spill]] %s14864_s27 }
  0x38   :  { %16956 = sst [smem:[#allocation17_spill]] %s14869_s4 }
  0x39   :  { %16957 = sst [smem:[#allocation18_spill]] %s14874_s29 }
  0x3a   :  { %16958 = sst [smem:[#allocation19_spill]] %s14879_s21 }
  0x3b   :  { %s14884_s27 = sld [smem:[%s16897_s0 + %s14701_s22]]   ;;  %s14705_s22 = smov 36  }
  0x3c   :  { %s14889_s4 = sld [smem:[%s16897_s0 + %s14702_s28]]   ;;  %s14706_s28 = smov 37  }
  0x3d   :  { %s14894_s29 = sld [smem:[%s16897_s0 + %s14703_s7]]   ;;  %s14707_s7 = smov 38  }
  0x3e   :  { %s14899_s21 = sld [smem:[%s16897_s0 + %s14704_s15]]   ;;  %s14708_s15 = smov 39  }
  0x41   :  { %16959 = sst [smem:[#allocation20_spill]] %s14884_s27 }
  0x42   :  { %16960 = sst [smem:[#allocation21_spill]] %s14889_s4 }
  0x43   :  { %16961 = sst [smem:[#allocation22_spill]] %s14894_s29 }
  0x44   :  { %16962 = sst [smem:[#allocation23_spill]] %s14899_s21 }
  0x45   :  { %s14904_s27 = sld [smem:[%s16897_s0 + %s14705_s22]]   ;;  %s14709_s22 = smov 40  }
  0x46   :  { %s14909_s4 = sld [smem:[%s16897_s0 + %s14706_s28]]   ;;  %s14710_s28 = smov 41  }
  0x47   :  { %s14914_s29 = sld [smem:[%s16897_s0 + %s14707_s7]]   ;;  %s14711_s7 = smov 42  }
  0x48   :  { %s14919_s21 = sld [smem:[%s16897_s0 + %s14708_s15]]   ;;  %s14712_s15 = smov 43  }
  0x4b   :  { %16963 = sst [smem:[#allocation24_spill]] %s14904_s27 }
  0x4c   :  { %16964 = sst [smem:[#allocation25_spill]] %s14909_s4 }
  0x4d   :  { %16965 = sst [smem:[#allocation26_spill]] %s14914_s29 }
  0x4e   :  { %16966 = sst [smem:[#allocation27_spill]] %s14919_s21 }
  0x4f   :  { %s14924_s27 = sld [smem:[%s16897_s0 + %s14709_s22]]   ;;  %s14941_s22 = smov 0  }
  0x50   :  { %s14929_s4 = sld [smem:[%s16897_s0 + %s14710_s28]]  }
  0x51   :  { %s14934_s29 = sld [smem:[%s16897_s0 + %s14711_s7]]  }
  0x52   :  { %s14939_s21 = sld [smem:[%s16897_s0 + %s14712_s15]]  }
  0x53 LB: > { %s11432_s23 = sadd.s32 4294967295, %s14668_s22   ;;  %p11436_p0 = scmp.ge.s32.totalorder %s14668_s22, 1  ;;  %s14668_s22 = sphi %s14941_s22, %s97_s22  }
  0x54   : > { %p1200_p1 = scmp.lt.s32.totalorder %s14668_s22, 3 }
  0x56   : > { %p1201_p2 = pnand %p11436_p0, %p1200_p1 }
  0x58   : > { %1204 = sbr.rel (%p1201_p2) target bundleno = 8323 (0x2083), region = 192 }
  0x5f   : > { %v1357_v0 = vld [vmem:[%s14759_s3] sm:$0xf]  ;;  %vm1391_vm0 = vcmask 1043456   ;;  %p1312_p3 = scmp.lt.s32.totalorder %s11432_s23, 1  ;;  %vm1378_vm1 = vcmask 64512   ;;  %v13468_v7 = vld [vmem:[%s14764_s8 + $0x8] sm:$0xff]  }
  0x60   : > { %13395 = vmatprep.subr.msk.bf16.mxu0 %vm1391_vm0, %v1357_v0  ;;  %v1393_v1 = vsel %vm1391_vm0, %v1357_v0, 0  ;;  %v13467_v6 = vld [vmem:[%s14764_s8] sm:$0xff]   ;;  %v13469_v8 = vld [vmem:[%s14764_s8 + $0x10] sm:$0xff]   ;;  %v13470_v9 = vld [vmem:[%s14764_s8 + $0x18] sm:$0xff]   ;;  %vm2055_vm2 = vcmask 130048   ;;  %vm14715_vm3 = vmmov 0  }
  0x61   : > { %12814 = vmatpush3.bf16.msra.mxu0 %v1393_v1  ;;  %s17012_s23 = smov (!%p1312_p3, %s11432_s23), 1  ;;  %12823 = vmatprep.subr.bf16.mxu1 %v13467_v6  ;;  %v13471_v10 = vld [vmem:[%s14764_s8 + $0x20] sm:$0xff]   ;;  %v13472_v11 = vld [vmem:[%s14764_s8 + $0x28] sm:$0xff]   ;;  %v13473_v12 = vld [vmem:[%s14764_s8 + $0x30] sm:$0xff]   ;;  %s16967_s7 = sld [smem:[#allocation2_spill]]  ;;  %vm2777_vm4 = vcmask 523264  }
  0x62   : > { %s12171_s0 = sshll.u32 %s17012_s23, 5  ;;  %12824 = vmatpush3.bf16.msra.mxu1 %v13467_v6  ;;  %v13474_v13 = vld [vmem:[%s14764_s8 + $0x38] sm:$0xff]   ;;  %s11441_s1 = sshll.u32 %s17012_s23, 2  ;;  %vm2844_vm5 = vcmask 1040384   ;;  %vm2840_vm6 = vcmask 146432   ;;  %vm4078_vm7 = vcmask 392192  }
  0x63   : > { %s14956_s26 = scalar_lea.vmem %s14724_s5, %s12171_s0  ;;  %s14967_s28 = scalar_lea.vmem %s14729_s9, %s12171_s0  ;;  %12825 = vmatprep.subr.bf16.mxu1 %v13468_v7  ;;  %vm6230_vm8 = vcmask 1041408   ;;  %vm6217_vm9 = vcmask 556032  }
  0x64   : > { %v13463_v2 = vld [vmem:[%s14956_s26] sm:$0xff]   ;;  %v13464_v3 = vld [vmem:[%s14956_s26 + $0x8] sm:$0xff]   ;;  %v13465_v4 = vld [vmem:[%s14956_s26 + $0x10] sm:$0xff]   ;;  %s1325_s2 = scalar_lea.vmem %s14734_s13, %s11441_s1  ;;  %s16968_s10 = sld [smem:[#allocation4_spill]] }
  0x65   : > { %12815 = vmatprep.mubr.msk.bf16.mxu0 %vm1378_vm1, %v13463_v2  ;;  %v13466_v5 = vld [vmem:[%s14956_s26 + $0x18] sm:$0xff]   ;;  %s16971_s11 = sld [smem:[#allocation3_spill]]  ;;  %s16972_s15 = sld [smem:[#allocation5_spill]] }
  0x66   : > { %12816 = vmatmul.mubr.msk.bf16.vlgmr.msra.gmra.mrb[0].mxu0 %vm1378_vm1, %v13464_v3  ;;  %12826 = vmatpush3.bf16.msra.mxu1 %v13468_v7  ;;  %s16973_s16 = sld [smem:[#allocation6_spill]]  ;;  %s16975_s18 = sld [smem:[#allocation7_spill]] }
  0x67   : > { %12819 = vmatprep.mubr.msk.bf16.mxu0 %vm1378_vm1, %v13465_v4  ;;  %12827 = vmatprep.subr.bf16.mxu1 %v13469_v8  ;;  %s16976_s0 = sld [smem:[#allocation8_spill]]  ;;  %s16977_s1 = sld [smem:[#allocation9_spill]] }
  0x6a   : > { %12828 = vmatpush3.bf16.msra.mxu1 %v13469_v8 }
  0x6b   : > { %12829 = vmatprep.subr.bf16.mxu1 %v13470_v9 }
  0x6e   : > { %12820 = vmatmul.mubr.msk.bf16.gmra.mrb[4].mxu0 %vm1378_vm1, %v13466_v5  ;;  %12830 = vmatpush3.bf16.msra.mxu1 %v13470_v9 }
  0x6f   : > { %12831 = vmatprep.subr.bf16.mxu1 %v13471_v10 }
  0x72   : > { %12832 = vmatpush3.bf16.msra.mxu1 %v13471_v10 }
  0x73   : > { %12833 = vmatprep.subr.bf16.mxu1 %v13472_v11 }
  0x76   : > { %12834 = vmatpush3.bf16.msra.mxu1 %v13472_v11 }
  0x77   : > { %12835 = vmatprep.subr.bf16.mxu1 %v13473_v12 }
  0x7a   : > { %12836 = vmatpush3.bf16.msra.mxu1 %v13473_v12 }
  0x7b   : > { %12837 = vmatprep.subr.bf16.mxu1 %v13474_v13 }
  0x7e   : > { %12838 = vmatpush3.bf16.msra.mxu1 %v13474_v13 }
 0x139   : > { %v14977_v14 = vpop.f32.mrb[0].mxu0 }
 0x13a   : > { %v1462_v15 = vsub.f32 0.0, %v14977_v14  ;;  %v14980_v16 = vpop.f32.mrb[1].mxu0 }
 0x13b   : > { %v1460_v17 = vsub.f32 0.0, %v14980_v16  ;;  %v14983_v18 = vpop.f32.mrb[2].mxu0 }
 0x13c   : > { %v1470_v19 = vmin.f32 %v1462_v15, 80.0  ;;  %v1463_v20 = vsub.f32 0.0, %v14983_v18  ;;  %v14986_v21 = vpop.f32.mrb[3].mxu0 }
 0x13d   : > { %v1468_v22 = vmin.f32 %v1460_v17, 80.0  ;;  %v1461_v23 = vsub.f32 0.0, %v14986_v21 }
 0x13e   : > { %v1480_v24 = vmul.f32 1.442695, %v1470_v19  ;;  %v1471_v25 = vmin.f32 %v1463_v20, 80.0  ;;  %v13476_v19 = vld [vmem:[%s14769_s14 + $0x8] sm:$0xff]   ;;  %v13477_v20 = vld [vmem:[%s14769_s14 + $0x10] sm:$0xff]  }
 0x13f   : > { %v1476_v26 = vmul.f32 1.442695, %v1468_v22  ;;  %v1469_v27 = vmin.f32 %v1461_v23, 80.0  ;;  %v13479_v22 = vld [vmem:[%s14769_s14 + $0x20] sm:$0xff]   ;;  %v13480_v23 = vld [vmem:[%s14769_s14 + $0x28] sm:$0xff]  }
 0x140   : > { %14179 = vpow2.f32 %v1480_v24  ;;  %v1482_v28 = vmul.f32 1.442695, %v1471_v25  ;;  %v13481_v24 = vld [vmem:[%s14769_s14 + $0x30] sm:$0xff]   ;;  %v13482_v25 = vld [vmem:[%s14769_s14 + $0x38] sm:$0xff]  }
 0x141   : > { %14181 = vpow2.f32 %v1476_v26  ;;  %v1478_v29 = vmul.f32 1.442695, %v1469_v27  ;;  %v12821_v30 = vpop.f32.mrb[4].mxu0 }
 0x142   : > { %14183 = vpow2.f32 %v1482_v28  ;;  %v1466_v31 = vsub.f32 0.0, %v12821_v30  ;;  %v1445_v32 = vpop.f32.mrb[5].mxu0 }
 0x143   : > { %14185 = vpow2.f32 %v1478_v29  ;;  %v1464_v33 = vsub.f32 0.0, %v1445_v32  ;;  %v12822_v34 = vpop.f32.mrb[6].mxu0 }
 0x144   : > { %v1474_v35 = vmin.f32 %v1466_v31, 80.0  ;;  %v1467_v36 = vsub.f32 0.0, %v12822_v34  ;;  %v1448_v37 = vpop.f32.mrb[7].mxu0 }
 0x145   : > { %v1472_v38 = vmin.f32 %v1464_v33, 80.0  ;;  %v1465_v39 = vsub.f32 0.0, %v1448_v37 }
 0x146   : > { %v1488_v40 = vmul.f32 1.442695, %v1474_v35  ;;  %v1475_v41 = vmin.f32 %v1467_v36, 80.0 }
 0x147   : > { %v1484_v42 = vmul.f32 1.442695, %v1472_v38  ;;  %v1473_v43 = vmin.f32 %v1465_v39, 80.0 }
 0x148   : > { %14187 = vpow2.f32 %v1488_v40  ;;  %v1490_v44 = vmul.f32 1.442695, %v1475_v41 }
 0x149   : > { %14189 = vpow2.f32 %v1484_v42  ;;  %v1486_v45 = vmul.f32 1.442695, %v1473_v43 }
 0x14a   : > { %v14180_v46 = vpop.eup %14179  ;;  %14191 = vpow2.f32 %v1490_v44 }
 0x14b   : > { %v14182_v47 = vpop.eup %14181  ;;  %v1494_v48 = vadd.f32 1.0, %v14180_v46  ;;  %14193 = vpow2.f32 %v1486_v45 }
 0x14c   : > { %v14184_v49 = vpop.eup %14183  ;;  %v1492_v50 = vadd.f32 1.0, %v14182_v47 }
 0x14d   : > { %v14186_v51 = vpop.eup %14185  ;;  %14195 = vrcp.f32 %v1494_v48  ;;  %v1495_v52 = vadd.f32 1.0, %v14184_v49 }
 0x14e   : > { %14197 = vrcp.f32 %v1492_v50  ;;  %v1493_v53 = vadd.f32 1.0, %v14186_v51 }
 0x14f   : > { %14199 = vrcp.f32 %v1495_v52 }
 0x150   : > { %14201 = vrcp.f32 %v1493_v53 }
 0x152   : > { %v14188_v54 = vpop.eup %14187 }
 0x153   : > { %v14190_v55 = vpop.eup %14189  ;;  %v1498_v56 = vadd.f32 1.0, %v14188_v54 }
 0x154   : > { %v14192_v57 = vpop.eup %14191  ;;  %v1496_v58 = vadd.f32 1.0, %v14190_v55 }
 0x155   : > { %v14194_v59 = vpop.eup %14193  ;;  %14203 = vrcp.f32 %v1498_v56  ;;  %v1499_v60 = vadd.f32 1.0, %v14192_v57 }
 0x156   : > { %14205 = vrcp.f32 %v1496_v58  ;;  %v1497_v61 = vadd.f32 1.0, %v14194_v59 }
 0x157   : > { %v14196_v62 = vpop.eup %14195  ;;  %14207 = vrcp.f32 %v1499_v60 }
 0x158   : > { %v14198_v63 = vpop.eup %14197  ;;  %14209 = vrcp.f32 %v1497_v61  ;;  %v1510_v2 = vmul.f32 %v14196_v62, %v14977_v14 }
 0x159   : > { %v14200_v0 = vpop.eup %14199  ;;  %v1508_v4 = vmul.f32 %v14198_v63, %v14980_v16 }
 0x15a   : > { %v14202_v1 = vpop.eup %14201  ;;  %v1511_v3 = vmul.f32 %v14200_v0, %v14983_v18  ;;  %v13475_v18 = vld [vmem:[%s14769_s14] sm:$0xff]  }
 0x15b   : > { %v1509_v5 = vmul.f32 %v14202_v1, %v14986_v21  ;;  %12847 = vmatprep.subr.bf16.mxu0 %v13475_v18  ;;  %v13478_v21 = vld [vmem:[%s14769_s14 + $0x18] sm:$0xff]  }
 0x15c   : > { %v1517_v6 = vpack.c.bf16 %v1511_v3, %v1510_v2  ;;  %12848 = vmatpush3.bf16.msra.mxu0 %v13475_v18 }
 0x15d   : > { %v1516_v7 = vpack.c.bf16 %v1509_v5, %v1508_v4  ;;  %12849 = vmatprep.subr.bf16.mxu0 %v13476_v19 }
 0x15f   : > { %v14204_v8 = vpop.eup %14203  ;;  %12839 = vmatprep.mubr.bf16.mxu1 %v1516_v7 }
 0x160   : > { %v14206_v9 = vpop.eup %14205  ;;  %12840 = vmatmul.mubr.bf16.vlgmr.msra.gmra.mrb[0].mxu1 %v1517_v6  ;;  %v1514_v12 = vmul.f32 %v14204_v8, %v12821_v30  ;;  %12850 = vmatpush3.bf16.msra.mxu0 %v13476_v19 }
 0x161   : > { %v14208_v10 = vpop.eup %14207  ;;  %v1512_v14 = vmul.f32 %v14206_v9, %v1445_v32  ;;  %12851 = vmatprep.subr.bf16.mxu0 %v13477_v20 }
 0x162   : > { %v14210_v11 = vpop.eup %14209  ;;  %v1515_v13 = vmul.f32 %v14208_v10, %v12822_v34 }
 0x163   : > { %v1513_v15 = vmul.f32 %v14210_v11, %v1448_v37 }
 0x164   : > { %v1519_v17 = vpack.c.bf16 %v1515_v13, %v1514_v12  ;;  %12852 = vmatpush3.bf16.msra.mxu0 %v13477_v20 }
 0x165   : > { %v1518_v16 = vpack.c.bf16 %v1513_v15, %v1512_v14  ;;  %12853 = vmatprep.subr.bf16.mxu0 %v13478_v21 }
 0x167   : > { %12843 = vmatprep.mubr.bf16.mxu1 %v1518_v16 }
 0x168   : > { %12844 = vmatmul.mubr.bf16.gmra.mrb[4].mxu1 %v1519_v17  ;;  %12854 = vmatpush3.bf16.msra.mxu0 %v13478_v21 }
 0x169   : > { %12855 = vmatprep.subr.bf16.mxu0 %v13479_v22 }
 0x16c   : > { %12856 = vmatpush3.bf16.msra.mxu0 %v13479_v22 }
 0x16d   : > { %12857 = vmatprep.subr.bf16.mxu0 %v13480_v23 }
 0x170   : > { %12858 = vmatpush3.bf16.msra.mxu0 %v13480_v23 }
 0x171   : > { %12859 = vmatprep.subr.bf16.mxu0 %v13481_v24 }
 0x174   : > { %12860 = vmatpush3.bf16.msra.mxu0 %v13481_v24 }
 0x175   : > { %12861 = vmatprep.subr.bf16.mxu0 %v13482_v25 }
 0x178   : > { %12862 = vmatpush3.bf16.msra.mxu0 %v13482_v25 }
 0x233   : > { %v15001_v26 = vpop.f32.mrb[0].mxu1 }
 0x234   : > { %v1651_v27 = vsub.f32 0.0, %v15001_v26  ;;  %v15004_v28 = vpop.f32.mrb[1].mxu1 }
 0x235   : > { %v1649_v29 = vsub.f32 0.0, %v15004_v28  ;;  %v15007_v30 = vpop.f32.mrb[2].mxu1 }
 0x236   : > { %v1659_v31 = vmin.f32 %v1651_v27, 80.0  ;;  %v1652_v32 = vsub.f32 0.0, %v15007_v30  ;;  %v15010_v33 = vpop.f32.mrb[3].mxu1 }
 0x237   : > { %v1657_v34 = vmin.f32 %v1649_v29, 80.0  ;;  %v1650_v35 = vsub.f32 0.0, %v15010_v33 }
 0x238   : > { %v1669_v36 = vmul.f32 1.442695, %v1659_v31  ;;  %v1660_v37 = vmin.f32 %v1652_v32, 80.0  ;;  %v13484_v31 = vld [vmem:[%s14774_s19 + $0x8] sm:$0xff]   ;;  %v13485_v32 = vld [vmem:[%s14774_s19 + $0x10] sm:$0xff]  }
 0x239   : > { %v1665_v38 = vmul.f32 1.442695, %v1657_v34  ;;  %v1658_v39 = vmin.f32 %v1650_v35, 80.0  ;;  %v13487_v34 = vld [vmem:[%s14774_s19 + $0x20] sm:$0xff]   ;;  %v13488_v35 = vld [vmem:[%s14774_s19 + $0x28] sm:$0xff]  }
 0x23a   : > { %14211 = vpow2.f32 %v1669_v36  ;;  %v1671_v40 = vmul.f32 1.442695, %v1660_v37  ;;  %v13489_v36 = vld [vmem:[%s14774_s19 + $0x30] sm:$0xff]   ;;  %v13490_v37 = vld [vmem:[%s14774_s19 + $0x38] sm:$0xff]  }
 0x23b   : > { %14213 = vpow2.f32 %v1665_v38  ;;  %v1667_v41 = vmul.f32 1.442695, %v1658_v39  ;;  %v12845_v42 = vpop.f32.mrb[4].mxu1  ;;  %v13491_v38 = vld [vmem:[%s14779_s24] sm:$0xff]  }
 0x23c   : > { %14215 = vpow2.f32 %v1671_v40  ;;  %v1655_v43 = vsub.f32 0.0, %v12845_v42  ;;  %v1634_v44 = vpop.f32.mrb[5].mxu1  ;;  %v13492_v39 = vld [vmem:[%s14967_s28] sm:$0xff]   ;;  %12895 = vmatprep.subr.bf16.mxu0 %v13491_v38 }
 0x23d   : > { %14217 = vpow2.f32 %v1667_v41  ;;  %v1653_v45 = vsub.f32 0.0, %v1634_v44  ;;  %v12846_v46 = vpop.f32.mrb[6].mxu1  ;;  %v2137_v40 = vld [vmem:[%s14784_s30] sm:$0xf]  ;;  %v13493_v41 = vld [vmem:[%s14967_s28 + $0x8] sm:$0xff]  }
 0x23e   : > { %v1663_v47 = vmin.f32 %v1655_v43, 80.0  ;;  %v1656_v48 = vsub.f32 0.0, %v12846_v46  ;;  %v1637_v49 = vpop.f32.mrb[7].mxu1  ;;  %v2151_v43 = vsel %vm1391_vm0, %v2137_v40, 0 }
 0x23f   : > { %v1661_v50 = vmin.f32 %v1653_v45, 80.0  ;;  %v1654_v51 = vsub.f32 0.0, %v1637_v49 }
 0x240   : > { %v1677_v52 = vmul.f32 1.442695, %v1663_v47  ;;  %v1664_v53 = vmin.f32 %v1656_v48, 80.0 }
 0x241   : > { %v1673_v54 = vmul.f32 1.442695, %v1661_v50  ;;  %v1662_v55 = vmin.f32 %v1654_v51, 80.0 }
 0x242   : > { %14219 = vpow2.f32 %v1677_v52  ;;  %v1679_v56 = vmul.f32 1.442695, %v1664_v53 }
 0x243   : > { %14221 = vpow2.f32 %v1673_v54  ;;  %v1675_v57 = vmul.f32 1.442695, %v1662_v55 }
 0x244   : > { %v14212_v58 = vpop.eup %14211  ;;  %14223 = vpow2.f32 %v1679_v56 }
 0x245   : > { %v14214_v59 = vpop.eup %14213  ;;  %v1683_v60 = vadd.f32 1.0, %v14212_v58  ;;  %14225 = vpow2.f32 %v1675_v57 }
 0x246   : > { %v14216_v61 = vpop.eup %14215  ;;  %v1681_v62 = vadd.f32 1.0, %v14214_v59 }
 0x247   : > { %v14218_v63 = vpop.eup %14217  ;;  %14227 = vrcp.f32 %v1683_v60  ;;  %v1684_v0 = vadd.f32 1.0, %v14216_v61 }
 0x248   : > { %14229 = vrcp.f32 %v1681_v62  ;;  %v1682_v1 = vadd.f32 1.0, %v14218_v63 }
 0x249   : > { %14231 = vrcp.f32 %v1684_v0 }
 0x24a   : > { %14233 = vrcp.f32 %v1682_v1 }
 0x24c   : > { %v14220_v2 = vpop.eup %14219 }
 0x24d   : > { %v14222_v3 = vpop.eup %14221  ;;  %v1687_v4 = vadd.f32 1.0, %v14220_v2 }
 0x24e   : > { %v14224_v5 = vpop.eup %14223  ;;  %v1685_v6 = vadd.f32 1.0, %v14222_v3 }
 0x24f   : > { %v14226_v7 = vpop.eup %14225  ;;  %14235 = vrcp.f32 %v1687_v4  ;;  %v1688_v8 = vadd.f32 1.0, %v14224_v5 }
 0x250   : > { %14237 = vrcp.f32 %v1685_v6  ;;  %v1686_v9 = vadd.f32 1.0, %v14226_v7 }
 0x251   : > { %v14228_v10 = vpop.eup %14227  ;;  %14239 = vrcp.f32 %v1688_v8 }
 0x252   : > { %v14230_v11 = vpop.eup %14229  ;;  %14241 = vrcp.f32 %v1686_v9  ;;  %v1699_v14 = vmul.f32 %v14228_v10, %v15001_v26 }
 0x253   : > { %v14232_v12 = vpop.eup %14231  ;;  %v1697_v17 = vmul.f32 %v14230_v11, %v15004_v28 }
 0x254   : > { %v14234_v13 = vpop.eup %14233  ;;  %v1700_v15 = vmul.f32 %v14232_v12, %v15007_v30  ;;  %v13483_v30 = vld [vmem:[%s14774_s19] sm:$0xff]  }
 0x255   : > { %v1698_v16 = vmul.f32 %v14234_v13, %v15010_v33  ;;  %12871 = vmatprep.subr.bf16.mxu1 %v13483_v30  ;;  %v13486_v33 = vld [vmem:[%s14774_s19 + $0x18] sm:$0xff]  }
 0x256   : > { %v1706_v18 = vpack.c.bf16 %v1700_v15, %v1699_v14  ;;  %12872 = vmatpush3.bf16.msra.mxu1 %v13483_v30 }
 0x257   : > { %v1705_v19 = vpack.c.bf16 %v1698_v16, %v1697_v17  ;;  %12873 = vmatprep.subr.bf16.mxu1 %v13484_v31 }
 0x259   : > { %v14236_v20 = vpop.eup %14235  ;;  %12863 = vmatprep.mubr.bf16.mxu0 %v1705_v19 }
 0x25a   : > { %v14238_v21 = vpop.eup %14237  ;;  %12864 = vmatmul.mubr.bf16.vlgmr.msra.gmra.mrb[8].mxu0 %v1706_v18  ;;  %v1703_v24 = vmul.f32 %v14236_v20, %v12845_v42  ;;  %12874 = vmatpush3.bf16.msra.mxu1 %v13484_v31  ;;  %v13494_v42 = vld [vmem:[%s14967_s28 + $0x10] sm:$0xff]  }
 0x25b   : > { %v14240_v22 = vpop.eup %14239  ;;  %v1701_v26 = vmul.f32 %v14238_v21, %v1634_v44  ;;  %12875 = vmatprep.subr.bf16.mxu1 %v13485_v32  ;;  %12896 = vmatpush3.bf16.msra.mxu0 %v13491_v38  ;;  %v13495_v44 = vld [vmem:[%s14967_s28 + $0x18] sm:$0xff]  }
 0x25c   : > { %v14242_v23 = vpop.eup %14241  ;;  %v1704_v25 = vmul.f32 %v14240_v22, %v12846_v46  ;;  %13396 = vmatprep.subr.msk.bf16.mxu0 %vm1391_vm0, %v2137_v40 }
 0x25d   : > { %v1702_v27 = vmul.f32 %v14242_v23, %v1637_v49 }
 0x25e   : > { %v1708_v29 = vpack.c.bf16 %v1704_v25, %v1703_v24  ;;  %12876 = vmatpush3.bf16.msra.mxu1 %v13485_v32 }
 0x25f   : > { %v1707_v28 = vpack.c.bf16 %v1702_v27, %v1701_v26  ;;  %12877 = vmatprep.subr.bf16.mxu1 %v13486_v33 }
 0x261   : > { %12867 = vmatprep.mubr.bf16.mxu0 %v1707_v28 }
 0x262   : > { %12868 = vmatmul.mubr.bf16.gmra.mrb[12].mxu0 %v1708_v29  ;;  %12878 = vmatpush3.bf16.msra.mxu1 %v13486_v33 }
 0x263   : > { %12879 = vmatprep.subr.bf16.mxu1 %v13487_v34  ;;  %12897 = vmatprep.mubr.msk.bf16.mxu0 %vm2055_vm2, %v13492_v39 }
 0x266   : > { %12880 = vmatpush3.bf16.msra.mxu1 %v13487_v34 }
 0x267   : > { %12881 = vmatprep.subr.bf16.mxu1 %v13488_v35 }
 0x26a   : > { %12882 = vmatpush3.bf16.msra.mxu1 %v13488_v35  ;;  %12898 = vmatmul.mubr.msk.bf16.vlgmr.msra.gmra.mrb[16].mxu0 %vm2055_vm2, %v13493_v41 }
 0x26b   : > { %12883 = vmatprep.subr.bf16.mxu1 %v13489_v36  ;;  %12901 = vmatprep.mubr.msk.bf16.mxu0 %vm2055_vm2, %v13494_v42 }
 0x26c   : > { %12906 = vmatpush3.bf16.msra.mxu0 %v2151_v43 }
 0x26e   : > { %12884 = vmatpush3.bf16.msra.mxu1 %v13489_v36 }
 0x26f   : > { %12885 = vmatprep.subr.bf16.mxu1 %v13490_v37 }
 0x272   : > { %12886 = vmatpush3.bf16.msra.mxu1 %v13490_v37  ;;  %12902 = vmatmul.mubr.msk.bf16.gmra.mrb[20].mxu0 %vm2055_vm2, %v13495_v44 }
 0x32d   : > { %v15037_v45 = vpop.f32.mrb[8].mxu0 }
 0x32e   : > { %v1840_v46 = vsub.f32 0.0, %v15037_v45  ;;  %v15040_v47 = vpop.f32.mrb[9].mxu0 }
 0x32f   : > { %v1838_v48 = vsub.f32 0.0, %v15040_v47  ;;  %v15043_v49 = vpop.f32.mrb[10].mxu0 }
 0x330   : > { %v1848_v50 = vmin.f32 %v1840_v46, 80.0  ;;  %v1841_v51 = vsub.f32 0.0, %v15043_v49  ;;  %v15046_v52 = vpop.f32.mrb[11].mxu0 }
 0x331   : > { %v1846_v53 = vmin.f32 %v1838_v48, 80.0  ;;  %v1839_v54 = vsub.f32 0.0, %v15046_v52 }
 0x332   : > { %v1858_v55 = vmul.f32 1.442695, %v1848_v50  ;;  %v1849_v56 = vmin.f32 %v1841_v51, 80.0  ;;  %v13500_v50 = vld [vmem:[%s14789_s6] ss:$8 sps:$4 sm:$0xff]  }
 0x333   : > { %v1854_v57 = vmul.f32 1.442695, %v1846_v53  ;;  %v1847_v58 = vmin.f32 %v1839_v54, 80.0  ;;  %v13502_v51 = vld [vmem:[%s14789_s6 + $0x4] ss:$8 sps:$4 sm:$0xff]  }
 0x334   : > { %14243 = vpow2.f32 %v1858_v55  ;;  %v1860_v59 = vmul.f32 1.442695, %v1849_v56  ;;  %2326 = vmatprep.subr.bf16.mxu1 %v13502_v51  ;;  %v13503_v55 = vld [vmem:[%s14789_s6 + $0x10] ss:$8 sps:$4 sm:$0xff]  }
 0x335   : > { %14245 = vpow2.f32 %v1854_v57  ;;  %v1856_v60 = vmul.f32 1.442695, %v1847_v58  ;;  %v12869_v61 = vpop.f32.mrb[12].mxu0  ;;  %v13508_v58 = vld [vmem:[%s14789_s6 + $0x24] ss:$8 sps:$4 sm:$0xff]  }
 0x336   : > { %14247 = vpow2.f32 %v1860_v59  ;;  %v1844_v62 = vsub.f32 0.0, %v12869_v61  ;;  %v1823_v63 = vpop.f32.mrb[13].mxu0 }
 0x337   : > { %14249 = vpow2.f32 %v1856_v60  ;;  %v1842_v0 = vsub.f32 0.0, %v1823_v63  ;;  %v12870_v1 = vpop.f32.mrb[14].mxu0 }
 0x338   : > { %v1852_v2 = vmin.f32 %v1844_v62, 80.0  ;;  %v1845_v3 = vsub.f32 0.0, %v12870_v1  ;;  %v1826_v4 = vpop.f32.mrb[15].mxu0 }
 0x339   : > { %v1850_v5 = vmin.f32 %v1842_v0, 80.0  ;;  %v1843_v6 = vsub.f32 0.0, %v1826_v4 }
 0x33a   : > { %v1866_v7 = vmul.f32 1.442695, %v1852_v2  ;;  %v1853_v8 = vmin.f32 %v1845_v3, 80.0  ;;  %v13514_v2 = vld [vmem:[%s14789_s6 + $0x44] ss:$8 sps:$4 sm:$0xff]  }
 0x33b   : > { %v1862_v9 = vmul.f32 1.442695, %v1850_v5  ;;  %v1851_v10 = vmin.f32 %v1843_v6, 80.0  ;;  %v13512_v3 = vld [vmem:[%s14789_s6 + $0x40] ss:$8 sps:$4 sm:$0xff]  }
 0x33c   : > { %14251 = vpow2.f32 %v1866_v7  ;;  %v1868_v11 = vmul.f32 1.442695, %v1853_v8  ;;  %v13515_v5 = vld [vmem:[%s14789_s6 + $0x50] ss:$8 sps:$4 sm:$0xff]  }
 0x33d   : > { %14253 = vpow2.f32 %v1862_v9  ;;  %v1864_v12 = vmul.f32 1.442695, %v1851_v10  ;;  %v15059_v53 = vpop.f32.mrb[16].mxu0 }
 0x33e   : > { %v14244_v13 = vpop.eup %14243  ;;  %14255 = vpow2.f32 %v1868_v11  ;;  %v15061_v54 = vpop.f32.mrb[17].mxu0 }
 0x33f   : > { %v14246_v14 = vpop.eup %14245  ;;  %v1872_v15 = vadd.f32 1.0, %v14244_v13  ;;  %14257 = vpow2.f32 %v1864_v12  ;;  %v15064_v56 = vpop.f32.mrb[18].mxu0 }
 0x340   : > { %v14248_v17 = vpop.eup %14247  ;;  %v1870_v16 = vadd.f32 1.0, %v14246_v14  ;;  %v15066_v57 = vpop.f32.mrb[19].mxu0 }
 0x341   : > { %v14250_v18 = vpop.eup %14249  ;;  %14259 = vrcp.f32 %v1872_v15  ;;  %v1873_v19 = vadd.f32 1.0, %v14248_v17 }
 0x342   : > { %14261 = vrcp.f32 %v1870_v16  ;;  %v1871_v20 = vadd.f32 1.0, %v14250_v18 }
 0x343   : > { %14263 = vrcp.f32 %v1873_v19  ;;  %v13496_v19 = vld [vmem:[%s14739_s17] sm:$0xff]  }
 0x344   : > { %14265 = vrcp.f32 %v1871_v20  ;;  %v13497_v20 = vld [vmem:[%s14739_s17 + $0x8] sm:$0xff]  }
 0x345   : > { %v15069_v59 = vpop.f32.mrb[20].mxu0 }
 0x346   : > { %v14252_v21 = vpop.eup %14251  ;;  %v15071_v60 = vpop.f32.mrb[21].mxu0 }
 0x347   : > { %v14254_v22 = vpop.eup %14253  ;;  %v1876_v23 = vadd.f32 1.0, %v14252_v21  ;;  %v15074_v62 = vpop.f32.mrb[22].mxu0  ;;  %v13498_v21 = vld [vmem:[%s14739_s17 + $0x10] sm:$0xff]  }
 0x348   : > { %v14256_v24 = vpop.eup %14255  ;;  %v1874_v25 = vadd.f32 1.0, %v14254_v22  ;;  %v15077_v0 = vpop.f32.mrb[23].mxu0  ;;  %v13499_v22 = vld [vmem:[%s14739_s17 + $0x18] sm:$0xff]  }
 0x349   : > { %v14258_v26 = vpop.eup %14257  ;;  %14267 = vrcp.f32 %v1876_v23  ;;  %v1877_v27 = vadd.f32 1.0, %v14256_v24  ;;  %v13520_v23 = vld [vmem:[%s14789_s6 + $0x64] ss:$8 sps:$4 sm:$0xff]   ;;  %v13518_v24 = vld [vmem:[%s14789_s6 + $0x60] ss:$8 sps:$4 sm:$0xff]  }
 0x34a   : > { %14269 = vrcp.f32 %v1874_v25  ;;  %v1875_v29 = vadd.f32 1.0, %v14258_v26  ;;  %v13523_v25 = vld [vmem:[%s14789_s6 + $0x74] ss:$8 sps:$4 sm:$0xff]   ;;  %v13521_v26 = vld [vmem:[%s14789_s6 + $0x70] ss:$8 sps:$4 sm:$0xff]  }
 0x34b   : > { %v14260_v28 = vpop.eup %14259  ;;  %14271 = vrcp.f32 %v1877_v27  ;;  %v16921_v27 = vmov 0  }
 0x34c   : > { %v14262_v30 = vpop.eup %14261  ;;  %14273 = vrcp.f32 %v1875_v29  ;;  %v1888_v33 = vmul.f32 %v14260_v28, %v15037_v45  ;;  %v2503_v29 = vld [vmem:[%s14794_s12] sm:$0xff] }
 0x34d   : > { %v14264_v31 = vpop.eup %14263  ;;  %v1886_v35 = vmul.f32 %v14262_v30, %v15040_v47  ;;  %v11513_v28 = vcombine.high %v2503_v29, %v2503_v29  ;;  %v11512_v30 = vcombine.low %v2503_v29, %v2503_v29 }
 0x34e   : > { %v14266_v32 = vpop.eup %14265  ;;  %v1889_v34 = vmul.f32 %v14264_v31, %v15043_v49  ;;  %v1347_v49 = vld [vmem:[%s1325_s2] sm:$0xf]  ;;  %s16978_s2 = sld [smem:[#allocation10_spill]] }
 0x34f   : > { %v1887_v36 = vmul.f32 %v14266_v32, %v15046_v52  ;;  %13397 = vmatprep.subr.msk.bf16.mxu0 %vm1391_vm0, %v1347_v49  ;;  %v13505_v52 = vld [vmem:[%s14789_s6 + $0x14] ss:$8 sps:$4 sm:$0xff]   ;;  %v2432_v12 = vsel %vm1391_vm0, %v1347_v49, 0  ;;  %v2522_v31 = vsel %vm1391_vm0, %v11512_v30, 0 }
 0x350   : > { %v1895_v37 = vpack.c.bf16 %v1889_v34, %v1888_v33 }
 0x351   : > { %v1894_v38 = vpack.c.bf16 %v1887_v36, %v1886_v35 }
 0x353   : > { %v14268_v39 = vpop.eup %14267  ;;  %12887 = vmatprep.mubr.bf16.mxu1 %v1894_v38 }
 0x354   : > { %v14270_v40 = vpop.eup %14269  ;;  %12888 = vmatmul.mubr.bf16.vlgmr.msra.gmra.mrb[8].mxu1 %v1895_v37  ;;  %v1892_v43 = vmul.f32 %v14268_v39, %v12869_v61  ;;  %v13506_v61 = vld [vmem:[%s14789_s6 + $0x20] ss:$8 sps:$4 sm:$0xff]  }
 0x355   : > { %v14272_v41 = vpop.eup %14271  ;;  %v1890_v45 = vmul.f32 %v14270_v40, %v1823_v63  ;;  %2327 = vmatpush1.bf16.msra.mxu1 %v13500_v50  ;;  %v13511_v63 = vld [vmem:[%s14789_s6 + $0x34] ss:$8 sps:$4 sm:$0xff]  }
 0x356   : > { %v14274_v42 = vpop.eup %14273  ;;  %v1893_v44 = vmul.f32 %v14272_v41, %v12870_v1  ;;  %2328 = vmatprep.subr.bf16.mxu1 %v13505_v52  ;;  %v13509_v1 = vld [vmem:[%s14789_s6 + $0x30] ss:$8 sps:$4 sm:$0xff]   ;;  %v13526_v41 = vld [vmem:[%s14799_s20] sm:$0xff]  }
 0x357   : > { %v1891_v46 = vmul.f32 %v14274_v42, %v1826_v4  ;;  %v13517_v4 = vld [vmem:[%s14789_s6 + $0x54] ss:$8 sps:$4 sm:$0xff]  }
 0x358   : > { %v1897_v47 = vpack.c.bf16 %v1893_v44, %v1892_v43 }
 0x359   : > { %v1896_v48 = vpack.c.bf16 %v1891_v46, %v1890_v45  ;;  %2329 = vmatpush1.bf16.msra.mxu1 %v13503_v55  ;;  %v13527_v46 = vld [vmem:[%s14799_s20 + $0x8] sm:$0xff]  }
 0x35a   : > { %2330 = vmatprep.subr.bf16.mxu1 %v13508_v58 }
 0x35b   : > { %12891 = vmatprep.mubr.bf16.mxu1 %v1896_v48 }
 0x35c   : > { %12892 = vmatmul.mubr.bf16.gmra.mrb[12].mxu1 %v1897_v47 }
 0x35d   : > { %2331 = vmatpush1.bf16.msra.mxu1 %v13506_v61  ;;  %2358 = vmatprep.mubr.bf16.mxu1 %v16921_v27 }
 0x35e   : > { %2332 = vmatprep.subr.bf16.mxu1 %v13511_v63 }
 0x361   : > { %2333 = vmatpush1.bf16.msra.mxu1 %v13509_v1 }
 0x362   : > { %2334 = vmatprep.subr.bf16.mxu1 %v13514_v2 }
 0x365   : > { %2335 = vmatpush1.bf16.msra.mxu1 %v13512_v3  ;;  %v13529_v3 = vld [vmem:[%s14799_s20 + $0x18] sm:$0xff]  }
 0x366   : > { %2336 = vmatprep.subr.bf16.mxu1 %v13517_v4  ;;  %v13530_v4 = vld [vmem:[%s14799_s20 + $0x20] sm:$0xff]  }
 0x369   : > { %2337 = vmatpush1.bf16.msra.mxu1 %v13515_v5  ;;  %v13531_v5 = vld [vmem:[%s14799_s20 + $0x28] sm:$0xff]  }
 0x36a   : > { %2338 = vmatprep.subr.bf16.mxu1 %v13520_v23 }
 0x36d   : > { %2339 = vmatpush1.bf16.msra.mxu1 %v13518_v24 }
 0x36e   : > { %2340 = vmatprep.subr.bf16.mxu1 %v13523_v25 }
 0x371   : > { %2341 = vmatpush1.bf16.msra.mxu1 %v13521_v26 }
 0x372   : > { %2708 = vmatprep.subr.bf16.mxu1 %v16921_v27 }
 0x427   : > { %v12889_v6 = vpop.f32.mrb[8].mxu1 }
 0x428   : > { %v1996_v7 = vpop.f32.mrb[9].mxu1 }
 0x429   : > { %v12890_v8 = vpop.f32.mrb[10].mxu1 }
 0x42a   : > { %v2134_v9 = vpack.c.bf16 %v12890_v8, %v12889_v6  ;;  %v1999_v10 = vpop.f32.mrb[11].mxu1  ;;  %v13532_v6 = vld [vmem:[%s14799_s20 + $0x30] sm:$0xff]   ;;  %v13534_v8 = vld [vmem:[%s14799_s20 + $0x40] sm:$0xff]  }
 0x42b   : > { %v2133_v11 = vpack.c.bf16 %v1999_v10, %v1996_v7  ;;  %v13533_v7 = vld [vmem:[%s14799_s20 + $0x38] sm:$0xff]  }
 0x42d   : > { %12907 = vmatprep.mubr.msk.bf16.mxu0 %vm1378_vm1, %v2133_v11 }
 0x42e   : > { %12908 = vmatmul.mubr.msk.bf16.vlgmr.msra.gmra.mrb[24].mxu0 %vm1378_vm1, %v2134_v9 }
 0x42f   : > { %v12893_v13 = vpop.f32.mrb[12].mxu1  ;;  %12916 = vmatpush3.bf16.msra.mxu0 %v2432_v12 }
 0x430   : > { %v2012_v14 = vpop.f32.mrb[13].mxu1  ;;  %11514 = vmatprep.subr.msk.bf16.mxu0 %vm1391_vm0, %v11513_v28 }
 0x431   : > { %v12894_v15 = vpop.f32.mrb[14].mxu1 }
 0x432   : > { %v2136_v17 = vpack.c.bf16 %v12894_v15, %v12893_v13  ;;  %v2015_v16 = vpop.f32.mrb[15].mxu1 }
 0x433   : > { %v2135_v18 = vpack.c.bf16 %v2015_v16, %v2012_v14 }
 0x435   : > { %12911 = vmatprep.mubr.msk.bf16.mxu0 %vm1378_vm1, %v2135_v18 }
 0x436   : > { %12912 = vmatmul.mubr.msk.bf16.gmra.mrb[28].mxu0 %vm1378_vm1, %v2136_v17 }
 0x437   : > { %12917 = vmatprep.mubr.msk.bf16.mxu0 %vm1378_vm1, %v13496_v19 }
 0x43e   : > { %12918 = vmatmul.mubr.msk.bf16.vlgmr.msra.gmra.mrb[32].mxu0 %vm1378_vm1, %v13497_v20 }
 0x43f   : > { %12921 = vmatprep.mubr.msk.bf16.mxu0 %vm1378_vm1, %v13498_v21  ;;  %2528 = vmatpush1.bf16.msra.mxu0 %v2522_v31 }
 0x446   : > { %12922 = vmatmul.mubr.msk.bf16.gmra.mrb[36].mxu0 %vm1378_vm1, %v13499_v22 }
 0x447   : > { %2559 = vmatprep.mubr.bf16.mxu0 %v16921_v27 }
 0x501   : > { %v12909_v32 = vpop.f32.mrb[24].mxu0 }
 0x502   : > { %v2220_v33 = vmul.f32 %v12909_v32, %v15059_v53  ;;  %v2187_v34 = vpop.f32.mrb[25].mxu0  ;;  %v13528_v53 = vld [vmem:[%s14799_s20 + $0x10] sm:$0xff]  }
 0x503   : > { %v2218_v35 = vmul.f32 %v2187_v34, %v15061_v54  ;;  %v12910_v36 = vpop.f32.mrb[26].mxu0 }
 0x504   : > { %v2221_v37 = vmul.f32 %v12910_v36, %v15064_v56  ;;  %v2190_v38 = vpop.f32.mrb[27].mxu0 }
 0x505   : > { %v2219_v39 = vmul.f32 %v2190_v38, %v15066_v57 }
 0x506   : > { %v2227_v40 = vpack.c.bf16 %v2221_v37, %v2220_v33 }
 0x507   : > { %v2226_v42 = vpack.c.bf16 %v2219_v39, %v2218_v35 }
 0x509   : > { %v12913_v43 = vpop.f32.mrb[28].mxu0  ;;  %2359 = vmatmul.mubr.bf16.vlgmr.msra.gmra.mrb[16].mxu1 %v2226_v42 }
 0x50a   : > { %v2224_v44 = vmul.f32 %v12913_v43, %v15069_v59  ;;  %v2203_v45 = vpop.f32.mrb[29].mxu0  ;;  %2368 = vmatprep.mubr.bf16.mxu1 %v16921_v27  ;;  %2709 = vmatpush1.bf16.msra.mxu1 %v13526_v41 }
 0x50b   : > { %v2222_v47 = vmul.f32 %v2203_v45, %v15071_v60  ;;  %v12914_v48 = vpop.f32.mrb[30].mxu0  ;;  %2710 = vmatprep.subr.bf16.mxu1 %v16921_v27 }
 0x50c   : > { %v2225_v49 = vmul.f32 %v12914_v48, %v15074_v62  ;;  %v2206_v50 = vpop.f32.mrb[31].mxu0 }
 0x50d   : > { %v2223_v51 = vmul.f32 %v2206_v50, %v15077_v0 }
 0x50e   : > { %v2229_v52 = vpack.c.bf16 %v2225_v49, %v2224_v44  ;;  %2711 = vmatpush1.bf16.msra.mxu1 %v13527_v46 }
 0x50f   : > { %v2228_v54 = vpack.c.bf16 %v2223_v51, %v2222_v47  ;;  %2712 = vmatprep.subr.bf16.mxu1 %v16921_v27 }
 0x511   : > { %2369 = vmatmul.mubr.bf16.gmra.mrb[20].mxu1 %v2227_v40  ;;  %v12919_v55 = vpop.f32.mrb[32].mxu0 }
 0x512   : > { %v2468_v56 = vpop.f32.mrb[33].mxu0  ;;  %2378 = vmatprep.mubr.bf16.mxu1 %v16921_v27  ;;  %2713 = vmatpush1.bf16.msra.mxu1 %v13528_v53 }
 0x513   : > { %v12920_v57 = vpop.f32.mrb[34].mxu0  ;;  %2714 = vmatprep.subr.bf16.mxu1 %v16921_v27 }
 0x514   : > { %v2500_v58 = vpack.c.bf16 %v12920_v57, %v12919_v55  ;;  %v2471_v59 = vpop.f32.mrb[35].mxu0 }
 0x515   : > { %v2499_v60 = vpack.c.bf16 %v2471_v59, %v2468_v56 }
 0x516   : > { %2715 = vmatpush1.bf16.msra.mxu1 %v13529_v3 }
 0x517   : > { %11515 = vmatmul.mubr.msk.bf16.vlgmr.msra.gmra.mrb[40].mxu0 %vm1378_vm1, %v2499_v60  ;;  %2716 = vmatprep.subr.bf16.mxu1 %v16921_v27 }
 0x518   : > { %2569 = vmatprep.mubr.bf16.mxu0 %v16921_v27 }
 0x519   : > { %2379 = vmatmul.mubr.bf16.gmra.mrb[24].mxu1 %v2228_v54  ;;  %v12923_v61 = vpop.f32.mrb[36].mxu0 }
 0x51a   : > { %v2484_v62 = vpop.f32.mrb[37].mxu0  ;;  %2388 = vmatprep.mubr.bf16.mxu1 %v16921_v27  ;;  %2717 = vmatpush1.bf16.msra.mxu1 %v13530_v4 }
 0x51b   : > { %v12924_v63 = vpop.f32.mrb[38].mxu0  ;;  %2718 = vmatprep.subr.bf16.mxu1 %v16921_v27 }
 0x51c   : > { %v2502_v0 = vpack.c.bf16 %v12924_v63, %v12923_v61  ;;  %v2487_v1 = vpop.f32.mrb[39].mxu0 }
 0x51d   : > { %v2501_v2 = vpack.c.bf16 %v2487_v1, %v2484_v62 }
 0x51e   : > { %2719 = vmatpush1.bf16.msra.mxu1 %v13531_v5 }
 0x51f   : > { %11516 = vmatmul.mubr.msk.bf16.gmra.mrb[44].mxu0 %vm1378_vm1, %v2500_v58  ;;  %2720 = vmatprep.subr.bf16.mxu1 %v16921_v27 }
 0x520   : > { %2579 = vmatprep.mubr.bf16.mxu0 %v16921_v27 }
 0x521   : > { %2389 = vmatmul.mubr.bf16.gmra.mrb[28].mxu1 %v2229_v52 }
 0x522   : > { %2721 = vmatpush1.bf16.msra.mxu1 %v13532_v6 }
 0x523   : > { %2722 = vmatprep.subr.bf16.mxu1 %v16921_v27 }
 0x526   : > { %2723 = vmatpush1.bf16.msra.mxu1 %v13533_v7 }
 0x527   : > { %11517 = vmatmul.mubr.msk.bf16.gmra.mrb[48].mxu0 %vm1378_vm1, %v2501_v2  ;;  %2724 = vmatprep.subr.bf16.mxu1 %v16921_v27  ;;  %v16919_v2 = vmov 0.0  }
 0x528   : > { %2589 = vmatprep.mubr.bf16.mxu0 %v16921_v27  ;;  %12925 = vmatprep.subr.bf16.mxu0 %v16919_v2 }
 0x52a   : > { %2725 = vmatpush1.bf16.msra.mxu1 %v13534_v8 }
 0x52f   : > { %11518 = vmatmul.mubr.msk.bf16.gmra.mrb[52].mxu0 %vm1378_vm1, %v2502_v0 }
 0x530   : > { %12933 = vmatprep.mubr.msk.bf16.mxu0 %vm14715_vm3, %v16919_v2 }
 0x5dc   : > { %v2360_v9 = vpop.f32.mrb[16].mxu1 }
 0x5dd   : > { %v2362_v10 = vpop.f32.mrb[17].mxu1 }
 0x5de   : > { %v2364_v11 = vpop.f32.mrb[18].mxu1 }
 0x5df   : > { %v2366_v12 = vpop.f32.mrb[19].mxu1 }
 0x5e4   : > { %v2370_v13 = vpop.f32.mrb[20].mxu1 }
 0x5e5   : > { %v2372_v14 = vpop.f32.mrb[21].mxu1 }
 0x5e6   : > { %v2374_v15 = vpop.f32.mrb[22].mxu1 }
 0x5e7   : > { %v2376_v17 = vpop.f32.mrb[23].mxu1 }
 0x5ea   : > { %v2561_v16 = vpop.f32.mrb[40].mxu0 }
 0x5eb   : > { %v2600_v18 = vmul.f32 %v2561_v16, %v2360_v9  ;;  %v2563_v19 = vpop.f32.mrb[41].mxu0 }
 0x5ec   : > { %v2601_v20 = vmul.f32 %v2563_v19, %v2362_v10  ;;  %v2380_v21 = vpop.f32.mrb[24].mxu1  ;;  %v2565_v22 = vpop.f32.mrb[42].mxu0 }
 0x5ed   : > { %v2602_v23 = vmul.f32 %v2565_v22, %v2364_v11  ;;  %v2382_v24 = vpop.f32.mrb[25].mxu1  ;;  %v2567_v25 = vpop.f32.mrb[43].mxu0 }
 0x5ee   : > { %v2603_v26 = vmul.f32 %v2567_v25, %v2366_v12  ;;  %v2384_v29 = vpop.f32.mrb[26].mxu1  ;;  %v1356_v25 = vld [vmem:[%s16967_s7] sm:$0xf] }
 0x5ef   : > { %v2616_v28 = vpack.c.bf16 %v2602_v23, %v2600_v18  ;;  %v2386_v30 = vpop.f32.mrb[27].mxu1 }
 0x5f0   : > { %v2617_v31 = vpack.c.bf16 %v2603_v26, %v2601_v20  ;;  %v13535_v26 = vld [vmem:[%s14749_s25] ss:$8 sps:$4 sm:$0xff]  }
 0x5f2   : > { %v2571_v32 = vpop.f32.mrb[44].mxu0  ;;  %11528 = vmatprep.mubr.msk.bf16.mxu1 %vm2055_vm2, %v2617_v31  ;;  %v3075_v31 = vld [vmem:[%s16968_s10] sm:$0xf]  ;;  %s16983_s10 = sld [smem:[#allocation11_spill]] }
 0x5f3   : > { %v2604_v33 = vmul.f32 %v2571_v32, %v2370_v13  ;;  %v2573_v34 = vpop.f32.mrb[45].mxu0  ;;  %2741 = vmatmul.mubr.bf16.vlgmr.msra.gmra.mrb[32].mxu1 %v2616_v28 }
 0x5f4   : > { %v2605_v35 = vmul.f32 %v2573_v34, %v2372_v14  ;;  %v2390_v36 = vpop.f32.mrb[28].mxu1  ;;  %v2575_v37 = vpop.f32.mrb[46].mxu0 }
 0x5f5   : > { %v2606_v38 = vmul.f32 %v2575_v37, %v2374_v15  ;;  %v2392_v39 = vpop.f32.mrb[29].mxu1  ;;  %v2577_v40 = vpop.f32.mrb[47].mxu0 }
 0x5f6   : > { %v2607_v41 = vmul.f32 %v2577_v40, %v2376_v17  ;;  %v2394_v42 = vpop.f32.mrb[30].mxu1  ;;  %v14589_v40 = vld [vmem:[%s14956_s26 + $0x10] sm:$0xff]  }
 0x5f7   : > { %v2396_v43 = vpop.f32.mrb[31].mxu1  ;;  %v2618_v44 = vpack.c.bf16 %v2606_v38, %v2604_v33  ;;  %v14587_v38 = vld [vmem:[%s14956_s26] sm:$0xff]  }
 0x5f8   : > { %v2619_v45 = vpack.c.bf16 %v2607_v41, %v2605_v35  ;;  %v3077_v35 = vsel %vm1391_vm0, %v3075_v31, 0  ;;  %v14590_v41 = vld [vmem:[%s14956_s26 + $0x18] sm:$0xff]  }
 0x5fa   : > { %v2581_v46 = vpop.f32.mrb[48].mxu0  ;;  %11529 = vmatprep.mubr.msk.bf16.mxu1 %vm2055_vm2, %v2619_v45  ;;  %v13543_v45 = vld [vmem:[%s16971_s11 + $0x8] sm:$0xff]  }
 0x5fb   : > { %v2608_v47 = vmul.f32 %v2581_v46, %v2380_v21  ;;  %v2583_v48 = vpop.f32.mrb[49].mxu0  ;;  %2749 = vmatmul.mubr.bf16.gmra.mrb[36].mxu1 %v2618_v44  ;;  %v13537_v21 = vld [vmem:[%s14749_s25 + $0x4] ss:$8 sps:$4 sm:$0xff]   ;;  %v13544_v46 = vld [vmem:[%s16971_s11 + $0x50] sm:$0xff]  }
 0x5fc   : > { %v2609_v49 = vmul.f32 %v2583_v48, %v2382_v24  ;;  %v2585_v50 = vpop.f32.mrb[50].mxu0  ;;  %v2824_v24 = vld [vmem:[%s14749_s25 + $0x10] sm:$0x11]  ;;  %v13542_v44 = vld [vmem:[%s16971_s11 + $0x48] sm:$0xff]   ;;  %v13546_v48 = vld [vmem:[%s16971_s11 + $0x58] sm:$0xff]  }
 0x5fd   : > { %v2610_v51 = vmul.f32 %v2585_v50, %v2384_v29  ;;  %v2587_v52 = vpop.f32.mrb[51].mxu0  ;;  %v15156_v29 = vcombine.high %v2824_v24, %v2824_v24  ;;  %v11535_v28 = vcombine.low %v2824_v24, %v2824_v24  ;;  %v13548_v50 = vld [vmem:[%s16971_s11 + $0x18] sm:$0xff]  }
 0x5fe   : > { %v2611_v53 = vmul.f32 %v2587_v52, %v2386_v30  ;;  %v13550_v52 = vld [vmem:[%s16972_s15 + $0x8] sm:$0xff]  }
 0x5ff   : > { %v2620_v54 = vpack.c.bf16 %v2610_v51, %v2608_v47  ;;  %16969 = vst [vmem:[#allocation28_spill] sm:$0xff] %v15156_v29  ;;  %v15163_v30 = vsel %vm2844_vm5, %v11535_v28, 0  ;;  %v13545_v47 = vld [vmem:[%s16971_s11 + $0x10] sm:$0xff]   ;;  %v13549_v51 = vld [vmem:[%s16971_s11 + $0x60] sm:$0xff]  }
 0x600   : > { %v2621_v55 = vpack.c.bf16 %v2611_v53, %v2609_v49  ;;  %16970 = vst [vmem:[#allocation29_spill] sm:$0xff] %v15163_v30  ;;  %v13547_v49 = vld [vmem:[%s16972_s15] sm:$0xff]  }
 0x601   : > { %v13551_v53 = vld [vmem:[%s16971_s11 + $0x20] sm:$0xff]  }
 0x602   : > { %v2591_v56 = vpop.f32.mrb[52].mxu0  ;;  %11530 = vmatprep.mubr.msk.bf16.mxu1 %vm2055_vm2, %v2621_v55  ;;  %v13553_v55 = vld [vmem:[%s16972_s15 + $0x10] sm:$0xff]  }
 0x603   : > { %v2612_v57 = vmul.f32 %v2591_v56, %v2390_v36  ;;  %v2593_v58 = vpop.f32.mrb[53].mxu0  ;;  %2757 = vmatmul.mubr.bf16.gmra.mrb[40].mxu1 %v2620_v54  ;;  %v13552_v54 = vld [vmem:[%s16971_s11 + $0x68] sm:$0xff]  }
 0x604   : > { %v2613_v59 = vmul.f32 %v2593_v58, %v2392_v39  ;;  %v2595_v60 = vpop.f32.mrb[54].mxu0  ;;  %v14588_v39 = vld [vmem:[%s14956_s26 + $0x8] sm:$0xff]   ;;  %v13556_v58 = vld [vmem:[%s16972_s15 + $0x18] sm:$0xff]  }
 0x605   : > { %v2614_v61 = vmul.f32 %v2595_v60, %v2394_v42  ;;  %v2597_v62 = vpop.f32.mrb[55].mxu0  ;;  %v13540_v42 = vld [vmem:[%s16971_s11 + $0x40] sm:$0xff]   ;;  %v13554_v56 = vld [vmem:[%s16971_s11 + $0x28] sm:$0xff]   ;;  %v13558_v60 = vld [vmem:[%s16971_s11 + $0x78] sm:$0xff]  }
 0x606   : > { %v2615_v63 = vmul.f32 %v2597_v62, %v2396_v43  ;;  %v13541_v43 = vld [vmem:[%s16971_s11] sm:$0xff]   ;;  %12234 = vmatprep.subr.bf16.mxu1 %v13540_v42  ;;  %v13560_v62 = vld [vmem:[%s16971_s11 + $0x38] sm:$0xff]  }
 0x607   : > { %v2622_v0 = vpack.c.bf16 %v2614_v61, %v2612_v57  ;;  %12235 = vmatpush3.bf16.msra.mxu1 %v13541_v43  ;;  %v13555_v57 = vld [vmem:[%s16971_s11 + $0x70] sm:$0xff]   ;;  %v13559_v61 = vld [vmem:[%s16972_s15 + $0x20] sm:$0xff]  }
 0x608   : > { %v2623_v1 = vpack.c.bf16 %v2615_v63, %v2613_v59  ;;  %12236 = vmatprep.subr.bf16.mxu1 %v13542_v44  ;;  %v13557_v59 = vld [vmem:[%s16971_s11 + $0x30] sm:$0xff]   ;;  %v13561_v63 = vld [vmem:[%s16972_s15 + $0x28] sm:$0xff]  }
 0x60a   : > { %11531 = vmatprep.mubr.msk.bf16.mxu1 %vm2055_vm2, %v2623_v1  ;;  %v13563_v1 = vld [vmem:[%s16972_s15 + $0x38] sm:$0xff]  }
 0x60b   : > { %2765 = vmatmul.mubr.bf16.gmra.mrb[44].mxu1 %v2622_v0  ;;  %v13562_v0 = vld [vmem:[%s16972_s15 + $0x30] sm:$0xff]  }
 0x60c   : > { %12237 = vmatpush3.bf16.msra.mxu1 %v13543_v45 }
 0x60d   : > { %12238 = vmatprep.subr.bf16.mxu1 %v13544_v46 }
 0x610   : > { %12239 = vmatpush3.bf16.msra.mxu1 %v13545_v47 }
 0x611   : > { %12240 = vmatprep.subr.bf16.mxu1 %v13546_v48 }
 0x614   : > { %12241 = vmatpush3.bf16.msra.mxu1 %v13548_v50 }
 0x615   : > { %12242 = vmatprep.subr.bf16.mxu1 %v13549_v51 }
 0x618   : > { %12243 = vmatpush3.bf16.msra.mxu1 %v13551_v53 }
 0x619   : > { %12244 = vmatprep.subr.bf16.mxu1 %v13552_v54 }
 0x61c   : > { %12245 = vmatpush3.bf16.msra.mxu1 %v13554_v56 }
 0x61d   : > { %12246 = vmatprep.subr.bf16.mxu1 %v13555_v57 }
 0x620   : > { %12247 = vmatpush3.bf16.msra.mxu1 %v13557_v59 }
 0x621   : > { %12248 = vmatprep.subr.bf16.mxu1 %v13558_v60 }
 0x624   : > { %12249 = vmatpush3.bf16.msra.mxu1 %v13560_v62 }
 0x6c6   : > { %v2742_v3 = vpop.f32.mrb[32].mxu1 }
 0x6c7   : > { %v2744_v4 = vpop.f32.mrb[33].mxu1 }
 0x6c8   : > { %v2745_v5 = vpop.f32.mrb[34].mxu1 }
 0x6c9   : > { %v2773_v6 = vpack.c.bf16 %v2745_v5, %v2742_v3  ;;  %v2747_v7 = vpop.f32.mrb[35].mxu1 }
 0x6cb   : > { %12926 = vmatpush3.bf16.msra.mxu0 %v2773_v6 }
 0x6cc   : > { %12927 = vmatprep.subr.bf16.mxu0 %v16919_v2 }
 0x6ce   : > { %v2750_v8 = vpop.f32.mrb[36].mxu1 }
 0x6cf   : > { %v2752_v9 = vpop.f32.mrb[37].mxu1 }
 0x6d0   : > { %v2753_v10 = vpop.f32.mrb[38].mxu1 }
 0x6d1   : > { %v2774_v11 = vpack.c.bf16 %v2753_v10, %v2750_v8  ;;  %v2755_v12 = vpop.f32.mrb[39].mxu1 }
 0x6d3   : > { %12928 = vmatpush3.bf16.msra.mxu0 %v2774_v11 }
 0x6d4   : > { %12929 = vmatprep.subr.bf16.mxu0 %v16919_v2 }
 0x6d6   : > { %v2758_v13 = vpop.f32.mrb[40].mxu1 }
 0x6d7   : > { %v2760_v14 = vpop.f32.mrb[41].mxu1 }
 0x6d8   : > { %v2761_v15 = vpop.f32.mrb[42].mxu1 }
 0x6d9   : > { %v2775_v17 = vpack.c.bf16 %v2761_v15, %v2758_v13  ;;  %v2763_v16 = vpop.f32.mrb[43].mxu1 }
 0x6db   : > { %12930 = vmatpush3.bf16.msra.mxu0 %v2775_v17 }
 0x6dc   : > { %12931 = vmatprep.subr.bf16.mxu0 %v16919_v2  ;;  %v13679_v2 = vld [vmem:[%s16978_s2 + $0xb0] ss:$12 sps:$4 sm:$0xff]  }
 0x6de   : > { %v2766_v18 = vpop.f32.mrb[44].mxu1 }
 0x6df   : > { %v2768_v19 = vpop.f32.mrb[45].mxu1 }
 0x6e0   : > { %v2769_v20 = vpop.f32.mrb[46].mxu1 }
 0x6e1   : > { %v2776_v22 = vpack.c.bf16 %v2769_v20, %v2766_v18  ;;  %v2771_v23 = vpop.f32.mrb[47].mxu1 }
 0x6e3   : > { %12932 = vmatpush3.bf16.msra.mxu0 %v2776_v22 }
 0x6e4   : > { %2851 = vmatprep.subr.bf16.mxu0 %v13537_v21 }
 0x6e6   : > { %12934 = vmatmul.mubr.msk.bf16.vlgmr.msra.gmra.mrb[56].mxu0 %vm2777_vm4, %v1356_v25 }
 0x6e7   : > { %2852 = vmatpush1.bf16.msra.mxu0 %v13535_v26  ;;  %2883 = vmatprep.mubr.bf16.mxu0 %v16921_v27 }
 0x6e8   : > { %11537 = vmatprep.subr.msk.bf16.mxu0 %vm2844_vm5, %v15156_v29  ;;  %v13687_v29 = vld [vmem:[%s16978_s2 + $0x19c] ss:$12 sps:$4 sm:$0xff]  }
 0x6eb   : > { %2854 = vmatpush1.bf16.msra.mxu0 %v15163_v30 }
 0x6ec   : > { %13398 = vmatprep.subr.msk.bf16.mxu0 %vm1391_vm0, %v3075_v31 }
 0x7b9   : > { %v2815_v32 = vpop.f32.mrb[56].mxu0 }
 0x7ba   : > { %v2821_v33 = vpack.c.bf16 %v2815_v32, %v2815_v32  ;;  %v12935_v34 = vpop.f32.mrb[57].mxu0 }
 0x7bb   : > { %v2818_v36 = vpop.f32.mrb[58].mxu0 }
 0x7bc   : > { %v12936_v37 = vpop.f32.mrb[59].mxu0  ;;  %11538 = vmatmul.mubr.msk.bf16.vlgmr.msra.gmra.mrb[60].mxu0 %vm2840_vm6, %v2821_v33 }
 0x7bd   : > { %12938 = vmatpush3.bf16.msra.mxu0 %v3077_v35  ;;  %12939 = vmatprep.mubr.msk.bf16.mxu0 %vm1378_vm1, %v14587_v38 }
 0x7be   : > { %12947 = vmatprep.subr.bf16.mxu0 %v13547_v49 }
 0x7c4   : > { %12940 = vmatmul.mubr.msk.bf16.vlgmr.msra.gmra.mrb[64].mxu0 %vm1378_vm1, %v14588_v39 }
 0x7c5   : > { %12943 = vmatprep.mubr.msk.bf16.mxu0 %vm1378_vm1, %v14589_v40  ;;  %12948 = vmatpush3.bf16.msra.mxu0 %v13547_v49 }
 0x7c6   : > { %12949 = vmatprep.subr.bf16.mxu0 %v13550_v52 }
 0x7c9   : > { %12950 = vmatpush3.bf16.msra.mxu0 %v13550_v52 }
 0x7ca   : > { %12951 = vmatprep.subr.bf16.mxu0 %v13553_v55 }
 0x7cc   : > { %12944 = vmatmul.mubr.msk.bf16.gmra.mrb[68].mxu0 %vm1378_vm1, %v14590_v41 }
 0x7cd   : > { %12952 = vmatpush3.bf16.msra.mxu0 %v13553_v55 }
 0x7ce   : > { %12953 = vmatprep.subr.bf16.mxu0 %v13556_v58 }
 0x7d1   : > { %12954 = vmatpush3.bf16.msra.mxu0 %v13556_v58 }
 0x7d2   : > { %12955 = vmatprep.subr.bf16.mxu0 %v13559_v61 }
 0x7d5   : > { %12956 = vmatpush3.bf16.msra.mxu0 %v13559_v61 }
 0x7d6   : > { %12957 = vmatprep.subr.bf16.mxu0 %v13561_v63 }
 0x7d9   : > { %12958 = vmatpush3.bf16.msra.mxu0 %v13561_v63 }
 0x7da   : > { %12959 = vmatprep.subr.bf16.mxu0 %v13562_v0 }
 0x7dd   : > { %12960 = vmatpush3.bf16.msra.mxu0 %v13562_v0 }
 0x7de   : > { %12961 = vmatprep.subr.bf16.mxu0 %v13563_v1 }
 0x7e1   : > { %12962 = vmatpush3.bf16.msra.mxu0 %v13563_v1 }
 0x88f   : > { %v2885_v3 = vpop.f32.mrb[60].mxu0 }
 0x890   : > { %v2892_v4 = vsub.f32 0.0, %v2885_v3  ;;  %v2887_v5 = vpop.f32.mrb[61].mxu0 }
 0x891   : > { %v2893_v6 = vsub.f32 0.0, %v2887_v5  ;;  %v2889_v7 = vpop.f32.mrb[62].mxu0 }
 0x892   : > { %v2894_v8 = vmin.f32 %v2892_v4, 80.0  ;;  %v2890_v9 = vpop.f32.mrb[63].mxu0 }
 0x893   : > { %v2895_v10 = vmin.f32 %v2893_v6, 80.0 }
 0x894   : > { %v2896_v11 = vmul.f32 1.442695, %v2894_v8 }
 0x895   : > { %v2898_v12 = vmul.f32 1.442695, %v2895_v10 }
 0x896   : > { %14275 = vpow2.f32 %v2896_v11 }
 0x897   : > { %14277 = vpow2.f32 %v2898_v12  ;;  %v15202_v13 = vpop.f32.mrb[64].mxu0 }
 0x898   : > { %v3146_v14 = vsub.f32 0.0, %v15202_v13  ;;  %v15205_v15 = vpop.f32.mrb[65].mxu0 }
 0x899   : > { %v3144_v17 = vsub.f32 0.0, %v15205_v15  ;;  %v15208_v16 = vpop.f32.mrb[66].mxu0 }
 0x89a   : > { %v3154_v18 = vmin.f32 %v3146_v14, 80.0  ;;  %v3147_v19 = vsub.f32 0.0, %v15208_v16  ;;  %v15211_v20 = vpop.f32.mrb[67].mxu0 }
 0x89b   : > { %v3152_v21 = vmin.f32 %v3144_v17, 80.0  ;;  %v3145_v22 = vsub.f32 0.0, %v15211_v20 }
 0x89c   : > { %v3164_v23 = vmul.f32 1.442695, %v3154_v18  ;;  %v3155_v24 = vmin.f32 %v3147_v19, 80.0 }
 0x89d   : > { %v3160_v25 = vmul.f32 1.442695, %v3152_v21  ;;  %v3153_v26 = vmin.f32 %v3145_v22, 80.0 }
 0x89e   : > { %14279 = vpow2.f32 %v3164_v23  ;;  %v3166_v28 = vmul.f32 1.442695, %v3155_v24 }
 0x89f   : > { %14281 = vpow2.f32 %v3160_v25  ;;  %v3162_v31 = vmul.f32 1.442695, %v3153_v26  ;;  %v15214_v32 = vpop.f32.mrb[68].mxu0 }
 0x8a0   : > { %v14276_v33 = vpop.eup %14275  ;;  %14283 = vpow2.f32 %v3166_v28  ;;  %v3150_v34 = vsub.f32 0.0, %v15214_v32  ;;  %v15217_v35 = vpop.f32.mrb[69].mxu0 }
 0x8a1   : > { %v14278_v36 = vpop.eup %14277  ;;  %v2900_v37 = vadd.f32 1.0, %v14276_v33  ;;  %14285 = vpow2.f32 %v3162_v31  ;;  %v3148_v38 = vsub.f32 0.0, %v15217_v35  ;;  %v15220_v39 = vpop.f32.mrb[70].mxu0  ;;  %v13564_v33 = vld [vmem:[%s16973_s16] sm:$0xff]  }
 0x8a2   : > { %v3158_v40 = vmin.f32 %v3150_v34, 80.0  ;;  %v3151_v41 = vsub.f32 0.0, %v15220_v39  ;;  %v15223_v42 = vpop.f32.mrb[71].mxu0  ;;  %v2901_v43 = vadd.f32 1.0, %v14278_v36  ;;  %12971 = vmatprep.subr.bf16.mxu1 %v13564_v33  ;;  %v13565_v34 = vld [vmem:[%s16973_s16 + $0x8] sm:$0xff]   ;;  %v13568_v36 = vld [vmem:[%s16973_s16 + $0x20] sm:$0xff]  }
 0x8a3   : > { %14287 = vrcp.f32 %v2900_v37  ;;  %v3156_v44 = vmin.f32 %v3148_v38, 80.0  ;;  %v3149_v45 = vsub.f32 0.0, %v15223_v42  ;;  %v13569_v37 = vld [vmem:[%s16973_s16 + $0x28] sm:$0xff]   ;;  %v13570_v38 = vld [vmem:[%s16973_s16 + $0x30] sm:$0xff]  }
 0x8a4   : > { %v3172_v46 = vmul.f32 1.442695, %v3158_v40  ;;  %v3159_v47 = vmin.f32 %v3151_v41, 80.0  ;;  %14289 = vrcp.f32 %v2901_v43 }
 0x8a5   : > { %v3168_v48 = vmul.f32 1.442695, %v3156_v44  ;;  %v3157_v49 = vmin.f32 %v3149_v45, 80.0 }
 0x8a6   : > { %14291 = vpow2.f32 %v3172_v46  ;;  %v3174_v50 = vmul.f32 1.442695, %v3159_v47 }
 0x8a7   : > { %14293 = vpow2.f32 %v3168_v48  ;;  %v3170_v51 = vmul.f32 1.442695, %v3157_v49 }
 0x8a8   : > { %v14280_v52 = vpop.eup %14279  ;;  %14295 = vpow2.f32 %v3174_v50 }
 0x8a9   : > { %v14282_v53 = vpop.eup %14281  ;;  %v3178_v54 = vadd.f32 1.0, %v14280_v52  ;;  %14297 = vpow2.f32 %v3170_v51 }
 0x8aa   : > { %v14284_v55 = vpop.eup %14283  ;;  %v3176_v56 = vadd.f32 1.0, %v14282_v53 }
 0x8ab   : > { %v14286_v57 = vpop.eup %14285  ;;  %14299 = vrcp.f32 %v3178_v54  ;;  %v3179_v58 = vadd.f32 1.0, %v14284_v55 }
 0x8ac   : > { %14301 = vrcp.f32 %v3176_v56  ;;  %v3177_v59 = vadd.f32 1.0, %v14286_v57 }
 0x8ad   : > { %v14288_v60 = vpop.eup %14287  ;;  %14303 = vrcp.f32 %v3179_v58 }
 0x8ae   : > { %v14290_v61 = vpop.eup %14289  ;;  %14305 = vrcp.f32 %v3177_v59  ;;  %v2904_v0 = vpack.c.bf16 %v14288_v60, %v14288_v60 }
 0x8af   : > { %v2905_v62 = vpack.c.bf16 %v14290_v61, %v14290_v61 }
 0x8b0   : > { %v14292_v63 = vpop.eup %14291 }
 0x8b1   : > { %v14294_v1 = vpop.eup %14293  ;;  %v3182_v3 = vadd.f32 1.0, %v14292_v63  ;;  %3066 = vmatprep.mubr.bf16.mxu1 %v2905_v62 }
 0x8b2   : > { %v14296_v4 = vpop.eup %14295  ;;  %v3180_v5 = vadd.f32 1.0, %v14294_v1  ;;  %3067 = vmatmul.mubr.bf16.vlgmr.msra.gmra.mrb[48].mxu1 %v2904_v0 }
 0x8b3   : > { %v14298_v6 = vpop.eup %14297  ;;  %14307 = vrcp.f32 %v3182_v3  ;;  %v3183_v7 = vadd.f32 1.0, %v14296_v4  ;;  %12972 = vmatpush3.bf16.msra.mxu1 %v13564_v33 }
 0x8b4   : > { %14309 = vrcp.f32 %v3180_v5  ;;  %v3181_v8 = vadd.f32 1.0, %v14298_v6  ;;  %12973 = vmatprep.subr.bf16.mxu1 %v13565_v34 }
 0x8b5   : > { %v14300_v9 = vpop.eup %14299  ;;  %14311 = vrcp.f32 %v3183_v7 }
 0x8b6   : > { %v14302_v10 = vpop.eup %14301  ;;  %14313 = vrcp.f32 %v3181_v8  ;;  %v3194_v14 = vmul.f32 %v14300_v9, %v15202_v13 }
 0x8b7   : > { %v14304_v11 = vpop.eup %14303  ;;  %v3192_v18 = vmul.f32 %v14302_v10, %v15205_v15  ;;  %12974 = vmatpush3.bf16.msra.mxu1 %v13565_v34 }
 0x8b8   : > { %v14306_v12 = vpop.eup %14305  ;;  %v3195_v17 = vmul.f32 %v14304_v11, %v15208_v16 }
 0x8b9   : > { %v3193_v19 = vmul.f32 %v14306_v12, %v15211_v20 }
 0x8ba   : > { %v3201_v21 = vpack.c.bf16 %v3195_v17, %v3194_v14 }
 0x8bb   : > { %v3200_v22 = vpack.c.bf16 %v3193_v19, %v3192_v18 }
 0x8bd   : > { %v14308_v23 = vpop.eup %14307  ;;  %12963 = vmatprep.mubr.bf16.mxu0 %v3200_v22 }
 0x8be   : > { %v14310_v24 = vpop.eup %14309  ;;  %12964 = vmatmul.mubr.bf16.vlgmr.msra.gmra.mrb[72].mxu0 %v3201_v21  ;;  %v3198_v28 = vmul.f32 %v14308_v23, %v15214_v32  ;;  %v13566_v32 = vld [vmem:[%s16973_s16 + $0x10] sm:$0xff]  }
 0x8bf   : > { %v14312_v25 = vpop.eup %14311  ;;  %v3196_v15 = vmul.f32 %v14310_v24, %v15217_v35  ;;  %12975 = vmatprep.subr.bf16.mxu1 %v13566_v32  ;;  %v13567_v35 = vld [vmem:[%s16973_s16 + $0x18] sm:$0xff]  }
 0x8c0   : > { %v14314_v26 = vpop.eup %14313  ;;  %v3199_v13 = vmul.f32 %v14312_v25, %v15220_v39  ;;  %12976 = vmatpush3.bf16.msra.mxu1 %v13566_v32  ;;  %v13571_v39 = vld [vmem:[%s16973_s16 + $0x38] sm:$0xff]  }
 0x8c1   : > { %v3197_v16 = vmul.f32 %v14314_v26, %v15223_v42  ;;  %12977 = vmatprep.subr.bf16.mxu1 %v13567_v35 }
 0x8c2   : > { %v3203_v20 = vpack.c.bf16 %v3199_v13, %v3198_v28 }
 0x8c3   : > { %v3202_v31 = vpack.c.bf16 %v3197_v16, %v3196_v15 }
 0x8c4   : > { %12978 = vmatpush3.bf16.msra.mxu1 %v13567_v35 }
 0x8c5   : > { %12967 = vmatprep.mubr.bf16.mxu0 %v3202_v31  ;;  %12979 = vmatprep.subr.bf16.mxu1 %v13568_v36 }
 0x8c6   : > { %12968 = vmatmul.mubr.bf16.gmra.mrb[76].mxu0 %v3203_v20 }
 0x8c8   : > { %12980 = vmatpush3.bf16.msra.mxu1 %v13568_v36 }
 0x8c9   : > { %12981 = vmatprep.subr.bf16.mxu1 %v13569_v37 }
 0x8cc   : > { %12982 = vmatpush3.bf16.msra.mxu1 %v13569_v37 }
 0x8cd   : > { %12983 = vmatprep.subr.bf16.mxu1 %v13570_v38 }
 0x8d0   : > { %12984 = vmatpush3.bf16.msra.mxu1 %v13570_v38 }
 0x8d1   : > { %12985 = vmatprep.subr.bf16.mxu1 %v13571_v39 }
 0x8d4   : > { %12986 = vmatpush3.bf16.msra.mxu1 %v13571_v39 }
 0x985   : > { %v12250_v40 = vpop.f32.mrb[48].mxu1 }
 0x986   : > { %v12251_v41 = vpop.f32.mrb[49].mxu1 }
 0x987   : > { %v15242_v42 = vadd.f32 %v12251_v41, %v12250_v40  ;;  %v12253_v43 = vpop.f32.mrb[50].mxu1 }
 0x988   : > { %v12254_v44 = vpop.f32.mrb[51].mxu1 }
 0x989   : > { %16974 = vst [vmem:[#allocation30_spill] sm:$0xff] %v15242_v42  ;;  %v13688_v42 = vld [vmem:[%s16978_s2 + $0x260] ss:$12 sps:$4 sm:$0xff]  }
 0x991   : > { %v15244_v45 = vpop.f32.mrb[72].mxu0 }
 0x992   : > { %v3335_v46 = vsub.f32 0.0, %v15244_v45  ;;  %v15247_v47 = vpop.f32.mrb[73].mxu0 }
 0x993   : > { %v3333_v48 = vsub.f32 0.0, %v15247_v47  ;;  %v15250_v49 = vpop.f32.mrb[74].mxu0 }
 0x994   : > { %v3343_v50 = vmin.f32 %v3335_v46, 80.0  ;;  %v3336_v51 = vsub.f32 0.0, %v15250_v49  ;;  %v15253_v52 = vpop.f32.mrb[75].mxu0 }
 0x995   : > { %v3341_v53 = vmin.f32 %v3333_v48, 80.0  ;;  %v3334_v54 = vsub.f32 0.0, %v15253_v52 }
 0x996   : > { %v3353_v55 = vmul.f32 1.442695, %v3343_v50  ;;  %v3344_v56 = vmin.f32 %v3336_v51, 80.0 }
 0x997   : > { %v3349_v57 = vmul.f32 1.442695, %v3341_v53  ;;  %v3342_v58 = vmin.f32 %v3334_v54, 80.0 }
 0x998   : > { %14315 = vpow2.f32 %v3353_v55  ;;  %v3355_v59 = vmul.f32 1.442695, %v3344_v56  ;;  %v13573_v55 = vld [vmem:[%s16975_s18 + $0x8] sm:$0xff]   ;;  %v13574_v56 = vld [vmem:[%s16975_s18 + $0x10] sm:$0xff]  }
 0x999   : > { %14317 = vpow2.f32 %v3349_v57  ;;  %v3351_v60 = vmul.f32 1.442695, %v3342_v58  ;;  %v12969_v61 = vpop.f32.mrb[76].mxu0  ;;  %v13575_v57 = vld [vmem:[%s16975_s18 + $0x18] sm:$0xff]   ;;  %v13576_v58 = vld [vmem:[%s16975_s18 + $0x20] sm:$0xff]  }
 0x99a   : > { %14319 = vpow2.f32 %v3355_v59  ;;  %v3339_v62 = vsub.f32 0.0, %v12969_v61  ;;  %v3318_v63 = vpop.f32.mrb[77].mxu0  ;;  %v13577_v59 = vld [vmem:[%s16975_s18 + $0x28] sm:$0xff]  }
 0x99b   : > { %14321 = vpow2.f32 %v3351_v60  ;;  %v3337_v0 = vsub.f32 0.0, %v3318_v63  ;;  %v12970_v1 = vpop.f32.mrb[78].mxu0  ;;  %v13578_v60 = vld [vmem:[%s16975_s18 + $0x30] sm:$0xff]  }
 0x99c   : > { %v3347_v3 = vmin.f32 %v3339_v62, 80.0  ;;  %v3340_v4 = vsub.f32 0.0, %v12970_v1  ;;  %v3321_v5 = vpop.f32.mrb[79].mxu0  ;;  %v15270_v62 = vld [vmem:[%s16976_s0] ss:$24 sps:$4 sm:$0xff]  }
 0x99d   : > { %v3345_v6 = vmin.f32 %v3337_v0, 80.0  ;;  %v3338_v7 = vsub.f32 0.0, %v3321_v5  ;;  %v15275_v0 = vld [vmem:[%s14967_s28 + $0x8] sm:$0xff]  }
 0x99e   : > { %v3361_v8 = vmul.f32 1.442695, %v3347_v3  ;;  %v3348_v9 = vmin.f32 %v3340_v4, 80.0  ;;  %v13588_v3 = vld [vmem:[%s16976_s0 + $0x14] ss:$24 sps:$4 sm:$0xff]  }
 0x99f   : > { %v3357_v10 = vmul.f32 1.442695, %v3345_v6  ;;  %v3346_v11 = vmin.f32 %v3338_v7, 80.0  ;;  %v15283_v4 = vld [vmem:[%s14967_s28 + $0x10] sm:$0xff]   ;;  %v15295_v6 = vld [vmem:[%s14967_s28] sm:$0xff]  }
 0x9a0   : > { %14323 = vpow2.f32 %v3361_v8  ;;  %v3363_v12 = vmul.f32 1.442695, %v3348_v9  ;;  %v13595_v7 = vld [vmem:[%s16977_s1 + $0x8] ss:$24 sps:$4 sm:$0xff]   ;;  %v13597_v8 = vld [vmem:[%s16977_s1 + $0xc] ss:$24 sps:$4 sm:$0xff]  }
 0x9a1   : > { %14325 = vpow2.f32 %v3357_v10  ;;  %v3359_v14 = vmul.f32 1.442695, %v3346_v11  ;;  %v13598_v9 = vld [vmem:[%s16977_s1 + $0x38] ss:$24 sps:$4 sm:$0xff]   ;;  %v13600_v10 = vld [vmem:[%s16977_s1 + $0x3c] ss:$24 sps:$4 sm:$0xff]  }
 0x9a2   : > { %v14316_v17 = vpop.eup %14315  ;;  %14327 = vpow2.f32 %v3363_v12 }
 0x9a3   : > { %v14318_v18 = vpop.eup %14317  ;;  %v3367_v19 = vadd.f32 1.0, %v14316_v17  ;;  %14329 = vpow2.f32 %v3359_v14 }
 0x9a4   : > { %v14320_v21 = vpop.eup %14319  ;;  %v3365_v22 = vadd.f32 1.0, %v14318_v18 }
 0x9a5   : > { %v14322_v23 = vpop.eup %14321  ;;  %14331 = vrcp.f32 %v3367_v19  ;;  %v3368_v24 = vadd.f32 1.0, %v14320_v21 }
 0x9a6   : > { %14333 = vrcp.f32 %v3365_v22  ;;  %v3366_v25 = vadd.f32 1.0, %v14322_v23 }
 0x9a7   : > { %14335 = vrcp.f32 %v3368_v24 }
 0x9a8   : > { %14337 = vrcp.f32 %v3366_v25 }
 0x9aa   : > { %v14324_v26 = vpop.eup %14323 }
 0x9ab   : > { %v14326_v28 = vpop.eup %14325  ;;  %v3371_v13 = vadd.f32 1.0, %v14324_v26 }
 0x9ac   : > { %v14328_v15 = vpop.eup %14327  ;;  %v3369_v16 = vadd.f32 1.0, %v14326_v28 }
 0x9ad   : > { %v14330_v20 = vpop.eup %14329  ;;  %14339 = vrcp.f32 %v3371_v13  ;;  %v3372_v31 = vadd.f32 1.0, %v14328_v15 }
 0x9ae   : > { %14341 = vrcp.f32 %v3369_v16  ;;  %v3370_v33 = vadd.f32 1.0, %v14330_v20 }
 0x9af   : > { %v14332_v34 = vpop.eup %14331  ;;  %14343 = vrcp.f32 %v3372_v31 }
 0x9b0   : > { %v14334_v32 = vpop.eup %14333  ;;  %14345 = vrcp.f32 %v3370_v33  ;;  %v3383_v37 = vmul.f32 %v14332_v34, %v15244_v45 }
 0x9b1   : > { %v14336_v35 = vpop.eup %14335  ;;  %v3381_v39 = vmul.f32 %v14334_v32, %v15247_v47 }
 0x9b2   : > { %v14338_v36 = vpop.eup %14337  ;;  %v3384_v38 = vmul.f32 %v14336_v35, %v15250_v49 }
 0x9b3   : > { %v3382_v40 = vmul.f32 %v14338_v36, %v15253_v52  ;;  %v13572_v52 = vld [vmem:[%s16975_s18] sm:$0xff]  }
 0x9b4   : > { %v3390_v41 = vpack.c.bf16 %v3384_v38, %v3383_v37  ;;  %12995 = vmatprep.subr.bf16.mxu0 %v13572_v52 }
 0x9b5   : > { %v3389_v43 = vpack.c.bf16 %v3382_v40, %v3381_v39  ;;  %12996 = vmatpush3.bf16.msra.mxu0 %v13572_v52 }
 0x9b6   : > { %12997 = vmatprep.subr.bf16.mxu0 %v13573_v55 }
 0x9b7   : > { %v14340_v44 = vpop.eup %14339  ;;  %12987 = vmatprep.mubr.bf16.mxu1 %v3389_v43 }
 0x9b8   : > { %v14342_v46 = vpop.eup %14341  ;;  %12988 = vmatmul.mubr.bf16.vlgmr.msra.gmra.mrb[52].mxu1 %v3390_v41  ;;  %v3387_v51 = vmul.f32 %v14340_v44, %v12969_v61  ;;  %v13579_v61 = vld [vmem:[%s16975_s18 + $0x38] sm:$0xff]  }
 0x9b9   : > { %v14344_v48 = vpop.eup %14343  ;;  %v3385_v45 = vmul.f32 %v14342_v46, %v3318_v63  ;;  %12998 = vmatpush3.bf16.msra.mxu0 %v13573_v55  ;;  %v13582_v63 = vld [vmem:[%s16976_s0 + $0x4] ss:$24 sps:$4 sm:$0xff]  }
 0x9ba   : > { %v14346_v50 = vpop.eup %14345  ;;  %v3388_v53 = vmul.f32 %v14344_v48, %v12970_v1  ;;  %12999 = vmatprep.subr.bf16.mxu0 %v13574_v56  ;;  %13329 = vmatprep.subr.bf16.mxu1 %v13582_v63  ;;  %v13586_v1 = vld [vmem:[%s16976_s0 + $0x10] ss:$24 sps:$4 sm:$0xff]  }
 0x9bb   : > { %v3386_v49 = vmul.f32 %v14346_v50, %v3321_v5  ;;  %13330 = vmatpush1.bf16.msra.mxu1 %v15270_v62  ;;  %v15289_v5 = vld [vmem:[%s14967_s28 + $0x18] sm:$0xff]  }
 0x9bc   : > { %v3392_v54 = vpack.c.bf16 %v3388_v53, %v3387_v51  ;;  %3893 = vmatprep.subr.bf16.mxu1 %v13588_v3 }
 0x9bd   : > { %v3391_v47 = vpack.c.bf16 %v3386_v49, %v3385_v45  ;;  %13000 = vmatpush3.bf16.msra.mxu0 %v13574_v56 }
 0x9be   : > { %13001 = vmatprep.subr.bf16.mxu0 %v13575_v57 }
 0x9bf   : > { %12991 = vmatprep.mubr.bf16.mxu1 %v3391_v47 }
 0x9c0   : > { %12992 = vmatmul.mubr.bf16.gmra.mrb[56].mxu1 %v3392_v54 }
 0x9c1   : > { %3789 = vmatprep.mubr.bf16.mxu1 %v16921_v27  ;;  %13002 = vmatpush3.bf16.msra.mxu0 %v13575_v57 }
 0x9c2   : > { %13003 = vmatprep.subr.bf16.mxu0 %v13576_v58 }
 0x9c5   : > { %13004 = vmatpush3.bf16.msra.mxu0 %v13576_v58 }
 0x9c6   : > { %13005 = vmatprep.subr.bf16.mxu0 %v13577_v59 }
 0x9c8   : > { %11590 = vmatmul.mubr.msk.bf16.vlgmr.msra.gmra.mrb[60].mxu1 %vm2055_vm2, %v15275_v0 }
 0x9c9   : > { %13006 = vmatpush3.bf16.msra.mxu0 %v13577_v59  ;;  %3799 = vmatprep.mubr.bf16.mxu1 %v16921_v27 }
 0x9ca   : > { %13007 = vmatprep.subr.bf16.mxu0 %v13578_v60  ;;  %3894 = vmatpush1.bf16.msra.mxu1 %v13586_v1 }
 0x9cb   : > { %4164 = vmatprep.subr.bf16.mxu1 %v13597_v8 }
 0x9cd   : > { %13008 = vmatpush3.bf16.msra.mxu0 %v13578_v60 }
 0x9ce   : > { %13009 = vmatprep.subr.bf16.mxu0 %v13579_v61 }
 0x9d0   : > { %11591 = vmatmul.mubr.msk.bf16.gmra.mrb[64].mxu1 %vm2055_vm2, %v15283_v4 }
 0x9d1   : > { %13010 = vmatpush3.bf16.msra.mxu0 %v13579_v61  ;;  %3809 = vmatprep.mubr.bf16.mxu1 %v16921_v27 }
 0x9d2   : > { %3747 = vmatprep.subr.bf16.mxu0 %v13582_v63 }
 0x9d8   : > { %11592 = vmatmul.mubr.msk.bf16.gmra.mrb[68].mxu1 %vm2055_vm2, %v15289_v5 }
 0x9d9   : > { %3925 = vmatprep.mubr.bf16.mxu1 %v16921_v27 }
 0x9e0   : > { %11597 = vmatmul.mubr.msk.bf16.vlgmr.msra.gmra.mrb[72].mxu1 %vm2055_vm2, %v15295_v6 }
 0x9e1   : > { %3935 = vmatprep.mubr.bf16.mxu1 %v16921_v27  ;;  %4165 = vmatpush1.bf16.msra.mxu1 %v13595_v7 }
 0x9e2   : > { %4166 = vmatprep.subr.bf16.mxu1 %v13600_v10 }
 0x9e5   : > { %4167 = vmatpush1.bf16.msra.mxu1 %v13598_v9 }
 0x9e8   : > { %11598 = vmatmul.mubr.msk.bf16.gmra.mrb[76].mxu1 %vm2055_vm2, %v15275_v0 }
 0x9e9   : > { %3945 = vmatprep.mubr.bf16.mxu1 %v16921_v27 }
 0x9f0   : > { %11599 = vmatmul.mubr.msk.bf16.gmra.mrb[80].mxu1 %vm2055_vm2, %v15283_v4 }
 0x9f1   : > { %3955 = vmatprep.mubr.bf16.mxu1 %v16921_v27 }
 0x9f8   : > { %11600 = vmatmul.mubr.msk.bf16.gmra.mrb[84].mxu1 %vm2055_vm2, %v15289_v5 }
 0x9f9   : > { %4196 = vmatprep.mubr.bf16.mxu1 %v16921_v27 }
 0xa8b   : > { %v15313_v11 = vpop.f32.mrb[52].mxu1 }
 0xa8c   : > { %v3524_v12 = vsub.f32 0.0, %v15313_v11  ;;  %v15316_v14 = vpop.f32.mrb[53].mxu1 }
 0xa8d   : > { %v3522_v17 = vsub.f32 0.0, %v15316_v14  ;;  %v15319_v18 = vpop.f32.mrb[54].mxu1 }
 0xa8e   : > { %v3532_v19 = vmin.f32 %v3524_v12, 80.0  ;;  %v3525_v21 = vsub.f32 0.0, %v15319_v18  ;;  %v15322_v22 = vpop.f32.mrb[55].mxu1 }
 0xa8f   : > { %v3530_v23 = vmin.f32 %v3522_v17, 80.0  ;;  %v3523_v24 = vsub.f32 0.0, %v15322_v22 }
 0xa90   : > { %v3542_v25 = vmul.f32 1.442695, %v3532_v19  ;;  %v3533_v26 = vmin.f32 %v3525_v21, 80.0 }
 0xa91   : > { %v3538_v28 = vmul.f32 1.442695, %v3530_v23  ;;  %v3531_v13 = vmin.f32 %v3523_v24, 80.0  ;;  %v13585_v23 = vld [vmem:[%s16976_s0 + $0xc] ss:$24 sps:$4 sm:$0xff]  }
 0xa92   : > { %14347 = vpow2.f32 %v3542_v25  ;;  %v3544_v15 = vmul.f32 1.442695, %v3533_v26 }
 0xa93   : > { %14349 = vpow2.f32 %v3538_v28  ;;  %v3540_v16 = vmul.f32 1.442695, %v3531_v13  ;;  %v15325_v20 = vpop.f32.mrb[56].mxu1 }
 0xa94   : > { %14351 = vpow2.f32 %v3544_v15  ;;  %v3528_v31 = vsub.f32 0.0, %v15325_v20  ;;  %v15328_v33 = vpop.f32.mrb[57].mxu1 }
 0xa95   : > { %14353 = vpow2.f32 %v3540_v16  ;;  %v3526_v34 = vsub.f32 0.0, %v15328_v33  ;;  %v12994_v32 = vpop.f32.mrb[58].mxu1  ;;  %v13583_v16 = vld [vmem:[%s16976_s0 + $0x8] ss:$24 sps:$4 sm:$0xff]   ;;  %s16984_s0 = sld [smem:[#allocation12_spill]] }
 0xa96   : > { %v3536_v35 = vmin.f32 %v3528_v31, 80.0  ;;  %v3529_v36 = vsub.f32 0.0, %v12994_v32  ;;  %v3510_v37 = vpop.f32.mrb[59].mxu1  ;;  %v13591_v31 = vld [vmem:[%s16977_s1 + $0x4] ss:$24 sps:$4 sm:$0xff]  }
 0xa97   : > { %v3534_v38 = vmin.f32 %v3526_v34, 80.0  ;;  %v3527_v39 = vsub.f32 0.0, %v3510_v37  ;;  %v13603_v34 = vld [vmem:[%s16977_s1 + $0x64] ss:$24 sps:$4 sm:$0xff]  }
 0xa98   : > { %v3550_v40 = vmul.f32 1.442695, %v3536_v35  ;;  %v3537_v41 = vmin.f32 %v3529_v36, 80.0  ;;  %v13604_v35 = vld [vmem:[%s16977_s1 + $0x68] ss:$24 sps:$4 sm:$0xff]  }
 0xa99   : > { %v3546_v43 = vmul.f32 1.442695, %v3534_v38  ;;  %v3535_v44 = vmin.f32 %v3527_v39, 80.0  ;;  %v13618_v36 = vld [vmem:[%s16978_s2 + $0x4] ss:$12 sps:$4 sm:$0xff]  }
 0xa9a   : > { %14355 = vpow2.f32 %v3550_v40  ;;  %v3552_v46 = vmul.f32 1.442695, %v3537_v41 }
 0xa9b   : > { %14357 = vpow2.f32 %v3546_v43  ;;  %v3548_v48 = vmul.f32 1.442695, %v3535_v44 }
 0xa9c   : > { %v14348_v50 = vpop.eup %14347  ;;  %14359 = vpow2.f32 %v3552_v46 }
 0xa9d   : > { %v14350_v51 = vpop.eup %14349  ;;  %v3556_v53 = vadd.f32 1.0, %v14348_v50  ;;  %14361 = vpow2.f32 %v3548_v48 }
 0xa9e   : > { %v14352_v45 = vpop.eup %14351  ;;  %v3554_v49 = vadd.f32 1.0, %v14350_v51 }
 0xa9f   : > { %v14354_v54 = vpop.eup %14353  ;;  %14363 = vrcp.f32 %v3556_v53  ;;  %v3557_v47 = vadd.f32 1.0, %v14352_v45 }
 0xaa0   : > { %14365 = vrcp.f32 %v3554_v49  ;;  %v3555_v52 = vadd.f32 1.0, %v14354_v54 }
 0xaa1   : > { %14367 = vrcp.f32 %v3557_v47 }
 0xaa2   : > { %14369 = vrcp.f32 %v3555_v52 }
 0xaa4   : > { %v14356_v55 = vpop.eup %14355 }
 0xaa5   : > { %v14358_v56 = vpop.eup %14357  ;;  %v3560_v57 = vadd.f32 1.0, %v14356_v55 }
 0xaa6   : > { %v14360_v58 = vpop.eup %14359  ;;  %v3558_v59 = vadd.f32 1.0, %v14358_v56 }
 0xaa7   : > { %v14362_v60 = vpop.eup %14361  ;;  %14371 = vrcp.f32 %v3560_v57  ;;  %v3561_v61 = vadd.f32 1.0, %v14360_v58 }
 0xaa8   : > { %14373 = vrcp.f32 %v3558_v59  ;;  %v3559_v63 = vadd.f32 1.0, %v14362_v60 }
 0xaa9   : > { %v14364_v1 = vpop.eup %14363  ;;  %14375 = vrcp.f32 %v3561_v61 }
 0xaaa   : > { %v14366_v3 = vpop.eup %14365  ;;  %14377 = vrcp.f32 %v3559_v63  ;;  %v3572_v9 = vmul.f32 %v14364_v1, %v15313_v11 }
 0xaab   : > { %v14368_v7 = vpop.eup %14367  ;;  %v3570_v12 = vmul.f32 %v14366_v3, %v15316_v14 }
 0xaac   : > { %v14370_v8 = vpop.eup %14369  ;;  %v3573_v10 = vmul.f32 %v14368_v7, %v15319_v18 }
 0xaad   : > { %v3571_v17 = vmul.f32 %v14370_v8, %v15322_v22 }
 0xaae   : > { %v3579_v19 = vpack.c.bf16 %v3573_v10, %v3572_v9 }
 0xaaf   : > { %v3578_v21 = vpack.c.bf16 %v3571_v17, %v3570_v12  ;;  %v13607_v17 = vld [vmem:[%s16977_s1 + $0x10] ss:$24 sps:$4 sm:$0xff]  }
 0xab1   : > { %v14372_v24 = vpop.eup %14371  ;;  %13011 = vmatprep.mubr.bf16.mxu0 %v3578_v21  ;;  %v13612_v21 = vld [vmem:[%s16977_s1 + $0x44] ss:$24 sps:$4 sm:$0xff]  }
 0xab2   : > { %v14374_v25 = vpop.eup %14373  ;;  %13012 = vmatmul.mubr.bf16.vlgmr.msra.gmra.mrb[80].mxu0 %v3579_v19  ;;  %v3576_v11 = vmul.f32 %v14372_v24, %v15325_v20  ;;  %v13594_v20 = vld [vmem:[%s16977_s1 + $0x34] ss:$24 sps:$4 sm:$0xff]  }
 0xab3   : > { %v14376_v26 = vpop.eup %14375  ;;  %3748 = vmatpush1.bf16.msra.mxu0 %v15270_v62  ;;  %v3574_v14 = vmul.f32 %v14374_v25, %v15328_v33  ;;  %v13589_v62 = vld [vmem:[%s16977_s1] ss:$24 sps:$4 sm:$0xff]   ;;  %v13592_v33 = vld [vmem:[%s16977_s1 + $0x30] ss:$24 sps:$4 sm:$0xff]  }
 0xab4   : > { %v14378_v28 = vpop.eup %14377  ;;  %v3577_v18 = vmul.f32 %v14376_v26, %v12994_v32  ;;  %3820 = vmatprep.subr.bf16.mxu0 %v13585_v23  ;;  %v13606_v32 = vld [vmem:[%s16977_s1 + $0x6c] ss:$24 sps:$4 sm:$0xff]   ;;  %v13621_v23 = vld [vmem:[%s16978_s2 + $0x1c] ss:$12 sps:$4 sm:$0xff]   ;;  %v13610_v25 = vld [vmem:[%s16977_s1 + $0x40] ss:$24 sps:$4 sm:$0xff]  }
 0xab5   : > { %v3575_v22 = vmul.f32 %v14378_v28, %v3510_v37  ;;  %4168 = vmatprep.subr.bf16.mxu1 %v13606_v32  ;;  %v13616_v19 = vld [vmem:[%s16978_s2] ss:$12 sps:$4 sm:$0xff]   ;;  %v13619_v26 = vld [vmem:[%s16978_s2 + $0x18] ss:$12 sps:$4 sm:$0xff]  }
 0xab6   : > { %v3581_v13 = vpack.c.bf16 %v3577_v18, %v3576_v11  ;;  %4169 = vmatpush1.bf16.msra.mxu1 %v13604_v35  ;;  %v13615_v11 = vld [vmem:[%s16977_s1 + $0x74] ss:$24 sps:$4 sm:$0xff]   ;;  %v13630_v32 = vld [vmem:[%s16978_s2 + $0x64] ss:$12 sps:$4 sm:$0xff]  }
 0xab7   : > { %v3580_v15 = vpack.c.bf16 %v3575_v22, %v3574_v14  ;;  %5342 = vmatprep.subr.bf16.mxu1 %v13618_v36  ;;  %v13624_v18 = vld [vmem:[%s16978_s2 + $0x34] ss:$12 sps:$4 sm:$0xff]  }
 0xab8   : > { %v13628_v36 = vld [vmem:[%s16978_s2 + $0x60] ss:$12 sps:$4 sm:$0xff]  }
 0xab9   : > { %13015 = vmatprep.mubr.bf16.mxu0 %v3580_v15 }
 0xaba   : > { %13016 = vmatmul.mubr.bf16.gmra.mrb[84].mxu0 %v3581_v13 }
 0xabb   : > { %3779 = vmatprep.mubr.bf16.mxu0 %v16921_v27 }
 0xac2   : > { %11589 = vmatmul.mubr.msk.bf16.vlgmr.msra.gmra.mrb[88].mxu0 %vm2055_vm2, %v15295_v6 }
 0xac3   : > { %3821 = vmatpush1.bf16.msra.mxu0 %v13583_v16  ;;  %3852 = vmatprep.mubr.bf16.mxu0 %v16921_v27  ;;  %v13613_v16 = vld [vmem:[%s16977_s1 + $0x70] ss:$24 sps:$4 sm:$0xff]  }
 0xac4   : > { %4091 = vmatprep.subr.bf16.mxu0 %v13591_v31  ;;  %v13622_v31 = vld [vmem:[%s16978_s2 + $0x30] ss:$12 sps:$4 sm:$0xff]  }
 0xaca   : > { %11593 = vmatmul.mubr.msk.bf16.vlgmr.msra.gmra.mrb[92].mxu0 %vm2055_vm2, %v15295_v6  ;;  %v13601_v6 = vld [vmem:[%s16977_s1 + $0x60] ss:$24 sps:$4 sm:$0xff]  }
 0xacb   : > { %3862 = vmatprep.mubr.bf16.mxu0 %v16921_v27  ;;  %4092 = vmatpush1.bf16.msra.mxu0 %v13589_v62  ;;  %v13627_v62 = vld [vmem:[%s16978_s2 + $0x4c] ss:$12 sps:$4 sm:$0xff]  }
 0xacc   : > { %4093 = vmatprep.subr.bf16.mxu0 %v13594_v20  ;;  %v13643_v20 = vld [vmem:[%s16978_s2 + $0xc8] ss:$12 sps:$4 sm:$0xff]  }
 0xacf   : > { %4094 = vmatpush1.bf16.msra.mxu0 %v13592_v33  ;;  %v13625_v33 = vld [vmem:[%s16978_s2 + $0x48] ss:$12 sps:$4 sm:$0xff]  }
 0xad0   : > { %4095 = vmatprep.subr.bf16.mxu0 %v13603_v34 }
 0xad2   : > { %11594 = vmatmul.mubr.msk.bf16.gmra.mrb[96].mxu0 %vm2055_vm2, %v15275_v0  ;;  %v13609_v0 = vld [vmem:[%s16977_s1 + $0x14] ss:$24 sps:$4 sm:$0xff]   ;;  %s16989_s1 = sld [smem:[#allocation14_spill]] }
 0xad3   : > { %3872 = vmatprep.mubr.bf16.mxu0 %v16921_v27  ;;  %4096 = vmatpush1.bf16.msra.mxu0 %v13601_v6 }
 0xad4   : > { %4237 = vmatprep.subr.bf16.mxu0 %v13609_v0 }
 0xada   : > { %11595 = vmatmul.mubr.msk.bf16.gmra.mrb[100].mxu0 %vm2055_vm2, %v15283_v4  ;;  %v15366_v4 = vpop.f32.mrb[60].mxu1 }
 0xadb   : > { %3882 = vmatprep.mubr.bf16.mxu0 %v16921_v27  ;;  %v15368_v37 = vpop.f32.mrb[61].mxu1 }
 0xadc   : > { %v15370_v38 = vpop.f32.mrb[62].mxu1 }
 0xae2   : > { %11596 = vmatmul.mubr.msk.bf16.gmra.mrb[104].mxu0 %vm2055_vm2, %v15289_v5  ;;  %v15372_v5 = vpop.f32.mrb[63].mxu1 }
 0xae3   : > { %4123 = vmatprep.mubr.bf16.mxu0 %v16921_v27  ;;  %v15374_v39 = vpop.f32.mrb[64].mxu1 }
 0xae4   : > { %v15376_v40 = vpop.f32.mrb[65].mxu1 }
 0xae5   : > { %v15378_v41 = vpop.f32.mrb[66].mxu1 }
 0xae6   : > { %v15380_v43 = vpop.f32.mrb[67].mxu1 }
 0xae7   : > { %v15382_v44 = vpop.f32.mrb[68].mxu1 }
 0xae8   : > { %v15384_v46 = vpop.f32.mrb[69].mxu1 }
 0xae9   : > { %v15386_v48 = vpop.f32.mrb[70].mxu1 }
 0xaea   : > { %v15388_v50 = vpop.f32.mrb[71].mxu1 }
 0xaeb   : > { %v15390_v51 = vpop.f32.mrb[72].mxu1 }
 0xaec   : > { %v15392_v53 = vpop.f32.mrb[73].mxu1 }
 0xaed   : > { %v15394_v45 = vpop.f32.mrb[74].mxu1 }
 0xaee   : > { %v15396_v49 = vpop.f32.mrb[75].mxu1 }
 0xaef   : > { %v15398_v54 = vpop.f32.mrb[76].mxu1 }
 0xaf0   : > { %v15400_v47 = vpop.f32.mrb[77].mxu1 }
 0xaf1   : > { %v15402_v52 = vpop.f32.mrb[78].mxu1 }
 0xaf2   : > { %v15404_v55 = vpop.f32.mrb[79].mxu1 }
 0xaf3   : > { %v15406_v56 = vpop.f32.mrb[80].mxu1 }
 0xaf4   : > { %v15408_v57 = vpop.f32.mrb[81].mxu1 }
 0xaf5   : > { %v15410_v58 = vpop.f32.mrb[82].mxu1 }
 0xaf6   : > { %v15412_v59 = vpop.f32.mrb[83].mxu1 }
 0xaf7   : > { %v15414_v60 = vpop.f32.mrb[84].mxu1 }
 0xaf8   : > { %v15416_v61 = vpop.f32.mrb[85].mxu1 }
 0xaf9   : > { %v15418_v63 = vpop.f32.mrb[86].mxu1 }
 0xafa   : > { %v15420_v1 = vpop.f32.mrb[87].mxu1 }
 0xafb   : > { %16979 = vst [vmem:[#allocation31_spill] sm:$0xff] %v15420_v1 }
 0xb85   : > { %v13013_v3 = vpop.f32.mrb[80].mxu0 }
 0xb86   : > { %v3680_v7 = vpop.f32.mrb[81].mxu0 }
 0xb87   : > { %v13014_v8 = vpop.f32.mrb[82].mxu0 }
 0xb88   : > { %v15422_v9 = vpack.c.bf16 %v13014_v8, %v13013_v3  ;;  %v3683_v10 = vpop.f32.mrb[83].mxu0  ;;  %v13633_v3 = vld [vmem:[%s16978_s2 + $0x7c] ss:$12 sps:$4 sm:$0xff]  }
 0xb89   : > { %v15424_v12 = vpack.c.bf16 %v3683_v10, %v3680_v7  ;;  %v13631_v7 = vld [vmem:[%s16978_s2 + $0x78] ss:$12 sps:$4 sm:$0xff]  }
 0xb8b   : > { %11619 = vmatmul.mubr.msk.bf16.vlgmr.msra.gmra.mrb[108].mxu0 %vm4078_vm7, %v15424_v12  ;;  %11623 = vmatmul.mubr.msk.bf16.vlgmr.msra.gmra.mrb[88].mxu1 %vm4078_vm7, %v15424_v12 }
 0xb8c   : > { %4133 = vmatprep.mubr.bf16.mxu0 %v16921_v27  ;;  %4206 = vmatprep.mubr.bf16.mxu1 %v16921_v27 }
 0xb8d   : > { %v13017_v24 = vpop.f32.mrb[84].mxu0  ;;  %4238 = vmatpush1.bf16.msra.mxu0 %v13607_v17  ;;  %5343 = vmatpush1.bf16.msra.mxu1 %v13616_v19  ;;  %v13636_v17 = vld [vmem:[%s16978_s2 + $0x94] ss:$12 sps:$4 sm:$0xff]  }
 0xb8e   : > { %v3696_v28 = vpop.f32.mrb[85].mxu0  ;;  %4239 = vmatprep.subr.bf16.mxu0 %v13612_v21  ;;  %5344 = vmatprep.subr.bf16.mxu1 %v13621_v23  ;;  %v13634_v23 = vld [vmem:[%s16978_s2 + $0x90] ss:$12 sps:$4 sm:$0xff]  }
 0xb8f   : > { %v13018_v14 = vpop.f32.mrb[86].mxu0 }
 0xb90   : > { %v15440_v22 = vpack.c.bf16 %v13018_v14, %v13017_v24  ;;  %v3699_v13 = vpop.f32.mrb[87].mxu0  ;;  %v13639_v24 = vld [vmem:[%s16978_s2 + $0xac] ss:$12 sps:$4 sm:$0xff]  }
 0xb91   : > { %v15442_v15 = vpack.c.bf16 %v3699_v13, %v3696_v28  ;;  %4240 = vmatpush1.bf16.msra.mxu0 %v13610_v25  ;;  %5345 = vmatpush1.bf16.msra.mxu1 %v13619_v26  ;;  %v13637_v25 = vld [vmem:[%s16978_s2 + $0xa8] ss:$12 sps:$4 sm:$0xff]  }
 0xb92   : > { %4241 = vmatprep.subr.bf16.mxu0 %v13615_v11  ;;  %5346 = vmatprep.subr.bf16.mxu1 %v13624_v18  ;;  %v13642_v11 = vld [vmem:[%s16978_s2 + $0xc4] ss:$12 sps:$4 sm:$0xff]   ;;  %v13644_v13 = vld [vmem:[%s16978_s2 + $0x8] ss:$12 sps:$4 sm:$0xff]  }
 0xb93   : > { %11620 = vmatmul.mubr.msk.bf16.gmra.mrb[112].mxu0 %vm4078_vm7, %v15422_v9  ;;  %11624 = vmatmul.mubr.msk.bf16.gmra.mrb[92].mxu1 %vm4078_vm7, %v15422_v9 }
 0xb94   : > { %4143 = vmatprep.mubr.bf16.mxu0 %v16921_v27  ;;  %4216 = vmatprep.mubr.bf16.mxu1 %v16921_v27 }
 0xb95   : > { %4242 = vmatpush1.bf16.msra.mxu0 %v13613_v16  ;;  %5347 = vmatpush1.bf16.msra.mxu1 %v13622_v31  ;;  %v15455_v6 = vpop.f32.mrb[88].mxu0  ;;  %v13640_v16 = vld [vmem:[%s16978_s2 + $0xc0] ss:$12 sps:$4 sm:$0xff]  }
 0xb96   : > { %5348 = vmatprep.subr.bf16.mxu1 %v13627_v62  ;;  %v15457_v34 = vpop.f32.mrb[89].mxu0  ;;  %12297 = vmatprep.subr.bf16.mxu0 %v13643_v20  ;;  %v13648_v31 = vld [vmem:[%s16978_s2 + $0xe0] ss:$12 sps:$4 sm:$0xff]   ;;  %v13647_v62 = vld [vmem:[%s16978_s2 + $0xdc] ss:$12 sps:$4 sm:$0xff]  }
 0xb97   : > { %v15460_v35 = vpop.f32.mrb[90].mxu0  ;;  %v13649_v20 = vld [vmem:[%s16978_s2 + $0x20] ss:$12 sps:$4 sm:$0xff]  }
 0xb98   : > { %v15462_v0 = vpop.f32.mrb[91].mxu0 }
 0xb99   : > { %5349 = vmatpush1.bf16.msra.mxu1 %v13625_v33  ;;  %v13645_v33 = vld [vmem:[%s16978_s2 + $0xd8] ss:$12 sps:$4 sm:$0xff]  }
 0xb9a   : > { %5350 = vmatprep.subr.bf16.mxu1 %v13630_v32 }
 0xb9b   : > { %11621 = vmatmul.mubr.msk.bf16.gmra.mrb[116].mxu0 %vm4078_vm7, %v15442_v15  ;;  %11625 = vmatmul.mubr.msk.bf16.gmra.mrb[96].mxu1 %vm4078_vm7, %v15442_v15 }
 0xb9c   : > { %4153 = vmatprep.mubr.bf16.mxu0 %v16921_v27  ;;  %4226 = vmatprep.mubr.bf16.mxu1 %v16921_v27 }
 0xb9d   : > { %5351 = vmatpush1.bf16.msra.mxu1 %v13628_v36  ;;  %v15473_v8 = vpop.f32.mrb[92].mxu0  ;;  %v13653_v36 = vld [vmem:[%s16978_s2 + $0xf8] ss:$12 sps:$4 sm:$0xff]  }
 0xb9e   : > { %5352 = vmatprep.subr.bf16.mxu1 %v13633_v3  ;;  %v15475_v10 = vpop.f32.mrb[93].mxu0 }
 0xb9f   : > { %v15478_v19 = vpop.f32.mrb[94].mxu0 }
 0xba0   : > { %v15480_v21 = vpop.f32.mrb[95].mxu0 }
 0xba1   : > { %5353 = vmatpush1.bf16.msra.mxu1 %v13631_v7  ;;  %v13652_v7 = vld [vmem:[%s16978_s2 + $0xf4] ss:$12 sps:$4 sm:$0xff]  }
 0xba2   : > { %5354 = vmatprep.subr.bf16.mxu1 %v13636_v17 }
 0xba3   : > { %11622 = vmatmul.mubr.msk.bf16.gmra.mrb[120].mxu0 %vm4078_vm7, %v15440_v22  ;;  %11626 = vmatmul.mubr.msk.bf16.gmra.mrb[100].mxu1 %vm4078_vm7, %v15440_v22 }
 0xba4   : > { %4269 = vmatprep.mubr.bf16.mxu0 %v16921_v27 }
 0xba5   : > { %5355 = vmatpush1.bf16.msra.mxu1 %v13634_v23  ;;  %v15490_v26 = vpop.f32.mrb[96].mxu0  ;;  %v13654_v23 = vld [vmem:[%s16978_s2 + $0x38] ss:$12 sps:$4 sm:$0xff]  }
 0xba6   : > { %5356 = vmatprep.subr.bf16.mxu1 %v13639_v24  ;;  %v15492_v28 = vpop.f32.mrb[97].mxu0  ;;  %v13650_v24 = vld [vmem:[%s16978_s2 + $0xf0] ss:$12 sps:$4 sm:$0xff]  }
 0xba7   : > { %v15495_v18 = vpop.f32.mrb[98].mxu0 }
 0xba8   : > { %v15497_v14 = vpop.f32.mrb[99].mxu0 }
 0xba9   : > { %5357 = vmatpush1.bf16.msra.mxu1 %v13637_v25  ;;  %v13658_v25 = vld [vmem:[%s16978_s2 + $0x110] ss:$12 sps:$4 sm:$0xff]  }
 0xbaa   : > { %5358 = vmatprep.subr.bf16.mxu1 %v13642_v11  ;;  %v13657_v11 = vld [vmem:[%s16978_s2 + $0x10c] ss:$12 sps:$4 sm:$0xff]  }
 0xbab   : > { %11627 = vmatmul.mubr.msk.bf16.vlgmr.msra.gmra.mrb[124].mxu0 %vm4078_vm7, %v15424_v12 }
 0xbac   : > { %4279 = vmatprep.mubr.bf16.mxu0 %v16921_v27  ;;  %12298 = vmatpush3.bf16.msra.mxu0 %v13644_v13  ;;  %v13659_v13 = vld [vmem:[%s16978_s2 + $0x50] ss:$12 sps:$4 sm:$0xff]  }
 0xbad   : > { %5359 = vmatpush1.bf16.msra.mxu1 %v13640_v16  ;;  %12299 = vmatprep.subr.bf16.mxu0 %v13648_v31  ;;  %v15508_v32 = vpop.f32.mrb[100].mxu0  ;;  %v13655_v16 = vld [vmem:[%s16978_s2 + $0x108] ss:$12 sps:$4 sm:$0xff]  }
 0xbae   : > { %5360 = vmatprep.subr.bf16.mxu1 %v13647_v62  ;;  %v15511_v3 = vpop.f32.mrb[101].mxu0  ;;  %v13663_v62 = vld [vmem:[%s16978_s2 + $0x128] ss:$12 sps:$4 sm:$0xff]  }
 0xbaf   : > { %v15514_v12 = vpop.f32.mrb[102].mxu0 }
 0xbb0   : > { %12300 = vmatpush3.bf16.msra.mxu0 %v13649_v20  ;;  %v15516_v17 = vpop.f32.mrb[103].mxu0 }
 0xbb1   : > { %5361 = vmatpush1.bf16.msra.mxu1 %v13645_v33  ;;  %12301 = vmatprep.subr.bf16.mxu0 %v13653_v36  ;;  %v13662_v33 = vld [vmem:[%s16978_s2 + $0x124] ss:$12 sps:$4 sm:$0xff]  }
 0xbb2   : > { %5362 = vmatprep.subr.bf16.mxu1 %v13652_v7  ;;  %v13664_v7 = vld [vmem:[%s16978_s2 + $0x68] ss:$12 sps:$4 sm:$0xff]  }
 0xbb3   : > { %11628 = vmatmul.mubr.msk.bf16.gmra.mrb[128].mxu0 %vm4078_vm7, %v15422_v9 }
 0xbb4   : > { %4289 = vmatprep.mubr.bf16.mxu0 %v16921_v27  ;;  %12302 = vmatpush3.bf16.msra.mxu0 %v13654_v23  ;;  %v13660_v23 = vld [vmem:[%s16978_s2 + $0x120] ss:$12 sps:$4 sm:$0xff]  }
 0xbb5   : > { %5363 = vmatpush1.bf16.msra.mxu1 %v13650_v24  ;;  %12303 = vmatprep.subr.bf16.mxu0 %v13658_v25  ;;  %v15527_v31 = vpop.f32.mrb[104].mxu0  ;;  %v13668_v24 = vld [vmem:[%s16978_s2 + $0x140] ss:$12 sps:$4 sm:$0xff]   ;;  %v13667_v25 = vld [vmem:[%s16978_s2 + $0x13c] ss:$12 sps:$4 sm:$0xff]  }
 0xbb6   : > { %5364 = vmatprep.subr.bf16.mxu1 %v13657_v11  ;;  %v15530_v20 = vpop.f32.mrb[105].mxu0  ;;  %v13669_v11 = vld [vmem:[%s16978_s2 + $0x80] ss:$12 sps:$4 sm:$0xff]  }
 0xbb7   : > { %v15533_v9 = vpop.f32.mrb[106].mxu0 }
 0xbb8   : > { %12304 = vmatpush3.bf16.msra.mxu0 %v13659_v13  ;;  %v15535_v36 = vpop.f32.mrb[107].mxu0  ;;  %v13665_v13 = vld [vmem:[%s16978_s2 + $0x138] ss:$12 sps:$4 sm:$0xff]  }
 0xbb9   : > { %5365 = vmatpush1.bf16.msra.mxu1 %v13655_v16  ;;  %12305 = vmatprep.subr.bf16.mxu0 %v13663_v62  ;;  %v13672_v16 = vld [vmem:[%s16978_s2 + $0x154] ss:$12 sps:$4 sm:$0xff]   ;;  %v13670_v62 = vld [vmem:[%s16978_s2 + $0x150] ss:$12 sps:$4 sm:$0xff]  }
 0xbba   : > { %5366 = vmatprep.subr.bf16.mxu1 %v13662_v33  ;;  %v13674_v33 = vld [vmem:[%s16978_s2 + $0x98] ss:$12 sps:$4 sm:$0xff]  }
 0xbbb   : > { %11629 = vmatmul.mubr.msk.bf16.gmra.mrb[132].mxu0 %vm4078_vm7, %v15442_v15  ;;  %v13673_v15 = vld [vmem:[%s16978_s2 + $0x158] ss:$12 sps:$4 sm:$0xff]  }
 0xbbc   : > { %4299 = vmatprep.mubr.bf16.mxu0 %v16921_v27  ;;  %12306 = vmatpush3.bf16.msra.mxu0 %v13664_v7  ;;  %v13677_v7 = vld [vmem:[%s16978_s2 + $0x16c] ss:$12 sps:$4 sm:$0xff]  }
 0xbbd   : > { %5367 = vmatpush1.bf16.msra.mxu1 %v13660_v23  ;;  %12307 = vmatprep.subr.bf16.mxu0 %v13668_v24  ;;  %v13678_v23 = vld [vmem:[%s16978_s2 + $0x170] ss:$12 sps:$4 sm:$0xff]   ;;  %v13675_v24 = vld [vmem:[%s16978_s2 + $0x168] ss:$12 sps:$4 sm:$0xff]  }
 0xbbe   : > { %5368 = vmatprep.subr.bf16.mxu1 %v13667_v25  ;;  %v13682_v25 = vld [vmem:[%s16978_s2 + $0x184] ss:$12 sps:$4 sm:$0xff]  }
 0xbc0   : > { %12308 = vmatpush3.bf16.msra.mxu0 %v13669_v11 }
 0xbc1   : > { %5369 = vmatpush1.bf16.msra.mxu1 %v13665_v13  ;;  %12309 = vmatprep.subr.bf16.mxu0 %v13673_v15 }
 0xbc2   : > { %5370 = vmatprep.subr.bf16.mxu1 %v13672_v16 }
 0xbc3   : > { %11630 = vmatmul.mubr.msk.bf16.gmra.mrb[136].mxu0 %vm4078_vm7, %v15440_v22  ;;  %v13683_v22 = vld [vmem:[%s16978_s2 + $0x248] ss:$12 sps:$4 sm:$0xff]  }
 0xbc4   : > { %12310 = vmatpush3.bf16.msra.mxu0 %v13674_v33 }
 0xbc5   : > { %5371 = vmatpush1.bf16.msra.mxu1 %v13670_v62  ;;  %12311 = vmatprep.subr.bf16.mxu0 %v13678_v23 }
 0xbc6   : > { %5372 = vmatprep.subr.bf16.mxu1 %v13677_v7 }
 0xbc8   : > { %12312 = vmatpush3.bf16.msra.mxu0 %v13679_v2 }
 0xbc9   : > { %5373 = vmatpush1.bf16.msra.mxu1 %v13675_v24  ;;  %12337 = vmatprep.subr.bf16.mxu0 %v13683_v22 }
 0xbca   : > { %5415 = vmatprep.subr.bf16.mxu1 %v13682_v25 }
 0xc5e   : > { %v4125_v11 = vpop.f32.mrb[108].mxu0  ;;  %v4198_v13 = vpop.f32.mrb[88].mxu1 }
 0xc5f   : > { %v4310_v27 = vmul.f32 %v4125_v11, %v15455_v6  ;;  %v4312_v16 = vmul.f32 %v4198_v13, %v15473_v8  ;;  %v4127_v15 = vpop.f32.mrb[109].mxu0  ;;  %v4200_v62 = vpop.f32.mrb[89].mxu1 }
 0xc60   : > { %v4311_v33 = vmul.f32 %v4127_v15, %v15457_v34  ;;  %v4313_v7 = vmul.f32 %v4200_v62, %v15475_v10  ;;  %v4129_v2 = vpop.f32.mrb[110].mxu0  ;;  %v4202_v23 = vpop.f32.mrb[90].mxu1  ;;  %v13680_v10 = vld [vmem:[%s16978_s2 + $0x180] ss:$12 sps:$4 sm:$0xff]   ;;  %v13684_v62 = vld [vmem:[%s16978_s2 + $0x188] ss:$12 sps:$4 sm:$0xff]  }
 0xc61   : > { %v4316_v24 = vmul.f32 %v4129_v2, %v15460_v35  ;;  %v4318_v25 = vmul.f32 %v4202_v23, %v15478_v19  ;;  %v4131_v22 = vpop.f32.mrb[111].mxu0  ;;  %v4204_v6 = vpop.f32.mrb[91].mxu1  ;;  %v13685_v23 = vld [vmem:[%s16978_s2 + $0x198] ss:$12 sps:$4 sm:$0xff]  }
 0xc62   : > { %v4317_v8 = vmul.f32 %v4131_v22, %v15462_v0  ;;  %v4319_v11 = vmul.f32 %v4204_v6, %v15480_v21 }
 0xc63   : > { %v4358_v13 = vpack.c.bf16 %v4316_v24, %v4310_v27  ;;  %v15566_v30 = vpack.c.bf16 %v4318_v25, %v4312_v16  ;;  %v13689_v24 = vld [vmem:[%s16978_s2 + $0x1a0] ss:$12 sps:$4 sm:$0xff]  }
 0xc64   : > { %v15568_v34 = vpack.c.bf16 %v4319_v11, %v4313_v7  ;;  %v4359_v15 = vpack.c.bf16 %v4317_v8, %v4311_v33 }
 0xc66   : > { %v4135_v1 = vpop.f32.mrb[112].mxu0  ;;  %v4208_v35 = vpop.f32.mrb[92].mxu1  ;;  %5374 = vmatprep.mubr.bf16.mxu1 %v4359_v15  ;;  %5593 = vmatprep.mubr.bf16.mxu0 %v4359_v15  ;;  %v13694_v15 = vld [vmem:[%s16978_s2 + $0x1b8] ss:$12 sps:$4 sm:$0xff]  }
 0xc67   : > { %v4322_v0 = vmul.f32 %v4135_v1, %v15366_v4  ;;  %v4324_v19 = vmul.f32 %v4208_v35, %v15490_v26  ;;  %v4137_v27 = vpop.f32.mrb[113].mxu0  ;;  %v4210_v21 = vpop.f32.mrb[93].mxu1  ;;  %5375 = vmatmul.mubr.bf16.vlgmr.msra.gmra.mrb[104].mxu1 %v4358_v13  ;;  %5594 = vmatmul.mubr.bf16.vlgmr.msra.gmra.mrb[140].mxu0 %v4358_v13  ;;  %v13690_v13 = vld [vmem:[%s16978_s2 + $0x1b0] ss:$12 sps:$4 sm:$0xff]  }
 0xc68   : > { %v4323_v16 = vmul.f32 %v4137_v27, %v15368_v37  ;;  %v4325_v33 = vmul.f32 %v4210_v21, %v15492_v28  ;;  %5416 = vmatpush1.bf16.msra.mxu1 %v13680_v10  ;;  %12338 = vmatpush3.bf16.msra.mxu0 %v13684_v62  ;;  %v4139_v7 = vpop.f32.mrb[114].mxu0  ;;  %v4212_v2 = vpop.f32.mrb[94].mxu1  ;;  %v13692_v37 = vld [vmem:[%s16978_s2 + $0x1b4] ss:$12 sps:$4 sm:$0xff]   ;;  %v13693_v28 = vld [vmem:[%s16978_s2 + $0x278] ss:$12 sps:$4 sm:$0xff]  }
 0xc69   : > { %v4328_v4 = vmul.f32 %v4139_v7, %v15370_v38  ;;  %v4330_v1 = vmul.f32 %v4212_v2, %v15495_v18  ;;  %v4141_v26 = vpop.f32.mrb[115].mxu0  ;;  %v4214_v25 = vpop.f32.mrb[95].mxu1  ;;  %5417 = vmatprep.subr.bf16.mxu1 %v13687_v29  ;;  %12339 = vmatprep.subr.bf16.mxu0 %v13688_v42  ;;  %v13697_v29 = vld [vmem:[%s16978_s2 + $0x1cc] ss:$12 sps:$4 sm:$0xff]   ;;  %v13698_v42 = vld [vmem:[%s16978_s2 + $0x290] ss:$12 sps:$4 sm:$0xff]  }
 0xc6a   : > { %v4329_v22 = vmul.f32 %v4141_v26, %v15372_v5  ;;  %v4331_v6 = vmul.f32 %v4214_v25, %v15497_v14  ;;  %v13699_v7 = vld [vmem:[%s16978_s2 + $0x1d0] ss:$12 sps:$4 sm:$0xff]   ;;  %v13700_v25 = vld [vmem:[%s16978_s2 + $0x1e0] ss:$12 sps:$4 sm:$0xff]  }
 0xc6b   : > { %v15586_v8 = vpack.c.bf16 %v4330_v1, %v4324_v19  ;;  %v4364_v11 = vpack.c.bf16 %v4328_v4, %v4322_v0 }
 0xc6c   : > { %v15588_v38 = vpack.c.bf16 %v4331_v6, %v4325_v33  ;;  %5418 = vmatpush1.bf16.msra.mxu1 %v13685_v23  ;;  %12340 = vmatpush3.bf16.msra.mxu0 %v13689_v24  ;;  %v4365_v18 = vpack.c.bf16 %v4329_v22, %v4323_v16  ;;  %v13695_v33 = vld [vmem:[%s16978_s2 + $0x1c8] ss:$12 sps:$4 sm:$0xff]   ;;  %v13708_v22 = vld [vmem:[%s16978_s2 + $0x2c0] ss:$12 sps:$4 sm:$0xff]  }
 0xc6d   : > { %5419 = vmatprep.subr.bf16.mxu1 %v13692_v37  ;;  %12341 = vmatprep.subr.bf16.mxu0 %v13693_v28  ;;  %v13704_v37 = vld [vmem:[%s16978_s2 + $0x1e8] ss:$12 sps:$4 sm:$0xff]  }
 0xc6e   : > { %v4145_v10 = vpop.f32.mrb[116].mxu0  ;;  %v4218_v62 = vpop.f32.mrb[96].mxu1  ;;  %5384 = vmatprep.mubr.bf16.mxu1 %v4365_v18  ;;  %5601 = vmatprep.mubr.bf16.mxu0 %v4365_v18  ;;  %v13707_v28 = vld [vmem:[%s16978_s2 + $0x1fc] ss:$12 sps:$4 sm:$0xff]  }
 0xc6f   : > { %v4334_v5 = vmul.f32 %v4145_v10, %v15374_v39  ;;  %v4336_v14 = vmul.f32 %v4218_v62, %v15508_v32  ;;  %v4147_v35 = vpop.f32.mrb[117].mxu0  ;;  %v4220_v0 = vpop.f32.mrb[97].mxu1  ;;  %5385 = vmatmul.mubr.bf16.gmra.mrb[108].mxu1 %v4364_v11  ;;  %5602 = vmatmul.mubr.bf16.gmra.mrb[144].mxu0 %v4364_v11  ;;  %v13705_v62 = vld [vmem:[%s16978_s2 + $0x1f8] ss:$12 sps:$4 sm:$0xff]  }
 0xc70   : > { %v4335_v19 = vmul.f32 %v4147_v35, %v15376_v40  ;;  %v4337_v27 = vmul.f32 %v4220_v0, %v15511_v3  ;;  %5420 = vmatpush1.bf16.msra.mxu1 %v13690_v13  ;;  %12342 = vmatpush3.bf16.msra.mxu0 %v13694_v15  ;;  %v4149_v21 = vpop.f32.mrb[118].mxu0  ;;  %v4222_v16 = vpop.f32.mrb[98].mxu1  ;;  %v13702_v40 = vld [vmem:[%s16978_s2 + $0x1e4] ss:$12 sps:$4 sm:$0xff]   ;;  %v13703_v3 = vld [vmem:[%s16978_s2 + $0x2a8] ss:$12 sps:$4 sm:$0xff]  }
 0xc71   : > { %v4340_v39 = vmul.f32 %v4149_v21, %v15378_v41  ;;  %v4342_v32 = vmul.f32 %v4222_v16, %v15514_v12  ;;  %v4151_v2 = vpop.f32.mrb[119].mxu0  ;;  %v4224_v23 = vpop.f32.mrb[99].mxu1  ;;  %5421 = vmatprep.subr.bf16.mxu1 %v13697_v29  ;;  %12343 = vmatprep.subr.bf16.mxu0 %v13698_v42  ;;  %v13712_v0 = vld [vmem:[%s16978_s2 + $0x214] ss:$12 sps:$4 sm:$0xff]   ;;  %v13710_v16 = vld [vmem:[%s16978_s2 + $0x210] ss:$12 sps:$4 sm:$0xff]  }
 0xc72   : > { %v4341_v24 = vmul.f32 %v4151_v2, %v15380_v43  ;;  %v4343_v4 = vmul.f32 %v4224_v23, %v15516_v17 }
 0xc73   : > { %v15606_v1 = vpack.c.bf16 %v4342_v32, %v4336_v14  ;;  %v4370_v26 = vpack.c.bf16 %v4340_v39, %v4334_v5  ;;  %v13709_v5 = vld [vmem:[%s16978_s2 + $0x200] ss:$12 sps:$4 sm:$0xff]  }
 0xc74   : > { %v15608_v41 = vpack.c.bf16 %v4343_v4, %v4337_v27  ;;  %5422 = vmatpush1.bf16.msra.mxu1 %v13695_v33  ;;  %12344 = vmatpush3.bf16.msra.mxu0 %v13699_v7  ;;  %v4371_v12 = vpack.c.bf16 %v4341_v24, %v4335_v19  ;;  %v13714_v33 = vld [vmem:[%s16978_s2 + $0x218] ss:$12 sps:$4 sm:$0xff]  }
 0xc75   : > { %5423 = vmatprep.subr.bf16.mxu1 %v13702_v40  ;;  %12345 = vmatprep.subr.bf16.mxu0 %v13703_v3  ;;  %v13715_v40 = vld [vmem:[%s16978_s2 + $0x228] ss:$12 sps:$4 sm:$0xff]   ;;  %v13719_v3 = vld [vmem:[%s16978_s2 + $0x230] ss:$12 sps:$4 sm:$0xff]  }
 0xc76   : > { %v4155_v6 = vpop.f32.mrb[120].mxu0  ;;  %v4228_v11 = vpop.f32.mrb[100].mxu1  ;;  %5394 = vmatprep.mubr.bf16.mxu1 %v4371_v12  ;;  %5609 = vmatprep.mubr.bf16.mxu0 %v4371_v12  ;;  %v13722_v4 = vld [vmem:[%s16978_s2 + $0x244] ss:$12 sps:$4 sm:$0xff]  }
 0xc77   : > { %v4346_v43 = vmul.f32 %v4155_v6, %v15382_v44  ;;  %v4348_v17 = vmul.f32 %v4228_v11, %v15527_v31  ;;  %v4157_v18 = vpop.f32.mrb[121].mxu0  ;;  %v4230_v13 = vpop.f32.mrb[101].mxu1  ;;  %5395 = vmatmul.mubr.bf16.gmra.mrb[112].mxu1 %v4370_v26  ;;  %5610 = vmatmul.mubr.bf16.gmra.mrb[148].mxu0 %v4370_v26  ;;  %v13723_v26 = vld [vmem:[%s16978_s2 + $0x3c8] ss:$12 sps:$4 sm:$0xff]  }
 0xc78   : > { %v4347_v15 = vmul.f32 %v4157_v18, %v15384_v46  ;;  %v4349_v29 = vmul.f32 %v4230_v13, %v15530_v20  ;;  %5424 = vmatpush1.bf16.msra.mxu1 %v13700_v25  ;;  %12346 = vmatpush3.bf16.msra.mxu0 %v13704_v37  ;;  %v4159_v42 = vpop.f32.mrb[122].mxu0  ;;  %v4232_v10 = vpop.f32.mrb[102].mxu1  ;;  %v13713_v46 = vld [vmem:[%s16978_s2 + $0x2d8] ss:$12 sps:$4 sm:$0xff]   ;;  %v13720_v25 = vld [vmem:[%s16978_s2 + $0x240] ss:$12 sps:$4 sm:$0xff]  }
 0xc79   : > { %v4352_v44 = vmul.f32 %v4159_v42, %v15386_v48  ;;  %v4354_v31 = vmul.f32 %v4232_v10, %v15533_v9  ;;  %v4161_v14 = vpop.f32.mrb[123].mxu0  ;;  %v4234_v35 = vpop.f32.mrb[103].mxu1  ;;  %5425 = vmatprep.subr.bf16.mxu1 %v13707_v28  ;;  %12347 = vmatprep.subr.bf16.mxu0 %v13708_v22  ;;  %v13728_v22 = vld [vmem:[%s16978_s2 + $0x3e0] ss:$12 sps:$4 sm:$0xff]   ;;  %v13730_v10 = vld [vmem:[%s16978_s2 + $0x270] ss:$12 sps:$4 sm:$0xff]  }
 0xc7a   : > { %v4353_v20 = vmul.f32 %v4161_v14, %v15388_v50  ;;  %v4355_v19 = vmul.f32 %v4234_v35, %v15535_v36  ;;  %v13717_v50 = vld [vmem:[%s16978_s2 + $0x22c] ss:$12 sps:$4 sm:$0xff]   ;;  %v13718_v36 = vld [vmem:[%s16978_s2 + $0x2f0] ss:$12 sps:$4 sm:$0xff]  }
 0xc7b   : > { %v15626_v27 = vpack.c.bf16 %v4354_v31, %v4348_v17  ;;  %v4376_v21 = vpack.c.bf16 %v4352_v44, %v4346_v43  ;;  %v13725_v17 = vld [vmem:[%s16978_s2 + $0x258] ss:$12 sps:$4 sm:$0xff]   ;;  %v13729_v18 = vld [vmem:[%s16978_s2 + $0x320] ss:$12 sps:$4 sm:$0xff]   ;;  %v13738_v31 = vld [vmem:[%s16978_s2 + $0x410] ss:$12 sps:$4 sm:$0xff]  }
 0xc7c   : > { %v15628_v48 = vpack.c.bf16 %v4355_v19, %v4349_v29  ;;  %5426 = vmatpush1.bf16.msra.mxu1 %v13705_v62  ;;  %12348 = vmatpush3.bf16.msra.mxu0 %v13709_v5  ;;  %v4377_v9 = vpack.c.bf16 %v4353_v20, %v4347_v15  ;;  %v13733_v29 = vld [vmem:[%s16978_s2 + $0x3f8] ss:$12 sps:$4 sm:$0xff]   ;;  %v13739_v20 = vld [vmem:[%s16978_s2 + $0x350] ss:$12 sps:$4 sm:$0xff]  }
 0xc7d   : > { %5427 = vmatprep.subr.bf16.mxu1 %v13712_v0  ;;  %12349 = vmatprep.subr.bf16.mxu0 %v13713_v46  ;;  %v13734_v62 = vld [vmem:[%s16978_s2 + $0x338] ss:$12 sps:$4 sm:$0xff]   ;;  %v13735_v46 = vld [vmem:[%s16978_s2 + $0x288] ss:$12 sps:$4 sm:$0xff]  }
 0xc7e   : > { %v4271_v7 = vpop.f32.mrb[124].mxu0  ;;  %5404 = vmatprep.mubr.bf16.mxu1 %v4377_v9  ;;  %5617 = vmatprep.mubr.bf16.mxu0 %v4377_v9  ;;  %v13737_v5 = vld [vmem:[%s16978_s2 + $0x28c] ss:$12 sps:$4 sm:$0xff]   ;;  %v13743_v9 = vld [vmem:[%s16978_s2 + $0x428] ss:$12 sps:$4 sm:$0xff]  }
 0xc7f   : > { %v4314_v39 = vmul.f32 %v4271_v7, %v15390_v51  ;;  %v4273_v32 = vpop.f32.mrb[125].mxu0  ;;  %5405 = vmatmul.mubr.bf16.gmra.mrb[116].mxu1 %v4376_v21  ;;  %5618 = vmatmul.mubr.bf16.gmra.mrb[152].mxu0 %v4376_v21  ;;  %v13744_v7 = vld [vmem:[%s16978_s2 + $0x368] ss:$12 sps:$4 sm:$0xff]  }
 0xc80   : > { %v4315_v2 = vmul.f32 %v4273_v32, %v15392_v53  ;;  %5428 = vmatpush1.bf16.msra.mxu1 %v13710_v16  ;;  %12350 = vmatpush3.bf16.msra.mxu0 %v13714_v33  ;;  %v4275_v23 = vpop.f32.mrb[126].mxu0  ;;  %v13740_v33 = vld [vmem:[%s16978_s2 + $0x2a0] ss:$12 sps:$4 sm:$0xff]  }
 0xc81   : > { %v4320_v24 = vmul.f32 %v4275_v23, %v15394_v45  ;;  %5447 = vmatprep.mubr.bf16.mxu1 %v15568_v34  ;;  %5658 = vmatprep.mubr.bf16.mxu0 %v15568_v34  ;;  %v4277_v51 = vpop.f32.mrb[127].mxu0  ;;  %v13724_v45 = vld [vmem:[%s16978_s2 + $0x308] ss:$12 sps:$4 sm:$0xff]  }
 0xc82   : > { %v4321_v53 = vmul.f32 %v4277_v51, %v15396_v49  ;;  %5429 = vmatprep.subr.bf16.mxu1 %v13717_v50  ;;  %12351 = vmatprep.subr.bf16.mxu0 %v13718_v36  ;;  %v13727_v34 = vld [vmem:[%s16978_s2 + $0x25c] ss:$12 sps:$4 sm:$0xff]  }
 0xc83   : > { %v15644_v12 = vpack.c.bf16 %v4320_v24, %v4314_v39  ;;  %v13747_v50 = vld [vmem:[%s16978_s2 + $0x2bc] ss:$12 sps:$4 sm:$0xff]   ;;  %v13748_v39 = vld [vmem:[%s16978_s2 + $0x440] ss:$12 sps:$4 sm:$0xff]  }
 0xc84   : > { %5430 = vmatpush1.bf16.msra.mxu1 %v13715_v40  ;;  %12352 = vmatpush3.bf16.msra.mxu0 %v13719_v3  ;;  %v15648_v37 = vpack.c.bf16 %v4321_v53, %v4315_v2  ;;  %v13745_v40 = vld [vmem:[%s16978_s2 + $0x2b8] ss:$12 sps:$4 sm:$0xff]   ;;  %v13749_v3 = vld [vmem:[%s16978_s2 + $0x380] ss:$12 sps:$4 sm:$0xff]  }
 0xc85   : > { %5431 = vmatprep.subr.bf16.mxu1 %v13722_v4  ;;  %12377 = vmatprep.subr.bf16.mxu0 %v13723_v26  ;;  %v13753_v4 = vld [vmem:[%s16978_s2 + $0x458] ss:$12 sps:$4 sm:$0xff]  }
 0xc86   : > { %v4281_v28 = vpop.f32.mrb[128].mxu0  ;;  %v16980_v26 = vld [vmem:[#allocation31_spill] sm:$0xff] }
 0xc87   : > { %v4326_v49 = vmul.f32 %v4281_v28, %v15398_v54  ;;  %v4283_v6 = vpop.f32.mrb[129].mxu0  ;;  %5659 = vmatmul.mubr.bf16.vlgmr.msra.gmra.mrb[156].mxu0 %v15566_v30  ;;  %v13732_v54 = vld [vmem:[%s16978_s2 + $0x274] ss:$12 sps:$4 sm:$0xff]   ;;  %v13758_v28 = vld [vmem:[%s16978_s2 + $0x470] ss:$12 sps:$4 sm:$0xff]  }
 0xc88   : > { %v4327_v11 = vmul.f32 %v4283_v6, %v15400_v47  ;;  %5432 = vmatpush1.bf16.msra.mxu1 %v13720_v25  ;;  %12378 = vmatpush3.bf16.msra.mxu0 %v13724_v45  ;;  %v4285_v43 = vpop.f32.mrb[130].mxu0  ;;  %v13750_v25 = vld [vmem:[%s16978_s2 + $0x2d0] ss:$12 sps:$4 sm:$0xff]  }
 0xc89   : > { %v4332_v13 = vmul.f32 %v4285_v43, %v15402_v52  ;;  %5666 = vmatprep.mubr.bf16.mxu0 %v15588_v38  ;;  %v4287_v15 = vpop.f32.mrb[131].mxu0  ;;  %5433 = vmatprep.subr.bf16.mxu1 %v13727_v34  ;;  %v13757_v34 = vld [vmem:[%s16978_s2 + $0x2ec] ss:$12 sps:$4 sm:$0xff]   ;;  %v13762_v6 = vld [vmem:[%s16978_s2 + $0x304] ss:$12 sps:$4 sm:$0xff]  }
 0xc8a   : > { %v4333_v42 = vmul.f32 %v4287_v15, %v15404_v55  ;;  %12379 = vmatprep.subr.bf16.mxu0 %v13728_v22  ;;  %v13755_v22 = vld [vmem:[%s16978_s2 + $0x2e8] ss:$12 sps:$4 sm:$0xff]   ;;  %v13763_v15 = vld [vmem:[%s16978_s2 + $0x318] ss:$12 sps:$4 sm:$0xff]  }
 0xc8b   : > { %v15662_v47 = vpack.c.bf16 %v4332_v13, %v4326_v49  ;;  %v13759_v49 = vld [vmem:[%s16978_s2 + $0x3b0] ss:$12 sps:$4 sm:$0xff]  }
 0xc8c   : > { %5434 = vmatpush1.bf16.msra.mxu1 %v13725_v17  ;;  %12380 = vmatpush3.bf16.msra.mxu0 %v13729_v18  ;;  %v15666_v52 = vpack.c.bf16 %v4333_v42, %v4327_v11  ;;  %v16981_v11 = vld [vmem:[#allocation30_spill] sm:$0xff]  ;;  %v13760_v17 = vld [vmem:[%s16978_s2 + $0x300] ss:$12 sps:$4 sm:$0xff]   ;;  %v13765_v18 = vld [vmem:[%s16978_s2 + $0x31c] ss:$12 sps:$4 sm:$0xff]  }
 0xc8d   : > { %5435 = vmatprep.subr.bf16.mxu1 %v13732_v54  ;;  %12381 = vmatprep.subr.bf16.mxu0 %v13733_v29  ;;  %v3074_v43 = vpack.c.bf16 %v16981_v11, %v16981_v11  ;;  %v13768_v54 = vld [vmem:[%s16978_s2 + $0x334] ss:$12 sps:$4 sm:$0xff]   ;;  %v13766_v29 = vld [vmem:[%s16978_s2 + $0x330] ss:$12 sps:$4 sm:$0xff]  }
 0xc8e   : > { %v4291_v44 = vpop.f32.mrb[132].mxu0  ;;  %v13774_v42 = vld [vmem:[%s16978_s2 + $0x364] ss:$12 sps:$4 sm:$0xff]  }
 0xc8f   : > { %v4338_v55 = vmul.f32 %v4291_v44, %v15406_v56  ;;  %v4293_v14 = vpop.f32.mrb[133].mxu0  ;;  %5667 = vmatmul.mubr.bf16.gmra.mrb[160].mxu0 %v15586_v8  ;;  %v13742_v56 = vld [vmem:[%s16978_s2 + $0x2a4] ss:$12 sps:$4 sm:$0xff]   ;;  %v5757_v13 = vsel %vm1391_vm0, %v3074_v43, 0 }
 0xc90   : > { %v4339_v35 = vmul.f32 %v4293_v14, %v15408_v57  ;;  %5436 = vmatpush1.bf16.msra.mxu1 %v13730_v10  ;;  %12382 = vmatpush3.bf16.msra.mxu0 %v13734_v62  ;;  %v4295_v0 = vpop.f32.mrb[134].mxu0  ;;  %v13772_v10 = vld [vmem:[%s16978_s2 + $0x360] ss:$12 sps:$4 sm:$0xff]   ;;  %v13777_v62 = vld [vmem:[%s16978_s2 + $0x37c] ss:$12 sps:$4 sm:$0xff]  }
 0xc91   : > { %v4344_v19 = vmul.f32 %v4295_v0, %v15410_v58  ;;  %5674 = vmatprep.mubr.bf16.mxu0 %v15608_v41  ;;  %v4297_v21 = vpop.f32.mrb[135].mxu0  ;;  %5437 = vmatprep.subr.bf16.mxu1 %v13737_v5  ;;  %v13778_v5 = vld [vmem:[%s16978_s2 + $0x390] ss:$12 sps:$4 sm:$0xff]   ;;  %v14596_v14 = vld [vmem:[%s14739_s17 + $0x8] sm:$0xff]   ;;  %v13792_v0 = vld [vmem:[%s16978_s2 + $0x3f4] ss:$12 sps:$4 sm:$0xff]  }
 0xc92   : > { %v4345_v16 = vmul.f32 %v4297_v21, %v15412_v59  ;;  %12383 = vmatprep.subr.bf16.mxu0 %v13738_v31  ;;  %v13786_v44 = vld [vmem:[%s16978_s2 + $0x3c4] ss:$12 sps:$4 sm:$0xff]   ;;  %v13793_v21 = vld [vmem:[%s16978_s2 + $0x408] ss:$12 sps:$4 sm:$0xff]  }
 0xc93   : > { %v15680_v57 = vpack.c.bf16 %v4344_v19, %v4338_v55  ;;  %v14595_v31 = vld [vmem:[%s14739_s17] sm:$0xff]   ;;  %v14598_v19 = vld [vmem:[%s14739_s17 + $0x18] sm:$0xff]  }
 0xc94   : > { %5438 = vmatpush1.bf16.msra.mxu1 %v13735_v46  ;;  %12384 = vmatpush3.bf16.msra.mxu0 %v13739_v20  ;;  %v15684_v58 = vpack.c.bf16 %v4345_v16, %v4339_v35  ;;  %v13784_v55 = vld [vmem:[%s16978_s2 + $0x3c0] ss:$12 sps:$4 sm:$0xff]   ;;  %v14597_v35 = vld [vmem:[%s14739_s17 + $0x10] sm:$0xff]  }
 0xc95   : > { %5439 = vmatprep.subr.bf16.mxu1 %v13742_v56  ;;  %12385 = vmatprep.subr.bf16.mxu0 %v13743_v9  ;;  %v13790_v46 = vld [vmem:[%s16978_s2 + $0x3f0] ss:$12 sps:$4 sm:$0xff]   ;;  %v13795_v20 = vld [vmem:[%s16978_s2 + $0x40c] ss:$12 sps:$4 sm:$0xff]   ;;  %v16982_v56 = vmov 0  }
 0xc96   : > { %v4301_v36 = vpop.f32.mrb[136].mxu0  ;;  %v13798_v9 = vld [vmem:[%s16978_s2 + $0x424] ss:$12 sps:$4 sm:$0xff]   ;;  %v13796_v16 = vld [vmem:[%s16978_s2 + $0x420] ss:$12 sps:$4 sm:$0xff]  }
 0xc97   : > { %v4350_v59 = vmul.f32 %v4301_v36, %v15414_v60  ;;  %v4303_v32 = vpop.f32.mrb[137].mxu0  ;;  %5675 = vmatmul.mubr.bf16.gmra.mrb[164].mxu0 %v15606_v1  ;;  %v13752_v60 = vld [vmem:[%s16978_s2 + $0x2d4] ss:$12 sps:$4 sm:$0xff]   ;;  %v13802_v36 = vld [vmem:[%s16978_s2 + $0x450] ss:$12 sps:$4 sm:$0xff]  }
 0xc98   : > { %v4351_v2 = vmul.f32 %v4303_v32, %v15416_v61  ;;  %5440 = vmatpush1.bf16.msra.mxu1 %v13740_v33  ;;  %12386 = vmatpush3.bf16.msra.mxu0 %v13744_v7  ;;  %v4305_v23 = vpop.f32.mrb[138].mxu0  ;;  %v13801_v33 = vld [vmem:[%s16978_s2 + $0x43c] ss:$12 sps:$4 sm:$0xff]   ;;  %v13799_v7 = vld [vmem:[%s16978_s2 + $0x438] ss:$12 sps:$4 sm:$0xff]  }
 0xc99   : > { %v4356_v24 = vmul.f32 %v4305_v23, %v15418_v63  ;;  %5682 = vmatprep.mubr.bf16.mxu0 %v15628_v48  ;;  %v4307_v51 = vpop.f32.mrb[139].mxu0  ;;  %5441 = vmatprep.subr.bf16.mxu1 %v13747_v50  ;;  %v13754_v63 = vld [vmem:[%s16978_s2 + $0x398] ss:$12 sps:$4 sm:$0xff]   ;;  %v13804_v50 = vld [vmem:[%s16978_s2 + $0x454] ss:$12 sps:$4 sm:$0xff]  }
 0xc9a   : > { %v4357_v61 = vmul.f32 %v4307_v51, %v16980_v26  ;;  %12387 = vmatprep.subr.bf16.mxu0 %v13748_v39  ;;  %v13807_v39 = vld [vmem:[%s16978_s2 + $0x46c] ss:$12 sps:$4 sm:$0xff]  }
 0xc9b   : > { %v15698_v53 = vpack.c.bf16 %v4356_v24, %v4350_v59  ;;  %v13805_v59 = vld [vmem:[%s16978_s2 + $0x468] ss:$12 sps:$4 sm:$0xff]   ;;  %v13808_v32 = vld [vmem:[%s16983_s10] ss:$12 sps:$4 sm:$0xff]   ;;  %v5832_v23 = vld [vmem:[%s16983_s10 + $0x18] sm:$0x11] }
 0xc9c   : > { %5442 = vmatpush1.bf16.msra.mxu1 %v13745_v40  ;;  %12388 = vmatpush3.bf16.msra.mxu0 %v13749_v3  ;;  %v15702_v45 = vpack.c.bf16 %v4357_v61, %v4351_v2  ;;  %v13810_v2 = vld [vmem:[%s16983_s10 + $0x4] ss:$12 sps:$4 sm:$0xff]   ;;  %v11783_v40 = vcombine.high %v5832_v23, %v5832_v23 }
 0xc9d   : > { %5443 = vmatprep.subr.bf16.mxu1 %v13752_v60  ;;  %12389 = vmatprep.subr.bf16.mxu0 %v13753_v4 }
 0xc9f   : > { %5683 = vmatmul.mubr.bf16.gmra.mrb[168].mxu0 %v15626_v27 }
 0xca0   : > { %5444 = vmatpush1.bf16.msra.mxu1 %v13750_v25  ;;  %12390 = vmatpush3.bf16.msra.mxu0 %v13754_v63 }
 0xca1   : > { %5723 = vmatprep.mubr.bf16.mxu0 %v15648_v37  ;;  %5445 = vmatprep.subr.bf16.mxu1 %v13757_v34 }
 0xca2   : > { %12391 = vmatprep.subr.bf16.mxu0 %v13758_v28 }
 0xca4   : > { %5446 = vmatpush1.bf16.msra.mxu1 %v13755_v22  ;;  %12392 = vmatpush3.bf16.msra.mxu0 %v13759_v49 }
 0xca5   : > { %13399 = vmatprep.subr.msk.bf16.mxu0 %vm1391_vm0, %v3074_v43  ;;  %5488 = vmatprep.subr.bf16.mxu1 %v13762_v6 }
 0xca7   : > { %5448 = vmatmul.mubr.bf16.vlgmr.msra.gmra.mrb[104].mxu1 %v15566_v30  ;;  %5724 = vmatmul.mubr.bf16.vlgmr.msra.gmra.mrb[172].mxu0 %v15644_v12  ;;  %v13771_v30 = vld [vmem:[%s16978_s2 + $0x34c] ss:$12 sps:$4 sm:$0xff]  }
 0xca8   : > { %5457 = vmatprep.mubr.bf16.mxu1 %v15588_v38  ;;  %5489 = vmatpush1.bf16.msra.mxu1 %v13760_v17  ;;  %v13769_v38 = vld [vmem:[%s16978_s2 + $0x348] ss:$12 sps:$4 sm:$0xff]  }
 0xca9   : > { %13020 = vmatpush3.bf16.msra.mxu0 %v5757_v13  ;;  %5731 = vmatprep.mubr.bf16.mxu0 %v15666_v52 }
 0xcaa   : > { %5490 = vmatprep.subr.bf16.mxu1 %v13765_v18  ;;  %5879 = vmatprep.subr.bf16.mxu0 %v13810_v2 }
 0xcac   : > { %5491 = vmatpush1.bf16.msra.mxu1 %v13763_v15 }
 0xcad   : > { %5492 = vmatprep.subr.bf16.mxu1 %v13768_v54 }
 0xcaf   : > { %5458 = vmatmul.mubr.bf16.gmra.mrb[108].mxu1 %v15586_v8  ;;  %5732 = vmatmul.mubr.bf16.gmra.mrb[176].mxu0 %v15662_v47  ;;  %v13775_v8 = vld [vmem:[%s16978_s2 + $0x378] ss:$12 sps:$4 sm:$0xff]  }
 0xcb0   : > { %5467 = vmatprep.mubr.bf16.mxu1 %v15608_v41  ;;  %5493 = vmatpush1.bf16.msra.mxu1 %v13766_v29  ;;  %v13780_v41 = vld [vmem:[%s16978_s2 + $0x394] ss:$12 sps:$4 sm:$0xff]  }
 0xcb1   : > { %5739 = vmatprep.mubr.bf16.mxu0 %v15684_v58  ;;  %5494 = vmatprep.subr.bf16.mxu1 %v13771_v30 }
 0xcb4   : > { %5495 = vmatpush1.bf16.msra.mxu1 %v13769_v38 }
 0xcb5   : > { %5496 = vmatprep.subr.bf16.mxu1 %v13774_v42 }
 0xcb7   : > { %5468 = vmatmul.mubr.bf16.gmra.mrb[112].mxu1 %v15606_v1  ;;  %5740 = vmatmul.mubr.bf16.gmra.mrb[180].mxu0 %v15680_v57  ;;  %v13783_v1 = vld [vmem:[%s16978_s2 + $0x3ac] ss:$12 sps:$4 sm:$0xff]  }
 0xcb8   : > { %5477 = vmatprep.mubr.bf16.mxu1 %v15628_v48  ;;  %5497 = vmatpush1.bf16.msra.mxu1 %v13772_v10  ;;  %v13781_v48 = vld [vmem:[%s16978_s2 + $0x3a8] ss:$12 sps:$4 sm:$0xff]  }
 0xcb9   : > { %5747 = vmatprep.mubr.bf16.mxu0 %v15702_v45  ;;  %5498 = vmatprep.subr.bf16.mxu1 %v13777_v62 }
 0xcbc   : > { %5499 = vmatpush1.bf16.msra.mxu1 %v13775_v8 }
 0xcbd   : > { %5500 = vmatprep.subr.bf16.mxu1 %v13780_v41 }
 0xcbf   : > { %5478 = vmatmul.mubr.bf16.gmra.mrb[116].mxu1 %v15626_v27  ;;  %5748 = vmatmul.mubr.bf16.gmra.mrb[184].mxu0 %v15698_v53  ;;  %v13789_v27 = vld [vmem:[%s16978_s2 + $0x3dc] ss:$12 sps:$4 sm:$0xff]  }
 0xcc0   : > { %5501 = vmatpush1.bf16.msra.mxu1 %v13778_v5  ;;  %5520 = vmatprep.mubr.bf16.mxu1 %v15648_v37  ;;  %v13787_v37 = vld [vmem:[%s16978_s2 + $0x3d8] ss:$12 sps:$4 sm:$0xff]   ;;  %s16994_s2 = sld [smem:[#allocation18_spill]] }
 0xcc1   : > { %5502 = vmatprep.subr.bf16.mxu1 %v13783_v1  ;;  %13021 = vmatprep.mubr.msk.bf16.mxu0 %vm1378_vm1, %v14595_v31 }
 0xcc4   : > { %5503 = vmatpush1.bf16.msra.mxu1 %v13781_v48 }
 0xcc5   : > { %5504 = vmatprep.subr.bf16.mxu1 %v13786_v44 }
 0xcc7   : > { %13022 = vmatmul.mubr.msk.bf16.vlgmr.msra.gmra.mrb[188].mxu0 %vm1378_vm1, %v14596_v14 }
 0xcc8   : > { %5505 = vmatpush1.bf16.msra.mxu1 %v13784_v55  ;;  %13025 = vmatprep.mubr.msk.bf16.mxu0 %vm1378_vm1, %v14597_v35 }
 0xcc9   : > { %5506 = vmatprep.subr.bf16.mxu1 %v13789_v27  ;;  %5880 = vmatpush1.bf16.msra.mxu0 %v13808_v32 }
 0xcca   : > { %11785 = vmatprep.subr.msk.bf16.mxu0 %vm2844_vm5, %v11783_v40 }
 0xccc   : > { %5507 = vmatpush1.bf16.msra.mxu1 %v13787_v37 }
 0xccd   : > { %5508 = vmatprep.subr.bf16.mxu1 %v13792_v0 }
 0xccf   : > { %13026 = vmatmul.mubr.msk.bf16.gmra.mrb[192].mxu0 %vm1378_vm1, %v14598_v19 }
 0xcd0   : > { %5509 = vmatpush1.bf16.msra.mxu1 %v13790_v46  ;;  %5911 = vmatprep.mubr.bf16.mxu0 %v16982_v56 }
 0xcd1   : > { %5510 = vmatprep.subr.bf16.mxu1 %v13795_v20 }
 0xcd4   : > { %5511 = vmatpush1.bf16.msra.mxu1 %v13793_v21 }
 0xcd5   : > { %5512 = vmatprep.subr.bf16.mxu1 %v13798_v9 }
 0xcd8   : > { %5513 = vmatpush1.bf16.msra.mxu1 %v13796_v16 }
 0xcd9   : > { %5514 = vmatprep.subr.bf16.mxu1 %v13801_v33 }
 0xcdc   : > { %5515 = vmatpush1.bf16.msra.mxu1 %v13799_v7 }
 0xcdd   : > { %5516 = vmatprep.subr.bf16.mxu1 %v13804_v50 }
 0xce0   : > { %5517 = vmatpush1.bf16.msra.mxu1 %v13802_v36 }
 0xce1   : > { %5518 = vmatprep.subr.bf16.mxu1 %v13807_v39 }
 0xce4   : > { %5519 = vmatpush1.bf16.msra.mxu1 %v13805_v59 }
 0xce7   : > { %5521 = vmatmul.mubr.bf16.vlgmr.msra.gmra.mrb[104].mxu1 %v15644_v12  ;;  %v11782_v12 = vcombine.low %v5832_v23, %v5832_v23 }
 0xce8   : > { %5530 = vmatprep.mubr.bf16.mxu1 %v15666_v52 }
 0xce9   : > { %v5871_v52 = vsel %vm2844_vm5, %v11782_v12, 0 }
 0xcea   : > { %5882 = vmatpush1.bf16.msra.mxu0 %v5871_v52 }
 0xcef   : > { %5531 = vmatmul.mubr.bf16.gmra.mrb[108].mxu1 %v15662_v47  ;;  %v15783_v47 = vld [vmem:[%s16983_s10 + $0x8] ss:$12 sps:$4 sm:$0xff]  }
 0xcf0   : > { %5540 = vmatprep.mubr.bf16.mxu1 %v15684_v58  ;;  %13029 = vmatprep.subr.bf16.mxu0 %v15783_v47 }
 0xcf7   : > { %5541 = vmatmul.mubr.bf16.gmra.mrb[112].mxu1 %v15680_v57 }
 0xcf8   : > { %5550 = vmatprep.mubr.bf16.mxu1 %v15702_v45 }
 0xcff   : > { %5551 = vmatmul.mubr.bf16.gmra.mrb[116].mxu1 %v15698_v53 }
 0xd3a   : > { %v12313_v57 = vpop.f32.mrb[140].mxu0 }
 0xd3b   : > { %v12314_v58 = vpop.f32.mrb[141].mxu0 }
 0xd3c   : > { %v12315_v3 = vadd.f32 %v12314_v58, %v12313_v57  ;;  %v12316_v24 = vpop.f32.mrb[142].mxu0 }
 0xd3d   : > { %v12317_v51 = vpop.f32.mrb[143].mxu0 }
 0xd3e   : > { %v12318_v60 = vadd.f32 %v12317_v51, %v12316_v24 }
 0xd42   : > { %v12319_v4 = vpop.f32.mrb[144].mxu0 }
 0xd43   : > { %v12320_v26 = vpop.f32.mrb[145].mxu0 }
 0xd44   : > { %v12321_v61 = vadd.f32 %v12320_v26, %v12319_v4  ;;  %v12322_v53 = vpop.f32.mrb[146].mxu0 }
 0xd45   : > { %v12323_v25 = vpop.f32.mrb[147].mxu0 }
 0xd46   : > { %v12324_v63 = vadd.f32 %v12323_v25, %v12322_v53 }
 0xd4a   : > { %v12325_v45 = vpop.f32.mrb[148].mxu0 }
 0xd4b   : > { %v12326_v34 = vpop.f32.mrb[149].mxu0 }
 0xd4c   : > { %v12327_v28 = vadd.f32 %v12326_v34, %v12325_v45  ;;  %v12328_v22 = vpop.f32.mrb[150].mxu0 }
 0xd4d   : > { %v12329_v49 = vpop.f32.mrb[151].mxu0 }
 0xd4e   : > { %v12330_v6 = vadd.f32 %v12329_v49, %v12328_v22 }
 0xd52   : > { %v12331_v11 = vpop.f32.mrb[152].mxu0 }
 0xd53   : > { %v12332_v43 = vpop.f32.mrb[153].mxu0 }
 0xd54   : > { %v12333_v17 = vadd.f32 %v12332_v43, %v12331_v11  ;;  %v12334_v18 = vpop.f32.mrb[154].mxu0 }
 0xd55   : > { %v12335_v13 = vpop.f32.mrb[155].mxu0 }
 0xd56   : > { %v12336_v15 = vadd.f32 %v12335_v13, %v12334_v18 }
 0xd5a   : > { %v12353_v54 = vpop.f32.mrb[156].mxu0 }
 0xd5b   : > { %v12354_v29 = vpop.f32.mrb[157].mxu0 }
 0xd5c   : > { %v12355_v30 = vadd.f32 %v12354_v29, %v12353_v54  ;;  %v12356_v38 = vpop.f32.mrb[158].mxu0 }
 0xd5d   : > { %v12357_v42 = vpop.f32.mrb[159].mxu0 }
 0xd5e   : > { %v12358_v10 = vadd.f32 %v12357_v42, %v12356_v38  ;;  %v5661_v62 = vadd.f32 %v12355_v30, %v12315_v3 }
 0xd60   : > { %v5664_v8 = vadd.f32 %v12358_v10, %v12318_v60 }
 0xd62   : > { %v12359_v41 = vpop.f32.mrb[160].mxu0 }
 0xd63   : > { %v12360_v5 = vpop.f32.mrb[161].mxu0 }
 0xd64   : > { %v12361_v1 = vadd.f32 %v12360_v5, %v12359_v41  ;;  %v12362_v48 = vpop.f32.mrb[162].mxu0  ;;  %v13814_v41 = vld [vmem:[%s16983_s10 + $0x20] ss:$0 sps:$4 sm:$0x11]  }
 0xd65   : > { %v12363_v44 = vpop.f32.mrb[163].mxu0 }
 0xd66   : > { %v12364_v31 = vadd.f32 %v12363_v44, %v12362_v48  ;;  %v5669_v55 = vadd.f32 %v12361_v1, %v12321_v61  ;;  %v5877_v1 = vsel %vm2844_vm5, %v13814_v41, 0  ;;  %v13815_v48 = vld [vmem:[%s16984_s0 + $0x40] sm:$0xff]  }
 0xd68   : > { %v5672_v27 = vadd.f32 %v12364_v31, %v12324_v63 }
 0xd6a   : > { %v12365_v14 = vpop.f32.mrb[164].mxu0 }
 0xd6b   : > { %v12366_v37 = vpop.f32.mrb[165].mxu0 }
 0xd6c   : > { %v12367_v35 = vadd.f32 %v12366_v37, %v12365_v14  ;;  %v12368_v0 = vpop.f32.mrb[166].mxu0 }
 0xd6d   : > { %v12369_v46 = vpop.f32.mrb[167].mxu0 }
 0xd6e   : > { %v12370_v20 = vadd.f32 %v12369_v46, %v12368_v0  ;;  %v5677_v19 = vadd.f32 %v12367_v35, %v12327_v28  ;;  %v13816_v46 = vld [vmem:[%s16984_s0] sm:$0xff]  }
 0xd70   : > { %v5680_v21 = vadd.f32 %v12370_v20, %v12330_v6  ;;  %v13817_v20 = vld [vmem:[%s16984_s0 + $0x48] sm:$0xff]  }
 0xd72   : > { %v12371_v9 = vpop.f32.mrb[168].mxu0 }
 0xd73   : > { %v12372_v16 = vpop.f32.mrb[169].mxu0 }
 0xd74   : > { %v12373_v33 = vadd.f32 %v12372_v16, %v12371_v9  ;;  %v12374_v7 = vpop.f32.mrb[170].mxu0  ;;  %v13819_v9 = vld [vmem:[%s16984_s0 + $0x50] sm:$0xff]  }
 0xd75   : > { %v12375_v50 = vpop.f32.mrb[171].mxu0 }
 0xd76   : > { %v12376_v36 = vadd.f32 %v12375_v50, %v12374_v7  ;;  %v5685_v39 = vadd.f32 %v12373_v33, %v12333_v17  ;;  %v13820_v50 = vld [vmem:[%s16984_s0 + $0x10] sm:$0xff]  }
 0xd78   : > { %v5688_v59 = vadd.f32 %v12376_v36, %v12336_v15  ;;  %v13821_v36 = vld [vmem:[%s16984_s0 + $0x58] sm:$0xff]  }
 0xd7a   : > { %v12393_v32 = vpop.f32.mrb[172].mxu0 }
 0xd7b   : > { %v12394_v2 = vpop.f32.mrb[173].mxu0 }
 0xd7c   : > { %v12395_v23 = vadd.f32 %v12394_v2, %v12393_v32  ;;  %v12396_v40 = vpop.f32.mrb[174].mxu0  ;;  %v13823_v32 = vld [vmem:[%s16984_s0 + $0x60] sm:$0xff]  }
 0xd7d   : > { %v12397_v12 = vpop.f32.mrb[175].mxu0 }
 0xd7e   : > { %v12398_v52 = vadd.f32 %v12397_v12, %v12396_v40  ;;  %v15786_v57 = vadd.f32 %v12395_v23, %v5661_v62  ;;  %v13824_v12 = vld [vmem:[%s16984_s0 + $0x20] sm:$0xff]  }
 0xd80   : > { %v15788_v58 = vadd.f32 %v12398_v52, %v5664_v8  ;;  %v13825_v52 = vld [vmem:[%s16984_s0 + $0x68] sm:$0xff]  }
 0xd82   : > { %v12399_v3 = vpop.f32.mrb[176].mxu0 }
 0xd83   : > { %v12400_v24 = vpop.f32.mrb[177].mxu0 }
 0xd84   : > { %v12401_v51 = vadd.f32 %v12400_v24, %v12399_v3  ;;  %v12402_v60 = vpop.f32.mrb[178].mxu0  ;;  %v13826_v3 = vld [vmem:[%s16984_s0 + $0x28] sm:$0xff]  }
 0xd85   : > { %v12403_v4 = vpop.f32.mrb[179].mxu0 }
 0xd86   : > { %v12404_v26 = vadd.f32 %v12403_v4, %v12402_v60  ;;  %v15790_v61 = vadd.f32 %v12401_v51, %v5669_v55 }
 0xd88   : > { %v15792_v53 = vadd.f32 %v12404_v26, %v5672_v27  ;;  %v13827_v26 = vld [vmem:[%s16984_s0 + $0x70] sm:$0xff]  }
 0xd8a   : > { %v12405_v25 = vpop.f32.mrb[180].mxu0 }
 0xd8b   : > { %v12406_v63 = vpop.f32.mrb[181].mxu0 }
 0xd8c   : > { %v12407_v45 = vadd.f32 %v12406_v63, %v12405_v25  ;;  %v12408_v34 = vpop.f32.mrb[182].mxu0  ;;  %v13828_v25 = vld [vmem:[%s16984_s0 + $0x30] sm:$0xff]   ;;  %v13829_v63 = vld [vmem:[%s16984_s0 + $0x78] sm:$0xff]  }
 0xd8d   : > { %v12409_v28 = vpop.f32.mrb[183].mxu0 }
 0xd8e   : > { %v12410_v22 = vadd.f32 %v12409_v28, %v12408_v34  ;;  %v15794_v49 = vadd.f32 %v12407_v45, %v5677_v19  ;;  %v13818_v19 = vld [vmem:[%s16984_s0 + $0x8] sm:$0xff]   ;;  %v13830_v45 = vld [vmem:[%s16984_s0 + $0x38] sm:$0xff]   ;;  %v14599_v34 = vld [vmem:[%s16971_s11 + $0x40] sm:$0xff]  }
 0xd8f   : > { %v13831_v28 = vld [vmem:[%s16984_s0 + $0x80] sm:$0xff]  }
 0xd90   : > { %v15796_v6 = vadd.f32 %v12410_v22, %v5680_v21  ;;  %13041 = vmatprep.subr.bf16.mxu1 %v13831_v28  ;;  %v13832_v22 = vld [vmem:[%s16984_s0 + $0x88] sm:$0xff]  }
 0xd91   : > { %13042 = vmatpush3.bf16.msra.mxu1 %v13831_v28  ;;  %v14608_v28 = vld [vmem:[%s16971_s11 + $0x20] sm:$0xff]  }
 0xd92   : > { %v12411_v11 = vpop.f32.mrb[184].mxu0  ;;  %13043 = vmatprep.subr.bf16.mxu1 %v13832_v22 }
 0xd93   : > { %v12412_v43 = vpop.f32.mrb[185].mxu0 }
 0xd94   : > { %v12413_v17 = vadd.f32 %v12412_v43, %v12411_v11  ;;  %v12414_v18 = vpop.f32.mrb[186].mxu0  ;;  %v13833_v11 = vld [vmem:[%s16984_s0 + $0x90] sm:$0xff]   ;;  %v13834_v43 = vld [vmem:[%s16984_s0 + $0x98] sm:$0xff]  }
 0xd95   : > { %v12415_v13 = vpop.f32.mrb[187].mxu0  ;;  %13044 = vmatpush3.bf16.msra.mxu1 %v13832_v22 }
 0xd96   : > { %v12416_v15 = vadd.f32 %v12415_v13, %v12414_v18  ;;  %v15798_v54 = vadd.f32 %v12413_v17, %v5685_v39  ;;  %v13822_v39 = vld [vmem:[%s16984_s0 + $0x18] sm:$0xff]   ;;  %13045 = vmatprep.subr.bf16.mxu1 %v13833_v11  ;;  %v13835_v17 = vld [vmem:[%s16984_s0 + $0xa0] ss:$0 sps:$4 sm:$0x33]   ;;  %v16985_v13 = vmov 0.0   ;;  %s16986_s0 = sld [smem:[#allocation13_spill]] }
 0xd97   : > { %v6232_v18 = vsel %vm6230_vm8, %v13835_v17, 0 }
 0xd98   : > { %v15800_v29 = vadd.f32 %v12416_v15, %v5688_v59 }
 0xd99   : > { %13046 = vmatpush3.bf16.msra.mxu1 %v13833_v11  ;;  %v14609_v11 = vld [vmem:[%s16971_s11 + $0x68] sm:$0xff]  }
 0xd9a   : > { %v13023_v30 = vpop.f32.mrb[188].mxu0  ;;  %13047 = vmatprep.subr.bf16.mxu1 %v13834_v43 }
 0xd9b   : > { %v5793_v38 = vpop.f32.mrb[189].mxu0 }
 0xd9c   : > { %v13024_v42 = vpop.f32.mrb[190].mxu0 }
 0xd9d   : > { %v5825_v10 = vpack.c.bf16 %v13024_v42, %v13023_v30  ;;  %v5796_v62 = vpop.f32.mrb[191].mxu0  ;;  %13048 = vmatpush3.bf16.msra.mxu1 %v13834_v43 }
 0xd9e   : > { %v5824_v8 = vpack.c.bf16 %v5796_v62, %v5793_v38  ;;  %13401 = vmatprep.subr.msk.bf16.mxu1 %vm6230_vm8, %v13835_v17 }
 0xda0   : > { %11786 = vmatmul.mubr.msk.bf16.vlgmr.msra.gmra.mrb[196].mxu0 %vm2840_vm6, %v5824_v8 }
 0xda1   : > { %13030 = vmatpush3.bf16.msra.mxu0 %v15783_v47  ;;  %5921 = vmatprep.mubr.bf16.mxu0 %v16982_v56 }
 0xda2   : > { %v13027_v5 = vpop.f32.mrb[192].mxu0  ;;  %13400 = vmatprep.subr.msk.bf16.mxu0 %vm2844_vm5, %v13814_v41  ;;  %13050 = vmatpush3.bf16.msra.mxu1 %v6232_v18 }
 0xda3   : > { %v5809_v44 = vpop.f32.mrb[193].mxu0  ;;  %13059 = vmatprep.subr.bf16.mxu1 %v16985_v13 }
 0xda4   : > { %v13028_v31 = vpop.f32.mrb[194].mxu0 }
 0xda5   : > { %v5827_v55 = vpack.c.bf16 %v13028_v31, %v13027_v5  ;;  %v5812_v27 = vpop.f32.mrb[195].mxu0  ;;  %13032 = vmatpush3.bf16.msra.mxu0 %v5877_v1 }
 0xda6   : > { %v5826_v14 = vpack.c.bf16 %v5812_v27, %v5809_v44  ;;  %12428 = vmatprep.subr.bf16.mxu0 %v13815_v48 }
 0xda8   : > { %11787 = vmatmul.mubr.msk.bf16.gmra.mrb[200].mxu0 %vm2840_vm6, %v5825_v10 }
 0xda9   : > { %5931 = vmatprep.mubr.bf16.mxu0 %v16982_v56 }
 0xdb0   : > { %11788 = vmatmul.mubr.msk.bf16.gmra.mrb[204].mxu0 %vm2840_vm6, %v5826_v14 }
 0xdb1   : > { %5941 = vmatprep.mubr.bf16.mxu0 %v16982_v56 }
 0xdb8   : > { %11789 = vmatmul.mubr.msk.bf16.gmra.mrb[208].mxu0 %vm2840_vm6, %v5827_v55 }
 0xdb9   : > { %13033 = vmatprep.mubr.msk.bf16.mxu0 %vm2840_vm6, %v5824_v8 }
 0xdba   : > { %v15815_v47 = vpop.f32.mrb[104].mxu1 }
 0xdbb   : > { %v15817_v37 = vpop.f32.mrb[105].mxu1 }
 0xdbc   : > { %v15819_v35 = vpop.f32.mrb[106].mxu1 }
 0xdbd   : > { %v15821_v0 = vpop.f32.mrb[107].mxu1 }
 0xdc0   : > { %13034 = vmatmul.mubr.msk.bf16.vlgmr.msra.gmra.mrb[212].mxu0 %vm2840_vm6, %v5825_v10 }
 0xdc1   : > { %13037 = vmatprep.mubr.msk.bf16.mxu0 %vm2840_vm6, %v5826_v14  ;;  %12429 = vmatpush3.bf16.msra.mxu0 %v13816_v46  ;;  %v14600_v14 = vld [vmem:[%s16971_s11] sm:$0xff]  }
 0xdc2   : > { %v15828_v21 = vpop.f32.mrb[108].mxu1  ;;  %12430 = vmatprep.subr.bf16.mxu0 %v13817_v20 }
 0xdc3   : > { %v15831_v16 = vpop.f32.mrb[109].mxu1 }
 0xdc4   : > { %v15833_v33 = vpop.f32.mrb[110].mxu1 }
 0xdc5   : > { %v15835_v7 = vpop.f32.mrb[111].mxu1  ;;  %12431 = vmatpush3.bf16.msra.mxu0 %v13818_v19  ;;  %v14602_v19 = vld [vmem:[%s16971_s11 + $0x8] sm:$0xff]  }
 0xdc6   : > { %12432 = vmatprep.subr.bf16.mxu0 %v13819_v9 }
 0xdc8   : > { %13038 = vmatmul.mubr.msk.bf16.gmra.mrb[216].mxu0 %vm2840_vm6, %v5827_v55 }
 0xdc9   : > { %12433 = vmatpush3.bf16.msra.mxu0 %v13820_v50 }
 0xdca   : > { %v15841_v59 = vpop.f32.mrb[112].mxu1  ;;  %12434 = vmatprep.subr.bf16.mxu0 %v13821_v36 }
 0xdcb   : > { %v15844_v2 = vpop.f32.mrb[113].mxu1 }
 0xdcc   : > { %v15846_v23 = vpop.f32.mrb[114].mxu1 }
 0xdcd   : > { %v15848_v40 = vpop.f32.mrb[115].mxu1  ;;  %12435 = vmatpush3.bf16.msra.mxu0 %v13822_v39  ;;  %v14604_v39 = vld [vmem:[%s16971_s11 + $0x10] sm:$0xff]  }
 0xdce   : > { %12436 = vmatprep.subr.bf16.mxu0 %v13823_v32 }
 0xdd1   : > { %12437 = vmatpush3.bf16.msra.mxu0 %v13824_v12  ;;  %v14605_v12 = vld [vmem:[%s16971_s11 + $0x58] sm:$0xff]  }
 0xdd2   : > { %v15853_v24 = vpop.f32.mrb[116].mxu1  ;;  %12438 = vmatprep.subr.bf16.mxu0 %v13825_v52 }
 0xdd3   : > { %v15855_v51 = vpop.f32.mrb[117].mxu1 }
 0xdd4   : > { %v15857_v60 = vpop.f32.mrb[118].mxu1 }
 0xdd5   : > { %v15859_v4 = vpop.f32.mrb[119].mxu1  ;;  %12439 = vmatpush3.bf16.msra.mxu0 %v13826_v3 }
 0xdd6   : > { %12440 = vmatprep.subr.bf16.mxu0 %v13827_v26 }
 0xdd9   : > { %12441 = vmatpush3.bf16.msra.mxu0 %v13828_v25  ;;  %v14607_v25 = vld [vmem:[%s16971_s11 + $0x60] sm:$0xff]  }
 0xdda   : > { %12442 = vmatprep.subr.bf16.mxu0 %v13829_v63 }
 0xddd   : > { %12443 = vmatpush3.bf16.msra.mxu0 %v13830_v45 }
 0xdde   : > { %12482 = vmatprep.subr.bf16.mxu0 %v14599_v34 }
 0xe73   : > { %v5913_v15 = vpop.f32.mrb[196].mxu0 }
 0xe74   : > { %v6017_v30 = vmul.f32 %v5913_v15, %v15815_v47  ;;  %v5915_v38 = vpop.f32.mrb[197].mxu0  ;;  %v14611_v15 = vld [vmem:[%s16971_s11 + $0x70] sm:$0xff]  }
 0xe75   : > { %v6018_v42 = vmul.f32 %v5915_v38, %v15817_v37  ;;  %v5917_v10 = vpop.f32.mrb[198].mxu0 }
 0xe76   : > { %v6020_v62 = vmul.f32 %v5917_v10, %v15819_v35  ;;  %v5919_v8 = vpop.f32.mrb[199].mxu0  ;;  %v14601_v35 = vld [vmem:[%s16971_s11 + $0x48] sm:$0xff]   ;;  %v14612_v10 = vld [vmem:[%s16971_s11 + $0x30] sm:$0xff]  }
 0xe77   : > { %v6021_v41 = vmul.f32 %v5919_v8, %v15821_v0  ;;  %v14613_v8 = vld [vmem:[%s16971_s11 + $0x78] sm:$0xff]  }
 0xe78   : > { %v6041_v5 = vpack.c.bf16 %v6020_v62, %v6017_v30 }
 0xe79   : > { %v6042_v1 = vpack.c.bf16 %v6021_v41, %v6018_v42 }
 0xe7b   : > { %v5923_v48 = vpop.f32.mrb[200].mxu0  ;;  %6266 = vmatprep.mubr.bf16.mxu0 %v6042_v1 }
 0xe7c   : > { %v6023_v44 = vmul.f32 %v5923_v48, %v15828_v21  ;;  %v5925_v31 = vpop.f32.mrb[201].mxu0  ;;  %6267 = vmatmul.mubr.bf16.vlgmr.msra.gmra.mrb[220].mxu0 %v6041_v5  ;;  %v14603_v21 = vld [vmem:[%s16971_s11 + $0x50] sm:$0xff]   ;;  %v14614_v48 = vld [vmem:[%s16971_s11 + $0x38] sm:$0xff]  }
 0xe7d   : > { %v6024_v55 = vmul.f32 %v5925_v31, %v15831_v16  ;;  %v5927_v27 = vpop.f32.mrb[202].mxu0  ;;  %12483 = vmatpush3.bf16.msra.mxu0 %v14600_v14 }
 0xe7e   : > { %v6026_v47 = vmul.f32 %v5927_v27, %v15833_v33  ;;  %v5929_v37 = vpop.f32.mrb[203].mxu0  ;;  %12484 = vmatprep.subr.bf16.mxu0 %v14601_v35 }
 0xe7f   : > { %v6027_v0 = vmul.f32 %v5929_v37, %v15835_v7 }
 0xe80   : > { %v6044_v46 = vpack.c.bf16 %v6026_v47, %v6023_v44 }
 0xe81   : > { %v6045_v20 = vpack.c.bf16 %v6027_v0, %v6024_v55  ;;  %12485 = vmatpush3.bf16.msra.mxu0 %v14602_v19 }
 0xe82   : > { %12486 = vmatprep.subr.bf16.mxu0 %v14603_v21 }
 0xe83   : > { %v5933_v9 = vpop.f32.mrb[204].mxu0  ;;  %6274 = vmatprep.mubr.bf16.mxu0 %v6045_v20 }
 0xe84   : > { %v6029_v16 = vmul.f32 %v5933_v9, %v15841_v59  ;;  %v5935_v33 = vpop.f32.mrb[205].mxu0  ;;  %6275 = vmatmul.mubr.bf16.gmra.mrb[224].mxu0 %v6044_v46  ;;  %v14606_v59 = vld [vmem:[%s16971_s11 + $0x18] sm:$0xff]  }
 0xe85   : > { %v6030_v50 = vmul.f32 %v5935_v33, %v15844_v2  ;;  %v5937_v36 = vpop.f32.mrb[206].mxu0  ;;  %12487 = vmatpush3.bf16.msra.mxu0 %v14604_v39 }
 0xe86   : > { %v6032_v7 = vmul.f32 %v5937_v36, %v15846_v23  ;;  %v5939_v32 = vpop.f32.mrb[207].mxu0  ;;  %12488 = vmatprep.subr.bf16.mxu0 %v14605_v12 }
 0xe87   : > { %v6033_v52 = vmul.f32 %v5939_v32, %v15848_v40 }
 0xe88   : > { %v6047_v3 = vpack.c.bf16 %v6032_v7, %v6029_v16 }
 0xe89   : > { %v6048_v26 = vpack.c.bf16 %v6033_v52, %v6030_v50  ;;  %12489 = vmatpush3.bf16.msra.mxu0 %v14606_v59 }
 0xe8a   : > { %12490 = vmatprep.subr.bf16.mxu0 %v14607_v25 }
 0xe8b   : > { %v5943_v63 = vpop.f32.mrb[208].mxu0  ;;  %6282 = vmatprep.mubr.bf16.mxu0 %v6048_v26 }
 0xe8c   : > { %v6035_v2 = vmul.f32 %v5943_v63, %v15853_v24  ;;  %v5945_v23 = vpop.f32.mrb[209].mxu0  ;;  %6283 = vmatmul.mubr.bf16.gmra.mrb[228].mxu0 %v6047_v3  ;;  %v14610_v24 = vld [vmem:[%s16971_s11 + $0x28] sm:$0xff]  }
 0xe8d   : > { %v6036_v45 = vmul.f32 %v5945_v23, %v15855_v51  ;;  %v5947_v34 = vpop.f32.mrb[210].mxu0  ;;  %12491 = vmatpush3.bf16.msra.mxu0 %v14608_v28 }
 0xe8e   : > { %v6038_v40 = vmul.f32 %v5947_v34, %v15857_v60  ;;  %v5949_v22 = vpop.f32.mrb[211].mxu0  ;;  %12492 = vmatprep.subr.bf16.mxu0 %v14609_v11 }
 0xe8f   : > { %v6039_v43 = vmul.f32 %v5949_v22, %v15859_v4 }
 0xe90   : > { %v6050_v17 = vpack.c.bf16 %v6038_v40, %v6035_v2 }
 0xe91   : > { %v6051_v18 = vpack.c.bf16 %v6039_v43, %v6036_v45  ;;  %12493 = vmatpush3.bf16.msra.mxu0 %v14610_v24 }
 0xe92   : > { %12494 = vmatprep.subr.bf16.mxu0 %v14611_v15 }
 0xe93   : > { %v13035_v30 = vpop.f32.mrb[212].mxu0  ;;  %6290 = vmatprep.mubr.bf16.mxu0 %v6051_v18 }
 0xe94   : > { %v6025_v51 = vmul.f32 %v13035_v30, %v15790_v61  ;;  %v5986_v38 = vpop.f32.mrb[213].mxu0  ;;  %6291 = vmatmul.mubr.bf16.gmra.mrb[232].mxu0 %v6050_v17 }
 0xe95   : > { %v6019_v60 = vmul.f32 %v5986_v38, %v15786_v57  ;;  %v13036_v42 = vpop.f32.mrb[214].mxu0  ;;  %12495 = vmatpush3.bf16.msra.mxu0 %v14612_v10  ;;  %v14615_v10 = vld [vmem:[%s14749_s25 + $0x4] ss:$8 sps:$4 sm:$0xff]  }
 0xe96   : > { %v6028_v4 = vmul.f32 %v13036_v42, %v15792_v53  ;;  %v5989_v62 = vpop.f32.mrb[215].mxu0  ;;  %12496 = vmatprep.subr.bf16.mxu0 %v14613_v8  ;;  %v16987_v8 = vld [vmem:[#allocation28_spill] sm:$0xff] }
 0xe97   : > { %v6022_v41 = vmul.f32 %v5989_v62, %v15788_v58  ;;  %v14617_v62 = vld [vmem:[%s14749_s25] ss:$8 sps:$4 sm:$0xff]  }
 0xe98   : > { %v6046_v5 = vpack.c.bf16 %v6028_v4, %v6025_v51  ;;  %v14616_v4 = vld [vmem:[%s16967_s7] sm:$0xf] }
 0xe99   : > { %v6043_v1 = vpack.c.bf16 %v6022_v41, %v6019_v60  ;;  %12497 = vmatpush3.bf16.msra.mxu0 %v14614_v48  ;;  %v16988_v41 = vld [vmem:[#allocation29_spill] sm:$0xff] }
 0xe9b   : > { %v13039_v61 = vpop.f32.mrb[216].mxu0  ;;  %13051 = vmatprep.mubr.msk.bf16.mxu1 %vm6217_vm9, %v6043_v1 }
 0xe9c   : > { %v6037_v57 = vmul.f32 %v13039_v61, %v15798_v54  ;;  %v6002_v44 = vpop.f32.mrb[217].mxu0  ;;  %13052 = vmatmul.mubr.msk.bf16.vlgmr.msra.gmra.mrb[120].mxu1 %vm6217_vm9, %v6046_v5  ;;  %v6508_v5 = vld [vmem:[%s16986_s0] sm:$0xf]  ;;  %s16990_s0 = sld [smem:[#allocation15_spill]] }
 0xe9d   : > { %v6031_v53 = vmul.f32 %v6002_v44, %v15794_v49  ;;  %v13040_v31 = vpop.f32.mrb[218].mxu0 }
 0xe9e   : > { %v6040_v55 = vmul.f32 %v13040_v31, %v15800_v29  ;;  %v6005_v27 = vpop.f32.mrb[219].mxu0  ;;  %v14618_v31 = vld [vmem:[%s14956_s26] sm:$0xff]  }
 0xe9f   : > { %v6034_v58 = vmul.f32 %v6005_v27, %v15796_v6  ;;  %v14620_v27 = vld [vmem:[%s14956_s26 + $0x10] sm:$0xff]  }
 0xea0   : > { %v6052_v14 = vpack.c.bf16 %v6040_v55, %v6037_v57  ;;  %v6510_v57 = vsel %vm1391_vm0, %v6508_v5, 0  ;;  %v14619_v55 = vld [vmem:[%s14956_s26 + $0x8] sm:$0xff]  }
 0xea1   : > { %v6049_v47 = vpack.c.bf16 %v6034_v58, %v6031_v53  ;;  %v14621_v58 = vld [vmem:[%s14956_s26 + $0x18] sm:$0xff]  }
 0xea3   : > { %13055 = vmatprep.mubr.msk.bf16.mxu1 %vm6217_vm9, %v6049_v47 }
 0xea4   : > { %13056 = vmatmul.mubr.msk.bf16.gmra.mrb[124].mxu1 %vm6217_vm9, %v6052_v14  ;;  %v15943_v14 = vld [vmem:[%s16989_s1] sm:$0xff]  }
 0xea5   : > { %13067 = vmatprep.mubr.msk.bf16.mxu1 %vm14715_vm3, %v16985_v13  ;;  %13081 = vmatprep.subr.bf16.mxu0 %v15943_v14 }
 0xf4f   : > { %v12444_v54 = vpop.f32.mrb[220].mxu0 }
 0xf50   : > { %v12445_v37 = vpop.f32.mrb[221].mxu0 }
 0xf51   : > { %v12446_v35 = vadd.f32 %v12445_v37, %v12444_v54  ;;  %v12447_v0 = vpop.f32.mrb[222].mxu0 }
 0xf52   : > { %v12448_v49 = vpop.f32.mrb[223].mxu0 }
 0xf53   : > { %v12449_v46 = vadd.f32 %v12448_v49, %v12447_v0 }
 0xf57   : > { %v12450_v20 = vpop.f32.mrb[224].mxu0 }
 0xf58   : > { %v12451_v29 = vpop.f32.mrb[225].mxu0 }
 0xf59   : > { %v12452_v19 = vadd.f32 %v12451_v29, %v12450_v20  ;;  %v12453_v21 = vpop.f32.mrb[226].mxu0 }
 0xf5a   : > { %v12454_v6 = vpop.f32.mrb[227].mxu0 }
 0xf5b   : > { %v12455_v9 = vadd.f32 %v12454_v6, %v12453_v21 }
 0xf5f   : > { %v12456_v16 = vpop.f32.mrb[228].mxu0 }
 0xf60   : > { %v12457_v33 = vpop.f32.mrb[229].mxu0 }
 0xf61   : > { %v12458_v50 = vadd.f32 %v12457_v33, %v12456_v16  ;;  %v12459_v36 = vpop.f32.mrb[230].mxu0 }
 0xf62   : > { %v12460_v39 = vpop.f32.mrb[231].mxu0 }
 0xf63   : > { %v12461_v7 = vadd.f32 %v12460_v39, %v12459_v36 }
 0xf67   : > { %v12462_v32 = vpop.f32.mrb[232].mxu0 }
 0xf68   : > { %v12463_v12 = vpop.f32.mrb[233].mxu0 }
 0xf69   : > { %v12464_v52 = vadd.f32 %v12463_v12, %v12462_v32  ;;  %v12465_v3 = vpop.f32.mrb[234].mxu0 }
 0xf6a   : > { %v12466_v26 = vpop.f32.mrb[235].mxu0 }
 0xf6b   : > { %v12467_v59 = vadd.f32 %v12466_v26, %v12465_v3 }
 0xf6f   : > { %v13053_v25 = vpop.f32.mrb[120].mxu1 }
 0xf70   : > { %v6342_v63 = vadd.f32 %v13053_v25, %v12452_v19  ;;  %v6333_v2 = vpop.f32.mrb[121].mxu1 }
 0xf71   : > { %v6334_v23 = vadd.f32 %v12446_v35, %v6333_v2  ;;  %v13054_v45 = vpop.f32.mrb[122].mxu1 }
 0xf72   : > { %v6345_v34 = vadd.f32 %v13054_v45, %v12455_v9  ;;  %v6336_v28 = vpop.f32.mrb[123].mxu1 }
 0xf73   : > { %v6337_v40 = vadd.f32 %v12449_v46, %v6336_v28 }
 0xf74   : > { %v6365_v22 = vpack.c.bf16 %v6345_v34, %v6342_v63 }
 0xf75   : > { %v6364_v11 = vpack.c.bf16 %v6337_v40, %v6334_v23 }
 0xf77   : > { %v13057_v43 = vpop.f32.mrb[124].mxu1  ;;  %13060 = vmatpush3.bf16.msra.mxu1 %v6364_v11 }
 0xf78   : > { %v6358_v17 = vadd.f32 %v13057_v43, %v12464_v52  ;;  %v6349_v18 = vpop.f32.mrb[125].mxu1  ;;  %13061 = vmatprep.subr.bf16.mxu1 %v16985_v13 }
 0xf79   : > { %v6350_v24 = vadd.f32 %v12458_v50, %v6349_v18  ;;  %v13058_v15 = vpop.f32.mrb[126].mxu1 }
 0xf7a   : > { %v6361_v30 = vadd.f32 %v13058_v15, %v12467_v59  ;;  %v6352_v51 = vpop.f32.mrb[127].mxu1 }
 0xf7b   : > { %v6353_v38 = vadd.f32 %v12461_v7, %v6352_v51  ;;  %13062 = vmatpush3.bf16.msra.mxu1 %v6365_v22 }
 0xf7c   : > { %v6367_v60 = vpack.c.bf16 %v6361_v30, %v6358_v17  ;;  %13063 = vmatprep.subr.bf16.mxu1 %v16985_v13 }
 0xf7d   : > { %v6366_v42 = vpack.c.bf16 %v6353_v38, %v6350_v24 }
 0xf7f   : > { %13064 = vmatpush3.bf16.msra.mxu1 %v6366_v42 }
 0xf80   : > { %13065 = vmatprep.subr.bf16.mxu1 %v16985_v13 }
 0xf83   : > { %13066 = vmatpush3.bf16.msra.mxu1 %v6367_v60 }
 0xf84   : > { %6412 = vmatprep.subr.bf16.mxu1 %v14615_v10 }
 0xf86   : > { %13068 = vmatmul.mubr.msk.bf16.vlgmr.msra.gmra.mrb[128].mxu1 %vm2777_vm4, %v14616_v4 }
 0xf87   : > { %6413 = vmatpush1.bf16.msra.mxu1 %v14617_v62  ;;  %6444 = vmatprep.mubr.bf16.mxu1 %v16982_v56 }
 0xf88   : > { %11820 = vmatprep.subr.msk.bf16.mxu1 %vm2844_vm5, %v16987_v8 }
 0xf8b   : > { %6415 = vmatpush1.bf16.msra.mxu1 %v16988_v41 }
 0xf8c   : > { %13402 = vmatprep.subr.msk.bf16.mxu1 %vm1391_vm0, %v6508_v5 }
0x1059   : > { %v6402_v1 = vpop.f32.mrb[128].mxu1 }
0x105a   : > { %v6408_v48 = vpack.c.bf16 %v6402_v1, %v6402_v1  ;;  %v13069_v61 = vpop.f32.mrb[129].mxu1 }
0x105b   : > { %v6405_v44 = vpop.f32.mrb[130].mxu1 }
0x105c   : > { %v13070_v53 = vpop.f32.mrb[131].mxu1  ;;  %11821 = vmatmul.mubr.msk.bf16.vlgmr.msra.gmra.mrb[132].mxu1 %vm2840_vm6, %v6408_v48 }
0x105d   : > { %13072 = vmatpush3.bf16.msra.mxu1 %v6510_v57  ;;  %13073 = vmatprep.mubr.msk.bf16.mxu1 %vm1378_vm1, %v14618_v31 }
0x1064   : > { %13074 = vmatmul.mubr.msk.bf16.vlgmr.msra.gmra.mrb[136].mxu1 %vm1378_vm1, %v14619_v55 }
0x1065   : > { %13077 = vmatprep.mubr.msk.bf16.mxu1 %vm1378_vm1, %v14620_v27 }
0x106c   : > { %13078 = vmatmul.mubr.msk.bf16.gmra.mrb[140].mxu1 %vm1378_vm1, %v14621_v58 }
0x112f   : > { %v6446_v47 = vpop.f32.mrb[132].mxu1 }
0x1130   : > { %v6453_v54 = vsub.f32 0.0, %v6446_v47  ;;  %v6448_v37 = vpop.f32.mrb[133].mxu1  ;;  %v13837_v47 = vld [vmem:[%s16989_s1 + $0x8] sm:$0xff]  }
0x1131   : > { %v6454_v35 = vsub.f32 0.0, %v6448_v37  ;;  %v6450_v0 = vpop.f32.mrb[134].mxu1 }
0x1132   : > { %v6455_v49 = vmin.f32 %v6453_v54, 80.0  ;;  %v6451_v46 = vpop.f32.mrb[135].mxu1 }
0x1133   : > { %v6456_v20 = vmin.f32 %v6454_v35, 80.0 }
0x1134   : > { %v6457_v29 = vmul.f32 1.442695, %v6455_v49 }
0x1135   : > { %v6459_v19 = vmul.f32 1.442695, %v6456_v20 }
0x1136   : > { %14379 = vpow2.f32 %v6457_v29  ;;  %v13838_v29 = vld [vmem:[%s16989_s1 + $0x10] sm:$0xff]  }
0x1137   : > { %14381 = vpow2.f32 %v6459_v19  ;;  %v15946_v21 = vpop.f32.mrb[136].mxu1 }
0x1138   : > { %v6579_v6 = vsub.f32 0.0, %v15946_v21  ;;  %v15949_v9 = vpop.f32.mrb[137].mxu1 }
0x1139   : > { %v6577_v16 = vsub.f32 0.0, %v15949_v9  ;;  %v15952_v33 = vpop.f32.mrb[138].mxu1 }
0x113a   : > { %v6587_v50 = vmin.f32 %v6579_v6, 80.0  ;;  %v6580_v36 = vsub.f32 0.0, %v15952_v33  ;;  %v15955_v39 = vpop.f32.mrb[139].mxu1 }
0x113b   : > { %v6585_v7 = vmin.f32 %v6577_v16, 80.0  ;;  %v6578_v32 = vsub.f32 0.0, %v15955_v39 }
0x113c   : > { %v6597_v12 = vmul.f32 1.442695, %v6587_v50  ;;  %v6588_v52 = vmin.f32 %v6580_v36, 80.0 }
0x113d   : > { %v6593_v3 = vmul.f32 1.442695, %v6585_v7  ;;  %v6586_v26 = vmin.f32 %v6578_v32, 80.0  ;;  %v13839_v32 = vld [vmem:[%s16989_s1 + $0x18] sm:$0xff]  }
0x113e   : > { %14383 = vpow2.f32 %v6597_v12  ;;  %v6599_v59 = vmul.f32 1.442695, %v6588_v52 }
0x113f   : > { %14385 = vpow2.f32 %v6593_v3  ;;  %v6595_v25 = vmul.f32 1.442695, %v6586_v26  ;;  %v15958_v63 = vpop.f32.mrb[140].mxu1  ;;  %v13840_v26 = vld [vmem:[%s16989_s1 + $0x20] sm:$0xff]  }
0x1140   : > { %v14380_v2 = vpop.eup %14379  ;;  %14387 = vpow2.f32 %v6599_v59  ;;  %v6583_v23 = vsub.f32 0.0, %v15958_v63  ;;  %v15961_v45 = vpop.f32.mrb[141].mxu1 }
0x1141   : > { %v14382_v34 = vpop.eup %14381  ;;  %v6461_v28 = vadd.f32 1.0, %v14380_v2  ;;  %14389 = vpow2.f32 %v6595_v25  ;;  %v6581_v40 = vsub.f32 0.0, %v15961_v45  ;;  %v15964_v22 = vpop.f32.mrb[142].mxu1 }
0x1142   : > { %v6462_v11 = vadd.f32 1.0, %v14382_v34  ;;  %v6591_v43 = vmin.f32 %v6583_v23, 80.0  ;;  %v6584_v17 = vsub.f32 0.0, %v15964_v22  ;;  %v15967_v18 = vpop.f32.mrb[143].mxu1  ;;  %v13841_v23 = vld [vmem:[%s16989_s1 + $0x28] sm:$0xff]  }
0x1143   : > { %14391 = vrcp.f32 %v6461_v28  ;;  %v6589_v24 = vmin.f32 %v6581_v40, 80.0  ;;  %v6582_v15 = vsub.f32 0.0, %v15967_v18 }
0x1144   : > { %14393 = vrcp.f32 %v6462_v11  ;;  %v6605_v30 = vmul.f32 1.442695, %v6591_v43  ;;  %v6592_v51 = vmin.f32 %v6584_v17, 80.0  ;;  %v13842_v11 = vld [vmem:[%s16989_s1 + $0x30] sm:$0xff]   ;;  %v13843_v43 = vld [vmem:[%s16989_s1 + $0x38] sm:$0xff]   ;;  %s16993_s1 = sld [smem:[#allocation17_spill]] }
0x1145   : > { %v6601_v38 = vmul.f32 1.442695, %v6589_v24  ;;  %v6590_v60 = vmin.f32 %v6582_v15, 80.0  ;;  %v13847_v17 = vld [vmem:[%s16990_s0 + $0x18] sm:$0xff]   ;;  %v13849_v24 = vld [vmem:[%s16990_s0 + $0x28] sm:$0xff]   ;;  %v13850_v15 = vld [vmem:[%s16990_s0 + $0x30] sm:$0xff]  }
0x1146   : > { %14395 = vpow2.f32 %v6605_v30  ;;  %v6607_v42 = vmul.f32 1.442695, %v6592_v51  ;;  %v13851_v30 = vld [vmem:[%s16990_s0 + $0x38] sm:$0xff]  }
0x1147   : > { %14397 = vpow2.f32 %v6601_v38  ;;  %v6603_v10 = vmul.f32 1.442695, %v6590_v60 }
0x1148   : > { %v14384_v4 = vpop.eup %14383  ;;  %14399 = vpow2.f32 %v6607_v42 }
0x1149   : > { %v14386_v62 = vpop.eup %14385  ;;  %v6611_v5 = vadd.f32 1.0, %v14384_v4  ;;  %14401 = vpow2.f32 %v6603_v10 }
0x114a   : > { %v14388_v1 = vpop.eup %14387  ;;  %v6609_v48 = vadd.f32 1.0, %v14386_v62 }
0x114b   : > { %v14390_v61 = vpop.eup %14389  ;;  %14403 = vrcp.f32 %v6611_v5  ;;  %v6612_v57 = vadd.f32 1.0, %v14388_v1 }
0x114c   : > { %14405 = vrcp.f32 %v6609_v48  ;;  %v6610_v44 = vadd.f32 1.0, %v14390_v61 }
0x114d   : > { %v14392_v53 = vpop.eup %14391  ;;  %14407 = vrcp.f32 %v6612_v57 }
0x114e   : > { %v14394_v31 = vpop.eup %14393  ;;  %14409 = vrcp.f32 %v6610_v44  ;;  %v6465_v58 = vpack.c.bf16 %v14392_v53, %v14392_v53 }
0x114f   : > { %v6466_v55 = vpack.c.bf16 %v14394_v31, %v14394_v31 }
0x1150   : > { %v14396_v27 = vpop.eup %14395 }
0x1151   : > { %v14398_v54 = vpop.eup %14397  ;;  %v6615_v37 = vadd.f32 1.0, %v14396_v27  ;;  %6499 = vmatprep.mubr.bf16.mxu0 %v6466_v55 }
0x1152   : > { %v14400_v35 = vpop.eup %14399  ;;  %v6613_v0 = vadd.f32 1.0, %v14398_v54  ;;  %6500 = vmatmul.mubr.bf16.vlgmr.msra.gmra.mrb[236].mxu0 %v6465_v58 }
0x1153   : > { %v14402_v49 = vpop.eup %14401  ;;  %14411 = vrcp.f32 %v6615_v37  ;;  %v6616_v46 = vadd.f32 1.0, %v14400_v35  ;;  %13082 = vmatpush3.bf16.msra.mxu0 %v15943_v14 }
0x1154   : > { %14413 = vrcp.f32 %v6613_v0  ;;  %v6614_v20 = vadd.f32 1.0, %v14402_v49  ;;  %13083 = vmatprep.subr.bf16.mxu0 %v13837_v47 }
0x1155   : > { %v14404_v19 = vpop.eup %14403  ;;  %14415 = vrcp.f32 %v6616_v46 }
0x1156   : > { %v14406_v6 = vpop.eup %14405  ;;  %14417 = vrcp.f32 %v6614_v20  ;;  %v6627_v36 = vmul.f32 %v14404_v19, %v15946_v21 }
0x1157   : > { %v14408_v16 = vpop.eup %14407  ;;  %13084 = vmatpush3.bf16.msra.mxu0 %v13837_v47  ;;  %v6625_v14 = vmul.f32 %v14406_v6, %v15949_v9 }
0x1158   : > { %v14410_v50 = vpop.eup %14409  ;;  %v6628_v7 = vmul.f32 %v14408_v16, %v15952_v33  ;;  %13085 = vmatprep.subr.bf16.mxu0 %v13838_v29 }
0x1159   : > { %v6626_v12 = vmul.f32 %v14410_v50, %v15955_v39 }
0x115a   : > { %v6634_v52 = vpack.c.bf16 %v6628_v7, %v6627_v36 }
0x115b   : > { %v6633_v3 = vpack.c.bf16 %v6626_v12, %v6625_v14  ;;  %13086 = vmatpush3.bf16.msra.mxu0 %v13838_v29 }
0x115c   : > { %13087 = vmatprep.subr.bf16.mxu0 %v13839_v32 }
0x115d   : > { %v14412_v59 = vpop.eup %14411  ;;  %13097 = vmatprep.mubr.bf16.mxu0 %v6633_v3 }
0x115e   : > { %v14414_v25 = vpop.eup %14413  ;;  %v6631_v33 = vmul.f32 %v14412_v59, %v15958_v63  ;;  %v13844_v63 = vld [vmem:[%s16990_s0] sm:$0xff]  }
0x115f   : > { %v14416_v2 = vpop.eup %14415  ;;  %13088 = vmatpush3.bf16.msra.mxu0 %v13839_v32  ;;  %v6629_v39 = vmul.f32 %v14414_v25, %v15961_v45  ;;  %13105 = vmatprep.subr.bf16.mxu1 %v13844_v63  ;;  %v13845_v45 = vld [vmem:[%s16990_s0 + $0x8] sm:$0xff]  }
0x1160   : > { %v14418_v21 = vpop.eup %14417  ;;  %v6632_v9 = vmul.f32 %v14416_v2, %v15964_v22  ;;  %13089 = vmatprep.subr.bf16.mxu0 %v13840_v26  ;;  %13106 = vmatpush3.bf16.msra.mxu1 %v13844_v63  ;;  %v13846_v22 = vld [vmem:[%s16990_s0 + $0x10] sm:$0xff]  }
0x1161   : > { %v6630_v34 = vmul.f32 %v14418_v21, %v15967_v18  ;;  %13107 = vmatprep.subr.bf16.mxu1 %v13845_v45  ;;  %v13848_v18 = vld [vmem:[%s16990_s0 + $0x20] sm:$0xff]   ;;  %s16992_s0 = sld [smem:[#allocation16_spill]] }
0x1162   : > { %v6636_v28 = vpack.c.bf16 %v6632_v9, %v6631_v33 }
0x1163   : > { %v6635_v40 = vpack.c.bf16 %v6630_v34, %v6629_v39  ;;  %13090 = vmatpush3.bf16.msra.mxu0 %v13840_v26 }
0x1164   : > { %13091 = vmatprep.subr.bf16.mxu0 %v13841_v23  ;;  %13108 = vmatpush3.bf16.msra.mxu1 %v13845_v45 }
0x1165   : > { %13109 = vmatprep.subr.bf16.mxu1 %v13846_v22 }
0x1167   : > { %13092 = vmatpush3.bf16.msra.mxu0 %v13841_v23 }
0x1168   : > { %13093 = vmatprep.subr.bf16.mxu0 %v13842_v11  ;;  %13110 = vmatpush3.bf16.msra.mxu1 %v13846_v22 }
0x1169   : > { %13111 = vmatprep.subr.bf16.mxu1 %v13847_v17 }
0x116b   : > { %13094 = vmatpush3.bf16.msra.mxu0 %v13842_v11 }
0x116c   : > { %13095 = vmatprep.subr.bf16.mxu0 %v13843_v43  ;;  %13112 = vmatpush3.bf16.msra.mxu1 %v13847_v17 }
0x116d   : > { %13113 = vmatprep.subr.bf16.mxu1 %v13848_v18 }
0x116f   : > { %13096 = vmatpush3.bf16.msra.mxu0 %v13843_v43 }
0x1170   : > { %13114 = vmatpush3.bf16.msra.mxu1 %v13848_v18 }
0x1171   : > { %13115 = vmatprep.subr.bf16.mxu1 %v13849_v24 }
0x1172   : > { %13098 = vmatmul.mubr.bf16.vlgmr.msra.gmra.mrb[240].mxu0 %v6634_v52 }
0x1173   : > { %13101 = vmatprep.mubr.bf16.mxu0 %v6635_v40 }
0x1174   : > { %13116 = vmatpush3.bf16.msra.mxu1 %v13849_v24 }
0x1175   : > { %13117 = vmatprep.subr.bf16.mxu1 %v13850_v15 }
0x1178   : > { %13118 = vmatpush3.bf16.msra.mxu1 %v13850_v15 }
0x1179   : > { %13119 = vmatprep.subr.bf16.mxu1 %v13851_v30 }
0x117a   : > { %13102 = vmatmul.mubr.bf16.gmra.mrb[244].mxu0 %v6636_v28 }
0x117c   : > { %13120 = vmatpush3.bf16.msra.mxu1 %v13851_v30 }
0x1225   : > { %v12498_v51 = vpop.f32.mrb[236].mxu0 }
0x1226   : > { %v12499_v38 = vpop.f32.mrb[237].mxu0 }
0x1227   : > { %v15994_v60 = vadd.f32 %v12499_v38, %v12498_v51  ;;  %v12501_v42 = vpop.f32.mrb[238].mxu0 }
0x1228   : > { %v12502_v10 = vpop.f32.mrb[239].mxu0 }
0x1229   : > { %16991 = vst [vmem:[#allocation31_spill] sm:$0xff] %v15994_v60 }
0x1245   : > { %v15996_v4 = vpop.f32.mrb[240].mxu0 }
0x1246   : > { %v6768_v62 = vsub.f32 0.0, %v15996_v4  ;;  %v15999_v5 = vpop.f32.mrb[241].mxu0 }
0x1247   : > { %v6766_v1 = vsub.f32 0.0, %v15999_v5  ;;  %v16002_v48 = vpop.f32.mrb[242].mxu0 }
0x1248   : > { %v6776_v61 = vmin.f32 %v6768_v62, 80.0  ;;  %v6769_v57 = vsub.f32 0.0, %v16002_v48  ;;  %v16005_v44 = vpop.f32.mrb[243].mxu0 }
0x1249   : > { %v6774_v53 = vmin.f32 %v6766_v1, 80.0  ;;  %v6767_v31 = vsub.f32 0.0, %v16005_v44 }
0x124a   : > { %v6786_v55 = vmul.f32 1.442695, %v6776_v61  ;;  %v6777_v27 = vmin.f32 %v6769_v57, 80.0 }
0x124b   : > { %v6782_v58 = vmul.f32 1.442695, %v6774_v53  ;;  %v6775_v47 = vmin.f32 %v6767_v31, 80.0 }
0x124c   : > { %14419 = vpow2.f32 %v6786_v55  ;;  %v6788_v54 = vmul.f32 1.442695, %v6777_v27  ;;  %v13853_v55 = vld [vmem:[%s16992_s0 + $0x8] sm:$0xff]   ;;  %v13854_v27 = vld [vmem:[%s16992_s0 + $0x10] sm:$0xff]  }
0x124d   : > { %14421 = vpow2.f32 %v6782_v58  ;;  %v6784_v37 = vmul.f32 1.442695, %v6775_v47  ;;  %v13103_v35 = vpop.f32.mrb[244].mxu0  ;;  %v13855_v58 = vld [vmem:[%s16992_s0 + $0x18] sm:$0xff]   ;;  %v13856_v47 = vld [vmem:[%s16992_s0 + $0x20] sm:$0xff]  }
0x124e   : > { %14423 = vpow2.f32 %v6788_v54  ;;  %v6772_v0 = vsub.f32 0.0, %v13103_v35  ;;  %v6751_v49 = vpop.f32.mrb[245].mxu0  ;;  %v13857_v54 = vld [vmem:[%s16992_s0 + $0x28] sm:$0xff]  }
0x124f   : > { %14425 = vpow2.f32 %v6784_v37  ;;  %v6770_v46 = vsub.f32 0.0, %v6751_v49  ;;  %v13104_v20 = vpop.f32.mrb[246].mxu0  ;;  %v13858_v37 = vld [vmem:[%s16992_s0 + $0x30] sm:$0xff]  }
0x1250   : > { %v6780_v29 = vmin.f32 %v6772_v0, 80.0  ;;  %v6773_v19 = vsub.f32 0.0, %v13104_v20  ;;  %v6754_v6 = vpop.f32.mrb[247].mxu0  ;;  %v13860_v0 = vld [vmem:[%s16993_s1] ss:$24 sps:$4 sm:$0xff]  }
0x1251   : > { %v6778_v16 = vmin.f32 %v6770_v46, 80.0  ;;  %v6771_v50 = vsub.f32 0.0, %v6754_v6  ;;  %v13865_v46 = vld [vmem:[%s16993_s1 + $0xc] ss:$24 sps:$4 sm:$0xff]  }
0x1252   : > { %v6794_v36 = vmul.f32 1.442695, %v6780_v29  ;;  %v6781_v7 = vmin.f32 %v6773_v19, 80.0  ;;  %v13866_v29 = vld [vmem:[%s16993_s1 + $0x10] ss:$24 sps:$4 sm:$0xff]   ;;  %v16027_v19 = vld [vmem:[%s14967_s28] sm:$0xff]  }
0x1253   : > { %v6790_v32 = vmul.f32 1.442695, %v6778_v16  ;;  %v6779_v14 = vmin.f32 %v6771_v50, 80.0  ;;  %v16039_v16 = vld [vmem:[%s14967_s28 + $0x10] sm:$0xff]   ;;  %v13877_v50 = vld [vmem:[%s16994_s2 + $0xc] ss:$24 sps:$4 sm:$0xff]  }
0x1254   : > { %14427 = vpow2.f32 %v6794_v36  ;;  %v6796_v12 = vmul.f32 1.442695, %v6781_v7  ;;  %v16046_v36 = vld [vmem:[%s14967_s28 + $0x18] sm:$0xff]   ;;  %v13875_v7 = vld [vmem:[%s16994_s2 + $0x8] ss:$24 sps:$4 sm:$0xff]  }
0x1255   : > { %14429 = vpow2.f32 %v6790_v32  ;;  %v6792_v52 = vmul.f32 1.442695, %v6779_v14  ;;  %v13880_v32 = vld [vmem:[%s16994_s2 + $0x3c] ss:$24 sps:$4 sm:$0xff]   ;;  %v13878_v14 = vld [vmem:[%s16994_s2 + $0x38] ss:$24 sps:$4 sm:$0xff]  }
0x1256   : > { %v14420_v3 = vpop.eup %14419  ;;  %14431 = vpow2.f32 %v6796_v12 }
0x1257   : > { %v14422_v26 = vpop.eup %14421  ;;  %v6800_v59 = vadd.f32 1.0, %v14420_v3  ;;  %14433 = vpow2.f32 %v6792_v52 }
0x1258   : > { %v14424_v25 = vpop.eup %14423  ;;  %v6798_v2 = vadd.f32 1.0, %v14422_v26 }
0x1259   : > { %v14426_v21 = vpop.eup %14425  ;;  %14435 = vrcp.f32 %v6800_v59  ;;  %v6801_v33 = vadd.f32 1.0, %v14424_v25 }
0x125a   : > { %14437 = vrcp.f32 %v6798_v2  ;;  %v6799_v9 = vadd.f32 1.0, %v14426_v21 }
0x125b   : > { %14439 = vrcp.f32 %v6801_v33 }
0x125c   : > { %14441 = vrcp.f32 %v6799_v9 }
0x125e   : > { %v14428_v23 = vpop.eup %14427 }
0x125f   : > { %v14430_v39 = vpop.eup %14429  ;;  %v6804_v34 = vadd.f32 1.0, %v14428_v23 }
0x1260   : > { %v14432_v28 = vpop.eup %14431  ;;  %v6802_v40 = vadd.f32 1.0, %v14430_v39 }
0x1261   : > { %v14434_v11 = vpop.eup %14433  ;;  %14443 = vrcp.f32 %v6804_v34  ;;  %v6805_v43 = vadd.f32 1.0, %v14432_v28 }
0x1262   : > { %14445 = vrcp.f32 %v6802_v40  ;;  %v6803_v63 = vadd.f32 1.0, %v14434_v11 }
0x1263   : > { %v14436_v45 = vpop.eup %14435  ;;  %14447 = vrcp.f32 %v6805_v43 }
0x1264   : > { %v14438_v22 = vpop.eup %14437  ;;  %14449 = vrcp.f32 %v6803_v63  ;;  %v6816_v24 = vmul.f32 %v14436_v45, %v15996_v4 }
0x1265   : > { %v14440_v17 = vpop.eup %14439  ;;  %v6814_v30 = vmul.f32 %v14438_v22, %v15999_v5 }
0x1266   : > { %v14442_v18 = vpop.eup %14441  ;;  %v6817_v15 = vmul.f32 %v14440_v17, %v16002_v48 }
0x1267   : > { %v6815_v51 = vmul.f32 %v14442_v18, %v16005_v44  ;;  %v13852_v44 = vld [vmem:[%s16992_s0] sm:$0xff]  }
0x1268   : > { %v6823_v38 = vpack.c.bf16 %v6817_v15, %v6816_v24  ;;  %13129 = vmatprep.subr.bf16.mxu0 %v13852_v44 }
0x1269   : > { %v6822_v42 = vpack.c.bf16 %v6815_v51, %v6814_v30  ;;  %13130 = vmatpush3.bf16.msra.mxu0 %v13852_v44 }
0x126a   : > { %13131 = vmatprep.subr.bf16.mxu0 %v13853_v55 }
0x126b   : > { %v14444_v10 = vpop.eup %14443  ;;  %13121 = vmatprep.mubr.bf16.mxu1 %v6822_v42 }
0x126c   : > { %v14446_v62 = vpop.eup %14445  ;;  %13122 = vmatmul.mubr.bf16.vlgmr.msra.gmra.mrb[144].mxu1 %v6823_v38  ;;  %v6820_v57 = vmul.f32 %v14444_v10, %v13103_v35  ;;  %v13859_v35 = vld [vmem:[%s16992_s0 + $0x38] sm:$0xff]   ;;  %s16995_s0 = sld [smem:[#allocation19_spill]] }
0x126d   : > { %v14448_v1 = vpop.eup %14447  ;;  %v6818_v4 = vmul.f32 %v14446_v62, %v6751_v49  ;;  %13132 = vmatpush3.bf16.msra.mxu0 %v13853_v55  ;;  %v13862_v49 = vld [vmem:[%s16993_s1 + $0x4] ss:$24 sps:$4 sm:$0xff]  }
0x126e   : > { %v14450_v61 = vpop.eup %14449  ;;  %v6821_v53 = vmul.f32 %v14448_v1, %v13104_v20  ;;  %13133 = vmatprep.subr.bf16.mxu0 %v13854_v27  ;;  %v13868_v20 = vld [vmem:[%s16993_s1 + $0x14] ss:$24 sps:$4 sm:$0xff]   ;;  %7180 = vmatprep.subr.bf16.mxu1 %v13862_v49 }
0x126f   : > { %v6819_v48 = vmul.f32 %v14450_v61, %v6754_v6  ;;  %7181 = vmatpush1.bf16.msra.mxu1 %v13860_v0  ;;  %v16033_v6 = vld [vmem:[%s14967_s28 + $0x8] sm:$0xff]  }
0x1270   : > { %v6825_v31 = vpack.c.bf16 %v6821_v53, %v6820_v57  ;;  %7326 = vmatprep.subr.bf16.mxu1 %v13868_v20 }
0x1271   : > { %v6824_v5 = vpack.c.bf16 %v6819_v48, %v6818_v4  ;;  %13134 = vmatpush3.bf16.msra.mxu0 %v13854_v27 }
0x1272   : > { %13135 = vmatprep.subr.bf16.mxu0 %v13855_v58  ;;  %v13935_v41 = vld [vmem:[%s16995_s0 + $0x108] ss:$12 sps:$4 sm:$0xff]   ;;  %v13940_v8 = vld [vmem:[%s16995_s0 + $0x120] ss:$12 sps:$4 sm:$0xff]  }
0x1273   : > { %13125 = vmatprep.mubr.bf16.mxu1 %v6824_v5  ;;  %v13968_v60 = vld [vmem:[%s16995_s0 + $0x260] ss:$12 sps:$4 sm:$0xff]  }
0x1274   : > { %13126 = vmatmul.mubr.bf16.gmra.mrb[148].mxu1 %v6825_v31 }
0x1275   : > { %7212 = vmatprep.mubr.bf16.mxu1 %v16982_v56  ;;  %13136 = vmatpush3.bf16.msra.mxu0 %v13855_v58 }
0x1276   : > { %13137 = vmatprep.subr.bf16.mxu0 %v13856_v47 }
0x1279   : > { %13138 = vmatpush3.bf16.msra.mxu0 %v13856_v47 }
0x127a   : > { %13139 = vmatprep.subr.bf16.mxu0 %v13857_v54 }
0x127c   : > { %11856 = vmatmul.mubr.msk.bf16.vlgmr.msra.gmra.mrb[152].mxu1 %vm2055_vm2, %v16027_v19 }
0x127d   : > { %13140 = vmatpush3.bf16.msra.mxu0 %v13857_v54  ;;  %7222 = vmatprep.mubr.bf16.mxu1 %v16982_v56 }
0x127e   : > { %13141 = vmatprep.subr.bf16.mxu0 %v13858_v37  ;;  %7327 = vmatpush1.bf16.msra.mxu1 %v13866_v29 }
0x127f   : > { %7596 = vmatprep.subr.bf16.mxu1 %v13877_v50 }
0x1281   : > { %13142 = vmatpush3.bf16.msra.mxu0 %v13858_v37 }
0x1282   : > { %13143 = vmatprep.subr.bf16.mxu0 %v13859_v35 }
0x1284   : > { %11857 = vmatmul.mubr.msk.bf16.gmra.mrb[156].mxu1 %vm2055_vm2, %v16033_v6 }
0x1285   : > { %13144 = vmatpush3.bf16.msra.mxu0 %v13859_v35  ;;  %7232 = vmatprep.mubr.bf16.mxu1 %v16982_v56 }
0x1286   : > { %7253 = vmatprep.subr.bf16.mxu0 %v13865_v46 }
0x128c   : > { %11858 = vmatmul.mubr.msk.bf16.gmra.mrb[160].mxu1 %vm2055_vm2, %v16039_v16 }
0x128d   : > { %7242 = vmatprep.mubr.bf16.mxu1 %v16982_v56 }
0x1294   : > { %11859 = vmatmul.mubr.msk.bf16.gmra.mrb[164].mxu1 %vm2055_vm2, %v16046_v36 }
0x1295   : > { %7358 = vmatprep.mubr.bf16.mxu1 %v16982_v56 }
0x129c   : > { %11864 = vmatmul.mubr.msk.bf16.vlgmr.msra.gmra.mrb[168].mxu1 %vm2055_vm2, %v16027_v19 }
0x129d   : > { %7368 = vmatprep.mubr.bf16.mxu1 %v16982_v56  ;;  %7597 = vmatpush1.bf16.msra.mxu1 %v13875_v7 }
0x129e   : > { %7598 = vmatprep.subr.bf16.mxu1 %v13880_v32 }
0x12a1   : > { %7599 = vmatpush1.bf16.msra.mxu1 %v13878_v14 }
0x12a4   : > { %11865 = vmatmul.mubr.msk.bf16.gmra.mrb[172].mxu1 %vm2055_vm2, %v16033_v6 }
0x12a5   : > { %7378 = vmatprep.mubr.bf16.mxu1 %v16982_v56 }
0x12ac   : > { %11866 = vmatmul.mubr.msk.bf16.gmra.mrb[176].mxu1 %vm2055_vm2, %v16039_v16 }
0x12ad   : > { %7388 = vmatprep.mubr.bf16.mxu1 %v16982_v56 }
0x12b4   : > { %11867 = vmatmul.mubr.msk.bf16.gmra.mrb[180].mxu1 %vm2055_vm2, %v16046_v36 }
0x12b5   : > { %7628 = vmatprep.mubr.bf16.mxu1 %v16982_v56 }
0x133f   : > { %v16066_v12 = vpop.f32.mrb[144].mxu1 }
0x1340   : > { %v6957_v52 = vsub.f32 0.0, %v16066_v12  ;;  %v16069_v3 = vpop.f32.mrb[145].mxu1 }
0x1341   : > { %v6955_v26 = vsub.f32 0.0, %v16069_v3  ;;  %v16072_v59 = vpop.f32.mrb[146].mxu1 }
0x1342   : > { %v6965_v25 = vmin.f32 %v6957_v52, 80.0  ;;  %v6958_v2 = vsub.f32 0.0, %v16072_v59  ;;  %v16075_v21 = vpop.f32.mrb[147].mxu1 }
0x1343   : > { %v6963_v33 = vmin.f32 %v6955_v26, 80.0  ;;  %v6956_v9 = vsub.f32 0.0, %v16075_v21 }
0x1344   : > { %v6975_v23 = vmul.f32 1.442695, %v6965_v25  ;;  %v6966_v39 = vmin.f32 %v6958_v2, 80.0  ;;  %v13863_v2 = vld [vmem:[%s16993_s1 + $0x8] ss:$24 sps:$4 sm:$0xff]   ;;  %s17000_s1 = sld [smem:[#allocation20_spill]] }
0x1345   : > { %v6971_v34 = vmul.f32 1.442695, %v6963_v33  ;;  %v6964_v28 = vmin.f32 %v6956_v9, 80.0  ;;  %v13871_v33 = vld [vmem:[%s16994_s2 + $0x4] ss:$24 sps:$4 sm:$0xff]  }
0x1346   : > { %14451 = vpow2.f32 %v6975_v23  ;;  %v6977_v40 = vmul.f32 1.442695, %v6966_v39 }
0x1347   : > { %14453 = vpow2.f32 %v6971_v34  ;;  %v6973_v11 = vmul.f32 1.442695, %v6964_v28  ;;  %v16078_v43 = vpop.f32.mrb[148].mxu1 }
0x1348   : > { %14455 = vpow2.f32 %v6977_v40  ;;  %v6961_v63 = vsub.f32 0.0, %v16078_v43  ;;  %v16081_v45 = vpop.f32.mrb[149].mxu1 }
0x1349   : > { %14457 = vpow2.f32 %v6973_v11  ;;  %v6959_v22 = vsub.f32 0.0, %v16081_v45  ;;  %v13128_v17 = vpop.f32.mrb[150].mxu1  ;;  %v13869_v11 = vld [vmem:[%s16994_s2] ss:$24 sps:$4 sm:$0xff]  }
0x134a   : > { %v6969_v18 = vmin.f32 %v6961_v63, 80.0  ;;  %v6962_v24 = vsub.f32 0.0, %v13128_v17  ;;  %v6943_v15 = vpop.f32.mrb[151].mxu1  ;;  %v13874_v63 = vld [vmem:[%s16994_s2 + $0x34] ss:$24 sps:$4 sm:$0xff]  }
0x134b   : > { %v6967_v30 = vmin.f32 %v6959_v22, 80.0  ;;  %v6960_v51 = vsub.f32 0.0, %v6943_v15  ;;  %v13886_v22 = vld [vmem:[%s16994_s2 + $0x6c] ss:$24 sps:$4 sm:$0xff]  }
0x134c   : > { %v6983_v38 = vmul.f32 1.442695, %v6969_v18  ;;  %v6970_v42 = vmin.f32 %v6962_v24, 80.0  ;;  %7600 = vmatprep.subr.bf16.mxu1 %v13886_v22  ;;  %v13898_v18 = vld [vmem:[%s16995_s0 + $0x4] ss:$12 sps:$4 sm:$0xff]  }
0x134d   : > { %v6979_v10 = vmul.f32 1.442695, %v6967_v30  ;;  %v6968_v62 = vmin.f32 %v6960_v51, 80.0  ;;  %v13923_v22 = vld [vmem:[%s16995_s0 + $0xc8] ss:$12 sps:$4 sm:$0xff]  }
0x134e   : > { %14459 = vpow2.f32 %v6983_v38  ;;  %v6985_v1 = vmul.f32 1.442695, %v6970_v42 }
0x134f   : > { %14461 = vpow2.f32 %v6979_v10  ;;  %v6981_v61 = vmul.f32 1.442695, %v6968_v62 }
0x1350   : > { %v14452_v57 = vpop.eup %14451  ;;  %14463 = vpow2.f32 %v6985_v1 }
0x1351   : > { %v14454_v53 = vpop.eup %14453  ;;  %v6989_v4 = vadd.f32 1.0, %v14452_v57  ;;  %14465 = vpow2.f32 %v6981_v61 }
0x1352   : > { %v14456_v48 = vpop.eup %14455  ;;  %v6987_v31 = vadd.f32 1.0, %v14454_v53 }
0x1353   : > { %v14458_v5 = vpop.eup %14457  ;;  %14467 = vrcp.f32 %v6989_v4  ;;  %v6990_v44 = vadd.f32 1.0, %v14456_v48 }
0x1354   : > { %14469 = vrcp.f32 %v6987_v31  ;;  %v6988_v55 = vadd.f32 1.0, %v14458_v5 }
0x1355   : > { %14471 = vrcp.f32 %v6990_v44 }
0x1356   : > { %14473 = vrcp.f32 %v6988_v55 }
0x1358   : > { %v14460_v27 = vpop.eup %14459 }
0x1359   : > { %v14462_v58 = vpop.eup %14461  ;;  %v6993_v47 = vadd.f32 1.0, %v14460_v27 }
0x135a   : > { %v14464_v54 = vpop.eup %14463  ;;  %v6991_v37 = vadd.f32 1.0, %v14462_v58 }
0x135b   : > { %v14466_v35 = vpop.eup %14465  ;;  %14475 = vrcp.f32 %v6993_v47  ;;  %v6994_v0 = vadd.f32 1.0, %v14464_v54 }
0x135c   : > { %14477 = vrcp.f32 %v6991_v37  ;;  %v6992_v49 = vadd.f32 1.0, %v14466_v35 }
0x135d   : > { %v14468_v46 = vpop.eup %14467  ;;  %14479 = vrcp.f32 %v6994_v0 }
0x135e   : > { %v14470_v20 = vpop.eup %14469  ;;  %14481 = vrcp.f32 %v6992_v49  ;;  %v7005_v7 = vmul.f32 %v14468_v46, %v16066_v12 }
0x135f   : > { %v14472_v29 = vpop.eup %14471  ;;  %v7003_v14 = vmul.f32 %v14470_v20, %v16069_v3 }
0x1360   : > { %v14474_v50 = vpop.eup %14473  ;;  %v7006_v32 = vmul.f32 %v14472_v29, %v16072_v59 }
0x1361   : > { %v7004_v52 = vmul.f32 %v14474_v50, %v16075_v21 }
0x1362   : > { %v7012_v26 = vpack.c.bf16 %v7006_v32, %v7005_v7 }
0x1363   : > { %v7011_v25 = vpack.c.bf16 %v7004_v52, %v7003_v14 }
0x1365   : > { %v14476_v9 = vpop.eup %14475  ;;  %13145 = vmatprep.mubr.bf16.mxu0 %v7011_v25 }
0x1366   : > { %v14478_v23 = vpop.eup %14477  ;;  %13146 = vmatmul.mubr.bf16.vlgmr.msra.gmra.mrb[248].mxu0 %v7012_v26  ;;  %v7009_v12 = vmul.f32 %v14476_v9, %v16078_v43  ;;  %v13872_v43 = vld [vmem:[%s16994_s2 + $0x30] ss:$24 sps:$4 sm:$0xff]   ;;  %v13892_v9 = vld [vmem:[%s16994_s2 + $0x44] ss:$24 sps:$4 sm:$0xff]  }
0x1367   : > { %v14480_v39 = vpop.eup %14479  ;;  %7254 = vmatpush1.bf16.msra.mxu0 %v13863_v2  ;;  %v7007_v3 = vmul.f32 %v14478_v23, %v16081_v45  ;;  %v13883_v45 = vld [vmem:[%s16994_s2 + $0x64] ss:$24 sps:$4 sm:$0xff]   ;;  %v13887_v2 = vld [vmem:[%s16994_s2 + $0x10] ss:$24 sps:$4 sm:$0xff]  }
0x1368   : > { %v14482_v34 = vpop.eup %14481  ;;  %v7010_v59 = vmul.f32 %v14480_v39, %v13128_v17  ;;  %7523 = vmatprep.subr.bf16.mxu0 %v13871_v33  ;;  %v13884_v17 = vld [vmem:[%s16994_s2 + $0x68] ss:$24 sps:$4 sm:$0xff]  }
0x1369   : > { %v7008_v21 = vmul.f32 %v14482_v34, %v6943_v15  ;;  %7601 = vmatpush1.bf16.msra.mxu1 %v13884_v17  ;;  %v13896_v33 = vld [vmem:[%s16995_s0] ss:$12 sps:$4 sm:$0xff]   ;;  %v13901_v23 = vld [vmem:[%s16995_s0 + $0x1c] ss:$12 sps:$4 sm:$0xff]  }
0x136a   : > { %v7014_v28 = vpack.c.bf16 %v7010_v59, %v7009_v12  ;;  %8774 = vmatprep.subr.bf16.mxu1 %v13898_v18  ;;  %v13890_v34 = vld [vmem:[%s16994_s2 + $0x40] ss:$24 sps:$4 sm:$0xff]   ;;  %v13905_v17 = vld [vmem:[%s16995_s0 + $0x48] ss:$12 sps:$4 sm:$0xff]   ;;  %v13910_v18 = vld [vmem:[%s16995_s0 + $0x64] ss:$12 sps:$4 sm:$0xff]  }
0x136b   : > { %v7013_v40 = vpack.c.bf16 %v7008_v21, %v7007_v3  ;;  %v13899_v12 = vld [vmem:[%s16995_s0 + $0x18] ss:$12 sps:$4 sm:$0xff]   ;;  %v13895_v3 = vld [vmem:[%s16994_s2 + $0x74] ss:$24 sps:$4 sm:$0xff]  }
0x136c   : > { %v13904_v21 = vld [vmem:[%s16995_s0 + $0x34] ss:$12 sps:$4 sm:$0xff]  }
0x136d   : > { %13149 = vmatprep.mubr.bf16.mxu0 %v7013_v40 }
0x136e   : > { %13150 = vmatmul.mubr.bf16.gmra.mrb[252].mxu0 %v7014_v28 }
0x136f   : > { %7285 = vmatprep.mubr.bf16.mxu0 %v16982_v56 }
0x1376   : > { %11860 = vmatmul.mubr.msk.bf16.vlgmr.msra.gmra.mrb[0].mxu0 %vm2055_vm2, %v16027_v19  ;;  %v13881_v19 = vld [vmem:[%s16994_s2 + $0x60] ss:$24 sps:$4 sm:$0xff]  }
0x1377   : > { %7295 = vmatprep.mubr.bf16.mxu0 %v16982_v56  ;;  %7524 = vmatpush1.bf16.msra.mxu0 %v13869_v11 }
0x1378   : > { %7525 = vmatprep.subr.bf16.mxu0 %v13874_v63 }
0x137b   : > { %7526 = vmatpush1.bf16.msra.mxu0 %v13872_v43  ;;  %v13893_v43 = vld [vmem:[%s16994_s2 + $0x70] ss:$24 sps:$4 sm:$0xff]  }
0x137c   : > { %7527 = vmatprep.subr.bf16.mxu0 %v13883_v45  ;;  %v13907_v45 = vld [vmem:[%s16995_s0 + $0x4c] ss:$12 sps:$4 sm:$0xff]  }
0x137e   : > { %11861 = vmatmul.mubr.msk.bf16.gmra.mrb[4].mxu0 %vm2055_vm2, %v16033_v6  ;;  %v13889_v6 = vld [vmem:[%s16994_s2 + $0x14] ss:$24 sps:$4 sm:$0xff]  }
0x137f   : > { %7305 = vmatprep.mubr.bf16.mxu0 %v16982_v56  ;;  %7528 = vmatpush1.bf16.msra.mxu0 %v13881_v19  ;;  %v13902_v19 = vld [vmem:[%s16995_s0 + $0x30] ss:$12 sps:$4 sm:$0xff]  }
0x1380   : > { %7669 = vmatprep.subr.bf16.mxu0 %v13889_v6 }
0x1386   : > { %11862 = vmatmul.mubr.msk.bf16.gmra.mrb[8].mxu0 %vm2055_vm2, %v16039_v16  ;;  %v16114_v16 = vpop.f32.mrb[152].mxu1 }
0x1387   : > { %7315 = vmatprep.mubr.bf16.mxu0 %v16982_v56  ;;  %v16116_v24 = vpop.f32.mrb[153].mxu1 }
0x1388   : > { %v16118_v15 = vpop.f32.mrb[154].mxu1 }
0x138e   : > { %11863 = vmatmul.mubr.msk.bf16.gmra.mrb[12].mxu0 %vm2055_vm2, %v16046_v36  ;;  %v16120_v36 = vpop.f32.mrb[155].mxu1 }
0x138f   : > { %7555 = vmatprep.mubr.bf16.mxu0 %v16982_v56  ;;  %v16122_v30 = vpop.f32.mrb[156].mxu1 }
0x1390   : > { %v16124_v51 = vpop.f32.mrb[157].mxu1 }
0x1391   : > { %v16126_v38 = vpop.f32.mrb[158].mxu1 }
0x1392   : > { %v16128_v42 = vpop.f32.mrb[159].mxu1 }
0x1393   : > { %v16130_v10 = vpop.f32.mrb[160].mxu1 }
0x1394   : > { %v16132_v62 = vpop.f32.mrb[161].mxu1 }
0x1395   : > { %v16134_v1 = vpop.f32.mrb[162].mxu1 }
0x1396   : > { %v16136_v61 = vpop.f32.mrb[163].mxu1 }
0x1397   : > { %v16138_v57 = vpop.f32.mrb[164].mxu1 }
0x1398   : > { %v16140_v53 = vpop.f32.mrb[165].mxu1 }
0x1399   : > { %v16142_v4 = vpop.f32.mrb[166].mxu1 }
0x139a   : > { %v16144_v48 = vpop.f32.mrb[167].mxu1 }
0x139b   : > { %v16146_v31 = vpop.f32.mrb[168].mxu1 }
0x139c   : > { %v16148_v5 = vpop.f32.mrb[169].mxu1 }
0x139d   : > { %v16150_v44 = vpop.f32.mrb[170].mxu1 }
0x139e   : > { %v16152_v55 = vpop.f32.mrb[171].mxu1 }
0x139f   : > { %v16154_v27 = vpop.f32.mrb[172].mxu1 }
0x13a0   : > { %v16156_v58 = vpop.f32.mrb[173].mxu1 }
0x13a1   : > { %v16158_v47 = vpop.f32.mrb[174].mxu1 }
0x13a2   : > { %v16160_v54 = vpop.f32.mrb[175].mxu1 }
0x13a3   : > { %v16162_v37 = vpop.f32.mrb[176].mxu1 }
0x13a4   : > { %v16164_v35 = vpop.f32.mrb[177].mxu1 }
0x13a5   : > { %v16166_v0 = vpop.f32.mrb[178].mxu1 }
0x13a6   : > { %v16168_v49 = vpop.f32.mrb[179].mxu1 }
0x13a7   : > { %v16170_v46 = vpop.f32.mrb[180].mxu1 }
0x13a8   : > { %v16172_v20 = vpop.f32.mrb[181].mxu1 }
0x13a9   : > { %v16174_v29 = vpop.f32.mrb[182].mxu1 }
0x13aa   : > { %v16176_v50 = vpop.f32.mrb[183].mxu1 }
0x13ab   : > { %16996 = vst [vmem:[#allocation30_spill] sm:$0xff] %v16176_v50 }
0x1439   : > { %v13147_v7 = vpop.f32.mrb[248].mxu0 }
0x143a   : > { %v7113_v32 = vpop.f32.mrb[249].mxu0 }
0x143b   : > { %v13148_v14 = vpop.f32.mrb[250].mxu0 }
0x143c   : > { %v16178_v52 = vpack.c.bf16 %v13148_v14, %v13147_v7  ;;  %v7116_v26 = vpop.f32.mrb[251].mxu0 }
0x143d   : > { %v16180_v25 = vpack.c.bf16 %v7116_v26, %v7113_v32  ;;  %v13908_v26 = vld [vmem:[%s16995_s0 + $0x60] ss:$12 sps:$4 sm:$0xff]  }
0x143f   : > { %11886 = vmatmul.mubr.msk.bf16.vlgmr.msra.gmra.mrb[16].mxu0 %vm4078_vm7, %v16180_v25  ;;  %11890 = vmatmul.mubr.msk.bf16.vlgmr.msra.gmra.mrb[184].mxu1 %vm4078_vm7, %v16180_v25 }
0x1440   : > { %7565 = vmatprep.mubr.bf16.mxu0 %v16982_v56  ;;  %7638 = vmatprep.mubr.bf16.mxu1 %v16982_v56 }
0x1441   : > { %v13151_v39 = vpop.f32.mrb[252].mxu0  ;;  %7670 = vmatpush1.bf16.msra.mxu0 %v13887_v2  ;;  %8775 = vmatpush1.bf16.msra.mxu1 %v13896_v33  ;;  %v13913_v2 = vld [vmem:[%s16995_s0 + $0x7c] ss:$12 sps:$4 sm:$0xff]   ;;  %v13911_v33 = vld [vmem:[%s16995_s0 + $0x78] ss:$12 sps:$4 sm:$0xff]  }
0x1442   : > { %v7129_v59 = vpop.f32.mrb[253].mxu0  ;;  %7671 = vmatprep.subr.bf16.mxu0 %v13892_v9  ;;  %8776 = vmatprep.subr.bf16.mxu1 %v13901_v23  ;;  %v13916_v23 = vld [vmem:[%s16995_s0 + $0x94] ss:$12 sps:$4 sm:$0xff]  }
0x1443   : > { %v13152_v28 = vpop.f32.mrb[254].mxu0 }
0x1444   : > { %v16196_v40 = vpack.c.bf16 %v13152_v28, %v13151_v39  ;;  %v7132_v11 = vpop.f32.mrb[255].mxu0 }
0x1445   : > { %v16198_v63 = vpack.c.bf16 %v7132_v11, %v7129_v59  ;;  %7672 = vmatpush1.bf16.msra.mxu0 %v13890_v34  ;;  %8777 = vmatpush1.bf16.msra.mxu1 %v13899_v12  ;;  %v13914_v59 = vld [vmem:[%s16995_s0 + $0x90] ss:$12 sps:$4 sm:$0xff]  }
0x1446   : > { %7673 = vmatprep.subr.bf16.mxu0 %v13895_v3  ;;  %8778 = vmatprep.subr.bf16.mxu1 %v13904_v21  ;;  %v13919_v3 = vld [vmem:[%s16995_s0 + $0xac] ss:$12 sps:$4 sm:$0xff]   ;;  %v13917_v21 = vld [vmem:[%s16995_s0 + $0xa8] ss:$12 sps:$4 sm:$0xff]   ;;  %v13922_v11 = vld [vmem:[%s16995_s0 + $0xc4] ss:$12 sps:$4 sm:$0xff]  }
0x1447   : > { %11887 = vmatmul.mubr.msk.bf16.gmra.mrb[20].mxu0 %vm4078_vm7, %v16178_v52  ;;  %11891 = vmatmul.mubr.msk.bf16.gmra.mrb[188].mxu1 %vm4078_vm7, %v16178_v52 }
0x1448   : > { %7575 = vmatprep.mubr.bf16.mxu0 %v16982_v56  ;;  %7648 = vmatprep.mubr.bf16.mxu1 %v16982_v56 }
0x1449   : > { %7674 = vmatpush1.bf16.msra.mxu0 %v13893_v43  ;;  %8779 = vmatpush1.bf16.msra.mxu1 %v13902_v19  ;;  %v16211_v6 = vpop.f32.mrb[0].mxu0 }
0x144a   : > { %8780 = vmatprep.subr.bf16.mxu1 %v13907_v45  ;;  %v16214_v7 = vpop.f32.mrb[1].mxu0  ;;  %12545 = vmatprep.subr.bf16.mxu0 %v13923_v22  ;;  %v13924_v45 = vld [vmem:[%s16995_s0 + $0x8] ss:$12 sps:$4 sm:$0xff]  }
0x144b   : > { %v16216_v32 = vpop.f32.mrb[2].mxu0 }
0x144c   : > { %v16218_v14 = vpop.f32.mrb[3].mxu0 }
0x144d   : > { %8781 = vmatpush1.bf16.msra.mxu1 %v13905_v17  ;;  %v13920_v17 = vld [vmem:[%s16995_s0 + $0xc0] ss:$12 sps:$4 sm:$0xff]  }
0x144e   : > { %8782 = vmatprep.subr.bf16.mxu1 %v13910_v18  ;;  %v13928_v18 = vld [vmem:[%s16995_s0 + $0xe0] ss:$12 sps:$4 sm:$0xff]  }
0x144f   : > { %11888 = vmatmul.mubr.msk.bf16.gmra.mrb[24].mxu0 %vm4078_vm7, %v16198_v63  ;;  %11892 = vmatmul.mubr.msk.bf16.gmra.mrb[192].mxu1 %vm4078_vm7, %v16198_v63 }
0x1450   : > { %7585 = vmatprep.mubr.bf16.mxu0 %v16982_v56  ;;  %7658 = vmatprep.mubr.bf16.mxu1 %v16982_v56 }
0x1451   : > { %8783 = vmatpush1.bf16.msra.mxu1 %v13908_v26  ;;  %v16229_v9 = vpop.f32.mrb[4].mxu0  ;;  %v13927_v26 = vld [vmem:[%s16995_s0 + $0xdc] ss:$12 sps:$4 sm:$0xff]  }
0x1452   : > { %8784 = vmatprep.subr.bf16.mxu1 %v13913_v2  ;;  %v16232_v39 = vpop.f32.mrb[5].mxu0  ;;  %v13929_v2 = vld [vmem:[%s16995_s0 + $0x20] ss:$12 sps:$4 sm:$0xff]  }
0x1453   : > { %v16234_v34 = vpop.f32.mrb[6].mxu0 }
0x1454   : > { %v16236_v12 = vpop.f32.mrb[7].mxu0 }
0x1455   : > { %8785 = vmatpush1.bf16.msra.mxu1 %v13911_v33  ;;  %v13925_v33 = vld [vmem:[%s16995_s0 + $0xd8] ss:$12 sps:$4 sm:$0xff]  }
0x1456   : > { %8786 = vmatprep.subr.bf16.mxu1 %v13916_v23  ;;  %v13933_v23 = vld [vmem:[%s16995_s0 + $0xf8] ss:$12 sps:$4 sm:$0xff]  }
0x1457   : > { %11889 = vmatmul.mubr.msk.bf16.gmra.mrb[28].mxu0 %vm4078_vm7, %v16196_v40  ;;  %11893 = vmatmul.mubr.msk.bf16.gmra.mrb[196].mxu1 %vm4078_vm7, %v16196_v40 }
0x1458   : > { %7701 = vmatprep.mubr.bf16.mxu0 %v16982_v56 }
0x1459   : > { %8787 = vmatpush1.bf16.msra.mxu1 %v13914_v59  ;;  %v16246_v28 = vpop.f32.mrb[8].mxu0 }
0x145a   : > { %8788 = vmatprep.subr.bf16.mxu1 %v13919_v3  ;;  %v16249_v43 = vpop.f32.mrb[9].mxu0  ;;  %v13932_v3 = vld [vmem:[%s16995_s0 + $0xf4] ss:$12 sps:$4 sm:$0xff]  }
0x145b   : > { %v16251_v19 = vpop.f32.mrb[10].mxu0 }
0x145c   : > { %v16254_v22 = vpop.f32.mrb[11].mxu0 }
0x145d   : > { %8789 = vmatpush1.bf16.msra.mxu1 %v13917_v21 }
0x145e   : > { %8790 = vmatprep.subr.bf16.mxu1 %v13922_v11  ;;  %v13934_v11 = vld [vmem:[%s16995_s0 + $0x38] ss:$12 sps:$4 sm:$0xff]  }
0x145f   : > { %11894 = vmatmul.mubr.msk.bf16.vlgmr.msra.gmra.mrb[32].mxu0 %vm4078_vm7, %v16180_v25 }
0x1460   : > { %7711 = vmatprep.mubr.bf16.mxu0 %v16982_v56  ;;  %12546 = vmatpush3.bf16.msra.mxu0 %v13924_v45 }
0x1461   : > { %8791 = vmatpush1.bf16.msra.mxu1 %v13920_v17  ;;  %12547 = vmatprep.subr.bf16.mxu0 %v13928_v18  ;;  %v16265_v59 = vpop.f32.mrb[12].mxu0  ;;  %v13930_v17 = vld [vmem:[%s16995_s0 + $0xf0] ss:$12 sps:$4 sm:$0xff]  }
0x1462   : > { %8792 = vmatprep.subr.bf16.mxu1 %v13927_v26  ;;  %v16268_v21 = vpop.f32.mrb[13].mxu0  ;;  %v13938_v18 = vld [vmem:[%s16995_s0 + $0x110] ss:$12 sps:$4 sm:$0xff]   ;;  %v13937_v26 = vld [vmem:[%s16995_s0 + $0x10c] ss:$12 sps:$4 sm:$0xff]  }
0x1463   : > { %v16270_v25 = vpop.f32.mrb[14].mxu0 }
0x1464   : > { %12548 = vmatpush3.bf16.msra.mxu0 %v13929_v2  ;;  %v16273_v45 = vpop.f32.mrb[15].mxu0  ;;  %v13939_v2 = vld [vmem:[%s16995_s0 + $0x50] ss:$12 sps:$4 sm:$0xff]  }
0x1465   : > { %8793 = vmatpush1.bf16.msra.mxu1 %v13925_v33  ;;  %12549 = vmatprep.subr.bf16.mxu0 %v13933_v23  ;;  %v13943_v33 = vld [vmem:[%s16995_s0 + $0x128] ss:$12 sps:$4 sm:$0xff]   ;;  %v13942_v23 = vld [vmem:[%s16995_s0 + $0x124] ss:$12 sps:$4 sm:$0xff]  }
0x1466   : > { %8794 = vmatprep.subr.bf16.mxu1 %v13932_v3  ;;  %v13944_v3 = vld [vmem:[%s16995_s0 + $0x68] ss:$12 sps:$4 sm:$0xff]  }
0x1467   : > { %11895 = vmatmul.mubr.msk.bf16.gmra.mrb[36].mxu0 %vm4078_vm7, %v16178_v52  ;;  %v13948_v52 = vld [vmem:[%s16995_s0 + $0x140] ss:$12 sps:$4 sm:$0xff]  }
0x1468   : > { %7721 = vmatprep.mubr.bf16.mxu0 %v16982_v56  ;;  %12550 = vmatpush3.bf16.msra.mxu0 %v13934_v11  ;;  %v13947_v11 = vld [vmem:[%s16995_s0 + $0x13c] ss:$12 sps:$4 sm:$0xff]  }
0x1469   : > { %8795 = vmatpush1.bf16.msra.mxu1 %v13930_v17  ;;  %12551 = vmatprep.subr.bf16.mxu0 %v13938_v18  ;;  %v13949_v17 = vld [vmem:[%s16995_s0 + $0x80] ss:$12 sps:$4 sm:$0xff]  }
0x146a   : > { %8796 = vmatprep.subr.bf16.mxu1 %v13937_v26  ;;  %v13952_v18 = vld [vmem:[%s16995_s0 + $0x154] ss:$12 sps:$4 sm:$0xff]   ;;  %v13950_v26 = vld [vmem:[%s16995_s0 + $0x150] ss:$12 sps:$4 sm:$0xff]  }
0x146c   : > { %12552 = vmatpush3.bf16.msra.mxu0 %v13939_v2  ;;  %v13954_v2 = vld [vmem:[%s16995_s0 + $0x98] ss:$12 sps:$4 sm:$0xff]  }
0x146d   : > { %8797 = vmatpush1.bf16.msra.mxu1 %v13935_v41  ;;  %12553 = vmatprep.subr.bf16.mxu0 %v13943_v33  ;;  %v13945_v41 = vld [vmem:[%s16995_s0 + $0x138] ss:$12 sps:$4 sm:$0xff]   ;;  %v13958_v33 = vld [vmem:[%s16995_s0 + $0x170] ss:$12 sps:$4 sm:$0xff]  }
0x146e   : > { %8798 = vmatprep.subr.bf16.mxu1 %v13942_v23  ;;  %v13955_v23 = vld [vmem:[%s16995_s0 + $0x168] ss:$12 sps:$4 sm:$0xff]  }
0x146f   : > { %11896 = vmatmul.mubr.msk.bf16.gmra.mrb[40].mxu0 %vm4078_vm7, %v16198_v63  ;;  %v13953_v63 = vld [vmem:[%s16995_s0 + $0x158] ss:$12 sps:$4 sm:$0xff]  }
0x1470   : > { %7731 = vmatprep.mubr.bf16.mxu0 %v16982_v56  ;;  %12554 = vmatpush3.bf16.msra.mxu0 %v13944_v3  ;;  %v13959_v3 = vld [vmem:[%s16995_s0 + $0xb0] ss:$12 sps:$4 sm:$0xff]  }
0x1471   : > { %8799 = vmatpush1.bf16.msra.mxu1 %v13940_v8  ;;  %12555 = vmatprep.subr.bf16.mxu0 %v13948_v52  ;;  %v13957_v8 = vld [vmem:[%s16995_s0 + $0x16c] ss:$12 sps:$4 sm:$0xff]   ;;  %v13962_v52 = vld [vmem:[%s16995_s0 + $0x184] ss:$12 sps:$4 sm:$0xff]   ;;  %v13967_v56 = vld [vmem:[%s16995_s0 + $0x19c] ss:$12 sps:$4 sm:$0xff]  }
0x1472   : > { %8800 = vmatprep.subr.bf16.mxu1 %v13947_v11 }
0x1474   : > { %12556 = vmatpush3.bf16.msra.mxu0 %v13949_v17 }
0x1475   : > { %8801 = vmatpush1.bf16.msra.mxu1 %v13945_v41  ;;  %12557 = vmatprep.subr.bf16.mxu0 %v13953_v63 }
0x1476   : > { %8802 = vmatprep.subr.bf16.mxu1 %v13952_v18 }
0x1477   : > { %11897 = vmatmul.mubr.msk.bf16.gmra.mrb[44].mxu0 %vm4078_vm7, %v16196_v40  ;;  %v13963_v40 = vld [vmem:[%s16995_s0 + $0x248] ss:$12 sps:$4 sm:$0xff]  }
0x1478   : > { %12558 = vmatpush3.bf16.msra.mxu0 %v13954_v2 }
0x1479   : > { %8803 = vmatpush1.bf16.msra.mxu1 %v13950_v26  ;;  %12559 = vmatprep.subr.bf16.mxu0 %v13958_v33 }
0x147a   : > { %8804 = vmatprep.subr.bf16.mxu1 %v13957_v8 }
0x147c   : > { %12560 = vmatpush3.bf16.msra.mxu0 %v13959_v3 }
0x147d   : > { %8805 = vmatpush1.bf16.msra.mxu1 %v13955_v23  ;;  %12585 = vmatprep.subr.bf16.mxu0 %v13963_v40 }
0x147e   : > { %8847 = vmatprep.subr.bf16.mxu1 %v13962_v52 }
0x1512   : > { %v7557_v11 = vpop.f32.mrb[16].mxu0  ;;  %v7630_v17 = vpop.f32.mrb[184].mxu1 }
0x1513   : > { %v7742_v41 = vmul.f32 %v7557_v11, %v16114_v16  ;;  %v7744_v18 = vmul.f32 %v7630_v17, %v16211_v6  ;;  %v7559_v63 = vpop.f32.mrb[17].mxu0  ;;  %v7632_v26 = vpop.f32.mrb[185].mxu1 }
0x1514   : > { %v7743_v2 = vmul.f32 %v7559_v63, %v16116_v24  ;;  %v7745_v8 = vmul.f32 %v7632_v26, %v16214_v7  ;;  %v7561_v33 = vpop.f32.mrb[18].mxu0  ;;  %v7634_v23 = vpop.f32.mrb[186].mxu1  ;;  %v13960_v7 = vld [vmem:[%s16995_s0 + $0x180] ss:$12 sps:$4 sm:$0xff]   ;;  %v13964_v26 = vld [vmem:[%s16995_s0 + $0x188] ss:$12 sps:$4 sm:$0xff]  }
0x1515   : > { %v7748_v3 = vmul.f32 %v7561_v33, %v16118_v15  ;;  %v7750_v52 = vmul.f32 %v7634_v23, %v16216_v32  ;;  %v7563_v40 = vpop.f32.mrb[19].mxu0  ;;  %v7636_v16 = vpop.f32.mrb[187].mxu1  ;;  %v13965_v23 = vld [vmem:[%s16995_s0 + $0x198] ss:$12 sps:$4 sm:$0xff]  }
0x1516   : > { %v7749_v6 = vmul.f32 %v7563_v40, %v16120_v36  ;;  %v7751_v11 = vmul.f32 %v7636_v16, %v16218_v14 }
0x1517   : > { %v7790_v17 = vpack.c.bf16 %v7748_v3, %v7742_v41  ;;  %v16314_v13 = vpack.c.bf16 %v7750_v52, %v7744_v18  ;;  %v13969_v3 = vld [vmem:[%s16995_s0 + $0x1a0] ss:$12 sps:$4 sm:$0xff]  }
0x1518   : > { %v7791_v24 = vpack.c.bf16 %v7749_v6, %v7743_v2  ;;  %v16316_v63 = vpack.c.bf16 %v7751_v11, %v7745_v8 }
0x151a   : > { %v7567_v50 = vpop.f32.mrb[20].mxu0  ;;  %v7640_v15 = vpop.f32.mrb[188].mxu1  ;;  %8806 = vmatprep.mubr.bf16.mxu1 %v7791_v24  ;;  %9025 = vmatprep.mubr.bf16.mxu0 %v7791_v24  ;;  %v13974_v24 = vld [vmem:[%s16995_s0 + $0x1b8] ss:$12 sps:$4 sm:$0xff]  }
0x151b   : > { %v7754_v36 = vmul.f32 %v7567_v50, %v16122_v30  ;;  %v7756_v32 = vmul.f32 %v7640_v15, %v16229_v9  ;;  %v7569_v14 = vpop.f32.mrb[21].mxu0  ;;  %v7642_v41 = vpop.f32.mrb[189].mxu1  ;;  %8807 = vmatmul.mubr.bf16.vlgmr.msra.gmra.mrb[200].mxu1 %v7790_v17  ;;  %9026 = vmatmul.mubr.bf16.vlgmr.msra.gmra.mrb[48].mxu0 %v7790_v17 }
0x151c   : > { %v7755_v18 = vmul.f32 %v7569_v14, %v16124_v51  ;;  %v7757_v2 = vmul.f32 %v7642_v41, %v16232_v39  ;;  %8848 = vmatpush1.bf16.msra.mxu1 %v13960_v7  ;;  %12586 = vmatpush3.bf16.msra.mxu0 %v13964_v26  ;;  %v7571_v8 = vpop.f32.mrb[22].mxu0  ;;  %v7644_v33 = vpop.f32.mrb[190].mxu1  ;;  %v13972_v51 = vld [vmem:[%s16995_s0 + $0x1b4] ss:$12 sps:$4 sm:$0xff]   ;;  %v13973_v39 = vld [vmem:[%s16995_s0 + $0x278] ss:$12 sps:$4 sm:$0xff]  }
0x151d   : > { %v7760_v30 = vmul.f32 %v7571_v8, %v16126_v38  ;;  %v7762_v50 = vmul.f32 %v7644_v33, %v16234_v34  ;;  %v7573_v9 = vpop.f32.mrb[23].mxu0  ;;  %v7646_v52 = vpop.f32.mrb[191].mxu1  ;;  %8849 = vmatprep.subr.bf16.mxu1 %v13967_v56  ;;  %12587 = vmatprep.subr.bf16.mxu0 %v13968_v60  ;;  %v13970_v34 = vld [vmem:[%s16995_s0 + $0x1b0] ss:$12 sps:$4 sm:$0xff]   ;;  %v13977_v56 = vld [vmem:[%s16995_s0 + $0x1cc] ss:$12 sps:$4 sm:$0xff]  }
0x151e   : > { %v7761_v40 = vmul.f32 %v7573_v9, %v16128_v42  ;;  %v7763_v16 = vmul.f32 %v7646_v52, %v16236_v12  ;;  %v13978_v60 = vld [vmem:[%s16995_s0 + $0x290] ss:$12 sps:$4 sm:$0xff]  }
0x151f   : > { %v7796_v6 = vpack.c.bf16 %v7760_v30, %v7754_v36  ;;  %v16334_v11 = vpack.c.bf16 %v7762_v50, %v7756_v32  ;;  %v13979_v8 = vld [vmem:[%s16995_s0 + $0x1d0] ss:$12 sps:$4 sm:$0xff]  }
0x1520   : > { %v7797_v38 = vpack.c.bf16 %v7761_v40, %v7755_v18  ;;  %v16336_v17 = vpack.c.bf16 %v7763_v16, %v7757_v2  ;;  %8850 = vmatpush1.bf16.msra.mxu1 %v13965_v23  ;;  %12588 = vmatpush3.bf16.msra.mxu0 %v13969_v3  ;;  %v13975_v2 = vld [vmem:[%s16995_s0 + $0x1c8] ss:$12 sps:$4 sm:$0xff]   ;;  %v13988_v40 = vld [vmem:[%s16995_s0 + $0x2c0] ss:$12 sps:$4 sm:$0xff]  }
0x1521   : > { %8851 = vmatprep.subr.bf16.mxu1 %v13972_v51  ;;  %12589 = vmatprep.subr.bf16.mxu0 %v13973_v39  ;;  %v13984_v51 = vld [vmem:[%s16995_s0 + $0x1e8] ss:$12 sps:$4 sm:$0xff]  }
0x1522   : > { %v7577_v7 = vpop.f32.mrb[24].mxu0  ;;  %v7650_v26 = vpop.f32.mrb[192].mxu1  ;;  %8816 = vmatprep.mubr.bf16.mxu1 %v7797_v38  ;;  %9033 = vmatprep.mubr.bf16.mxu0 %v7797_v38  ;;  %v13987_v39 = vld [vmem:[%s16995_s0 + $0x1fc] ss:$12 sps:$4 sm:$0xff]  }
0x1523   : > { %v7766_v42 = vmul.f32 %v7577_v7, %v16130_v10  ;;  %v7768_v12 = vmul.f32 %v7650_v26, %v16246_v28  ;;  %v7579_v15 = vpop.f32.mrb[25].mxu0  ;;  %v7652_v36 = vpop.f32.mrb[193].mxu1  ;;  %8817 = vmatmul.mubr.bf16.gmra.mrb[204].mxu1 %v7796_v6  ;;  %9034 = vmatmul.mubr.bf16.gmra.mrb[52].mxu0 %v7796_v6  ;;  %v13985_v26 = vld [vmem:[%s16995_s0 + $0x1f8] ss:$12 sps:$4 sm:$0xff]  }
0x1524   : > { %v7767_v32 = vmul.f32 %v7579_v15, %v16132_v62  ;;  %v7769_v14 = vmul.f32 %v7652_v36, %v16249_v43  ;;  %8852 = vmatpush1.bf16.msra.mxu1 %v13970_v34  ;;  %12590 = vmatpush3.bf16.msra.mxu0 %v13974_v24  ;;  %v7581_v41 = vpop.f32.mrb[26].mxu0  ;;  %v7654_v18 = vpop.f32.mrb[194].mxu1  ;;  %v13982_v62 = vld [vmem:[%s16995_s0 + $0x1e4] ss:$12 sps:$4 sm:$0xff]   ;;  %v13983_v43 = vld [vmem:[%s16995_s0 + $0x2a8] ss:$12 sps:$4 sm:$0xff]  }
0x1525   : > { %v7772_v10 = vmul.f32 %v7581_v41, %v16134_v1  ;;  %v7774_v28 = vmul.f32 %v7654_v18, %v16251_v19  ;;  %v7583_v33 = vpop.f32.mrb[27].mxu0  ;;  %v7656_v23 = vpop.f32.mrb[195].mxu1  ;;  %8853 = vmatprep.subr.bf16.mxu1 %v13977_v56  ;;  %12591 = vmatprep.subr.bf16.mxu0 %v13978_v60  ;;  %v13980_v19 = vld [vmem:[%s16995_s0 + $0x1e0] ss:$12 sps:$4 sm:$0xff]  }
0x1526   : > { %v7773_v3 = vmul.f32 %v7583_v33, %v16136_v61  ;;  %v7775_v30 = vmul.f32 %v7656_v23, %v16254_v22  ;;  %v13992_v36 = vld [vmem:[%s16995_s0 + $0x214] ss:$12 sps:$4 sm:$0xff]  }
0x1527   : > { %v7802_v50 = vpack.c.bf16 %v7772_v10, %v7766_v42  ;;  %v16354_v9 = vpack.c.bf16 %v7774_v28, %v7768_v12  ;;  %v13989_v42 = vld [vmem:[%s16995_s0 + $0x200] ss:$12 sps:$4 sm:$0xff]  }
0x1528   : > { %v7803_v1 = vpack.c.bf16 %v7773_v3, %v7767_v32  ;;  %v16356_v52 = vpack.c.bf16 %v7775_v30, %v7769_v14  ;;  %8854 = vmatpush1.bf16.msra.mxu1 %v13975_v2  ;;  %12592 = vmatpush3.bf16.msra.mxu0 %v13979_v8  ;;  %v13994_v2 = vld [vmem:[%s16995_s0 + $0x218] ss:$12 sps:$4 sm:$0xff]  }
0x1529   : > { %8855 = vmatprep.subr.bf16.mxu1 %v13982_v62  ;;  %12593 = vmatprep.subr.bf16.mxu0 %v13983_v43  ;;  %v13995_v62 = vld [vmem:[%s16995_s0 + $0x228] ss:$12 sps:$4 sm:$0xff]   ;;  %v13999_v43 = vld [vmem:[%s16995_s0 + $0x230] ss:$12 sps:$4 sm:$0xff]  }
0x152a   : > { %v7587_v16 = vpop.f32.mrb[28].mxu0  ;;  %v7660_v6 = vpop.f32.mrb[196].mxu1  ;;  %8826 = vmatprep.mubr.bf16.mxu1 %v7803_v1  ;;  %9041 = vmatprep.mubr.bf16.mxu0 %v7803_v1  ;;  %v14002_v30 = vld [vmem:[%s16995_s0 + $0x244] ss:$12 sps:$4 sm:$0xff]  }
0x152b   : > { %v7778_v61 = vmul.f32 %v7587_v16, %v16138_v57  ;;  %v7780_v22 = vmul.f32 %v7660_v6, %v16265_v59  ;;  %v7589_v38 = vpop.f32.mrb[29].mxu0  ;;  %v7662_v34 = vpop.f32.mrb[197].mxu1  ;;  %8827 = vmatmul.mubr.bf16.gmra.mrb[208].mxu1 %v7802_v50  ;;  %9042 = vmatmul.mubr.bf16.gmra.mrb[56].mxu0 %v7802_v50  ;;  %v14003_v50 = vld [vmem:[%s16995_s0 + $0x3c8] ss:$12 sps:$4 sm:$0xff]  }
0x152c   : > { %v7779_v24 = vmul.f32 %v7589_v38, %v16140_v53  ;;  %v7781_v56 = vmul.f32 %v7662_v34, %v16268_v21  ;;  %8856 = vmatpush1.bf16.msra.mxu1 %v13980_v19  ;;  %12594 = vmatpush3.bf16.msra.mxu0 %v13984_v51  ;;  %v7591_v60 = vpop.f32.mrb[30].mxu0  ;;  %v7664_v7 = vpop.f32.mrb[198].mxu1  ;;  %v13993_v53 = vld [vmem:[%s16995_s0 + $0x2d8] ss:$12 sps:$4 sm:$0xff]   ;;  %v14004_v51 = vld [vmem:[%s16995_s0 + $0x308] ss:$12 sps:$4 sm:$0xff]  }
0x152d   : > { %v7784_v57 = vmul.f32 %v7591_v60, %v16142_v4  ;;  %v7786_v59 = vmul.f32 %v7664_v7, %v16270_v25  ;;  %v7593_v12 = vpop.f32.mrb[31].mxu0  ;;  %v7666_v15 = vpop.f32.mrb[199].mxu1  ;;  %8857 = vmatprep.subr.bf16.mxu1 %v13987_v39  ;;  %12595 = vmatprep.subr.bf16.mxu0 %v13988_v40  ;;  %v13990_v25 = vld [vmem:[%s16995_s0 + $0x210] ss:$12 sps:$4 sm:$0xff]   ;;  %v14008_v40 = vld [vmem:[%s16995_s0 + $0x3e0] ss:$12 sps:$4 sm:$0xff]  }
0x152e   : > { %v7785_v21 = vmul.f32 %v7593_v12, %v16144_v48  ;;  %v7787_v32 = vmul.f32 %v7666_v15, %v16273_v45  ;;  %v13997_v48 = vld [vmem:[%s16995_s0 + $0x22c] ss:$12 sps:$4 sm:$0xff]   ;;  %v13998_v45 = vld [vmem:[%s16995_s0 + $0x2f0] ss:$12 sps:$4 sm:$0xff]  }
0x152f   : > { %v7808_v14 = vpack.c.bf16 %v7784_v57, %v7778_v61  ;;  %v16374_v41 = vpack.c.bf16 %v7786_v59, %v7780_v22  ;;  %v14005_v22 = vld [vmem:[%s16995_s0 + $0x258] ss:$12 sps:$4 sm:$0xff]   ;;  %v14009_v38 = vld [vmem:[%s16995_s0 + $0x320] ss:$12 sps:$4 sm:$0xff]   ;;  %v14018_v59 = vld [vmem:[%s16995_s0 + $0x410] ss:$12 sps:$4 sm:$0xff]  }
0x1530   : > { %v7809_v4 = vpack.c.bf16 %v7785_v21, %v7779_v24  ;;  %v16376_v18 = vpack.c.bf16 %v7787_v32, %v7781_v56  ;;  %8858 = vmatpush1.bf16.msra.mxu1 %v13985_v26  ;;  %12596 = vmatpush3.bf16.msra.mxu0 %v13989_v42  ;;  %v14013_v56 = vld [vmem:[%s16995_s0 + $0x3f8] ss:$12 sps:$4 sm:$0xff]   ;;  %v14019_v21 = vld [vmem:[%s16995_s0 + $0x350] ss:$12 sps:$4 sm:$0xff]  }
0x1531   : > { %8859 = vmatprep.subr.bf16.mxu1 %v13992_v36  ;;  %12597 = vmatprep.subr.bf16.mxu0 %v13993_v53  ;;  %v14014_v26 = vld [vmem:[%s16995_s0 + $0x338] ss:$12 sps:$4 sm:$0xff]   ;;  %v14015_v53 = vld [vmem:[%s16995_s0 + $0x288] ss:$12 sps:$4 sm:$0xff]  }
0x1532   : > { %v7703_v8 = vpop.f32.mrb[32].mxu0  ;;  %8836 = vmatprep.mubr.bf16.mxu1 %v7809_v4  ;;  %9049 = vmatprep.mubr.bf16.mxu0 %v7809_v4  ;;  %v14017_v42 = vld [vmem:[%s16995_s0 + $0x28c] ss:$12 sps:$4 sm:$0xff]   ;;  %v14023_v4 = vld [vmem:[%s16995_s0 + $0x428] ss:$12 sps:$4 sm:$0xff]  }
0x1533   : > { %v7746_v10 = vmul.f32 %v7703_v8, %v16146_v31  ;;  %v7705_v28 = vpop.f32.mrb[33].mxu0  ;;  %8837 = vmatmul.mubr.bf16.gmra.mrb[212].mxu1 %v7808_v14  ;;  %9050 = vmatmul.mubr.bf16.gmra.mrb[60].mxu0 %v7808_v14  ;;  %v14024_v8 = vld [vmem:[%s16995_s0 + $0x368] ss:$12 sps:$4 sm:$0xff]  }
0x1534   : > { %v7747_v33 = vmul.f32 %v7705_v28, %v16148_v5  ;;  %8860 = vmatpush1.bf16.msra.mxu1 %v13990_v25  ;;  %12598 = vmatpush3.bf16.msra.mxu0 %v13994_v2  ;;  %v7707_v23 = vpop.f32.mrb[34].mxu0 }
0x1535   : > { %v7752_v3 = vmul.f32 %v7707_v23, %v16150_v44  ;;  %8879 = vmatprep.mubr.bf16.mxu1 %v16316_v63  ;;  %9090 = vmatprep.mubr.bf16.mxu0 %v16316_v63  ;;  %v7709_v31 = vpop.f32.mrb[35].mxu0  ;;  %v14000_v44 = vld [vmem:[%s16995_s0 + $0x240] ss:$12 sps:$4 sm:$0xff]   ;;  %v14007_v63 = vld [vmem:[%s16995_s0 + $0x25c] ss:$12 sps:$4 sm:$0xff]  }
0x1536   : > { %v7753_v5 = vmul.f32 %v7709_v31, %v16152_v55  ;;  %8861 = vmatprep.subr.bf16.mxu1 %v13997_v48  ;;  %12599 = vmatprep.subr.bf16.mxu0 %v13998_v45  ;;  %v14027_v48 = vld [vmem:[%s16995_s0 + $0x2bc] ss:$12 sps:$4 sm:$0xff]  }
0x1537   : > { %v16392_v1 = vpack.c.bf16 %v7752_v3, %v7746_v10  ;;  %v14028_v10 = vld [vmem:[%s16995_s0 + $0x440] ss:$12 sps:$4 sm:$0xff]  }
0x1538   : > { %v16394_v19 = vpack.c.bf16 %v7753_v5, %v7747_v33  ;;  %8862 = vmatpush1.bf16.msra.mxu1 %v13995_v62  ;;  %12600 = vmatpush3.bf16.msra.mxu0 %v13999_v43  ;;  %v14025_v62 = vld [vmem:[%s16995_s0 + $0x2b8] ss:$12 sps:$4 sm:$0xff]   ;;  %v14029_v43 = vld [vmem:[%s16995_s0 + $0x380] ss:$12 sps:$4 sm:$0xff]  }
0x1539   : > { %8863 = vmatprep.subr.bf16.mxu1 %v14002_v30  ;;  %12625 = vmatprep.subr.bf16.mxu0 %v14003_v50  ;;  %v14033_v30 = vld [vmem:[%s16995_s0 + $0x458] ss:$12 sps:$4 sm:$0xff]   ;;  %v16997_v50 = vld [vmem:[#allocation30_spill] sm:$0xff] }
0x153a   : > { %v7713_v39 = vpop.f32.mrb[36].mxu0 }
0x153b   : > { %v7758_v55 = vmul.f32 %v7713_v39, %v16154_v27  ;;  %v7715_v16 = vpop.f32.mrb[37].mxu0  ;;  %9091 = vmatmul.mubr.bf16.vlgmr.msra.gmra.mrb[64].mxu0 %v16314_v13  ;;  %v14012_v27 = vld [vmem:[%s16995_s0 + $0x274] ss:$12 sps:$4 sm:$0xff]   ;;  %v14038_v39 = vld [vmem:[%s16995_s0 + $0x470] ss:$12 sps:$4 sm:$0xff]  }
0x153c   : > { %v7759_v6 = vmul.f32 %v7715_v16, %v16156_v58  ;;  %8864 = vmatpush1.bf16.msra.mxu1 %v14000_v44  ;;  %12626 = vmatpush3.bf16.msra.mxu0 %v14004_v51  ;;  %v7717_v61 = vpop.f32.mrb[38].mxu0  ;;  %v14034_v51 = vld [vmem:[%s16995_s0 + $0x398] ss:$12 sps:$4 sm:$0xff]  }
0x153d   : > { %v7764_v34 = vmul.f32 %v7717_v61, %v16158_v47  ;;  %9098 = vmatprep.mubr.bf16.mxu0 %v16336_v17  ;;  %v7719_v24 = vpop.f32.mrb[39].mxu0  ;;  %8865 = vmatprep.subr.bf16.mxu1 %v14007_v63  ;;  %v14010_v47 = vld [vmem:[%s16995_s0 + $0x270] ss:$12 sps:$4 sm:$0xff]   ;;  %v14037_v63 = vld [vmem:[%s16995_s0 + $0x2ec] ss:$12 sps:$4 sm:$0xff]  }
0x153e   : > { %v7765_v60 = vmul.f32 %v7719_v24, %v16160_v54  ;;  %12627 = vmatprep.subr.bf16.mxu0 %v14008_v40  ;;  %v14035_v40 = vld [vmem:[%s16995_s0 + $0x2e8] ss:$12 sps:$4 sm:$0xff]   ;;  %v14042_v16 = vld [vmem:[%s16995_s0 + $0x304] ss:$12 sps:$4 sm:$0xff]  }
0x153f   : > { %v16410_v58 = vpack.c.bf16 %v7764_v34, %v7758_v55  ;;  %v14039_v55 = vld [vmem:[%s16995_s0 + $0x3b0] ss:$12 sps:$4 sm:$0xff]   ;;  %v14043_v24 = vld [vmem:[%s16995_s0 + $0x318] ss:$12 sps:$4 sm:$0xff]  }
0x1540   : > { %v16412_v7 = vpack.c.bf16 %v7765_v60, %v7759_v6  ;;  %8866 = vmatpush1.bf16.msra.mxu1 %v14005_v22  ;;  %12628 = vmatpush3.bf16.msra.mxu0 %v14009_v38  ;;  %v16998_v6 = vld [vmem:[#allocation31_spill] sm:$0xff]  ;;  %v14040_v22 = vld [vmem:[%s16995_s0 + $0x300] ss:$12 sps:$4 sm:$0xff]   ;;  %v14054_v60 = vld [vmem:[%s16995_s0 + $0x364] ss:$12 sps:$4 sm:$0xff]  }
0x1541   : > { %8867 = vmatprep.subr.bf16.mxu1 %v14012_v27  ;;  %12629 = vmatprep.subr.bf16.mxu0 %v14013_v56  ;;  %v6507_v61 = vpack.c.bf16 %v16998_v6, %v16998_v6  ;;  %v14045_v38 = vld [vmem:[%s16995_s0 + $0x31c] ss:$12 sps:$4 sm:$0xff]   ;;  %v14048_v27 = vld [vmem:[%s16995_s0 + $0x334] ss:$12 sps:$4 sm:$0xff]  }
0x1542   : > { %v7723_v57 = vpop.f32.mrb[40].mxu0  ;;  %v14046_v56 = vld [vmem:[%s16995_s0 + $0x330] ss:$12 sps:$4 sm:$0xff]  }
0x1543   : > { %v7770_v54 = vmul.f32 %v7723_v57, %v16162_v37  ;;  %v7725_v12 = vpop.f32.mrb[41].mxu0  ;;  %9099 = vmatmul.mubr.bf16.gmra.mrb[68].mxu0 %v16334_v11  ;;  %v14022_v37 = vld [vmem:[%s16995_s0 + $0x2a4] ss:$12 sps:$4 sm:$0xff]   ;;  %v9189_v34 = vsel %vm1391_vm0, %v6507_v61, 0 }
0x1544   : > { %v7771_v15 = vmul.f32 %v7725_v12, %v16164_v35  ;;  %8868 = vmatpush1.bf16.msra.mxu1 %v14010_v47  ;;  %12630 = vmatpush3.bf16.msra.mxu0 %v14014_v26  ;;  %v7727_v36 = vpop.f32.mrb[42].mxu0  ;;  %v14052_v47 = vld [vmem:[%s16995_s0 + $0x360] ss:$12 sps:$4 sm:$0xff]   ;;  %v14057_v26 = vld [vmem:[%s16995_s0 + $0x37c] ss:$12 sps:$4 sm:$0xff]  }
0x1545   : > { %v7776_v32 = vmul.f32 %v7727_v36, %v16166_v0  ;;  %9106 = vmatprep.mubr.bf16.mxu0 %v16356_v52  ;;  %v7729_v14 = vpop.f32.mrb[43].mxu0  ;;  %8869 = vmatprep.subr.bf16.mxu1 %v14017_v42  ;;  %v14020_v0 = vld [vmem:[%s16995_s0 + $0x2a0] ss:$12 sps:$4 sm:$0xff]   ;;  %v14058_v42 = vld [vmem:[%s16995_s0 + $0x390] ss:$12 sps:$4 sm:$0xff]  }
0x1546   : > { %v7777_v25 = vmul.f32 %v7729_v14, %v16168_v49  ;;  %12631 = vmatprep.subr.bf16.mxu0 %v14018_v59  ;;  %v14066_v57 = vld [vmem:[%s16995_s0 + $0x3c4] ss:$12 sps:$4 sm:$0xff]   ;;  %v14627_v12 = vld [vmem:[%s14739_s17 + $0x8] sm:$0xff]   ;;  %v14072_v36 = vld [vmem:[%s16995_s0 + $0x3f4] ss:$12 sps:$4 sm:$0xff]  }
0x1547   : > { %v16428_v35 = vpack.c.bf16 %v7776_v32, %v7770_v54  ;;  %v14626_v59 = vld [vmem:[%s14739_s17] sm:$0xff]   ;;  %v14629_v32 = vld [vmem:[%s14739_s17 + $0x18] sm:$0xff]   ;;  %v14073_v14 = vld [vmem:[%s16995_s0 + $0x408] ss:$12 sps:$4 sm:$0xff]  }
0x1548   : > { %v16430_v2 = vpack.c.bf16 %v7777_v25, %v7771_v15  ;;  %8870 = vmatpush1.bf16.msra.mxu1 %v14015_v53  ;;  %12632 = vmatpush3.bf16.msra.mxu0 %v14019_v21  ;;  %v14064_v54 = vld [vmem:[%s16995_s0 + $0x3c0] ss:$12 sps:$4 sm:$0xff]   ;;  %v14628_v15 = vld [vmem:[%s14739_s17 + $0x10] sm:$0xff]  }
0x1549   : > { %8871 = vmatprep.subr.bf16.mxu1 %v14022_v37  ;;  %12633 = vmatprep.subr.bf16.mxu0 %v14023_v4  ;;  %v14070_v53 = vld [vmem:[%s16995_s0 + $0x3f0] ss:$12 sps:$4 sm:$0xff]   ;;  %v14075_v21 = vld [vmem:[%s16995_s0 + $0x40c] ss:$12 sps:$4 sm:$0xff]   ;;  %v16999_v37 = vmov 0  }
0x154a   : > { %v7733_v45 = vpop.f32.mrb[44].mxu0  ;;  %v14078_v4 = vld [vmem:[%s16995_s0 + $0x424] ss:$12 sps:$4 sm:$0xff]   ;;  %v14076_v25 = vld [vmem:[%s16995_s0 + $0x420] ss:$12 sps:$4 sm:$0xff]  }
0x154b   : > { %v7782_v49 = vmul.f32 %v7733_v45, %v16170_v46  ;;  %v7735_v28 = vpop.f32.mrb[45].mxu0  ;;  %9107 = vmatmul.mubr.bf16.gmra.mrb[72].mxu0 %v16354_v9  ;;  %v14032_v46 = vld [vmem:[%s16995_s0 + $0x2d4] ss:$12 sps:$4 sm:$0xff]   ;;  %v14082_v45 = vld [vmem:[%s16995_s0 + $0x450] ss:$12 sps:$4 sm:$0xff]  }
0x154c   : > { %v7783_v33 = vmul.f32 %v7735_v28, %v16172_v20  ;;  %8872 = vmatpush1.bf16.msra.mxu1 %v14020_v0  ;;  %12634 = vmatpush3.bf16.msra.mxu0 %v14024_v8  ;;  %v7737_v23 = vpop.f32.mrb[46].mxu0  ;;  %v14081_v0 = vld [vmem:[%s16995_s0 + $0x43c] ss:$12 sps:$4 sm:$0xff]   ;;  %v14079_v8 = vld [vmem:[%s16995_s0 + $0x438] ss:$12 sps:$4 sm:$0xff]  }
0x154d   : > { %v7788_v3 = vmul.f32 %v7737_v23, %v16174_v29  ;;  %9114 = vmatprep.mubr.bf16.mxu0 %v16376_v18  ;;  %v7739_v31 = vpop.f32.mrb[47].mxu0  ;;  %8873 = vmatprep.subr.bf16.mxu1 %v14027_v48  ;;  %v14030_v29 = vld [vmem:[%s16995_s0 + $0x2d0] ss:$12 sps:$4 sm:$0xff]   ;;  %v14084_v48 = vld [vmem:[%s16995_s0 + $0x454] ss:$12 sps:$4 sm:$0xff]  }
0x154e   : > { %v7789_v20 = vmul.f32 %v7739_v31, %v16997_v50  ;;  %12635 = vmatprep.subr.bf16.mxu0 %v14028_v10  ;;  %v14087_v10 = vld [vmem:[%s16995_s0 + $0x46c] ss:$12 sps:$4 sm:$0xff]  }
0x154f   : > { %v16446_v5 = vpack.c.bf16 %v7788_v3, %v7782_v49  ;;  %v14085_v49 = vld [vmem:[%s16995_s0 + $0x468] ss:$12 sps:$4 sm:$0xff]   ;;  %v14088_v28 = vld [vmem:[%s17000_s1] ss:$12 sps:$4 sm:$0xff]   ;;  %v9264_v23 = vld [vmem:[%s17000_s1 + $0x18] sm:$0x11] }
0x1550   : > { %v16448_v44 = vpack.c.bf16 %v7789_v20, %v7783_v33  ;;  %8874 = vmatpush1.bf16.msra.mxu1 %v14025_v62  ;;  %12636 = vmatpush3.bf16.msra.mxu0 %v14029_v43  ;;  %v14090_v33 = vld [vmem:[%s17000_s1 + $0x4] ss:$12 sps:$4 sm:$0xff]   ;;  %v12050_v62 = vcombine.high %v9264_v23, %v9264_v23 }
0x1551   : > { %8875 = vmatprep.subr.bf16.mxu1 %v14032_v46  ;;  %12637 = vmatprep.subr.bf16.mxu0 %v14033_v30 }
0x1553   : > { %9115 = vmatmul.mubr.bf16.gmra.mrb[76].mxu0 %v16374_v41 }
0x1554   : > { %8876 = vmatpush1.bf16.msra.mxu1 %v14030_v29  ;;  %12638 = vmatpush3.bf16.msra.mxu0 %v14034_v51 }
0x1555   : > { %9155 = vmatprep.mubr.bf16.mxu0 %v16394_v19  ;;  %8877 = vmatprep.subr.bf16.mxu1 %v14037_v63 }
0x1556   : > { %12639 = vmatprep.subr.bf16.mxu0 %v14038_v39 }
0x1558   : > { %8878 = vmatpush1.bf16.msra.mxu1 %v14035_v40  ;;  %12640 = vmatpush3.bf16.msra.mxu0 %v14039_v55 }
0x1559   : > { %13403 = vmatprep.subr.msk.bf16.mxu0 %vm1391_vm0, %v6507_v61  ;;  %8920 = vmatprep.subr.bf16.mxu1 %v14042_v16 }
0x155b   : > { %8880 = vmatmul.mubr.bf16.vlgmr.msra.gmra.mrb[200].mxu1 %v16314_v13  ;;  %9156 = vmatmul.mubr.bf16.vlgmr.msra.gmra.mrb[80].mxu0 %v16392_v1  ;;  %v14051_v13 = vld [vmem:[%s16995_s0 + $0x34c] ss:$12 sps:$4 sm:$0xff]  }
0x155c   : > { %8889 = vmatprep.mubr.bf16.mxu1 %v16336_v17  ;;  %8921 = vmatpush1.bf16.msra.mxu1 %v14040_v22  ;;  %v14049_v17 = vld [vmem:[%s16995_s0 + $0x348] ss:$12 sps:$4 sm:$0xff]  }
0x155d   : > { %13154 = vmatpush3.bf16.msra.mxu0 %v9189_v34  ;;  %9163 = vmatprep.mubr.bf16.mxu0 %v16412_v7 }
0x155e   : > { %8922 = vmatprep.subr.bf16.mxu1 %v14045_v38  ;;  %9311 = vmatprep.subr.bf16.mxu0 %v14090_v33 }
0x1560   : > { %8923 = vmatpush1.bf16.msra.mxu1 %v14043_v24 }
0x1561   : > { %8924 = vmatprep.subr.bf16.mxu1 %v14048_v27 }
0x1563   : > { %8890 = vmatmul.mubr.bf16.gmra.mrb[204].mxu1 %v16334_v11  ;;  %9164 = vmatmul.mubr.bf16.gmra.mrb[84].mxu0 %v16410_v58  ;;  %v14055_v11 = vld [vmem:[%s16995_s0 + $0x378] ss:$12 sps:$4 sm:$0xff]  }
0x1564   : > { %8899 = vmatprep.mubr.bf16.mxu1 %v16356_v52  ;;  %8925 = vmatpush1.bf16.msra.mxu1 %v14046_v56  ;;  %v14060_v52 = vld [vmem:[%s16995_s0 + $0x394] ss:$12 sps:$4 sm:$0xff]  }
0x1565   : > { %9171 = vmatprep.mubr.bf16.mxu0 %v16430_v2  ;;  %8926 = vmatprep.subr.bf16.mxu1 %v14051_v13 }
0x1568   : > { %8927 = vmatpush1.bf16.msra.mxu1 %v14049_v17 }
0x1569   : > { %8928 = vmatprep.subr.bf16.mxu1 %v14054_v60 }
0x156b   : > { %8900 = vmatmul.mubr.bf16.gmra.mrb[208].mxu1 %v16354_v9  ;;  %9172 = vmatmul.mubr.bf16.gmra.mrb[88].mxu0 %v16428_v35  ;;  %v14063_v9 = vld [vmem:[%s16995_s0 + $0x3ac] ss:$12 sps:$4 sm:$0xff]  }
0x156c   : > { %8909 = vmatprep.mubr.bf16.mxu1 %v16376_v18  ;;  %8929 = vmatpush1.bf16.msra.mxu1 %v14052_v47  ;;  %v14061_v18 = vld [vmem:[%s16995_s0 + $0x3a8] ss:$12 sps:$4 sm:$0xff]  }
0x156d   : > { %9179 = vmatprep.mubr.bf16.mxu0 %v16448_v44  ;;  %8930 = vmatprep.subr.bf16.mxu1 %v14057_v26 }
0x1570   : > { %8931 = vmatpush1.bf16.msra.mxu1 %v14055_v11 }
0x1571   : > { %8932 = vmatprep.subr.bf16.mxu1 %v14060_v52 }
0x1573   : > { %8910 = vmatmul.mubr.bf16.gmra.mrb[212].mxu1 %v16374_v41  ;;  %9180 = vmatmul.mubr.bf16.gmra.mrb[92].mxu0 %v16446_v5  ;;  %v14069_v41 = vld [vmem:[%s16995_s0 + $0x3dc] ss:$12 sps:$4 sm:$0xff]  }
0x1574   : > { %8933 = vmatpush1.bf16.msra.mxu1 %v14058_v42  ;;  %8952 = vmatprep.mubr.bf16.mxu1 %v16394_v19  ;;  %v14067_v19 = vld [vmem:[%s16995_s0 + $0x3d8] ss:$12 sps:$4 sm:$0xff]   ;;  %s17001_s0 = sld [smem:[#allocation21_spill]] }
0x1575   : > { %8934 = vmatprep.subr.bf16.mxu1 %v14063_v9  ;;  %13155 = vmatprep.mubr.msk.bf16.mxu0 %vm1378_vm1, %v14626_v59 }
0x1578   : > { %8935 = vmatpush1.bf16.msra.mxu1 %v14061_v18 }
0x1579   : > { %8936 = vmatprep.subr.bf16.mxu1 %v14066_v57 }
0x157a   : > { %v14095_v24 = vld [vmem:[%s17001_s0 + $0x40] sm:$0xff]   ;;  %v14097_v56 = vld [vmem:[%s17001_s0 + $0x48] sm:$0xff]   ;;  %v14099_v60 = vld [vmem:[%s17001_s0 + $0x50] sm:$0xff]  }
0x157b   : > { %13156 = vmatmul.mubr.msk.bf16.vlgmr.msra.gmra.mrb[96].mxu0 %vm1378_vm1, %v14627_v12  ;;  %v14096_v27 = vld [vmem:[%s17001_s0] sm:$0xff]   ;;  %v14098_v17 = vld [vmem:[%s17001_s0 + $0x8] sm:$0xff]   ;;  %v14100_v42 = vld [vmem:[%s17001_s0 + $0x10] sm:$0xff]  }
0x157c   : > { %8937 = vmatpush1.bf16.msra.mxu1 %v14064_v54  ;;  %13159 = vmatprep.mubr.msk.bf16.mxu0 %vm1378_vm1, %v14628_v15  ;;  %v14101_v18 = vld [vmem:[%s17001_s0 + $0x58] sm:$0xff]   ;;  %v14103_v12 = vld [vmem:[%s17001_s0 + $0x60] sm:$0xff]  }
0x157d   : > { %8938 = vmatprep.subr.bf16.mxu1 %v14069_v41  ;;  %9312 = vmatpush1.bf16.msra.mxu0 %v14088_v28  ;;  %v14102_v41 = vld [vmem:[%s17001_s0 + $0x18] sm:$0xff]  }
0x157e   : > { %12052 = vmatprep.subr.msk.bf16.mxu0 %vm2844_vm5, %v12050_v62 }
0x1580   : > { %8939 = vmatpush1.bf16.msra.mxu1 %v14067_v19 }
0x1581   : > { %8940 = vmatprep.subr.bf16.mxu1 %v14072_v36 }
0x1583   : > { %13160 = vmatmul.mubr.msk.bf16.gmra.mrb[100].mxu0 %vm1378_vm1, %v14629_v32 }
0x1584   : > { %8941 = vmatpush1.bf16.msra.mxu1 %v14070_v53  ;;  %9343 = vmatprep.mubr.bf16.mxu0 %v16999_v37 }
0x1585   : > { %8942 = vmatprep.subr.bf16.mxu1 %v14075_v21  ;;  %v14104_v21 = vld [vmem:[%s17001_s0 + $0x20] sm:$0xff]  }
0x1588   : > { %8943 = vmatpush1.bf16.msra.mxu1 %v14073_v14  ;;  %v14105_v14 = vld [vmem:[%s17001_s0 + $0x68] sm:$0xff]  }
0x1589   : > { %8944 = vmatprep.subr.bf16.mxu1 %v14078_v4 }
0x158c   : > { %8945 = vmatpush1.bf16.msra.mxu1 %v14076_v25 }
0x158d   : > { %8946 = vmatprep.subr.bf16.mxu1 %v14081_v0 }
0x1590   : > { %8947 = vmatpush1.bf16.msra.mxu1 %v14079_v8  ;;  %v14106_v8 = vld [vmem:[%s17001_s0 + $0x28] sm:$0xff]  }
0x1591   : > { %8948 = vmatprep.subr.bf16.mxu1 %v14084_v48 }
0x1594   : > { %8949 = vmatpush1.bf16.msra.mxu1 %v14082_v45 }
0x1595   : > { %8950 = vmatprep.subr.bf16.mxu1 %v14087_v10 }
0x1598   : > { %8951 = vmatpush1.bf16.msra.mxu1 %v14085_v49 }
0x1599   : > { %12676 = vmatprep.subr.bf16.mxu1 %v14095_v24 }
0x159b   : > { %8953 = vmatmul.mubr.bf16.vlgmr.msra.gmra.mrb[200].mxu1 %v16392_v1  ;;  %v12049_v1 = vcombine.low %v9264_v23, %v9264_v23 }
0x159c   : > { %8962 = vmatprep.mubr.bf16.mxu1 %v16412_v7  ;;  %12677 = vmatpush3.bf16.msra.mxu1 %v14096_v27 }
0x159d   : > { %v9303_v7 = vsel %vm2844_vm5, %v12049_v1, 0  ;;  %12678 = vmatprep.subr.bf16.mxu1 %v14097_v56 }
0x159e   : > { %9314 = vmatpush1.bf16.msra.mxu0 %v9303_v7 }
0x15a0   : > { %12679 = vmatpush3.bf16.msra.mxu1 %v14098_v17 }
0x15a1   : > { %12680 = vmatprep.subr.bf16.mxu1 %v14099_v60 }
0x15a3   : > { %8963 = vmatmul.mubr.bf16.gmra.mrb[204].mxu1 %v16410_v58  ;;  %v16531_v58 = vld [vmem:[%s17000_s1 + $0x8] ss:$12 sps:$4 sm:$0xff]  }
0x15a4   : > { %8972 = vmatprep.mubr.bf16.mxu1 %v16430_v2  ;;  %13163 = vmatprep.subr.bf16.mxu0 %v16531_v58 }
0x15a5   : > { %12681 = vmatpush3.bf16.msra.mxu1 %v14100_v42 }
0x15a6   : > { %12682 = vmatprep.subr.bf16.mxu1 %v14101_v18 }
0x15a9   : > { %12683 = vmatpush3.bf16.msra.mxu1 %v14102_v41 }
0x15aa   : > { %12684 = vmatprep.subr.bf16.mxu1 %v14103_v12 }
0x15ab   : > { %8973 = vmatmul.mubr.bf16.gmra.mrb[208].mxu1 %v16428_v35 }
0x15ac   : > { %8982 = vmatprep.mubr.bf16.mxu1 %v16448_v44 }
0x15ad   : > { %12685 = vmatpush3.bf16.msra.mxu1 %v14104_v21 }
0x15ae   : > { %12686 = vmatprep.subr.bf16.mxu1 %v14105_v14 }
0x15b1   : > { %12687 = vmatpush3.bf16.msra.mxu1 %v14106_v8 }
0x15b3   : > { %8983 = vmatmul.mubr.bf16.gmra.mrb[212].mxu1 %v16446_v5 }
0x15ee   : > { %v12561_v35 = vpop.f32.mrb[48].mxu0 }
0x15ef   : > { %v12562_v2 = vpop.f32.mrb[49].mxu0 }
0x15f0   : > { %v12563_v43 = vadd.f32 %v12562_v2, %v12561_v35  ;;  %v12564_v3 = vpop.f32.mrb[50].mxu0 }
0x15f1   : > { %v12565_v31 = vpop.f32.mrb[51].mxu0 }
0x15f2   : > { %v12566_v46 = vadd.f32 %v12565_v31, %v12564_v3 }
0x15f6   : > { %v12567_v30 = vpop.f32.mrb[52].mxu0 }
0x15f7   : > { %v12568_v50 = vpop.f32.mrb[53].mxu0 }
0x15f8   : > { %v12569_v20 = vadd.f32 %v12568_v50, %v12567_v30  ;;  %v12570_v5 = vpop.f32.mrb[54].mxu0 }
0x15f9   : > { %v12571_v44 = vpop.f32.mrb[55].mxu0 }
0x15fa   : > { %v12572_v29 = vadd.f32 %v12571_v44, %v12570_v5 }
0x15fe   : > { %v12573_v51 = vpop.f32.mrb[56].mxu0 }
0x15ff   : > { %v12574_v63 = vpop.f32.mrb[57].mxu0 }
0x1600   : > { %v12575_v39 = vadd.f32 %v12574_v63, %v12573_v51  ;;  %v12576_v40 = vpop.f32.mrb[58].mxu0 }
0x1601   : > { %v12577_v55 = vpop.f32.mrb[59].mxu0 }
0x1602   : > { %v12578_v16 = vadd.f32 %v12577_v55, %v12576_v40 }
0x1606   : > { %v12579_v6 = vpop.f32.mrb[60].mxu0 }
0x1607   : > { %v12580_v61 = vpop.f32.mrb[61].mxu0 }
0x1608   : > { %v12581_v22 = vadd.f32 %v12580_v61, %v12579_v6  ;;  %v12582_v38 = vpop.f32.mrb[62].mxu0 }
0x1609   : > { %v12583_v34 = vpop.f32.mrb[63].mxu0 }
0x160a   : > { %v12584_v13 = vadd.f32 %v12583_v34, %v12582_v38 }
0x160e   : > { %v12601_v47 = vpop.f32.mrb[64].mxu0 }
0x160f   : > { %v12602_v26 = vpop.f32.mrb[65].mxu0 }
0x1610   : > { %v12603_v11 = vadd.f32 %v12602_v26, %v12601_v47  ;;  %v12604_v52 = vpop.f32.mrb[66].mxu0 }
0x1611   : > { %v12605_v9 = vpop.f32.mrb[67].mxu0 }
0x1612   : > { %v9093_v57 = vadd.f32 %v12603_v11, %v12563_v43  ;;  %v12606_v59 = vadd.f32 %v12605_v9, %v12604_v52 }
0x1614   : > { %v9096_v54 = vadd.f32 %v12606_v59, %v12566_v46 }
0x1616   : > { %v12607_v19 = vpop.f32.mrb[68].mxu0 }
0x1617   : > { %v12608_v15 = vpop.f32.mrb[69].mxu0 }
0x1618   : > { %v12609_v36 = vadd.f32 %v12608_v15, %v12607_v19  ;;  %v12610_v53 = vpop.f32.mrb[70].mxu0 }
0x1619   : > { %v12611_v32 = vpop.f32.mrb[71].mxu0 }
0x161a   : > { %v9101_v4 = vadd.f32 %v12609_v36, %v12569_v20  ;;  %v12612_v25 = vadd.f32 %v12611_v32, %v12610_v53  ;;  %v14094_v53 = vld [vmem:[%s17000_s1 + $0x20] ss:$0 sps:$4 sm:$0x11]   ;;  %s17006_s1 = sld [smem:[#allocation23_spill]] }
0x161b   : > { %v9309_v32 = vsel %vm2844_vm5, %v14094_v53, 0 }
0x161c   : > { %v9104_v0 = vadd.f32 %v12612_v25, %v12572_v29 }
0x161e   : > { %v12613_v48 = vpop.f32.mrb[72].mxu0 }
0x161f   : > { %v12614_v45 = vpop.f32.mrb[73].mxu0 }
0x1620   : > { %v12615_v10 = vadd.f32 %v12614_v45, %v12613_v48  ;;  %v12616_v49 = vpop.f32.mrb[74].mxu0 }
0x1621   : > { %v12617_v28 = vpop.f32.mrb[75].mxu0 }
0x1622   : > { %v9109_v33 = vadd.f32 %v12615_v10, %v12575_v39  ;;  %v12618_v23 = vadd.f32 %v12617_v28, %v12616_v49 }
0x1624   : > { %v9112_v62 = vadd.f32 %v12618_v23, %v12578_v16 }
0x1626   : > { %v12619_v1 = vpop.f32.mrb[76].mxu0 }
0x1627   : > { %v12620_v7 = vpop.f32.mrb[77].mxu0 }
0x1628   : > { %v12621_v35 = vadd.f32 %v12620_v7, %v12619_v1  ;;  %v12622_v2 = vpop.f32.mrb[78].mxu0 }
0x1629   : > { %v12623_v43 = vpop.f32.mrb[79].mxu0 }
0x162a   : > { %v9117_v3 = vadd.f32 %v12621_v35, %v12581_v22  ;;  %v12624_v31 = vadd.f32 %v12623_v43, %v12622_v2 }
0x162c   : > { %v9120_v46 = vadd.f32 %v12624_v31, %v12584_v13 }
0x162e   : > { %v12641_v30 = vpop.f32.mrb[80].mxu0 }
0x162f   : > { %v12642_v50 = vpop.f32.mrb[81].mxu0 }
0x1630   : > { %v12643_v20 = vadd.f32 %v12642_v50, %v12641_v30  ;;  %v12644_v5 = vpop.f32.mrb[82].mxu0  ;;  %v14108_v30 = vld [vmem:[%s17001_s0 + $0x30] sm:$0xff]   ;;  %v14109_v50 = vld [vmem:[%s17001_s0 + $0x78] sm:$0xff]  }
0x1631   : > { %v12645_v44 = vpop.f32.mrb[83].mxu0 }
0x1632   : > { %v12646_v29 = vadd.f32 %v12645_v44, %v12644_v5  ;;  %v16546_v51 = vadd.f32 %v12643_v20, %v9093_v57  ;;  %v14110_v20 = vld [vmem:[%s17001_s0 + $0x38] sm:$0xff]   ;;  %v14630_v5 = vld [vmem:[%s16971_s11 + $0x40] sm:$0xff]  }
0x1633   : > { %v14111_v44 = vld [vmem:[%s17001_s0 + $0x80] sm:$0xff]  }
0x1634   : > { %v16548_v63 = vadd.f32 %v12646_v29, %v9096_v54  ;;  %v14112_v29 = vld [vmem:[%s17001_s0 + $0x88] sm:$0xff]  }
0x1636   : > { %v12647_v39 = vpop.f32.mrb[84].mxu0 }
0x1637   : > { %v12648_v40 = vpop.f32.mrb[85].mxu0 }
0x1638   : > { %v12649_v55 = vadd.f32 %v12648_v40, %v12647_v39  ;;  %v12650_v16 = vpop.f32.mrb[86].mxu0  ;;  %v14113_v39 = vld [vmem:[%s17001_s0 + $0x90] sm:$0xff]   ;;  %v14114_v40 = vld [vmem:[%s17001_s0 + $0x98] sm:$0xff]  }
0x1639   : > { %v12651_v6 = vpop.f32.mrb[87].mxu0 }
0x163a   : > { %v12652_v61 = vadd.f32 %v12651_v6, %v12650_v16  ;;  %v16550_v38 = vadd.f32 %v12649_v55, %v9101_v4  ;;  %v14115_v55 = vld [vmem:[%s17001_s0 + $0xa0] ss:$0 sps:$4 sm:$0x33]   ;;  %v17002_v6 = vmov 0.0  }
0x163b   : > { %v9662_v16 = vsel %vm6230_vm8, %v14115_v55, 0 }
0x163c   : > { %v16552_v22 = vadd.f32 %v12652_v61, %v9104_v0 }
0x163e   : > { %v12653_v34 = vpop.f32.mrb[88].mxu0 }
0x163f   : > { %v12654_v24 = vpop.f32.mrb[89].mxu0 }
0x1640   : > { %v12655_v27 = vadd.f32 %v12654_v24, %v12653_v34  ;;  %v12656_v56 = vpop.f32.mrb[90].mxu0 }
0x1641   : > { %v12657_v13 = vpop.f32.mrb[91].mxu0 }
0x1642   : > { %v12658_v17 = vadd.f32 %v12657_v13, %v12656_v56  ;;  %v16554_v60 = vadd.f32 %v12655_v27, %v9109_v33 }
0x1644   : > { %v16556_v47 = vadd.f32 %v12658_v17, %v9112_v62 }
0x1646   : > { %v12659_v26 = vpop.f32.mrb[92].mxu0 }
0x1647   : > { %v12660_v11 = vpop.f32.mrb[93].mxu0 }
0x1648   : > { %v12661_v52 = vadd.f32 %v12660_v11, %v12659_v26  ;;  %v12662_v42 = vpop.f32.mrb[94].mxu0 }
0x1649   : > { %v12663_v9 = vpop.f32.mrb[95].mxu0 }
0x164a   : > { %v12664_v18 = vadd.f32 %v12663_v9, %v12662_v42  ;;  %v16558_v57 = vadd.f32 %v12661_v52, %v9117_v3 }
0x164c   : > { %v16560_v59 = vadd.f32 %v12664_v18, %v9120_v46  ;;  %v14107_v46 = vld [vmem:[%s17001_s0 + $0x70] sm:$0xff]   ;;  %s17003_s0 = sld [smem:[#allocation22_spill]] }
0x164d   : > { %12688 = vmatprep.subr.bf16.mxu1 %v14107_v46 }
0x164e   : > { %v13157_v54 = vpop.f32.mrb[96].mxu0  ;;  %12689 = vmatpush3.bf16.msra.mxu1 %v14108_v30  ;;  %v14638_v30 = vld [vmem:[%s16971_s11 + $0x60] sm:$0xff]  }
0x164f   : > { %v9225_v41 = vpop.f32.mrb[97].mxu0  ;;  %12690 = vmatprep.subr.bf16.mxu1 %v14109_v50 }
0x1650   : > { %v13158_v12 = vpop.f32.mrb[98].mxu0 }
0x1651   : > { %v9257_v19 = vpack.c.bf16 %v13158_v12, %v13157_v54  ;;  %v9228_v15 = vpop.f32.mrb[99].mxu0  ;;  %v14631_v12 = vld [vmem:[%s16971_s11] sm:$0xff]  }
0x1652   : > { %v9256_v36 = vpack.c.bf16 %v9228_v15, %v9225_v41  ;;  %12691 = vmatpush3.bf16.msra.mxu1 %v14110_v20 }
0x1653   : > { %12730 = vmatprep.subr.bf16.mxu1 %v14630_v5 }
0x1654   : > { %12053 = vmatmul.mubr.msk.bf16.vlgmr.msra.gmra.mrb[104].mxu0 %vm2840_vm6, %v9256_v36 }
0x1655   : > { %13164 = vmatpush3.bf16.msra.mxu0 %v16531_v58  ;;  %9353 = vmatprep.mubr.bf16.mxu0 %v16999_v37 }
0x1656   : > { %v13161_v21 = vpop.f32.mrb[100].mxu0  ;;  %13404 = vmatprep.subr.msk.bf16.mxu0 %vm2844_vm5, %v14094_v53 }
0x1657   : > { %v9241_v14 = vpop.f32.mrb[101].mxu0 }
0x1658   : > { %v13162_v4 = vpop.f32.mrb[102].mxu0 }
0x1659   : > { %v9259_v25 = vpack.c.bf16 %v13162_v4, %v13161_v21  ;;  %v9244_v0 = vpop.f32.mrb[103].mxu0  ;;  %13166 = vmatpush3.bf16.msra.mxu0 %v9309_v32  ;;  %v14634_v4 = vld [vmem:[%s16971_s11 + $0x50] sm:$0xff]  }
0x165a   : > { %v9258_v8 = vpack.c.bf16 %v9244_v0, %v9241_v14  ;;  %13175 = vmatprep.subr.bf16.mxu0 %v14111_v44  ;;  %v14633_v14 = vld [vmem:[%s16971_s11 + $0x8] sm:$0xff]  }
0x165c   : > { %12054 = vmatmul.mubr.msk.bf16.gmra.mrb[108].mxu0 %vm2840_vm6, %v9257_v19 }
0x165d   : > { %9363 = vmatprep.mubr.bf16.mxu0 %v16999_v37 }
0x1664   : > { %12055 = vmatmul.mubr.msk.bf16.gmra.mrb[112].mxu0 %vm2840_vm6, %v9258_v8 }
0x1665   : > { %9373 = vmatprep.mubr.bf16.mxu0 %v16999_v37 }
0x166c   : > { %12056 = vmatmul.mubr.msk.bf16.gmra.mrb[116].mxu0 %vm2840_vm6, %v9259_v25 }
0x166d   : > { %13167 = vmatprep.mubr.msk.bf16.mxu0 %vm2840_vm6, %v9256_v36  ;;  %v14632_v36 = vld [vmem:[%s16971_s11 + $0x48] sm:$0xff]  }
0x166e   : > { %v8954_v58 = vpop.f32.mrb[200].mxu1 }
0x166f   : > { %v8956_v48 = vpop.f32.mrb[201].mxu1 }
0x1670   : > { %v8958_v45 = vpop.f32.mrb[202].mxu1 }
0x1671   : > { %v8960_v10 = vpop.f32.mrb[203].mxu1 }
0x1674   : > { %13168 = vmatmul.mubr.msk.bf16.vlgmr.msra.gmra.mrb[120].mxu0 %vm2840_vm6, %v9257_v19 }
0x1675   : > { %13171 = vmatprep.mubr.msk.bf16.mxu0 %vm2840_vm6, %v9258_v8  ;;  %13176 = vmatpush3.bf16.msra.mxu0 %v14111_v44  ;;  %v14639_v44 = vld [vmem:[%s16971_s11 + $0x20] sm:$0xff]  }
0x1676   : > { %v8964_v49 = vpop.f32.mrb[204].mxu1  ;;  %13177 = vmatprep.subr.bf16.mxu0 %v14112_v29 }
0x1677   : > { %v8966_v28 = vpop.f32.mrb[205].mxu1 }
0x1678   : > { %v8968_v33 = vpop.f32.mrb[206].mxu1 }
0x1679   : > { %v8970_v23 = vpop.f32.mrb[207].mxu1  ;;  %13178 = vmatpush3.bf16.msra.mxu0 %v14112_v29 }
0x167a   : > { %13179 = vmatprep.subr.bf16.mxu0 %v14113_v39 }
0x167c   : > { %13172 = vmatmul.mubr.msk.bf16.gmra.mrb[124].mxu0 %vm2840_vm6, %v9259_v25 }
0x167d   : > { %13180 = vmatpush3.bf16.msra.mxu0 %v14113_v39  ;;  %v14640_v39 = vld [vmem:[%s16971_s11 + $0x68] sm:$0xff]  }
0x167e   : > { %v16577_v62 = vpop.f32.mrb[208].mxu1  ;;  %13181 = vmatprep.subr.bf16.mxu0 %v14114_v40 }
0x167f   : > { %v16579_v1 = vpop.f32.mrb[209].mxu1 }
0x1680   : > { %v16581_v7 = vpop.f32.mrb[210].mxu1 }
0x1681   : > { %v16583_v35 = vpop.f32.mrb[211].mxu1  ;;  %13182 = vmatpush3.bf16.msra.mxu0 %v14114_v40 }
0x1682   : > { %13405 = vmatprep.subr.msk.bf16.mxu0 %vm6230_vm8, %v14115_v55 }
0x1685   : > { %13184 = vmatpush3.bf16.msra.mxu0 %v9662_v16 }
0x1686   : > { %v16585_v2 = vpop.f32.mrb[212].mxu1  ;;  %13193 = vmatprep.subr.bf16.mxu0 %v17002_v6 }
0x1687   : > { %v16587_v43 = vpop.f32.mrb[213].mxu1 }
0x1688   : > { %v16589_v3 = vpop.f32.mrb[214].mxu1 }
0x1689   : > { %v16591_v31 = vpop.f32.mrb[215].mxu1 }
0x1727   : > { %v9345_v61 = vpop.f32.mrb[104].mxu0 }
0x1728   : > { %v9449_v34 = vmul.f32 %v9345_v61, %v8954_v58  ;;  %v9347_v24 = vpop.f32.mrb[105].mxu0  ;;  %v14642_v61 = vld [vmem:[%s16971_s11 + $0x70] sm:$0xff]  }
0x1729   : > { %v9450_v27 = vmul.f32 %v9347_v24, %v8956_v48  ;;  %v9349_v56 = vpop.f32.mrb[106].mxu0 }
0x172a   : > { %v9452_v13 = vmul.f32 %v9349_v56, %v8958_v45  ;;  %v9351_v17 = vpop.f32.mrb[107].mxu0  ;;  %v14635_v45 = vld [vmem:[%s16971_s11 + $0x10] sm:$0xff]  }
0x172b   : > { %v9453_v26 = vmul.f32 %v9351_v17, %v8960_v10  ;;  %v14643_v56 = vld [vmem:[%s16971_s11 + $0x30] sm:$0xff]   ;;  %v14644_v17 = vld [vmem:[%s16971_s11 + $0x78] sm:$0xff]  }
0x172c   : > { %v9473_v11 = vpack.c.bf16 %v9452_v13, %v9449_v34 }
0x172d   : > { %v9474_v52 = vpack.c.bf16 %v9453_v26, %v9450_v27 }
0x172f   : > { %v9355_v42 = vpop.f32.mrb[108].mxu0  ;;  %9696 = vmatprep.mubr.bf16.mxu1 %v9474_v52 }
0x1730   : > { %v9455_v9 = vmul.f32 %v9355_v42, %v8964_v49  ;;  %v9357_v18 = vpop.f32.mrb[109].mxu0  ;;  %9697 = vmatmul.mubr.bf16.vlgmr.msra.gmra.mrb[216].mxu1 %v9473_v11  ;;  %v14645_v42 = vld [vmem:[%s16971_s11 + $0x38] sm:$0xff]  }
0x1731   : > { %v9456_v54 = vmul.f32 %v9357_v18, %v8966_v28  ;;  %v9359_v41 = vpop.f32.mrb[110].mxu0  ;;  %12731 = vmatpush3.bf16.msra.mxu1 %v14631_v12  ;;  %v14636_v28 = vld [vmem:[%s16971_s11 + $0x58] sm:$0xff]  }
0x1732   : > { %v9458_v19 = vmul.f32 %v9359_v41, %v8968_v33  ;;  %v9361_v15 = vpop.f32.mrb[111].mxu0  ;;  %12732 = vmatprep.subr.bf16.mxu1 %v14632_v36 }
0x1733   : > { %v9459_v53 = vmul.f32 %v9361_v15, %v8970_v23 }
0x1734   : > { %v9476_v21 = vpack.c.bf16 %v9458_v19, %v9455_v9 }
0x1735   : > { %v9477_v32 = vpack.c.bf16 %v9459_v53, %v9456_v54  ;;  %12733 = vmatpush3.bf16.msra.mxu1 %v14633_v14 }
0x1736   : > { %12734 = vmatprep.subr.bf16.mxu1 %v14634_v4 }
0x1737   : > { %v9365_v25 = vpop.f32.mrb[112].mxu0  ;;  %9704 = vmatprep.mubr.bf16.mxu1 %v9477_v32 }
0x1738   : > { %v9461_v0 = vmul.f32 %v9365_v25, %v16577_v62  ;;  %v9367_v8 = vpop.f32.mrb[113].mxu0  ;;  %9705 = vmatmul.mubr.bf16.gmra.mrb[220].mxu1 %v9476_v21  ;;  %v14637_v62 = vld [vmem:[%s16971_s11 + $0x18] sm:$0xff]  }
0x1739   : > { %v9462_v58 = vmul.f32 %v9367_v8, %v16579_v1  ;;  %v9369_v48 = vpop.f32.mrb[114].mxu0  ;;  %12735 = vmatpush3.bf16.msra.mxu1 %v14635_v45 }
0x173a   : > { %v9464_v10 = vmul.f32 %v9369_v48, %v16581_v7  ;;  %v9371_v49 = vpop.f32.mrb[115].mxu0  ;;  %12736 = vmatprep.subr.bf16.mxu1 %v14636_v28 }
0x173b   : > { %v9465_v33 = vmul.f32 %v9371_v49, %v16583_v35 }
0x173c   : > { %v9479_v23 = vpack.c.bf16 %v9464_v10, %v9461_v0 }
0x173d   : > { %v9480_v46 = vpack.c.bf16 %v9465_v33, %v9462_v58  ;;  %12737 = vmatpush3.bf16.msra.mxu1 %v14637_v62 }
0x173e   : > { %12738 = vmatprep.subr.bf16.mxu1 %v14638_v30 }
0x173f   : > { %v9375_v50 = vpop.f32.mrb[116].mxu0  ;;  %9712 = vmatprep.mubr.bf16.mxu1 %v9480_v46 }
0x1740   : > { %v9467_v1 = vmul.f32 %v9375_v50, %v16585_v2  ;;  %v9377_v7 = vpop.f32.mrb[117].mxu0  ;;  %9713 = vmatmul.mubr.bf16.gmra.mrb[224].mxu1 %v9479_v23  ;;  %v14641_v2 = vld [vmem:[%s16971_s11 + $0x28] sm:$0xff]  }
0x1741   : > { %v9468_v20 = vmul.f32 %v9377_v7, %v16587_v43  ;;  %v9379_v5 = vpop.f32.mrb[118].mxu0  ;;  %12739 = vmatpush3.bf16.msra.mxu1 %v14639_v44 }
0x1742   : > { %v9470_v35 = vmul.f32 %v9379_v5, %v16589_v3  ;;  %v9381_v29 = vpop.f32.mrb[119].mxu0  ;;  %12740 = vmatprep.subr.bf16.mxu1 %v14640_v39 }
0x1743   : > { %v9471_v40 = vmul.f32 %v9381_v29, %v16591_v31 }
0x1744   : > { %v9482_v55 = vpack.c.bf16 %v9470_v35, %v9467_v1 }
0x1745   : > { %v9483_v16 = vpack.c.bf16 %v9471_v40, %v9468_v20  ;;  %12741 = vmatpush3.bf16.msra.mxu1 %v14641_v2 }
0x1746   : > { %12742 = vmatprep.subr.bf16.mxu1 %v14642_v61 }
0x1747   : > { %v13169_v34 = vpop.f32.mrb[120].mxu0  ;;  %9720 = vmatprep.mubr.bf16.mxu1 %v9483_v16 }
0x1748   : > { %v9457_v43 = vmul.f32 %v13169_v34, %v16550_v38  ;;  %v9418_v24 = vpop.f32.mrb[121].mxu0  ;;  %9721 = vmatmul.mubr.bf16.gmra.mrb[228].mxu1 %v9482_v55 }
0x1749   : > { %v9451_v3 = vmul.f32 %v9418_v24, %v16546_v51  ;;  %v13170_v27 = vpop.f32.mrb[122].mxu0  ;;  %12743 = vmatpush3.bf16.msra.mxu1 %v14643_v56  ;;  %v14646_v56 = vld [vmem:[%s14749_s25 + $0x4] ss:$8 sps:$4 sm:$0xff]  }
0x174a   : > { %v9460_v31 = vmul.f32 %v13170_v27, %v16552_v22  ;;  %v9421_v13 = vpop.f32.mrb[123].mxu0  ;;  %12744 = vmatprep.subr.bf16.mxu1 %v14644_v17  ;;  %v17004_v17 = vld [vmem:[#allocation28_spill] sm:$0xff] }
0x174b   : > { %v9454_v26 = vmul.f32 %v9421_v13, %v16548_v63  ;;  %v14648_v13 = vld [vmem:[%s14749_s25] ss:$8 sps:$4 sm:$0xff]  }
0x174c   : > { %v9478_v11 = vpack.c.bf16 %v9460_v31, %v9457_v43  ;;  %v14647_v31 = vld [vmem:[%s16967_s7] sm:$0xf] }
0x174d   : > { %v9475_v52 = vpack.c.bf16 %v9454_v26, %v9451_v3  ;;  %12745 = vmatpush3.bf16.msra.mxu1 %v14645_v42  ;;  %v17005_v26 = vld [vmem:[#allocation29_spill] sm:$0xff] }
0x174f   : > { %v13173_v9 = vpop.f32.mrb[124].mxu0  ;;  %13185 = vmatprep.mubr.msk.bf16.mxu0 %vm6217_vm9, %v9475_v52 }
0x1750   : > { %v9469_v38 = vmul.f32 %v13173_v9, %v16558_v57  ;;  %v9434_v51 = vpop.f32.mrb[125].mxu0  ;;  %13186 = vmatmul.mubr.msk.bf16.vlgmr.msra.gmra.mrb[128].mxu0 %vm6217_vm9, %v9478_v11  ;;  %v9938_v11 = vld [vmem:[%s17003_s0] sm:$0xf]  ;;  %s17008_s0 = sld [smem:[#allocation26_spill]] }
0x1751   : > { %v9463_v18 = vmul.f32 %v9434_v51, %v16554_v60  ;;  %v13174_v22 = vpop.f32.mrb[126].mxu0 }
0x1752   : > { %v9472_v54 = vmul.f32 %v13174_v22, %v16560_v59  ;;  %v9437_v41 = vpop.f32.mrb[127].mxu0  ;;  %v14649_v22 = vld [vmem:[%s14956_s26] sm:$0xff]  }
0x1753   : > { %v9466_v63 = vmul.f32 %v9437_v41, %v16556_v47  ;;  %v14651_v41 = vld [vmem:[%s14956_s26 + $0x10] sm:$0xff]  }
0x1754   : > { %v9484_v12 = vpack.c.bf16 %v9472_v54, %v9469_v38  ;;  %v9940_v38 = vsel %vm1391_vm0, %v9938_v11, 0  ;;  %v14650_v54 = vld [vmem:[%s14956_s26 + $0x8] sm:$0xff]  }
0x1755   : > { %v9481_v19 = vpack.c.bf16 %v9466_v63, %v9463_v18  ;;  %v14652_v63 = vld [vmem:[%s14956_s26 + $0x18] sm:$0xff]   ;;  %s17007_s26 = sld [smem:[#allocation24_spill]] }
0x1757   : > { %13189 = vmatprep.mubr.msk.bf16.mxu0 %vm6217_vm9, %v9481_v19 }
0x1758   : > { %13190 = vmatmul.mubr.msk.bf16.gmra.mrb[132].mxu0 %vm6217_vm9, %v9484_v12  ;;  %v16667_v12 = vld [vmem:[%s17006_s1] sm:$0xff]  }
0x1759   : > { %13201 = vmatprep.mubr.msk.bf16.mxu0 %vm14715_vm3, %v17002_v6  ;;  %13215 = vmatprep.subr.bf16.mxu1 %v16667_v12 }
0x1803   : > { %v12692_v57 = vpop.f32.mrb[216].mxu1 }
0x1804   : > { %v12693_v15 = vpop.f32.mrb[217].mxu1 }
0x1805   : > { %v12694_v36 = vadd.f32 %v12693_v15, %v12692_v57  ;;  %v12695_v53 = vpop.f32.mrb[218].mxu1 }
0x1806   : > { %v12696_v60 = vpop.f32.mrb[219].mxu1 }
0x1807   : > { %v12697_v21 = vadd.f32 %v12696_v60, %v12695_v53 }
0x180b   : > { %v12698_v32 = vpop.f32.mrb[220].mxu1 }
0x180c   : > { %v12699_v59 = vpop.f32.mrb[221].mxu1 }
0x180d   : > { %v12700_v14 = vadd.f32 %v12699_v59, %v12698_v32  ;;  %v12701_v4 = vpop.f32.mrb[222].mxu1 }
0x180e   : > { %v12702_v47 = vpop.f32.mrb[223].mxu1 }
0x180f   : > { %v12703_v25 = vadd.f32 %v12702_v47, %v12701_v4 }
0x1813   : > { %v12704_v0 = vpop.f32.mrb[224].mxu1 }
0x1814   : > { %v12705_v8 = vpop.f32.mrb[225].mxu1 }
0x1815   : > { %v12706_v58 = vadd.f32 %v12705_v8, %v12704_v0  ;;  %v12707_v48 = vpop.f32.mrb[226].mxu1 }
0x1816   : > { %v12708_v45 = vpop.f32.mrb[227].mxu1 }
0x1817   : > { %v12709_v10 = vadd.f32 %v12708_v45, %v12707_v48 }
0x181b   : > { %v12710_v49 = vpop.f32.mrb[228].mxu1 }
0x181c   : > { %v12711_v28 = vpop.f32.mrb[229].mxu1 }
0x181d   : > { %v12712_v33 = vadd.f32 %v12711_v28, %v12710_v49  ;;  %v12713_v23 = vpop.f32.mrb[230].mxu1 }
0x181e   : > { %v12714_v46 = vpop.f32.mrb[231].mxu1 }
0x181f   : > { %v12715_v62 = vadd.f32 %v12714_v46, %v12713_v23 }
0x1823   : > { %v13187_v30 = vpop.f32.mrb[128].mxu0 }
0x1824   : > { %v9772_v50 = vadd.f32 %v13187_v30, %v12700_v14  ;;  %v9763_v1 = vpop.f32.mrb[129].mxu0 }
0x1825   : > { %v9764_v7 = vadd.f32 %v12694_v36, %v9763_v1  ;;  %v13188_v20 = vpop.f32.mrb[130].mxu0 }
0x1826   : > { %v9775_v5 = vadd.f32 %v13188_v20, %v12703_v25  ;;  %v9766_v44 = vpop.f32.mrb[131].mxu0 }
0x1827   : > { %v9767_v35 = vadd.f32 %v12697_v21, %v9766_v44 }
0x1828   : > { %v9795_v29 = vpack.c.bf16 %v9775_v5, %v9772_v50 }
0x1829   : > { %v9794_v39 = vpack.c.bf16 %v9767_v35, %v9764_v7 }
0x182b   : > { %v13191_v40 = vpop.f32.mrb[132].mxu0  ;;  %13194 = vmatpush3.bf16.msra.mxu0 %v9794_v39 }
0x182c   : > { %v9788_v55 = vadd.f32 %v13191_v40, %v12712_v33  ;;  %v9779_v16 = vpop.f32.mrb[133].mxu0  ;;  %13195 = vmatprep.subr.bf16.mxu0 %v17002_v6 }
0x182d   : > { %v9780_v2 = vadd.f32 %v12706_v58, %v9779_v16  ;;  %v13192_v61 = vpop.f32.mrb[134].mxu0 }
0x182e   : > { %v9791_v34 = vadd.f32 %v13192_v61, %v12715_v62  ;;  %v9782_v43 = vpop.f32.mrb[135].mxu0 }
0x182f   : > { %v9783_v24 = vadd.f32 %v12709_v10, %v9782_v43  ;;  %13196 = vmatpush3.bf16.msra.mxu0 %v9795_v29 }
0x1830   : > { %v9797_v3 = vpack.c.bf16 %v9791_v34, %v9788_v55  ;;  %13197 = vmatprep.subr.bf16.mxu0 %v17002_v6 }
0x1831   : > { %v9796_v27 = vpack.c.bf16 %v9783_v24, %v9780_v2 }
0x1833   : > { %13198 = vmatpush3.bf16.msra.mxu0 %v9796_v27 }
0x1834   : > { %13199 = vmatprep.subr.bf16.mxu0 %v17002_v6 }
0x1837   : > { %13200 = vmatpush3.bf16.msra.mxu0 %v9797_v3 }
0x1838   : > { %9842 = vmatprep.subr.bf16.mxu0 %v14646_v56 }
0x183a   : > { %13202 = vmatmul.mubr.msk.bf16.vlgmr.msra.gmra.mrb[136].mxu0 %vm2777_vm4, %v14647_v31 }
0x183b   : > { %9843 = vmatpush1.bf16.msra.mxu0 %v14648_v13  ;;  %9874 = vmatprep.mubr.bf16.mxu0 %v16999_v37 }
0x183c   : > { %12087 = vmatprep.subr.msk.bf16.mxu0 %vm2844_vm5, %v17004_v17 }
0x183f   : > { %9845 = vmatpush1.bf16.msra.mxu0 %v17005_v26 }
0x1840   : > { %13406 = vmatprep.subr.msk.bf16.mxu0 %vm1391_vm0, %v9938_v11 }
0x190d   : > { %v9832_v52 = vpop.f32.mrb[136].mxu0 }
0x190e   : > { %v9838_v42 = vpack.c.bf16 %v9832_v52, %v9832_v52  ;;  %v13203_v9 = vpop.f32.mrb[137].mxu0 }
0x190f   : > { %v9835_v51 = vpop.f32.mrb[138].mxu0 }
0x1910   : > { %v13204_v18 = vpop.f32.mrb[139].mxu0  ;;  %12088 = vmatmul.mubr.msk.bf16.vlgmr.msra.gmra.mrb[140].mxu0 %vm2840_vm6, %v9838_v42 }
0x1911   : > { %13206 = vmatpush3.bf16.msra.mxu0 %v9940_v38  ;;  %13207 = vmatprep.mubr.msk.bf16.mxu0 %vm1378_vm1, %v14649_v22 }
0x1918   : > { %13208 = vmatmul.mubr.msk.bf16.vlgmr.msra.gmra.mrb[144].mxu0 %vm1378_vm1, %v14650_v54 }
0x1919   : > { %13211 = vmatprep.mubr.msk.bf16.mxu0 %vm1378_vm1, %v14651_v41  ;;  %v14117_v41 = vld [vmem:[%s17006_s1 + $0x8] sm:$0xff]  }
0x1920   : > { %13212 = vmatmul.mubr.msk.bf16.gmra.mrb[148].mxu0 %vm1378_vm1, %v14652_v63 }
0x19e3   : > { %v9876_v19 = vpop.f32.mrb[140].mxu0 }
0x19e4   : > { %v9883_v57 = vsub.f32 0.0, %v9876_v19  ;;  %v9878_v15 = vpop.f32.mrb[141].mxu0 }
0x19e5   : > { %v9884_v36 = vsub.f32 0.0, %v9878_v15  ;;  %v9880_v53 = vpop.f32.mrb[142].mxu0 }
0x19e6   : > { %v9885_v60 = vmin.f32 %v9883_v57, 80.0  ;;  %v9881_v21 = vpop.f32.mrb[143].mxu0 }
0x19e7   : > { %v9886_v32 = vmin.f32 %v9884_v36, 80.0  ;;  %v14118_v21 = vld [vmem:[%s17006_s1 + $0x10] sm:$0xff]  }
0x19e8   : > { %v9887_v59 = vmul.f32 1.442695, %v9885_v60 }
0x19e9   : > { %v9889_v14 = vmul.f32 1.442695, %v9886_v32 }
0x19ea   : > { %14483 = vpow2.f32 %v9887_v59 }
0x19eb   : > { %14485 = vpow2.f32 %v9889_v14  ;;  %v16670_v4 = vpop.f32.mrb[144].mxu0 }
0x19ec   : > { %v10009_v47 = vsub.f32 0.0, %v16670_v4  ;;  %v16673_v25 = vpop.f32.mrb[145].mxu0 }
0x19ed   : > { %v10007_v0 = vsub.f32 0.0, %v16673_v25  ;;  %v16676_v8 = vpop.f32.mrb[146].mxu0 }
0x19ee   : > { %v10017_v58 = vmin.f32 %v10009_v47, 80.0  ;;  %v10010_v48 = vsub.f32 0.0, %v16676_v8  ;;  %v16679_v45 = vpop.f32.mrb[147].mxu0 }
0x19ef   : > { %v10015_v10 = vmin.f32 %v10007_v0, 80.0  ;;  %v10008_v49 = vsub.f32 0.0, %v16679_v45 }
0x19f0   : > { %v10027_v28 = vmul.f32 1.442695, %v10017_v58  ;;  %v10018_v33 = vmin.f32 %v10010_v48, 80.0  ;;  %v14119_v48 = vld [vmem:[%s17006_s1 + $0x18] sm:$0xff]  }
0x19f1   : > { %v10023_v23 = vmul.f32 1.442695, %v10015_v10  ;;  %v10016_v46 = vmin.f32 %v10008_v49, 80.0 }
0x19f2   : > { %14487 = vpow2.f32 %v10027_v28  ;;  %v10029_v62 = vmul.f32 1.442695, %v10018_v33  ;;  %v14120_v33 = vld [vmem:[%s17006_s1 + $0x20] sm:$0xff]  }
0x19f3   : > { %14489 = vpow2.f32 %v10023_v23  ;;  %v10025_v30 = vmul.f32 1.442695, %v10016_v46  ;;  %v16682_v50 = vpop.f32.mrb[148].mxu0 }
0x19f4   : > { %v14484_v1 = vpop.eup %14483  ;;  %14491 = vpow2.f32 %v10029_v62  ;;  %v10013_v7 = vsub.f32 0.0, %v16682_v50  ;;  %v16685_v20 = vpop.f32.mrb[149].mxu0 }
0x19f5   : > { %v14486_v5 = vpop.eup %14485  ;;  %v9891_v44 = vadd.f32 1.0, %v14484_v1  ;;  %14493 = vpow2.f32 %v10025_v30  ;;  %v10011_v35 = vsub.f32 0.0, %v16685_v20  ;;  %v16688_v29 = vpop.f32.mrb[150].mxu0  ;;  %v14121_v30 = vld [vmem:[%s17006_s1 + $0x28] sm:$0xff]  }
0x19f6   : > { %v9892_v39 = vadd.f32 1.0, %v14486_v5  ;;  %v10021_v40 = vmin.f32 %v10013_v7, 80.0  ;;  %v10014_v55 = vsub.f32 0.0, %v16688_v29  ;;  %v16691_v16 = vpop.f32.mrb[151].mxu0 }
0x19f7   : > { %14495 = vrcp.f32 %v9891_v44  ;;  %v10019_v2 = vmin.f32 %v10011_v35, 80.0  ;;  %v10012_v61 = vsub.f32 0.0, %v16691_v16  ;;  %v14122_v44 = vld [vmem:[%s17006_s1 + $0x30] sm:$0xff]   ;;  %v14123_v35 = vld [vmem:[%s17006_s1 + $0x38] sm:$0xff]   ;;  %s17010_s1 = sld [smem:[#allocation25_spill]] }
0x19f8   : > { %14497 = vrcp.f32 %v9892_v39  ;;  %v10035_v34 = vmul.f32 1.442695, %v10021_v40  ;;  %v10022_v43 = vmin.f32 %v10014_v55, 80.0  ;;  %v14127_v39 = vld [vmem:[%s17007_s26 + $0x18] sm:$0xff]   ;;  %v14128_v40 = vld [vmem:[%s17007_s26 + $0x20] sm:$0xff]   ;;  %v14129_v55 = vld [vmem:[%s17007_s26 + $0x28] sm:$0xff]  }
0x19f9   : > { %v10031_v24 = vmul.f32 1.442695, %v10019_v2  ;;  %v10020_v3 = vmin.f32 %v10012_v61, 80.0  ;;  %v14131_v2 = vld [vmem:[%s17007_s26 + $0x38] sm:$0xff]   ;;  %v16719_v61 = vld [vmem:[%s17008_s0] sm:$0xff]   ;;  %s17009_s0 = sld [smem:[#allocation27_spill]] }
0x19fa   : > { %14499 = vpow2.f32 %v10035_v34  ;;  %v10037_v27 = vmul.f32 1.442695, %v10022_v43 }
0x19fb   : > { %14501 = vpow2.f32 %v10031_v24  ;;  %v10033_v56 = vmul.f32 1.442695, %v10020_v3 }
0x19fc   : > { %v14488_v31 = vpop.eup %14487  ;;  %14503 = vpow2.f32 %v10037_v27 }
0x19fd   : > { %v14490_v13 = vpop.eup %14489  ;;  %v10041_v17 = vadd.f32 1.0, %v14488_v31  ;;  %14505 = vpow2.f32 %v10033_v56 }
0x19fe   : > { %v14492_v26 = vpop.eup %14491  ;;  %v10039_v11 = vadd.f32 1.0, %v14490_v13 }
0x19ff   : > { %v14494_v52 = vpop.eup %14493  ;;  %14507 = vrcp.f32 %v10041_v17  ;;  %v10042_v42 = vadd.f32 1.0, %v14492_v26 }
0x1a00   : > { %14509 = vrcp.f32 %v10039_v11  ;;  %v10040_v9 = vadd.f32 1.0, %v14494_v52 }
0x1a01   : > { %v14496_v38 = vpop.eup %14495  ;;  %14511 = vrcp.f32 %v10042_v42 }
0x1a02   : > { %v14498_v51 = vpop.eup %14497  ;;  %14513 = vrcp.f32 %v10040_v9  ;;  %v9895_v54 = vpack.c.bf16 %v14496_v38, %v14496_v38 }
0x1a03   : > { %v9896_v18 = vpack.c.bf16 %v14498_v51, %v14498_v51 }
0x1a04   : > { %v14500_v22 = vpop.eup %14499 }
0x1a05   : > { %v14502_v63 = vpop.eup %14501  ;;  %v10045_v19 = vadd.f32 1.0, %v14500_v22  ;;  %9929 = vmatprep.mubr.bf16.mxu1 %v9896_v18 }
0x1a06   : > { %v14504_v57 = vpop.eup %14503  ;;  %v10043_v15 = vadd.f32 1.0, %v14502_v63  ;;  %9930 = vmatmul.mubr.bf16.vlgmr.msra.gmra.mrb[232].mxu1 %v9895_v54 }
0x1a07   : > { %v14506_v36 = vpop.eup %14505  ;;  %14515 = vrcp.f32 %v10045_v19  ;;  %v10046_v53 = vadd.f32 1.0, %v14504_v57  ;;  %13216 = vmatpush3.bf16.msra.mxu1 %v16667_v12 }
0x1a08   : > { %14517 = vrcp.f32 %v10043_v15  ;;  %v10044_v60 = vadd.f32 1.0, %v14506_v36  ;;  %13217 = vmatprep.subr.bf16.mxu1 %v14117_v41 }
0x1a09   : > { %v14508_v32 = vpop.eup %14507  ;;  %14519 = vrcp.f32 %v10046_v53 }
0x1a0a   : > { %v14510_v59 = vpop.eup %14509  ;;  %14521 = vrcp.f32 %v10044_v60  ;;  %v10057_v0 = vmul.f32 %v14508_v32, %v16670_v4 }
0x1a0b   : > { %v14512_v14 = vpop.eup %14511  ;;  %13218 = vmatpush3.bf16.msra.mxu1 %v14117_v41  ;;  %v10055_v12 = vmul.f32 %v14510_v59, %v16673_v25 }
0x1a0c   : > { %v14514_v47 = vpop.eup %14513  ;;  %v10058_v58 = vmul.f32 %v14512_v14, %v16676_v8  ;;  %13219 = vmatprep.subr.bf16.mxu1 %v14118_v21 }
0x1a0d   : > { %v10056_v10 = vmul.f32 %v14514_v47, %v16679_v45 }
0x1a0e   : > { %v10064_v49 = vpack.c.bf16 %v10058_v58, %v10057_v0 }
0x1a0f   : > { %v10063_v28 = vpack.c.bf16 %v10056_v10, %v10055_v12  ;;  %13220 = vmatpush3.bf16.msra.mxu1 %v14118_v21 }
0x1a10   : > { %13221 = vmatprep.subr.bf16.mxu1 %v14119_v48 }
0x1a11   : > { %v14516_v23 = vpop.eup %14515  ;;  %13231 = vmatprep.mubr.bf16.mxu1 %v10063_v28 }
0x1a12   : > { %v14518_v46 = vpop.eup %14517  ;;  %v10061_v8 = vmul.f32 %v14516_v23, %v16682_v50  ;;  %v14124_v50 = vld [vmem:[%s17007_s26] sm:$0xff]  }
0x1a13   : > { %v14520_v62 = vpop.eup %14519  ;;  %13222 = vmatpush3.bf16.msra.mxu1 %v14119_v48  ;;  %v10059_v45 = vmul.f32 %v14518_v46, %v16685_v20  ;;  %13239 = vmatprep.subr.bf16.mxu0 %v14124_v50  ;;  %v14125_v20 = vld [vmem:[%s17007_s26 + $0x8] sm:$0xff]  }
0x1a14   : > { %v14522_v4 = vpop.eup %14521  ;;  %v10062_v25 = vmul.f32 %v14520_v62, %v16688_v29  ;;  %13223 = vmatprep.subr.bf16.mxu1 %v14120_v33  ;;  %13240 = vmatpush3.bf16.msra.mxu0 %v14124_v50  ;;  %v14126_v29 = vld [vmem:[%s17007_s26 + $0x10] sm:$0xff]  }
0x1a15   : > { %v10060_v1 = vmul.f32 %v14522_v4, %v16691_v16  ;;  %13241 = vmatprep.subr.bf16.mxu0 %v14125_v20  ;;  %v14130_v16 = vld [vmem:[%s17007_s26 + $0x30] sm:$0xff]  }
0x1a16   : > { %v10066_v7 = vpack.c.bf16 %v10062_v25, %v10061_v8 }
0x1a17   : > { %v10065_v5 = vpack.c.bf16 %v10060_v1, %v10059_v45  ;;  %13224 = vmatpush3.bf16.msra.mxu1 %v14120_v33 }
0x1a18   : > { %13225 = vmatprep.subr.bf16.mxu1 %v14121_v30  ;;  %13242 = vmatpush3.bf16.msra.mxu0 %v14125_v20 }
0x1a19   : > { %13243 = vmatprep.subr.bf16.mxu0 %v14126_v29 }
0x1a1b   : > { %13226 = vmatpush3.bf16.msra.mxu1 %v14121_v30 }
0x1a1c   : > { %13227 = vmatprep.subr.bf16.mxu1 %v14122_v44  ;;  %13244 = vmatpush3.bf16.msra.mxu0 %v14126_v29 }
0x1a1d   : > { %13245 = vmatprep.subr.bf16.mxu0 %v14127_v39 }
0x1a1f   : > { %13228 = vmatpush3.bf16.msra.mxu1 %v14122_v44 }
0x1a20   : > { %13229 = vmatprep.subr.bf16.mxu1 %v14123_v35  ;;  %13246 = vmatpush3.bf16.msra.mxu0 %v14127_v39 }
0x1a21   : > { %13247 = vmatprep.subr.bf16.mxu0 %v14128_v40 }
0x1a23   : > { %13230 = vmatpush3.bf16.msra.mxu1 %v14123_v35 }
0x1a24   : > { %13248 = vmatpush3.bf16.msra.mxu0 %v14128_v40 }
0x1a25   : > { %13249 = vmatprep.subr.bf16.mxu0 %v14129_v55 }
0x1a26   : > { %13232 = vmatmul.mubr.bf16.vlgmr.msra.gmra.mrb[236].mxu1 %v10064_v49 }
0x1a27   : > { %13235 = vmatprep.mubr.bf16.mxu1 %v10065_v5 }
0x1a28   : > { %13250 = vmatpush3.bf16.msra.mxu0 %v14129_v55 }
0x1a29   : > { %13251 = vmatprep.subr.bf16.mxu0 %v14130_v16 }
0x1a2c   : > { %13252 = vmatpush3.bf16.msra.mxu0 %v14130_v16 }
0x1a2d   : > { %13253 = vmatprep.subr.bf16.mxu0 %v14131_v2 }
0x1a2e   : > { %13236 = vmatmul.mubr.bf16.gmra.mrb[240].mxu1 %v10066_v7 }
0x1a30   : > { %13254 = vmatpush3.bf16.msra.mxu0 %v14131_v2 }
0x1a31   : > { %13287 = vmatprep.subr.bf16.mxu0 %v16719_v61 }
0x1ad9   : > { %v12746_v34 = vpop.f32.mrb[232].mxu1 }
0x1ada   : > { %v12747_v43 = vpop.f32.mrb[233].mxu1 }
0x1adb   : > { %v16722_v24 = vadd.f32 %v12747_v43, %v12746_v34  ;;  %v12749_v3 = vpop.f32.mrb[234].mxu1 }
0x1adc   : > { %v12750_v27 = vpop.f32.mrb[235].mxu1 }
0x1add   : > { %v10651_v27 = vld [vmem:[%s17009_s0] sm:$0xf] }
0x1af9   : > { %v16724_v56 = vpop.f32.mrb[236].mxu1 }
0x1afa   : > { %v10198_v31 = vsub.f32 0.0, %v16724_v56  ;;  %v16727_v13 = vpop.f32.mrb[237].mxu1 }
0x1afb   : > { %v10196_v17 = vsub.f32 0.0, %v16727_v13  ;;  %v16730_v26 = vpop.f32.mrb[238].mxu1 }
0x1afc   : > { %v10206_v11 = vmin.f32 %v10198_v31, 80.0  ;;  %v10199_v52 = vsub.f32 0.0, %v16730_v26  ;;  %v16733_v42 = vpop.f32.mrb[239].mxu1 }
0x1afd   : > { %v10204_v9 = vmin.f32 %v10196_v17, 80.0  ;;  %v10197_v38 = vsub.f32 0.0, %v16733_v42 }
0x1afe   : > { %v10216_v51 = vmul.f32 1.442695, %v10206_v11  ;;  %v10207_v18 = vmin.f32 %v10199_v52, 80.0 }
0x1aff   : > { %v10212_v22 = vmul.f32 1.442695, %v10204_v9  ;;  %v10205_v54 = vmin.f32 %v10197_v38, 80.0  ;;  %v14653_v38 = vld [vmem:[%s14967_s28] sm:$0xff]  }
0x1b00   : > { %14523 = vpow2.f32 %v10216_v51  ;;  %v10218_v41 = vmul.f32 1.442695, %v10207_v18  ;;  %v16756_v51 = vpack.c.bf16 %v16722_v24, %v16722_v24  ;;  %v14654_v18 = vld [vmem:[%s14967_s28 + $0x8] sm:$0xff]  }
0x1b01   : > { %14525 = vpow2.f32 %v10212_v22  ;;  %v10214_v63 = vmul.f32 1.442695, %v10205_v54  ;;  %v16736_v19 = vpop.f32.mrb[240].mxu1  ;;  %v14655_v22 = vld [vmem:[%s14967_s28 + $0x10] sm:$0xff]   ;;  %v14656_v54 = vld [vmem:[%s14967_s28 + $0x18] sm:$0xff]   ;;  %v14134_v24 = vld [vmem:[%s17010_s1 + $0x8] sm:$0xff]  }
0x1b02   : > { %14527 = vpow2.f32 %v10218_v41  ;;  %v10202_v57 = vsub.f32 0.0, %v16736_v19  ;;  %v16739_v15 = vpop.f32.mrb[241].mxu1  ;;  %v14133_v41 = vld [vmem:[%s17010_s1] sm:$0xff]   ;;  %s11442_s28 = sshll.u32 %s17012_s23, 3 }
0x1b03   : > { %14529 = vpow2.f32 %v10214_v63  ;;  %v10200_v36 = vsub.f32 0.0, %v16739_v15  ;;  %v13238_v53 = vpop.f32.mrb[242].mxu1  ;;  %13263 = vmatprep.subr.bf16.mxu1 %v14133_v41  ;;  %v14135_v63 = vld [vmem:[%s17010_s1 + $0x10] sm:$0xff]   ;;  %s1329_s0 = scalar_lea.vmem %s14939_s21, %s11442_s28 }
0x1b04   : > { %v10210_v60 = vmin.f32 %v10202_v57, 80.0  ;;  %v10203_v21 = vsub.f32 0.0, %v13238_v53  ;;  %v10184_v32 = vpop.f32.mrb[243].mxu1  ;;  %13264 = vmatpush3.bf16.msra.mxu1 %v14133_v41  ;;  %v14137_v57 = vld [vmem:[%s17010_s1 + $0x20] sm:$0xff]  }
0x1b05   : > { %v10208_v59 = vmin.f32 %v10200_v36, 80.0  ;;  %v10201_v14 = vsub.f32 0.0, %v10184_v32  ;;  %13265 = vmatprep.subr.bf16.mxu1 %v14134_v24  ;;  %v14139_v36 = vld [vmem:[%s17010_s1 + $0x30] sm:$0xff]  }
0x1b06   : > { %v10224_v47 = vmul.f32 1.442695, %v10210_v60  ;;  %v10211_v0 = vmin.f32 %v10203_v21, 80.0 }
0x1b07   : > { %v10220_v58 = vmul.f32 1.442695, %v10208_v59  ;;  %v10209_v48 = vmin.f32 %v10201_v14, 80.0 }
0x1b08   : > { %14531 = vpow2.f32 %v10224_v47  ;;  %v10226_v12 = vmul.f32 1.442695, %v10211_v0  ;;  %13266 = vmatpush3.bf16.msra.mxu1 %v14134_v24 }
0x1b09   : > { %14533 = vpow2.f32 %v10220_v58  ;;  %v10222_v10 = vmul.f32 1.442695, %v10209_v48  ;;  %13267 = vmatprep.subr.bf16.mxu1 %v14135_v63 }
0x1b0a   : > { %v14524_v49 = vpop.eup %14523  ;;  %14535 = vpow2.f32 %v10226_v12 }
0x1b0b   : > { %v14526_v28 = vpop.eup %14525  ;;  %v10230_v33 = vadd.f32 1.0, %v14524_v49  ;;  %14537 = vpow2.f32 %v10222_v10 }
0x1b0c   : > { %v14528_v23 = vpop.eup %14527  ;;  %v10228_v46 = vadd.f32 1.0, %v14526_v28  ;;  %13268 = vmatpush3.bf16.msra.mxu1 %v14135_v63 }
0x1b0d   : > { %v14530_v62 = vpop.eup %14529  ;;  %14539 = vrcp.f32 %v10230_v33  ;;  %v10231_v4 = vadd.f32 1.0, %v14528_v23 }
0x1b0e   : > { %14541 = vrcp.f32 %v10228_v46  ;;  %v10229_v8 = vadd.f32 1.0, %v14530_v62 }
0x1b0f   : > { %14543 = vrcp.f32 %v10231_v4 }
0x1b10   : > { %14545 = vrcp.f32 %v10229_v8 }
0x1b12   : > { %v14532_v25 = vpop.eup %14531 }
0x1b13   : > { %v14534_v30 = vpop.eup %14533  ;;  %v10234_v45 = vadd.f32 1.0, %v14532_v25 }
0x1b14   : > { %v14536_v1 = vpop.eup %14535  ;;  %v10232_v7 = vadd.f32 1.0, %v14534_v30 }
0x1b15   : > { %v14538_v5 = vpop.eup %14537  ;;  %14547 = vrcp.f32 %v10234_v45  ;;  %v10235_v44 = vadd.f32 1.0, %v14536_v1 }
0x1b16   : > { %14549 = vrcp.f32 %v10232_v7  ;;  %v10233_v35 = vadd.f32 1.0, %v14538_v5 }
0x1b17   : > { %v14540_v50 = vpop.eup %14539  ;;  %14551 = vrcp.f32 %v10235_v44 }
0x1b18   : > { %v14542_v20 = vpop.eup %14541  ;;  %14553 = vrcp.f32 %v10233_v35  ;;  %v10246_v40 = vmul.f32 %v14540_v50, %v16724_v56 }
0x1b19   : > { %v14544_v29 = vpop.eup %14543  ;;  %v10244_v16 = vmul.f32 %v14542_v20, %v16727_v13 }
0x1b1a   : > { %v14546_v39 = vpop.eup %14545  ;;  %v10247_v55 = vmul.f32 %v14544_v29, %v16730_v26 }
0x1b1b   : > { %v10245_v2 = vmul.f32 %v14546_v39, %v16733_v42 }
0x1b1c   : > { %v10253_v34 = vpack.c.bf16 %v10247_v55, %v10246_v40 }
0x1b1d   : > { %v10252_v43 = vpack.c.bf16 %v10245_v2, %v10244_v16 }
0x1b1f   : > { %v14548_v3 = vpop.eup %14547  ;;  %13255 = vmatprep.mubr.bf16.mxu0 %v10252_v43 }
0x1b20   : > { %v14550_v31 = vpop.eup %14549  ;;  %13256 = vmatmul.mubr.bf16.vlgmr.msra.gmra.mrb[152].mxu0 %v10253_v34  ;;  %v10250_v56 = vmul.f32 %v14548_v3, %v16736_v19  ;;  %v14136_v19 = vld [vmem:[%s17010_s1 + $0x18] sm:$0xff]  }
0x1b21   : > { %v14552_v17 = vpop.eup %14551  ;;  %13288 = vmatpush3.bf16.msra.mxu0 %v16719_v61  ;;  %v10248_v13 = vmul.f32 %v14550_v31, %v16739_v15  ;;  %v10665_v61 = vsel %vm1391_vm0, %v10651_v27, 0  ;;  %13269 = vmatprep.subr.bf16.mxu1 %v14136_v19  ;;  %v14138_v15 = vld [vmem:[%s17010_s1 + $0x28] sm:$0xff]  }
0x1b22   : > { %v14554_v11 = vpop.eup %14553  ;;  %v10251_v26 = vmul.f32 %v14552_v17, %v13238_v53  ;;  %13407 = vmatprep.subr.msk.bf16.mxu0 %vm1391_vm0, %v10651_v27  ;;  %13270 = vmatpush3.bf16.msra.mxu1 %v14136_v19  ;;  %v14140_v53 = vld [vmem:[%s17010_s1 + $0x38] sm:$0xff]  }
0x1b23   : > { %v10249_v52 = vmul.f32 %v14554_v11, %v10184_v32  ;;  %13271 = vmatprep.subr.bf16.mxu1 %v14137_v57 }
0x1b24   : > { %v10255_v42 = vpack.c.bf16 %v10251_v26, %v10250_v56 }
0x1b25   : > { %v10254_v9 = vpack.c.bf16 %v10249_v52, %v10248_v13 }
0x1b26   : > { %13272 = vmatpush3.bf16.msra.mxu1 %v14137_v57 }
0x1b27   : > { %13259 = vmatprep.mubr.bf16.mxu0 %v10254_v9  ;;  %13273 = vmatprep.subr.bf16.mxu1 %v14138_v15 }
0x1b28   : > { %13260 = vmatmul.mubr.bf16.gmra.mrb[156].mxu0 %v10255_v42 }
0x1b29   : > { %13289 = vmatprep.mubr.msk.bf16.mxu0 %vm2055_vm2, %v14653_v38 }
0x1b2a   : > { %13274 = vmatpush3.bf16.msra.mxu1 %v14138_v15 }
0x1b2b   : > { %13275 = vmatprep.subr.bf16.mxu1 %v14139_v36 }
0x1b2e   : > { %13276 = vmatpush3.bf16.msra.mxu1 %v14139_v36 }
0x1b2f   : > { %13277 = vmatprep.subr.bf16.mxu1 %v14140_v53 }
0x1b30   : > { %13290 = vmatmul.mubr.msk.bf16.vlgmr.msra.gmra.mrb[160].mxu0 %vm2055_vm2, %v14654_v18 }
0x1b31   : > { %13298 = vmatpush3.bf16.msra.mxu0 %v10665_v61  ;;  %13293 = vmatprep.mubr.msk.bf16.mxu0 %vm2055_vm2, %v14655_v22 }
0x1b32   : > { %13408 = vmatprep.subr.msk.bf16.mxu0 %vm1391_vm0, %v16756_v51  ;;  %13278 = vmatpush3.bf16.msra.mxu1 %v14140_v53 }
0x1b38   : > { %13294 = vmatmul.mubr.msk.bf16.gmra.mrb[164].mxu0 %vm2055_vm2, %v14656_v54 }
0x1bf3   : > { %v16774_v60 = vpop.f32.mrb[152].mxu0 }
0x1bf4   : > { %v10387_v21 = vsub.f32 0.0, %v16774_v60  ;;  %v16777_v32 = vpop.f32.mrb[153].mxu0 }
0x1bf5   : > { %v10385_v59 = vsub.f32 0.0, %v16777_v32  ;;  %v16780_v14 = vpop.f32.mrb[154].mxu0 }
0x1bf6   : > { %v10395_v47 = vmin.f32 %v10387_v21, 80.0  ;;  %v10388_v0 = vsub.f32 0.0, %v16780_v14  ;;  %v16783_v58 = vpop.f32.mrb[155].mxu0 }
0x1bf7   : > { %v10393_v48 = vmin.f32 %v10385_v59, 80.0  ;;  %v10386_v12 = vsub.f32 0.0, %v16783_v58 }
0x1bf8   : > { %v10405_v10 = vmul.f32 1.442695, %v10395_v47  ;;  %v10396_v49 = vmin.f32 %v10388_v0, 80.0 }
0x1bf9   : > { %v10401_v28 = vmul.f32 1.442695, %v10393_v48  ;;  %v10394_v33 = vmin.f32 %v10386_v12, 80.0  ;;  %v14143_v48 = vld [vmem:[%s14924_s27 + $0x4] ss:$8 sps:$4 sm:$0xff]  }
0x1bfa   : > { %14555 = vpow2.f32 %v10405_v10  ;;  %v10407_v23 = vmul.f32 1.442695, %v10396_v49  ;;  %v14146_v12 = vld [vmem:[%s14924_s27 + $0x14] ss:$8 sps:$4 sm:$0xff]   ;;  %10840 = vmatprep.subr.bf16.mxu1 %v14143_v48 }
0x1bfb   : > { %14557 = vpow2.f32 %v10401_v28  ;;  %v10403_v46 = vmul.f32 1.442695, %v10394_v33  ;;  %v13261_v62 = vpop.f32.mrb[156].mxu0  ;;  %v14144_v28 = vld [vmem:[%s14924_s27 + $0x10] ss:$8 sps:$4 sm:$0xff]  }
0x1bfc   : > { %14559 = vpow2.f32 %v10407_v23  ;;  %v10391_v4 = vsub.f32 0.0, %v13261_v62  ;;  %v10370_v8 = vpop.f32.mrb[157].mxu0 }
0x1bfd   : > { %14561 = vpow2.f32 %v10403_v46  ;;  %v10389_v25 = vsub.f32 0.0, %v10370_v8  ;;  %v13262_v30 = vpop.f32.mrb[158].mxu0  ;;  %v14149_v46 = vld [vmem:[%s14924_s27 + $0x24] ss:$8 sps:$4 sm:$0xff]  }
0x1bfe   : > { %v10399_v45 = vmin.f32 %v10391_v4, 80.0  ;;  %v10392_v1 = vsub.f32 0.0, %v13262_v30  ;;  %v10373_v7 = vpop.f32.mrb[159].mxu0 }
0x1bff   : > { %v10397_v5 = vmin.f32 %v10389_v25, 80.0  ;;  %v10390_v44 = vsub.f32 0.0, %v10373_v7 }
0x1c00   : > { %v10413_v35 = vmul.f32 1.442695, %v10399_v45  ;;  %v10400_v50 = vmin.f32 %v10392_v1, 80.0  ;;  %v14150_v1 = vld [vmem:[%s14924_s27 + $0x30] ss:$8 sps:$4 sm:$0xff]  }
0x1c01   : > { %v10409_v20 = vmul.f32 1.442695, %v10397_v5  ;;  %v10398_v29 = vmin.f32 %v10390_v44, 80.0  ;;  %v14153_v5 = vld [vmem:[%s14924_s27 + $0x40] ss:$8 sps:$4 sm:$0xff]  }
0x1c02   : > { %14563 = vpow2.f32 %v10413_v35  ;;  %v10415_v39 = vmul.f32 1.442695, %v10400_v50  ;;  %v14158_v44 = vld [vmem:[%s14924_s27 + $0x54] ss:$8 sps:$4 sm:$0xff]   ;;  %v14156_v35 = vld [vmem:[%s14924_s27 + $0x50] ss:$8 sps:$4 sm:$0xff]  }
0x1c03   : > { %14565 = vpow2.f32 %v10409_v20  ;;  %v10411_v40 = vmul.f32 1.442695, %v10398_v29  ;;  %v16794_v10 = vpop.f32.mrb[160].mxu0 }
0x1c04   : > { %v14556_v55 = vpop.eup %14555  ;;  %14567 = vpow2.f32 %v10415_v39  ;;  %v16796_v49 = vpop.f32.mrb[161].mxu0 }
0x1c05   : > { %v14558_v16 = vpop.eup %14557  ;;  %v10419_v2 = vadd.f32 1.0, %v14556_v55  ;;  %14569 = vpow2.f32 %v10411_v40  ;;  %v16799_v33 = vpop.f32.mrb[162].mxu0 }
0x1c06   : > { %v14560_v34 = vpop.eup %14559  ;;  %v10417_v43 = vadd.f32 1.0, %v14558_v16  ;;  %v16801_v23 = vpop.f32.mrb[163].mxu0  ;;  %v10914_v16 = vsel %vm1391_vm0, %v16756_v51, 0  ;;  %v14658_v51 = vld [vmem:[%s14739_s17 + $0x8] sm:$0xff]  }
0x1c07   : > { %v14562_v3 = vpop.eup %14561  ;;  %14571 = vrcp.f32 %v10419_v2  ;;  %v10420_v27 = vadd.f32 1.0, %v14560_v34 }
0x1c08   : > { %14573 = vrcp.f32 %v10417_v43  ;;  %v10418_v31 = vadd.f32 1.0, %v14562_v3 }
0x1c09   : > { %14575 = vrcp.f32 %v10420_v27 }
0x1c0a   : > { %14577 = vrcp.f32 %v10418_v31 }
0x1c0c   : > { %v14564_v17 = vpop.eup %14563 }
0x1c0d   : > { %v14566_v11 = vpop.eup %14565  ;;  %v10423_v56 = vadd.f32 1.0, %v14564_v17  ;;  %v14657_v17 = vld [vmem:[%s14739_s17] sm:$0xff]  }
0x1c0e   : > { %v14568_v26 = vpop.eup %14567  ;;  %v10421_v13 = vadd.f32 1.0, %v14566_v11  ;;  %v14659_v11 = vld [vmem:[%s14739_s17 + $0x10] sm:$0xff]  }
0x1c0f   : > { %v14570_v52 = vpop.eup %14569  ;;  %14579 = vrcp.f32 %v10423_v56  ;;  %v10424_v42 = vadd.f32 1.0, %v14568_v26  ;;  %v14660_v56 = vld [vmem:[%s14739_s17 + $0x18] sm:$0xff]   ;;  %v14161_v26 = vld [vmem:[%s14924_s27 + $0x64] ss:$8 sps:$4 sm:$0xff]  }
0x1c10   : > { %14581 = vrcp.f32 %v10421_v13  ;;  %v10422_v9 = vadd.f32 1.0, %v14570_v52  ;;  %v14159_v13 = vld [vmem:[%s14924_s27 + $0x60] ss:$8 sps:$4 sm:$0xff]   ;;  %v14164_v52 = vld [vmem:[%s14924_s27 + $0x74] ss:$8 sps:$4 sm:$0xff]  }
0x1c11   : > { %v14572_v38 = vpop.eup %14571  ;;  %14583 = vrcp.f32 %v10424_v42  ;;  %v14162_v42 = vld [vmem:[%s14924_s27 + $0x70] ss:$8 sps:$4 sm:$0xff]  }
0x1c12   : > { %v14574_v61 = vpop.eup %14573  ;;  %14585 = vrcp.f32 %v10422_v9  ;;  %v10435_v54 = vmul.f32 %v14572_v38, %v16774_v60  ;;  %v14165_v9 = vld [vmem:[%s14929_s4] ss:$8 sps:$4 sm:$0xff]   ;;  %v14167_v38 = vld [vmem:[%s14929_s4 + $0x4] ss:$8 sps:$4 sm:$0xff]  }
0x1c13   : > { %v14576_v18 = vpop.eup %14575  ;;  %v10433_v24 = vmul.f32 %v14574_v61, %v16777_v32  ;;  %v10987_v61 = vld [vmem:[%s14929_s4 + $0x10] sm:$0x11] }
0x1c14   : > { %v14578_v22 = vpop.eup %14577  ;;  %v10436_v41 = vmul.f32 %v14576_v18, %v16780_v14  ;;  %v12149_v18 = vcombine.high %v10987_v61, %v10987_v61 }
0x1c15   : > { %v10434_v63 = vmul.f32 %v14578_v22, %v16783_v58  ;;  %v14141_v58 = vld [vmem:[%s14924_s27] ss:$8 sps:$4 sm:$0xff]   ;;  %v12148_v22 = vcombine.low %v10987_v61, %v10987_v61 }
0x1c16   : > { %v10442_v19 = vpack.c.bf16 %v10436_v41, %v10435_v54 }
0x1c17   : > { %v10441_v57 = vpack.c.bf16 %v10434_v63, %v10433_v24  ;;  %v11016_v54 = vsel %vm2844_vm5, %v12148_v22, 0 }
0x1c19   : > { %v14580_v15 = vpop.eup %14579  ;;  %13279 = vmatprep.mubr.bf16.mxu1 %v10441_v57 }
0x1c1a   : > { %v14582_v36 = vpop.eup %14581  ;;  %13280 = vmatmul.mubr.bf16.vlgmr.msra.gmra.mrb[244].mxu1 %v10442_v19  ;;  %v10439_v59 = vmul.f32 %v14580_v15, %v13261_v62  ;;  %v16804_v62 = vpop.f32.mrb[164].mxu0 }
0x1c1b   : > { %v14584_v53 = vpop.eup %14583  ;;  %v10437_v47 = vmul.f32 %v14582_v36, %v10370_v8  ;;  %10841 = vmatpush1.bf16.msra.mxu1 %v14141_v58  ;;  %v16806_v4 = vpop.f32.mrb[165].mxu0  ;;  %v14147_v8 = vld [vmem:[%s14924_s27 + $0x20] ss:$8 sps:$4 sm:$0xff]  }
0x1c1c   : > { %v14586_v21 = vpop.eup %14585  ;;  %v10440_v60 = vmul.f32 %v14584_v53, %v13262_v30  ;;  %10842 = vmatprep.subr.bf16.mxu1 %v14146_v12  ;;  %v16809_v25 = vpop.f32.mrb[166].mxu0  ;;  %v14152_v30 = vld [vmem:[%s14924_s27 + $0x34] ss:$8 sps:$4 sm:$0xff]  }
0x1c1d   : > { %v10438_v14 = vmul.f32 %v14586_v21, %v10373_v7  ;;  %v16812_v45 = vpop.f32.mrb[167].mxu0  ;;  %v14155_v7 = vld [vmem:[%s14924_s27 + $0x44] ss:$8 sps:$4 sm:$0xff]  }
0x1c1e   : > { %v10444_v0 = vpack.c.bf16 %v10440_v60, %v10439_v59  ;;  %v14170_v59 = vld [vmem:[%s14934_s29] sm:$0xff]  }
0x1c1f   : > { %v10443_v32 = vpack.c.bf16 %v10438_v14, %v10437_v47  ;;  %10843 = vmatpush1.bf16.msra.mxu1 %v14144_v28 }
0x1c20   : > { %10844 = vmatprep.subr.bf16.mxu1 %v14149_v46 }
0x1c21   : > { %13283 = vmatprep.mubr.bf16.mxu1 %v10443_v32  ;;  %v14171_v32 = vld [vmem:[%s14934_s29 + $0x8] sm:$0xff]  }
0x1c22   : > { %13284 = vmatmul.mubr.bf16.gmra.mrb[248].mxu1 %v10444_v0 }
0x1c23   : > { %10872 = vmatprep.mubr.bf16.mxu1 %v16999_v37  ;;  %10845 = vmatpush1.bf16.msra.mxu1 %v14147_v8 }
0x1c24   : > { %10846 = vmatprep.subr.bf16.mxu1 %v14152_v30 }
0x1c27   : > { %10847 = vmatpush1.bf16.msra.mxu1 %v14150_v1 }
0x1c28   : > { %10848 = vmatprep.subr.bf16.mxu1 %v14155_v7 }
0x1c2b   : > { %10849 = vmatpush1.bf16.msra.mxu1 %v14153_v5 }
0x1c2c   : > { %10850 = vmatprep.subr.bf16.mxu1 %v14158_v44 }
0x1c2f   : > { %10851 = vmatpush1.bf16.msra.mxu1 %v14156_v35 }
0x1c30   : > { %10852 = vmatprep.subr.bf16.mxu1 %v14161_v26 }
0x1c33   : > { %10853 = vmatpush1.bf16.msra.mxu1 %v14159_v13 }
0x1c34   : > { %10854 = vmatprep.subr.bf16.mxu1 %v14164_v52 }
0x1c37   : > { %10855 = vmatpush1.bf16.msra.mxu1 %v14162_v42 }
0x1c38   : > { %11202 = vmatprep.subr.bf16.mxu1 %v16999_v37 }
0x1ced   : > { %v13281_v50 = vpop.f32.mrb[244].mxu1 }
0x1cee   : > { %v10543_v20 = vpop.f32.mrb[245].mxu1 }
0x1cef   : > { %v13282_v29 = vpop.f32.mrb[246].mxu1 }
0x1cf0   : > { %v10648_v39 = vpack.c.bf16 %v13282_v29, %v13281_v50  ;;  %v10546_v40 = vpop.f32.mrb[247].mxu1  ;;  %v14173_v50 = vld [vmem:[%s14934_s29 + $0x18] sm:$0xff]   ;;  %v14175_v29 = vld [vmem:[%s14934_s29 + $0x28] sm:$0xff]  }
0x1cf1   : > { %v10647_v55 = vpack.c.bf16 %v10546_v40, %v10543_v20  ;;  %v14174_v20 = vld [vmem:[%s14934_s29 + $0x20] sm:$0xff]   ;;  %v14177_v40 = vld [vmem:[%s14934_s29 + $0x38] sm:$0xff]  }
0x1cf3   : > { %13299 = vmatprep.mubr.msk.bf16.mxu0 %vm1378_vm1, %v10647_v55  ;;  %v14178_v55 = vld [vmem:[%s14934_s29 + $0x40] sm:$0xff]  }
0x1cf4   : > { %13300 = vmatmul.mubr.msk.bf16.vlgmr.msra.gmra.mrb[168].mxu0 %vm1378_vm1, %v10648_v39  ;;  %v14176_v39 = vld [vmem:[%s14934_s29 + $0x30] sm:$0xff]  }
0x1cf5   : > { %13308 = vmatpush3.bf16.msra.mxu0 %v10914_v16  ;;  %v13285_v2 = vpop.f32.mrb[248].mxu1 }
0x1cf6   : > { %v10559_v34 = vpop.f32.mrb[249].mxu1  ;;  %11021 = vmatprep.subr.bf16.mxu0 %v14167_v38 }
0x1cf7   : > { %v13286_v43 = vpop.f32.mrb[250].mxu1 }
0x1cf8   : > { %v10650_v3 = vpack.c.bf16 %v13286_v43, %v13285_v2  ;;  %v10562_v27 = vpop.f32.mrb[251].mxu1 }
0x1cf9   : > { %v10649_v31 = vpack.c.bf16 %v10562_v27, %v10559_v34 }
0x1cfb   : > { %13303 = vmatprep.mubr.msk.bf16.mxu0 %vm1378_vm1, %v10649_v31 }
0x1cfc   : > { %13304 = vmatmul.mubr.msk.bf16.gmra.mrb[172].mxu0 %vm1378_vm1, %v10650_v3 }
0x1cfd   : > { %13309 = vmatprep.mubr.msk.bf16.mxu0 %vm1378_vm1, %v14657_v17 }
0x1d04   : > { %13310 = vmatmul.mubr.msk.bf16.vlgmr.msra.gmra.mrb[176].mxu0 %vm1378_vm1, %v14658_v51 }
0x1d05   : > { %13313 = vmatprep.mubr.msk.bf16.mxu0 %vm1378_vm1, %v14659_v11  ;;  %11022 = vmatpush1.bf16.msra.mxu0 %v14165_v9 }
0x1d06   : > { %12150 = vmatprep.subr.msk.bf16.mxu0 %vm2844_vm5, %v12149_v18 }
0x1d09   : > { %11024 = vmatpush1.bf16.msra.mxu0 %v11016_v54 }
0x1d0a   : > { %13317 = vmatprep.subr.bf16.mxu0 %v17002_v6 }
0x1d0c   : > { %13314 = vmatmul.mubr.msk.bf16.gmra.mrb[180].mxu0 %vm1378_vm1, %v14660_v56 }
0x1d0d   : > { %11053 = vmatprep.mubr.bf16.mxu0 %v16999_v37 }
0x1dc7   : > { %v13301_v41 = vpop.f32.mrb[168].mxu0 }
0x1dc8   : > { %v10734_v24 = vmul.f32 %v13301_v41, %v16794_v10  ;;  %v10701_v63 = vpop.f32.mrb[169].mxu0 }
0x1dc9   : > { %v10732_v19 = vmul.f32 %v10701_v63, %v16796_v49  ;;  %v13302_v57 = vpop.f32.mrb[170].mxu0 }
0x1dca   : > { %v10735_v15 = vmul.f32 %v13302_v57, %v16799_v33  ;;  %v10704_v36 = vpop.f32.mrb[171].mxu0  ;;  %v14172_v33 = vld [vmem:[%s14934_s29 + $0x10] sm:$0xff]  }
0x1dcb   : > { %v10733_v53 = vmul.f32 %v10704_v36, %v16801_v23 }
0x1dcc   : > { %v10741_v21 = vpack.c.bf16 %v10735_v15, %v10734_v24 }
0x1dcd   : > { %v10740_v60 = vpack.c.bf16 %v10733_v53, %v10732_v19 }
0x1dcf   : > { %v13305_v47 = vpop.f32.mrb[172].mxu0  ;;  %10873 = vmatmul.mubr.bf16.vlgmr.msra.gmra.mrb[252].mxu1 %v10740_v60 }
0x1dd0   : > { %v10738_v14 = vmul.f32 %v13305_v47, %v16804_v62  ;;  %v10717_v0 = vpop.f32.mrb[173].mxu0  ;;  %10882 = vmatprep.mubr.bf16.mxu1 %v16999_v37  ;;  %11203 = vmatpush1.bf16.msra.mxu1 %v14170_v59 }
0x1dd1   : > { %v10736_v58 = vmul.f32 %v10717_v0, %v16806_v4  ;;  %v13306_v48 = vpop.f32.mrb[174].mxu0  ;;  %11204 = vmatprep.subr.bf16.mxu1 %v16999_v37 }
0x1dd2   : > { %v10739_v12 = vmul.f32 %v13306_v48, %v16809_v25  ;;  %v10720_v10 = vpop.f32.mrb[175].mxu0 }
0x1dd3   : > { %v10737_v49 = vmul.f32 %v10720_v10, %v16812_v45 }
0x1dd4   : > { %v10743_v28 = vpack.c.bf16 %v10739_v12, %v10738_v14  ;;  %11205 = vmatpush1.bf16.msra.mxu1 %v14171_v32 }
0x1dd5   : > { %v10742_v23 = vpack.c.bf16 %v10737_v49, %v10736_v58  ;;  %11206 = vmatprep.subr.bf16.mxu1 %v16999_v37 }
0x1dd7   : > { %10883 = vmatmul.mubr.bf16.gmra.mrb[0].mxu1 %v10741_v21  ;;  %v13311_v46 = vpop.f32.mrb[176].mxu0 }
0x1dd8   : > { %v10950_v62 = vpop.f32.mrb[177].mxu0  ;;  %10892 = vmatprep.mubr.bf16.mxu1 %v16999_v37  ;;  %11207 = vmatpush1.bf16.msra.mxu1 %v14172_v33 }
0x1dd9   : > { %v13312_v4 = vpop.f32.mrb[178].mxu0  ;;  %11208 = vmatprep.subr.bf16.mxu1 %v16999_v37 }
0x1dda   : > { %v10982_v8 = vpack.c.bf16 %v13312_v4, %v13311_v46  ;;  %v10953_v25 = vpop.f32.mrb[179].mxu0 }
0x1ddb   : > { %v10981_v30 = vpack.c.bf16 %v10953_v25, %v10950_v62 }
0x1ddc   : > { %11209 = vmatpush1.bf16.msra.mxu1 %v14173_v50 }
0x1ddd   : > { %12151 = vmatmul.mubr.msk.bf16.vlgmr.msra.gmra.mrb[184].mxu0 %vm2840_vm6, %v10981_v30  ;;  %11210 = vmatprep.subr.bf16.mxu1 %v16999_v37 }
0x1dde   : > { %11063 = vmatprep.mubr.bf16.mxu0 %v16999_v37 }
0x1ddf   : > { %10893 = vmatmul.mubr.bf16.gmra.mrb[4].mxu1 %v10742_v23  ;;  %v13315_v45 = vpop.f32.mrb[180].mxu0 }
0x1de0   : > { %v10966_v1 = vpop.f32.mrb[181].mxu0  ;;  %10902 = vmatprep.mubr.bf16.mxu1 %v16999_v37  ;;  %11211 = vmatpush1.bf16.msra.mxu1 %v14174_v20 }
0x1de1   : > { %v13316_v7 = vpop.f32.mrb[182].mxu0  ;;  %11212 = vmatprep.subr.bf16.mxu1 %v16999_v37 }
0x1de2   : > { %v10984_v5 = vpack.c.bf16 %v13316_v7, %v13315_v45  ;;  %v10969_v44 = vpop.f32.mrb[183].mxu0 }
0x1de3   : > { %v10983_v35 = vpack.c.bf16 %v10969_v44, %v10966_v1 }
0x1de4   : > { %11213 = vmatpush1.bf16.msra.mxu1 %v14175_v29 }
0x1de5   : > { %12152 = vmatmul.mubr.msk.bf16.gmra.mrb[188].mxu0 %vm2840_vm6, %v10982_v8  ;;  %11214 = vmatprep.subr.bf16.mxu1 %v16999_v37 }
0x1de6   : > { %11073 = vmatprep.mubr.bf16.mxu0 %v16999_v37 }
0x1de7   : > { %10903 = vmatmul.mubr.bf16.gmra.mrb[8].mxu1 %v10743_v28 }
0x1de8   : > { %11215 = vmatpush1.bf16.msra.mxu1 %v14176_v39 }
0x1de9   : > { %11216 = vmatprep.subr.bf16.mxu1 %v16999_v37 }
0x1dec   : > { %11217 = vmatpush1.bf16.msra.mxu1 %v14177_v40 }
0x1ded   : > { %12153 = vmatmul.mubr.msk.bf16.gmra.mrb[192].mxu0 %vm2840_vm6, %v10983_v35  ;;  %11218 = vmatprep.subr.bf16.mxu1 %v16999_v37 }
0x1dee   : > { %11083 = vmatprep.mubr.bf16.mxu0 %v16999_v37 }
0x1df0   : > { %11219 = vmatpush1.bf16.msra.mxu1 %v14178_v55 }
0x1df5   : > { %12154 = vmatmul.mubr.msk.bf16.gmra.mrb[196].mxu0 %vm2840_vm6, %v10984_v5 }
0x1df6   : > { %13325 = vmatprep.mubr.msk.bf16.mxu0 %vm14715_vm3, %v17002_v6 }
0x1ea2   : > { %v10874_v16 = vpop.f32.mrb[252].mxu1 }
0x1ea3   : > { %v10876_v2 = vpop.f32.mrb[253].mxu1 }
0x1ea4   : > { %v10878_v34 = vpop.f32.mrb[254].mxu1 }
0x1ea5   : > { %v10880_v43 = vpop.f32.mrb[255].mxu1 }
0x1eaa   : > { %v10884_v3 = vpop.f32.mrb[0].mxu1 }
0x1eab   : > { %v10886_v27 = vpop.f32.mrb[1].mxu1 }
0x1eac   : > { %v10888_v31 = vpop.f32.mrb[2].mxu1 }
0x1ead   : > { %v10890_v17 = vpop.f32.mrb[3].mxu1 }
0x1eb0   : > { %v11055_v51 = vpop.f32.mrb[184].mxu0 }
0x1eb1   : > { %v11094_v11 = vmul.f32 %v11055_v51, %v10874_v16  ;;  %v11057_v56 = vpop.f32.mrb[185].mxu0 }
0x1eb2   : > { %v11095_v26 = vmul.f32 %v11057_v56, %v10876_v2  ;;  %v10894_v13 = vpop.f32.mrb[4].mxu1  ;;  %v11059_v52 = vpop.f32.mrb[186].mxu0 }
0x1eb3   : > { %v11096_v42 = vmul.f32 %v11059_v52, %v10878_v34  ;;  %v10896_v9 = vpop.f32.mrb[5].mxu1  ;;  %v11061_v38 = vpop.f32.mrb[187].mxu0  ;;  %v14661_v52 = vld [vmem:[%s16967_s7] sm:$0xf] }
0x1eb4   : > { %v11097_v37 = vmul.f32 %v11061_v38, %v10880_v43  ;;  %v10898_v61 = vpop.f32.mrb[6].mxu1 }
0x1eb5   : > { %v11110_v18 = vpack.c.bf16 %v11096_v42, %v11094_v11  ;;  %v10900_v22 = vpop.f32.mrb[7].mxu1 }
0x1eb6   : > { %v11111_v54 = vpack.c.bf16 %v11097_v37, %v11095_v26 }
0x1eb8   : > { %v11065_v41 = vpop.f32.mrb[188].mxu0  ;;  %12164 = vmatprep.mubr.msk.bf16.mxu1 %vm2055_vm2, %v11111_v54 }
0x1eb9   : > { %v11098_v24 = vmul.f32 %v11065_v41, %v10884_v3  ;;  %v11067_v63 = vpop.f32.mrb[189].mxu0  ;;  %11235 = vmatmul.mubr.bf16.vlgmr.msra.gmra.mrb[12].mxu1 %v11110_v18 }
0x1eba   : > { %v11099_v19 = vmul.f32 %v11067_v63, %v10886_v27  ;;  %v10904_v57 = vpop.f32.mrb[8].mxu1  ;;  %v11069_v15 = vpop.f32.mrb[190].mxu0 }
0x1ebb   : > { %v11100_v36 = vmul.f32 %v11069_v15, %v10888_v31  ;;  %v10906_v53 = vpop.f32.mrb[9].mxu1  ;;  %v11071_v21 = vpop.f32.mrb[191].mxu0 }
0x1ebc   : > { %v11101_v59 = vmul.f32 %v11071_v21, %v10890_v17  ;;  %v10908_v60 = vpop.f32.mrb[10].mxu1 }
0x1ebd   : > { %v11112_v47 = vpack.c.bf16 %v11100_v36, %v11098_v24  ;;  %v10910_v14 = vpop.f32.mrb[11].mxu1 }
0x1ebe   : > { %v11113_v0 = vpack.c.bf16 %v11101_v59, %v11099_v19 }
0x1ec0   : > { %v11075_v32 = vpop.f32.mrb[192].mxu0  ;;  %12165 = vmatprep.mubr.msk.bf16.mxu1 %vm2055_vm2, %v11113_v0 }
0x1ec1   : > { %v11102_v58 = vmul.f32 %v11075_v32, %v10894_v13  ;;  %v11077_v48 = vpop.f32.mrb[193].mxu0  ;;  %11243 = vmatmul.mubr.bf16.gmra.mrb[16].mxu1 %v11112_v47 }
0x1ec2   : > { %v11103_v12 = vmul.f32 %v11077_v48, %v10896_v9  ;;  %v11079_v10 = vpop.f32.mrb[194].mxu0 }
0x1ec3   : > { %v11104_v49 = vmul.f32 %v11079_v10, %v10898_v61  ;;  %v11081_v28 = vpop.f32.mrb[195].mxu0 }
0x1ec4   : > { %v11105_v33 = vmul.f32 %v11081_v28, %v10900_v22 }
0x1ec5   : > { %v11114_v23 = vpack.c.bf16 %v11104_v49, %v11102_v58 }
0x1ec6   : > { %v11115_v46 = vpack.c.bf16 %v11105_v33, %v11103_v12 }
0x1ec8   : > { %v11085_v62 = vpop.f32.mrb[196].mxu0  ;;  %12166 = vmatprep.mubr.msk.bf16.mxu1 %vm2055_vm2, %v11115_v46 }
0x1ec9   : > { %v11106_v4 = vmul.f32 %v11085_v62, %v10904_v57  ;;  %v11087_v8 = vpop.f32.mrb[197].mxu0  ;;  %11251 = vmatmul.mubr.bf16.gmra.mrb[20].mxu1 %v11114_v23 }
0x1eca   : > { %v11107_v25 = vmul.f32 %v11087_v8, %v10906_v53  ;;  %v11089_v30 = vpop.f32.mrb[198].mxu0 }
0x1ecb   : > { %v11108_v45 = vmul.f32 %v11089_v30, %v10908_v60  ;;  %v11091_v1 = vpop.f32.mrb[199].mxu0 }
0x1ecc   : > { %v11109_v7 = vmul.f32 %v11091_v1, %v10910_v14 }
0x1ecd   : > { %v11116_v5 = vpack.c.bf16 %v11108_v45, %v11106_v4 }
0x1ece   : > { %v11117_v44 = vpack.c.bf16 %v11109_v7, %v11107_v25 }
0x1ed0   : > { %12167 = vmatprep.mubr.msk.bf16.mxu1 %vm2055_vm2, %v11117_v44 }
0x1ed1   : > { %11259 = vmatmul.mubr.bf16.gmra.mrb[24].mxu1 %v11116_v5 }
0x1f8c   : > { %v11236_v35 = vpop.f32.mrb[12].mxu1 }
0x1f8d   : > { %v11238_v50 = vpop.f32.mrb[13].mxu1 }
0x1f8e   : > { %v11239_v20 = vpop.f32.mrb[14].mxu1 }
0x1f8f   : > { %v11267_v29 = vpack.c.bf16 %v11239_v20, %v11236_v35  ;;  %v11241_v39 = vpop.f32.mrb[15].mxu1 }
0x1f91   : > { %13318 = vmatpush3.bf16.msra.mxu0 %v11267_v29 }
0x1f92   : > { %13319 = vmatprep.subr.bf16.mxu0 %v17002_v6 }
0x1f94   : > { %v11244_v40 = vpop.f32.mrb[16].mxu1 }
0x1f95   : > { %v11246_v55 = vpop.f32.mrb[17].mxu1 }
0x1f96   : > { %v11247_v16 = vpop.f32.mrb[18].mxu1 }
0x1f97   : > { %v11268_v2 = vpack.c.bf16 %v11247_v16, %v11244_v40  ;;  %v11249_v34 = vpop.f32.mrb[19].mxu1 }
0x1f99   : > { %13320 = vmatpush3.bf16.msra.mxu0 %v11268_v2 }
0x1f9a   : > { %13321 = vmatprep.subr.bf16.mxu0 %v17002_v6 }
0x1f9c   : > { %v11252_v43 = vpop.f32.mrb[20].mxu1 }
0x1f9d   : > { %v11254_v3 = vpop.f32.mrb[21].mxu1 }
0x1f9e   : > { %v11255_v27 = vpop.f32.mrb[22].mxu1 }
0x1f9f   : > { %v11269_v31 = vpack.c.bf16 %v11255_v27, %v11252_v43  ;;  %v11257_v17 = vpop.f32.mrb[23].mxu1 }
0x1fa1   : > { %13322 = vmatpush3.bf16.msra.mxu0 %v11269_v31 }
0x1fa2   : > { %13323 = vmatprep.subr.bf16.mxu0 %v17002_v6 }
0x1fa4   : > { %v11260_v51 = vpop.f32.mrb[24].mxu1 }
0x1fa5   : > { %v11262_v11 = vpop.f32.mrb[25].mxu1 }
0x1fa6   : > { %v11263_v56 = vpop.f32.mrb[26].mxu1 }
0x1fa7   : > { %v11270_v26 = vpack.c.bf16 %v11263_v56, %v11260_v51  ;;  %v11265_v13 = vpop.f32.mrb[27].mxu1 }
0x1fa9   : > { %13324 = vmatpush3.bf16.msra.mxu0 %v11270_v26 }
0x1fac   : > { %13326 = vmatmul.mubr.msk.bf16.vlgmr.msra.gmra.mrb[200].mxu0 %vm2777_vm4, %v14661_v52 }
0x207f   : > { %v11305_v42 = vpop.f32.mrb[200].mxu0 }
0x2080   : > { %11311 = vst.msk [vmem:[%s1329_s0] sm:$0xff] %vm1378_vm1, %v11305_v42  ;;  %v13327_v9 = vpop.f32.mrb[201].mxu0 }
0x2081   : > { %v11308_v38 = vpop.f32.mrb[202].mxu0 }
0x2082   : > { %v13328_v37 = vpop.f32.mrb[203].mxu0 }
0x2083 PF: > { %s97_s22 = sadd.s32 1, %s14668_s22  }
0x2084   : > { %p94_p4 = scmp.ge.s32.totalorder %s97_s22, 4  }
0x2086   :  { %96 = sbr.rel (!%p94_p4) target bundleno = 83 (0x53), region = 271 }

</bundles_post_ra>
